<compile_context>
chip_gen: v7x
topology: tpu7x:2x2x1
jax: 0.10.0
libtpu: 0.0.40
codegen_flags: <defaults>
</compile_context>

<pallas_src>
import jax
import jax.numpy as jnp
from jax.experimental import pallas as pl
from jax.experimental.pallas import tpu as pltpu


# ----------------------------------------------------------------------------- fused kernel
def _fused_forward_kernel(x_ref, wc_ref, bc_ref, wp_ref, bp_ref,
                          w1_ref, b1_ref, w2_ref, b2_ref, o_ref, pad_ref):
    # x_ref:  (1, L_in, Cin)   one batch element (channels-last)
    # wc_ref: (5, Cin, 32)     first conv taps     bc_ref: (1, 32)
    # wp_ref: (5, 32, 32)      conv_pad taps       bp_ref: (1, 32)
    # w1_ref: (8, 32, 32)      dense1 pre-split    b1_ref: (1, 32)
    # w2_ref: (32, 32)         dense2 (in, out)    b2_ref: (1, 32)
    # o_ref:  (1, 1, 32)       output row
    # pad_ref: VMEM scratch (L_conv + 4, 32) used for in-kernel zero padding.
    f32 = jnp.float32
    K = wc_ref.shape[0]            # 5
    C = wp_ref.shape[2]            # 32
    assert K == 5, "module fixes kernel_size=5"

    x = x_ref[0]                   # (L_in, Cin)
    bc = bc_ref[...]               # (1, 32)
    bp = bp_ref[...]               # (1, 32)

    # ---- first conv: Conv1d(Cin, 32, k=5, s=1, p=0); K accumulated MXU dots.
    L0 = x.shape[0]
    Lc = L0 - K + 1
    h = jnp.dot(x[0:Lc, :], wc_ref[0], preferred_element_type=f32)
    for k in range(1, K):
        h = h + jnp.dot(x[k:k + Lc, :], wc_ref[k], preferred_element_type=f32)
    h = h + bc                     # residual = conv(x)   (no ReLU)

    def conv_pad2(t, relu):
        # Conv1d(32, 32, k=5, s=1, padding=2). Zero padding built in VMEM scratch:
        # rows [0:2) and [L+2:L+4) are the zero halo, rows [2:L+2) hold the activation.
        L = t.shape[0]
        pad_ref[0:2, :] = jnp.zeros((2, C), f32)
        pad_ref[2:L + 2, :] = t
        pad_ref[L + 2:L + 4, :] = jnp.zeros((2, C), f32)
        acc = jnp.dot(pad_ref[0:L, :], wp_ref[0], preferred_element_type=f32)
        for k in range(1, K):
            acc = acc + jnp.dot(pad_ref[k:k + L, :], wp_ref[k], preferred_element_type=f32)
        acc = acc + bp
        return jnp.maximum(acc, 0.0) if relu else acc

    def res_block(t):
        r = conv_pad2(t, relu=True)        # x = relu(conv_pad(residual))
        r = conv_pad2(r, relu=False)       # x = conv_pad(x)
        return jnp.maximum(r + t, 0.0)     # x += residual ; x = relu(x)

    def maxpool_k5s2(t):
        # MaxPool1d(kernel_size=5, stride=2): out[i] = max(t[2i .. 2i+4]).
        # Running max over contiguous shifted slices, then stride-2 subsample via a
        # one-hot selection matmul (avoids strided sublane loads / gathers).
        L = t.shape[0]
        L_out = (L - 5) // 2 + 1
        Lm = L - 4
        m = t[0:Lm, :]
        for k in range(1, 5):
            m = jnp.maximum(m, t[k:k + Lm, :])
        rows = jax.lax.broadcasted_iota(jnp.int32, (L_out, Lm), 0)
        cols = jax.lax.broadcasted_iota(jnp.int32, (L_out, Lm), 1)
        sel = (cols == 2 * rows).astype(f32)                # sel[i, 2i] = 1
        return jnp.dot(sel, m, preferred_element_type=f32)  # (L_out, C)

    # ---- residual blocks + pools (exactly the forward() sequence)
    h = res_block(h)
    h = maxpool_k5s2(h)
    h = res_block(h)
    h = maxpool_k5s2(h)
    h = res_block(h)
    h = maxpool_k5s2(h)
    h = res_block(h)
    h = maxpool_k5s2(h)            # (8, 32)

    # ---- dense head. PyTorch flattens NCW channel-major: flat[c*8 + l] = h[l, c].
    # dense1 weights were pre-split as w1[l, c, o] = W1[o, c*8 + l], so
    # dense1(flat) = sum_l h[l, :] @ w1[l]  (no in-kernel transpose/reshape needed).
    Lf = h.shape[0]
    assert Lf == w1_ref.shape[0], "pooled length must equal 8 (Linear(32*8, 32))"
    z = jnp.dot(h[0:1, :], w1_ref[0], preferred_element_type=f32)
    for l in range(1, Lf):
        z = z + jnp.dot(h[l:l + 1, :], w1_ref[l], preferred_element_type=f32)
    z = jnp.maximum(z + b1_ref[...], 0.0)                                   # relu(dense1)
    out = jnp.dot(z, w2_ref[...], preferred_element_type=f32) + b2_ref[...]  # dense2 (no relu)
    o_ref[0] = out.astype(o_ref.dtype)


# --------------------------------------------------------------------------- param prep
def prepare_params(p):
    """One-time conversion from PyTorch parameter layout to the kernel layout."""
    c = p["conv_w"].shape[0]                # 32 channels
    seq = p["d1_w"].shape[1] // c           # 8 positions after pooling
    return {
        "conv_w": jnp.transpose(p["conv_w"], (2, 1, 0)).astype(jnp.float32),   # (K, Cin, 32)
        "conv_b": p["conv_b"].reshape(1, -1).astype(jnp.float32),
        "convp_w": jnp.transpose(p["convp_w"], (2, 1, 0)).astype(jnp.float32),  # (K, 32, 32)
        "convp_b": p["convp_b"].reshape(1, -1).astype(jnp.float32),
        # dense1: W1 (out=32, in=c*seq) with in-index = c*seq + l  ->  (seq, c, out)
        "d1_w": jnp.transpose(p["d1_w"].reshape(-1, c, seq), (2, 1, 0)).astype(jnp.float32),
        "d1_b": p["d1_b"].reshape(1, -1).astype(jnp.float32),
        "d2_w": jnp.transpose(p["d2_w"], (1, 0)).astype(jnp.float32),            # (in, out)
        "d2_b": p["d2_b"].reshape(1, -1).astype(jnp.float32),
    }


# ------------------------------------------------------------------------- full forward
@jax.jit
def anomaly_classifier_forward(x_ncl, kp):
    """x_ncl: (B, Cin, L) float32 in PyTorch NCW layout; kp: prepare_params(...) output."""
    x = jnp.transpose(x_ncl, (0, 2, 1)).astype(jnp.float32)   # (B, L, Cin) channels-last
    B, L, Cin = x.shape
    K, Cin_w, C = kp["conv_w"].shape
    assert Cin_w == Cin, (Cin_w, Cin)

    # Static sanity check: 4 maxpools must end at length 8 for the 32*8 flatten.
    Lc = L - K + 1
    Lp = Lc
    for _ in range(4):
        Lp = (Lp - 5) // 2 + 1
    if Lp != 8:
        raise ValueError(f"input length {L} is incompatible with Linear(32*8, 32); "
                         f"need final pooled length 8 (e.g. L=177)")

    out3 = pl.pallas_call(
        _fused_forward_kernel,
        out_shape=jax.ShapeDtypeStruct((B, 1, C), jnp.float32),
        grid=(B,),
        in_specs=[
            pl.BlockSpec((1, L, Cin), lambda i: (i, 0, 0)),          # one batch element
            pl.BlockSpec((K, Cin, C), lambda i: (0, 0, 0)),          # conv taps
            pl.BlockSpec((1, C), lambda i: (0, 0)),
            pl.BlockSpec((K, C, C), lambda i: (0, 0, 0)),            # conv_pad taps
            pl.BlockSpec((1, C), lambda i: (0, 0)),
            pl.BlockSpec((8, C, C), lambda i: (0, 0, 0)),            # dense1 (pre-split)
            pl.BlockSpec((1, C), lambda i: (0, 0)),
            pl.BlockSpec((C, C), lambda i: (0, 0)),                  # dense2
            pl.BlockSpec((1, C), lambda i: (0, 0)),
        ],
        out_specs=pl.BlockSpec((1, 1, C), lambda i: (i, 0, 0)),
        scratch_shapes=[pltpu.VMEM((Lc + 4, C), jnp.float32)],       # in-kernel zero padding
        compiler_params=pltpu.CompilerParams(dimension_semantics=("parallel",)),
    )(x, kp["conv_w"], kp["conv_b"], kp["convp_w"], kp["convp_b"],
      kp["d1_w"], kp["d1_b"], kp["d2_w"], kp["d2_b"])
    return out3[:, 0, :]                                             # (B, 32)


if __name__ == "__main__":
    # L=177 is forced by the module: conv(k=5) -> 173, 4 maxpools -> 85 -> 41 -> 19 -> 8 = 32*8 flatten.
    B, Cin, L, num_classes = 2, 4, 177, 5

    key = jax.random.PRNGKey(0)
    ks = jax.random.split(key, 10)
    torch_params = {
        # PyTorch layouts: Conv1d.weight (Cout, Cin, K), Linear.weight (out, in).
        "conv_w": 0.10 * jax.random.normal(ks[0], (32, Cin, 5), jnp.float32),
        "conv_b": 0.10 * jax.random.normal(ks[1], (32,), jnp.float32),
        "convp_w": 0.10 * jax.random.normal(ks[2], (32, 32, 5), jnp.float32),
        "convp_b": 0.10 * jax.random.normal(ks[3], (32,), jnp.float32),
        "d1_w": 0.05 * jax.random.normal(ks[4], (32, 32 * 8), jnp.float32),
        "d1_b": 0.05 * jax.random.normal(ks[5], (32,), jnp.float32),
        "d2_w": 0.05 * jax.random.normal(ks[6], (32, 32), jnp.float32),
        "d2_b": 0.05 * jax.random.normal(ks[7], (32,), jnp.float32),
        # TODO(synk): drop_50 (Dropout) and dense_final are defined in __init__ but never used
        # in forward(); intentionally not implemented to match forward semantics exactly.
    }
    kparams = prepare_params(torch_params)        # one-time layout prep (outside the jitted path)

    x = jax.random.normal(ks[8], (B, Cin, L), jnp.float32)

    out = anomaly_classifier_forward(x, kparams)
    out = jax.block_until_ready(out)
    assert out.shape == (B, 32), out.shape
    assert bool(jnp.all(jnp.isfinite(out)))
    print("KERNEL_OK")
</pallas_src>

<mosaic_0001>
module attributes {stable_mosaic.version = 11 : i64} {
  func.func @_fused_forward_kernel(%arg0: i32, %arg1: memref<1x177x4xf32, #tpu.memory_space<vmem>>, %arg2: memref<5x4x32xf32, #tpu.memory_space<vmem>>, %arg3: memref<1x32xf32, #tpu.memory_space<vmem>>, %arg4: memref<5x32x32xf32, #tpu.memory_space<vmem>>, %arg5: memref<1x32xf32, #tpu.memory_space<vmem>>, %arg6: memref<8x32x32xf32, #tpu.memory_space<vmem>>, %arg7: memref<1x32xf32, #tpu.memory_space<vmem>>, %arg8: memref<32x32xf32, #tpu.memory_space<vmem>>, %arg9: memref<1x32xf32, #tpu.memory_space<vmem>>, %arg10: memref<1x1x32xf32, #tpu.memory_space<vmem>>, %arg11: memref<177x32xf32, #tpu.memory_space<vmem>>) attributes {dimension_semantics = [#tpu.dimension_semantics<parallel>], iteration_bounds = array<i64: 2>, scalar_prefetch = 0 : i64, scratch_operands = 1 : i64, tpu.core_type = #tpu.core_type<tc>, window_params = [{transform_indices = @transform_0, window_bounds = array<i64: 1, 177, 4>}, {pipeline_mode = #tpu.pipeline_mode<synchronous>, transform_indices = @transform_1, window_bounds = array<i64: 5, 4, 32>}, {pipeline_mode = #tpu.pipeline_mode<synchronous>, transform_indices = @transform_2, window_bounds = array<i64: 1, 32>}, {pipeline_mode = #tpu.pipeline_mode<synchronous>, transform_indices = @transform_3, window_bounds = array<i64: 5, 32, 32>}, {pipeline_mode = #tpu.pipeline_mode<synchronous>, transform_indices = @transform_4, window_bounds = array<i64: 1, 32>}, {pipeline_mode = #tpu.pipeline_mode<synchronous>, transform_indices = @transform_5, window_bounds = array<i64: 8, 32, 32>}, {pipeline_mode = #tpu.pipeline_mode<synchronous>, transform_indices = @transform_6, window_bounds = array<i64: 1, 32>}, {pipeline_mode = #tpu.pipeline_mode<synchronous>, transform_indices = @transform_7, window_bounds = array<i64: 32, 32>}, {pipeline_mode = #tpu.pipeline_mode<synchronous>, transform_indices = @transform_8, window_bounds = array<i64: 1, 32>}, {transform_indices = @transform_9, window_bounds = array<i64: 1, 1, 32>}]} {
    %c0 = arith.constant 0 : index
    %c0_0 = arith.constant 0 : index
    %c0_1 = arith.constant 0 : index
    %0 = vector.load %arg1[%c0, %c0_0, %c0_1] : memref<1x177x4xf32, #tpu.memory_space<vmem>>, vector<1x177x4xf32>
    %1 = vector.shape_cast %0 : vector<1x177x4xf32> to vector<177x4xf32>
    %c0_2 = arith.constant 0 : index
    %c0_3 = arith.constant 0 : index
    %2 = vector.load %arg3[%c0_2, %c0_3] : memref<1x32xf32, #tpu.memory_space<vmem>>, vector<1x32xf32>
    %c0_4 = arith.constant 0 : index
    %c0_5 = arith.constant 0 : index
    %3 = vector.load %arg5[%c0_4, %c0_5] : memref<1x32xf32, #tpu.memory_space<vmem>>, vector<1x32xf32>
    %4 = vector.extract_strided_slice %1 {offsets = [0, 0], sizes = [173, 4], strides = [1, 1]} : vector<177x4xf32> to vector<173x4xf32>
    %c0_6 = arith.constant 0 : index
    %c0_7 = arith.constant 0 : index
    %c0_8 = arith.constant 0 : index
    %5 = vector.load %arg2[%c0_6, %c0_7, %c0_8] : memref<5x4x32xf32, #tpu.memory_space<vmem>>, vector<1x4x32xf32>
    %6 = vector.shape_cast %5 : vector<1x4x32xf32> to vector<4x32xf32>
    %cst = arith.constant dense<0.000000e+00> : vector<173x32xf32>
    %7 = tpu.matmul %4, %6, %cst {dimension_numbers = #tpu.dot_dimension_numbers<[1], [0], [0], [1], [0, 0, 1, 1], [], []>} : vector<173x4xf32>, vector<4x32xf32>, vector<173x32xf32> -> vector<173x32xf32>
    %8 = vector.extract_strided_slice %1 {offsets = [1, 0], sizes = [173, 4], strides = [1, 1]} : vector<177x4xf32> to vector<173x4xf32>
    %c1 = arith.constant 1 : index
    %c0_9 = arith.constant 0 : index
    %c0_10 = arith.constant 0 : index
    %9 = vector.load %arg2[%c1, %c0_9, %c0_10] : memref<5x4x32xf32, #tpu.memory_space<vmem>>, vector<1x4x32xf32>
    %10 = vector.shape_cast %9 : vector<1x4x32xf32> to vector<4x32xf32>
    %cst_11 = arith.constant dense<0.000000e+00> : vector<173x32xf32>
    %11 = tpu.matmul %8, %10, %cst_11 {dimension_numbers = #tpu.dot_dimension_numbers<[1], [0], [0], [1], [0, 0, 1, 1], [], []>} : vector<173x4xf32>, vector<4x32xf32>, vector<173x32xf32> -> vector<173x32xf32>
    %12 = arith.addf %7, %11 : vector<173x32xf32>
    %13 = vector.extract_strided_slice %1 {offsets = [2, 0], sizes = [173, 4], strides = [1, 1]} : vector<177x4xf32> to vector<173x4xf32>
    %c2 = arith.constant 2 : index
    %c0_12 = arith.constant 0 : index
    %c0_13 = arith.constant 0 : index
    %14 = vector.load %arg2[%c2, %c0_12, %c0_13] : memref<5x4x32xf32, #tpu.memory_space<vmem>>, vector<1x4x32xf32>
    %15 = vector.shape_cast %14 : vector<1x4x32xf32> to vector<4x32xf32>
    %cst_14 = arith.constant dense<0.000000e+00> : vector<173x32xf32>
    %16 = tpu.matmul %13, %15, %cst_14 {dimension_numbers = #tpu.dot_dimension_numbers<[1], [0], [0], [1], [0, 0, 1, 1], [], []>} : vector<173x4xf32>, vector<4x32xf32>, vector<173x32xf32> -> vector<173x32xf32>
    %17 = arith.addf %12, %16 : vector<173x32xf32>
    %18 = vector.extract_strided_slice %1 {offsets = [3, 0], sizes = [173, 4], strides = [1, 1]} : vector<177x4xf32> to vector<173x4xf32>
    %c3 = arith.constant 3 : index
    %c0_15 = arith.constant 0 : index
    %c0_16 = arith.constant 0 : index
    %19 = vector.load %arg2[%c3, %c0_15, %c0_16] : memref<5x4x32xf32, #tpu.memory_space<vmem>>, vector<1x4x32xf32>
    %20 = vector.shape_cast %19 : vector<1x4x32xf32> to vector<4x32xf32>
    %cst_17 = arith.constant dense<0.000000e+00> : vector<173x32xf32>
    %21 = tpu.matmul %18, %20, %cst_17 {dimension_numbers = #tpu.dot_dimension_numbers<[1], [0], [0], [1], [0, 0, 1, 1], [], []>} : vector<173x4xf32>, vector<4x32xf32>, vector<173x32xf32> -> vector<173x32xf32>
    %22 = arith.addf %17, %21 : vector<173x32xf32>
    %23 = vector.extract_strided_slice %1 {offsets = [4, 0], sizes = [173, 4], strides = [1, 1]} : vector<177x4xf32> to vector<173x4xf32>
    %c4 = arith.constant 4 : index
    %c0_18 = arith.constant 0 : index
    %c0_19 = arith.constant 0 : index
    %24 = vector.load %arg2[%c4, %c0_18, %c0_19] : memref<5x4x32xf32, #tpu.memory_space<vmem>>, vector<1x4x32xf32>
    %25 = vector.shape_cast %24 : vector<1x4x32xf32> to vector<4x32xf32>
    %cst_20 = arith.constant dense<0.000000e+00> : vector<173x32xf32>
    %26 = tpu.matmul %23, %25, %cst_20 {dimension_numbers = #tpu.dot_dimension_numbers<[1], [0], [0], [1], [0, 0, 1, 1], [], []>} : vector<173x4xf32>, vector<4x32xf32>, vector<173x32xf32> -> vector<173x32xf32>
    %27 = arith.addf %22, %26 : vector<173x32xf32>
    %28 = vector.broadcast %2 : vector<1x32xf32> to vector<173x32xf32>
    %29 = arith.addf %27, %28 : vector<173x32xf32>
    %cst_21 = arith.constant 0.000000e+00 : f32
    %30 = vector.broadcast %cst_21 : f32 to vector<2x32xf32>
    %c0_22 = arith.constant 0 : index
    %c0_23 = arith.constant 0 : index
    %31 = vector.load %arg11[%c0_22, %c0_23] : memref<177x32xf32, #tpu.memory_space<vmem>>, vector<2x32xf32>
    tpu.vector_store %arg11[%c0_22, %c0_23], %30 {strides = array<i32>} : memref<177x32xf32, #tpu.memory_space<vmem>>, vector<2x32xf32>,
    %c2_24 = arith.constant 2 : index
    %c0_25 = arith.constant 0 : index
    %32 = vector.load %arg11[%c2_24, %c0_25] : memref<177x32xf32, #tpu.memory_space<vmem>>, vector<173x32xf32>
    tpu.vector_store %arg11[%c2_24, %c0_25], %29 {strides = array<i32>} : memref<177x32xf32, #tpu.memory_space<vmem>>, vector<173x32xf32>,
    %cst_26 = arith.constant 0.000000e+00 : f32
    %33 = vector.broadcast %cst_26 : f32 to vector<2x32xf32>
    %c175 = arith.constant 175 : index
    %c0_27 = arith.constant 0 : index
    %34 = vector.load %arg11[%c175, %c0_27] : memref<177x32xf32, #tpu.memory_space<vmem>>, vector<2x32xf32>
    tpu.vector_store %arg11[%c175, %c0_27], %33 {strides = array<i32>} : memref<177x32xf32, #tpu.memory_space<vmem>>, vector<2x32xf32>,
    %c0_28 = arith.constant 0 : index
    %c0_29 = arith.constant 0 : index
    %35 = vector.load %arg11[%c0_28, %c0_29] : memref<177x32xf32, #tpu.memory_space<vmem>>, vector<173x32xf32>
    %c0_30 = arith.constant 0 : index
    %c0_31 = arith.constant 0 : index
    %c0_32 = arith.constant 0 : index
    %36 = vector.load %arg4[%c0_30, %c0_31, %c0_32] : memref<5x32x32xf32, #tpu.memory_space<vmem>>, vector<1x32x32xf32>
    %37 = vector.shape_cast %36 : vector<1x32x32xf32> to vector<32x32xf32>
    %cst_33 = arith.constant dense<0.000000e+00> : vector<173x32xf32>
    %38 = tpu.matmul %35, %37, %cst_33 {dimension_numbers = #tpu.dot_dimension_numbers<[1], [0], [0], [1], [0, 0, 1, 1], [], []>} : vector<173x32xf32>, vector<32x32xf32>, vector<173x32xf32> -> vector<173x32xf32>
    %c1_34 = arith.constant 1 : index
    %c0_35 = arith.constant 0 : index
    %39 = vector.load %arg11[%c1_34, %c0_35] : memref<177x32xf32, #tpu.memory_space<vmem>>, vector<173x32xf32>
    %c1_36 = arith.constant 1 : index
    %c0_37 = arith.constant 0 : index
    %c0_38 = arith.constant 0 : index
    %40 = vector.load %arg4[%c1_36, %c0_37, %c0_38] : memref<5x32x32xf32, #tpu.memory_space<vmem>>, vector<1x32x32xf32>
    %41 = vector.shape_cast %40 : vector<1x32x32xf32> to vector<32x32xf32>
    %cst_39 = arith.constant dense<0.000000e+00> : vector<173x32xf32>
    %42 = tpu.matmul %39, %41, %cst_39 {dimension_numbers = #tpu.dot_dimension_numbers<[1], [0], [0], [1], [0, 0, 1, 1], [], []>} : vector<173x32xf32>, vector<32x32xf32>, vector<173x32xf32> -> vector<173x32xf32>
    %43 = arith.addf %38, %42 : vector<173x32xf32>
    %c2_40 = arith.constant 2 : index
    %c0_41 = arith.constant 0 : index
    %44 = vector.load %arg11[%c2_40, %c0_41] : memref<177x32xf32, #tpu.memory_space<vmem>>, vector<173x32xf32>
    %c2_42 = arith.constant 2 : index
    %c0_43 = arith.constant 0 : index
    %c0_44 = arith.constant 0 : index
    %45 = vector.load %arg4[%c2_42, %c0_43, %c0_44] : memref<5x32x32xf32, #tpu.memory_space<vmem>>, vector<1x32x32xf32>
    %46 = vector.shape_cast %45 : vector<1x32x32xf32> to vector<32x32xf32>
    %cst_45 = arith.constant dense<0.000000e+00> : vector<173x32xf32>
    %47 = tpu.matmul %44, %46, %cst_45 {dimension_numbers = #tpu.dot_dimension_numbers<[1], [0], [0], [1], [0, 0, 1, 1], [], []>} : vector<173x32xf32>, vector<32x32xf32>, vector<173x32xf32> -> vector<173x32xf32>
    %48 = arith.addf %43, %47 : vector<173x32xf32>
    %c3_46 = arith.constant 3 : index
    %c0_47 = arith.constant 0 : index
    %49 = vector.load %arg11[%c3_46, %c0_47] : memref<177x32xf32, #tpu.memory_space<vmem>>, vector<173x32xf32>
    %c3_48 = arith.constant 3 : index
    %c0_49 = arith.constant 0 : index
    %c0_50 = arith.constant 0 : index
    %50 = vector.load %arg4[%c3_48, %c0_49, %c0_50] : memref<5x32x32xf32, #tpu.memory_space<vmem>>, vector<1x32x32xf32>
    %51 = vector.shape_cast %50 : vector<1x32x32xf32> to vector<32x32xf32>
    %cst_51 = arith.constant dense<0.000000e+00> : vector<173x32xf32>
    %52 = tpu.matmul %49, %51, %cst_51 {dimension_numbers = #tpu.dot_dimension_numbers<[1], [0], [0], [1], [0, 0, 1, 1], [], []>} : vector<173x32xf32>, vector<32x32xf32>, vector<173x32xf32> -> vector<173x32xf32>
    %53 = arith.addf %48, %52 : vector<173x32xf32>
    %c4_52 = arith.constant 4 : index
    %c0_53 = arith.constant 0 : index
    %54 = vector.load %arg11[%c4_52, %c0_53] : memref<177x32xf32, #tpu.memory_space<vmem>>, vector<173x32xf32>
    %c4_54 = arith.constant 4 : index
    %c0_55 = arith.constant 0 : index
    %c0_56 = arith.constant 0 : index
    %55 = vector.load %arg4[%c4_54, %c0_55, %c0_56] : memref<5x32x32xf32, #tpu.memory_space<vmem>>, vector<1x32x32xf32>
    %56 = vector.shape_cast %55 : vector<1x32x32xf32> to vector<32x32xf32>
    %cst_57 = arith.constant dense<0.000000e+00> : vector<173x32xf32>
    %57 = tpu.matmul %54, %56, %cst_57 {dimension_numbers = #tpu.dot_dimension_numbers<[1], [0], [0], [1], [0, 0, 1, 1], [], []>} : vector<173x32xf32>, vector<32x32xf32>, vector<173x32xf32> -> vector<173x32xf32>
    %58 = arith.addf %53, %57 : vector<173x32xf32>
    %59 = vector.broadcast %3 : vector<1x32xf32> to vector<173x32xf32>
    %60 = arith.addf %58, %59 : vector<173x32xf32>
    %cst_58 = arith.constant 0.000000e+00 : f32
    %61 = vector.broadcast %cst_58 : f32 to vector<173x32xf32>
    %62 = arith.maximumf %60, %61 : vector<173x32xf32>
    %cst_59 = arith.constant 0.000000e+00 : f32
    %63 = vector.broadcast %cst_59 : f32 to vector<2x32xf32>
    %c0_60 = arith.constant 0 : index
    %c0_61 = arith.constant 0 : index
    %64 = vector.load %arg11[%c0_60, %c0_61] : memref<177x32xf32, #tpu.memory_space<vmem>>, vector<2x32xf32>
    tpu.vector_store %arg11[%c0_60, %c0_61], %63 {strides = array<i32>} : memref<177x32xf32, #tpu.memory_space<vmem>>, vector<2x32xf32>,
    %c2_62 = arith.constant 2 : index
    %c0_63 = arith.constant 0 : index
    %65 = vector.load %arg11[%c2_62, %c0_63] : memref<177x32xf32, #tpu.memory_space<vmem>>, vector<173x32xf32>
    tpu.vector_store %arg11[%c2_62, %c0_63], %62 {strides = array<i32>} : memref<177x32xf32, #tpu.memory_space<vmem>>, vector<173x32xf32>,
    %cst_64 = arith.constant 0.000000e+00 : f32
    %66 = vector.broadcast %cst_64 : f32 to vector<2x32xf32>
    %c175_65 = arith.constant 175 : index
    %c0_66 = arith.constant 0 : index
    %67 = vector.load %arg11[%c175_65, %c0_66] : memref<177x32xf32, #tpu.memory_space<vmem>>, vector<2x32xf32>
    tpu.vector_store %arg11[%c175_65, %c0_66], %66 {strides = array<i32>} : memref<177x32xf32, #tpu.memory_space<vmem>>, vector<2x32xf32>,
    %c0_67 = arith.constant 0 : index
    %c0_68 = arith.constant 0 : index
    %68 = vector.load %arg11[%c0_67, %c0_68] : memref<177x32xf32, #tpu.memory_space<vmem>>, vector<173x32xf32>
    %c0_69 = arith.constant 0 : index
    %c0_70 = arith.constant 0 : index
    %c0_71 = arith.constant 0 : index
    %69 = vector.load %arg4[%c0_69, %c0_70, %c0_71] : memref<5x32x32xf32, #tpu.memory_space<vmem>>, vector<1x32x32xf32>
    %70 = vector.shape_cast %69 : vector<1x32x32xf32> to vector<32x32xf32>
    %cst_72 = arith.constant dense<0.000000e+00> : vector<173x32xf32>
    %71 = tpu.matmul %68, %70, %cst_72 {dimension_numbers = #tpu.dot_dimension_numbers<[1], [0], [0], [1], [0, 0, 1, 1], [], []>} : vector<173x32xf32>, vector<32x32xf32>, vector<173x32xf32> -> vector<173x32xf32>
    %c1_73 = arith.constant 1 : index
    %c0_74 = arith.constant 0 : index
    %72 = vector.load %arg11[%c1_73, %c0_74] : memref<177x32xf32, #tpu.memory_space<vmem>>, vector<173x32xf32>
    %c1_75 = arith.constant 1 : index
    %c0_76 = arith.constant 0 : index
    %c0_77 = arith.constant 0 : index
    %73 = vector.load %arg4[%c1_75, %c0_76, %c0_77] : memref<5x32x32xf32, #tpu.memory_space<vmem>>, vector<1x32x32xf32>
    %74 = vector.shape_cast %73 : vector<1x32x32xf32> to vector<32x32xf32>
    %cst_78 = arith.constant dense<0.000000e+00> : vector<173x32xf32>
    %75 = tpu.matmul %72, %74, %cst_78 {dimension_numbers = #tpu.dot_dimension_numbers<[1], [0], [0], [1], [0, 0, 1, 1], [], []>} : vector<173x32xf32>, vector<32x32xf32>, vector<173x32xf32> -> vector<173x32xf32>
    %76 = arith.addf %71, %75 : vector<173x32xf32>
    %c2_79 = arith.constant 2 : index
    %c0_80 = arith.constant 0 : index
    %77 = vector.load %arg11[%c2_79, %c0_80] : memref<177x32xf32, #tpu.memory_space<vmem>>, vector<173x32xf32>
    %c2_81 = arith.constant 2 : index
    %c0_82 = arith.constant 0 : index
    %c0_83 = arith.constant 0 : index
    %78 = vector.load %arg4[%c2_81, %c0_82, %c0_83] : memref<5x32x32xf32, #tpu.memory_space<vmem>>, vector<1x32x32xf32>
    %79 = vector.shape_cast %78 : vector<1x32x32xf32> to vector<32x32xf32>
    %cst_84 = arith.constant dense<0.000000e+00> : vector<173x32xf32>
    %80 = tpu.matmul %77, %79, %cst_84 {dimension_numbers = #tpu.dot_dimension_numbers<[1], [0], [0], [1], [0, 0, 1, 1], [], []>} : vector<173x32xf32>, vector<32x32xf32>, vector<173x32xf32> -> vector<173x32xf32>
    %81 = arith.addf %76, %80 : vector<173x32xf32>
    %c3_85 = arith.constant 3 : index
    %c0_86 = arith.constant 0 : index
    %82 = vector.load %arg11[%c3_85, %c0_86] : memref<177x32xf32, #tpu.memory_space<vmem>>, vector<173x32xf32>
    %c3_87 = arith.constant 3 : index
    %c0_88 = arith.constant 0 : index
    %c0_89 = arith.constant 0 : index
    %83 = vector.load %arg4[%c3_87, %c0_88, %c0_89] : memref<5x32x32xf32, #tpu.memory_space<vmem>>, vector<1x32x32xf32>
    %84 = vector.shape_cast %83 : vector<1x32x32xf32> to vector<32x32xf32>
    %cst_90 = arith.constant dense<0.000000e+00> : vector<173x32xf32>
    %85 = tpu.matmul %82, %84, %cst_90 {dimension_numbers = #tpu.dot_dimension_numbers<[1], [0], [0], [1], [0, 0, 1, 1], [], []>} : vector<173x32xf32>, vector<32x32xf32>, vector<173x32xf32> -> vector<173x32xf32>
    %86 = arith.addf %81, %85 : vector<173x32xf32>
    %c4_91 = arith.constant 4 : index
    %c0_92 = arith.constant 0 : index
    %87 = vector.load %arg11[%c4_91, %c0_92] : memref<177x32xf32, #tpu.memory_space<vmem>>, vector<173x32xf32>
    %c4_93 = arith.constant 4 : index
    %c0_94 = arith.constant 0 : index
    %c0_95 = arith.constant 0 : index
    %88 = vector.load %arg4[%c4_93, %c0_94, %c0_95] : memref<5x32x32xf32, #tpu.memory_space<vmem>>, vector<1x32x32xf32>
    %89 = vector.shape_cast %88 : vector<1x32x32xf32> to vector<32x32xf32>
    %cst_96 = arith.constant dense<0.000000e+00> : vector<173x32xf32>
    %90 = tpu.matmul %87, %89, %cst_96 {dimension_numbers = #tpu.dot_dimension_numbers<[1], [0], [0], [1], [0, 0, 1, 1], [], []>} : vector<173x32xf32>, vector<32x32xf32>, vector<173x32xf32> -> vector<173x32xf32>
    %91 = arith.addf %86, %90 : vector<173x32xf32>
    %92 = vector.broadcast %3 : vector<1x32xf32> to vector<173x32xf32>
    %93 = arith.addf %91, %92 : vector<173x32xf32>
    %94 = arith.addf %93, %29 : vector<173x32xf32>
    %cst_97 = arith.constant 0.000000e+00 : f32
    %95 = vector.broadcast %cst_97 : f32 to vector<173x32xf32>
    %96 = arith.maximumf %94, %95 : vector<173x32xf32>
    %97 = vector.extract_strided_slice %96 {offsets = [0, 0], sizes = [169, 32], strides = [1, 1]} : vector<173x32xf32> to vector<169x32xf32>
    %98 = vector.extract_strided_slice %96 {offsets = [1, 0], sizes = [169, 32], strides = [1, 1]} : vector<173x32xf32> to vector<169x32xf32>
    %99 = arith.maximumf %97, %98 : vector<169x32xf32>
    %100 = vector.extract_strided_slice %96 {offsets = [2, 0], sizes = [169, 32], strides = [1, 1]} : vector<173x32xf32> to vector<169x32xf32>
    %101 = arith.maximumf %99, %100 : vector<169x32xf32>
    %102 = vector.extract_strided_slice %96 {offsets = [3, 0], sizes = [169, 32], strides = [1, 1]} : vector<173x32xf32> to vector<169x32xf32>
    %103 = arith.maximumf %101, %102 : vector<169x32xf32>
    %104 = vector.extract_strided_slice %96 {offsets = [4, 0], sizes = [169, 32], strides = [1, 1]} : vector<173x32xf32> to vector<169x32xf32>
    %105 = arith.maximumf %103, %104 : vector<169x32xf32>
    %106 = tpu.iota {dimensions = array<i32: 0>} : vector<85x169xi32>
    %107 = tpu.iota {dimensions = array<i32: 1>} : vector<85x169xi32>
    %c2_i32 = arith.constant 2 : i32
    %108 = vector.broadcast %c2_i32 : i32 to vector<85x169xi32>
    %109 = arith.muli %108, %106 : vector<85x169xi32>
    %110 = arith.cmpi eq, %107, %109 : vector<85x169xi32>
    %111 = arith.extui %110 : vector<85x169xi1> to vector<85x169xi32>
    %112 = arith.sitofp %111 : vector<85x169xi32> to vector<85x169xf32>
    %cst_98 = arith.constant dense<0.000000e+00> : vector<85x32xf32>
    %113 = tpu.matmul %112, %105, %cst_98 {dimension_numbers = #tpu.dot_dimension_numbers<[1], [0], [0], [1], [0, 0, 1, 1], [], []>} : vector<85x169xf32>, vector<169x32xf32>, vector<85x32xf32> -> vector<85x32xf32>
    %cst_99 = arith.constant 0.000000e+00 : f32
    %114 = vector.broadcast %cst_99 : f32 to vector<2x32xf32>
    %c0_100 = arith.constant 0 : index
    %c0_101 = arith.constant 0 : index
    %115 = vector.load %arg11[%c0_100, %c0_101] : memref<177x32xf32, #tpu.memory_space<vmem>>, vector<2x32xf32>
    tpu.vector_store %arg11[%c0_100, %c0_101], %114 {strides = array<i32>} : memref<177x32xf32, #tpu.memory_space<vmem>>, vector<2x32xf32>,
    %c2_102 = arith.constant 2 : index
    %c0_103 = arith.constant 0 : index
    %116 = vector.load %arg11[%c2_102, %c0_103] : memref<177x32xf32, #tpu.memory_space<vmem>>, vector<85x32xf32>
    tpu.vector_store %arg11[%c2_102, %c0_103], %113 {strides = array<i32>} : memref<177x32xf32, #tpu.memory_space<vmem>>, vector<85x32xf32>,
    %cst_104 = arith.constant 0.000000e+00 : f32
    %117 = vector.broadcast %cst_104 : f32 to vector<2x32xf32>
    %c87 = arith.constant 87 : index
    %c0_105 = arith.constant 0 : index
    %118 = vector.load %arg11[%c87, %c0_105] : memref<177x32xf32, #tpu.memory_space<vmem>>, vector<2x32xf32>
    tpu.vector_store %arg11[%c87, %c0_105], %117 {strides = array<i32>} : memref<177x32xf32, #tpu.memory_space<vmem>>, vector<2x32xf32>,
    %c0_106 = arith.constant 0 : index
    %c0_107 = arith.constant 0 : index
    %119 = vector.load %arg11[%c0_106, %c0_107] : memref<177x32xf32, #tpu.memory_space<vmem>>, vector<85x32xf32>
    %c0_108 = arith.constant 0 : index
    %c0_109 = arith.constant 0 : index
    %c0_110 = arith.constant 0 : index
    %120 = vector.load %arg4[%c0_108, %c0_109, %c0_110] : memref<5x32x32xf32, #tpu.memory_space<vmem>>, vector<1x32x32xf32>
    %121 = vector.shape_cast %120 : vector<1x32x32xf32> to vector<32x32xf32>
    %cst_111 = arith.constant dense<0.000000e+00> : vector<85x32xf32>
    %122 = tpu.matmul %119, %121, %cst_111 {dimension_numbers = #tpu.dot_dimension_numbers<[1], [0], [0], [1], [0, 0, 1, 1], [], []>} : vector<85x32xf32>, vector<32x32xf32>, vector<85x32xf32> -> vector<85x32xf32>
    %c1_112 = arith.constant 1 : index
    %c0_113 = arith.constant 0 : index
    %123 = vector.load %arg11[%c1_112, %c0_113] : memref<177x32xf32, #tpu.memory_space<vmem>>, vector<85x32xf32>
    %c1_114 = arith.constant 1 : index
    %c0_115 = arith.constant 0 : index
    %c0_116 = arith.constant 0 : index
    %124 = vector.load %arg4[%c1_114, %c0_115, %c0_116] : memref<5x32x32xf32, #tpu.memory_space<vmem>>, vector<1x32x32xf32>
    %125 = vector.shape_cast %124 : vector<1x32x32xf32> to vector<32x32xf32>
    %cst_117 = arith.constant dense<0.000000e+00> : vector<85x32xf32>
    %126 = tpu.matmul %123, %125, %cst_117 {dimension_numbers = #tpu.dot_dimension_numbers<[1], [0], [0], [1], [0, 0, 1, 1], [], []>} : vector<85x32xf32>, vector<32x32xf32>, vector<85x32xf32> -> vector<85x32xf32>
    %127 = arith.addf %122, %126 : vector<85x32xf32>
    %c2_118 = arith.constant 2 : index
    %c0_119 = arith.constant 0 : index
    %128 = vector.load %arg11[%c2_118, %c0_119] : memref<177x32xf32, #tpu.memory_space<vmem>>, vector<85x32xf32>
    %c2_120 = arith.constant 2 : index
    %c0_121 = arith.constant 0 : index
    %c0_122 = arith.constant 0 : index
    %129 = vector.load %arg4[%c2_120, %c0_121, %c0_122] : memref<5x32x32xf32, #tpu.memory_space<vmem>>, vector<1x32x32xf32>
    %130 = vector.shape_cast %129 : vector<1x32x32xf32> to vector<32x32xf32>
    %cst_123 = arith.constant dense<0.000000e+00> : vector<85x32xf32>
    %131 = tpu.matmul %128, %130, %cst_123 {dimension_numbers = #tpu.dot_dimension_numbers<[1], [0], [0], [1], [0, 0, 1, 1], [], []>} : vector<85x32xf32>, vector<32x32xf32>, vector<85x32xf32> -> vector<85x32xf32>
    %132 = arith.addf %127, %131 : vector<85x32xf32>
    %c3_124 = arith.constant 3 : index
    %c0_125 = arith.constant 0 : index
    %133 = vector.load %arg11[%c3_124, %c0_125] : memref<177x32xf32, #tpu.memory_space<vmem>>, vector<85x32xf32>
    %c3_126 = arith.constant 3 : index
    %c0_127 = arith.constant 0 : index
    %c0_128 = arith.constant 0 : index
    %134 = vector.load %arg4[%c3_126, %c0_127, %c0_128] : memref<5x32x32xf32, #tpu.memory_space<vmem>>, vector<1x32x32xf32>
    %135 = vector.shape_cast %134 : vector<1x32x32xf32> to vector<32x32xf32>
    %cst_129 = arith.constant dense<0.000000e+00> : vector<85x32xf32>
    %136 = tpu.matmul %133, %135, %cst_129 {dimension_numbers = #tpu.dot_dimension_numbers<[1], [0], [0], [1], [0, 0, 1, 1], [], []>} : vector<85x32xf32>, vector<32x32xf32>, vector<85x32xf32> -> vector<85x32xf32>
    %137 = arith.addf %132, %136 : vector<85x32xf32>
    %c4_130 = arith.constant 4 : index
    %c0_131 = arith.constant 0 : index
    %138 = vector.load %arg11[%c4_130, %c0_131] : memref<177x32xf32, #tpu.memory_space<vmem>>, vector<85x32xf32>
    %c4_132 = arith.constant 4 : index
    %c0_133 = arith.constant 0 : index
    %c0_134 = arith.constant 0 : index
    %139 = vector.load %arg4[%c4_132, %c0_133, %c0_134] : memref<5x32x32xf32, #tpu.memory_space<vmem>>, vector<1x32x32xf32>
    %140 = vector.shape_cast %139 : vector<1x32x32xf32> to vector<32x32xf32>
    %cst_135 = arith.constant dense<0.000000e+00> : vector<85x32xf32>
    %141 = tpu.matmul %138, %140, %cst_135 {dimension_numbers = #tpu.dot_dimension_numbers<[1], [0], [0], [1], [0, 0, 1, 1], [], []>} : vector<85x32xf32>, vector<32x32xf32>, vector<85x32xf32> -> vector<85x32xf32>
    %142 = arith.addf %137, %141 : vector<85x32xf32>
    %143 = vector.broadcast %3 : vector<1x32xf32> to vector<85x32xf32>
    %144 = arith.addf %142, %143 : vector<85x32xf32>
    %cst_136 = arith.constant 0.000000e+00 : f32
    %145 = vector.broadcast %cst_136 : f32 to vector<85x32xf32>
    %146 = arith.maximumf %144, %145 : vector<85x32xf32>
    %cst_137 = arith.constant 0.000000e+00 : f32
    %147 = vector.broadcast %cst_137 : f32 to vector<2x32xf32>
    %c0_138 = arith.constant 0 : index
    %c0_139 = arith.constant 0 : index
    %148 = vector.load %arg11[%c0_138, %c0_139] : memref<177x32xf32, #tpu.memory_space<vmem>>, vector<2x32xf32>
    tpu.vector_store %arg11[%c0_138, %c0_139], %147 {strides = array<i32>} : memref<177x32xf32, #tpu.memory_space<vmem>>, vector<2x32xf32>,
    %c2_140 = arith.constant 2 : index
    %c0_141 = arith.constant 0 : index
    %149 = vector.load %arg11[%c2_140, %c0_141] : memref<177x32xf32, #tpu.memory_space<vmem>>, vector<85x32xf32>
    tpu.vector_store %arg11[%c2_140, %c0_141], %146 {strides = array<i32>} : memref<177x32xf32, #tpu.memory_space<vmem>>, vector<85x32xf32>,
    %cst_142 = arith.constant 0.000000e+00 : f32
    %150 = vector.broadcast %cst_142 : f32 to vector<2x32xf32>
    %c87_143 = arith.constant 87 : index
    %c0_144 = arith.constant 0 : index
    %151 = vector.load %arg11[%c87_143, %c0_144] : memref<177x32xf32, #tpu.memory_space<vmem>>, vector<2x32xf32>
    tpu.vector_store %arg11[%c87_143, %c0_144], %150 {strides = array<i32>} : memref<177x32xf32, #tpu.memory_space<vmem>>, vector<2x32xf32>,
    %c0_145 = arith.constant 0 : index
    %c0_146 = arith.constant 0 : index
    %152 = vector.load %arg11[%c0_145, %c0_146] : memref<177x32xf32, #tpu.memory_space<vmem>>, vector<85x32xf32>
    %c0_147 = arith.constant 0 : index
    %c0_148 = arith.constant 0 : index
    %c0_149 = arith.constant 0 : index
    %153 = vector.load %arg4[%c0_147, %c0_148, %c0_149] : memref<5x32x32xf32, #tpu.memory_space<vmem>>, vector<1x32x32xf32>
    %154 = vector.shape_cast %153 : vector<1x32x32xf32> to vector<32x32xf32>
    %cst_150 = arith.constant dense<0.000000e+00> : vector<85x32xf32>
    %155 = tpu.matmul %152, %154, %cst_150 {dimension_numbers = #tpu.dot_dimension_numbers<[1], [0], [0], [1], [0, 0, 1, 1], [], []>} : vector<85x32xf32>, vector<32x32xf32>, vector<85x32xf32> -> vector<85x32xf32>
    %c1_151 = arith.constant 1 : index
    %c0_152 = arith.constant 0 : index
    %156 = vector.load %arg11[%c1_151, %c0_152] : memref<177x32xf32, #tpu.memory_space<vmem>>, vector<85x32xf32>
    %c1_153 = arith.constant 1 : index
    %c0_154 = arith.constant 0 : index
    %c0_155 = arith.constant 0 : index
    %157 = vector.load %arg4[%c1_153, %c0_154, %c0_155] : memref<5x32x32xf32, #tpu.memory_space<vmem>>, vector<1x32x32xf32>
    %158 = vector.shape_cast %157 : vector<1x32x32xf32> to vector<32x32xf32>
    %cst_156 = arith.constant dense<0.000000e+00> : vector<85x32xf32>
    %159 = tpu.matmul %156, %158, %cst_156 {dimension_numbers = #tpu.dot_dimension_numbers<[1], [0], [0], [1], [0, 0, 1, 1], [], []>} : vector<85x32xf32>, vector<32x32xf32>, vector<85x32xf32> -> vector<85x32xf32>
    %160 = arith.addf %155, %159 : vector<85x32xf32>
    %c2_157 = arith.constant 2 : index
    %c0_158 = arith.constant 0 : index
    %161 = vector.load %arg11[%c2_157, %c0_158] : memref<177x32xf32, #tpu.memory_space<vmem>>, vector<85x32xf32>
    %c2_159 = arith.constant 2 : index
    %c0_160 = arith.constant 0 : index
    %c0_161 = arith.constant 0 : index
    %162 = vector.load %arg4[%c2_159, %c0_160, %c0_161] : memref<5x32x32xf32, #tpu.memory_space<vmem>>, vector<1x32x32xf32>
    %163 = vector.shape_cast %162 : vector<1x32x32xf32> to vector<32x32xf32>
    %cst_162 = arith.constant dense<0.000000e+00> : vector<85x32xf32>
    %164 = tpu.matmul %161, %163, %cst_162 {dimension_numbers = #tpu.dot_dimension_numbers<[1], [0], [0], [1], [0, 0, 1, 1], [], []>} : vector<85x32xf32>, vector<32x32xf32>, vector<85x32xf32> -> vector<85x32xf32>
    %165 = arith.addf %160, %164 : vector<85x32xf32>
    %c3_163 = arith.constant 3 : index
    %c0_164 = arith.constant 0 : index
    %166 = vector.load %arg11[%c3_163, %c0_164] : memref<177x32xf32, #tpu.memory_space<vmem>>, vector<85x32xf32>
    %c3_165 = arith.constant 3 : index
    %c0_166 = arith.constant 0 : index
    %c0_167 = arith.constant 0 : index
    %167 = vector.load %arg4[%c3_165, %c0_166, %c0_167] : memref<5x32x32xf32, #tpu.memory_space<vmem>>, vector<1x32x32xf32>
    %168 = vector.shape_cast %167 : vector<1x32x32xf32> to vector<32x32xf32>
    %cst_168 = arith.constant dense<0.000000e+00> : vector<85x32xf32>
    %169 = tpu.matmul %166, %168, %cst_168 {dimension_numbers = #tpu.dot_dimension_numbers<[1], [0], [0], [1], [0, 0, 1, 1], [], []>} : vector<85x32xf32>, vector<32x32xf32>, vector<85x32xf32> -> vector<85x32xf32>
    %170 = arith.addf %165, %169 : vector<85x32xf32>
    %c4_169 = arith.constant 4 : index
    %c0_170 = arith.constant 0 : index
    %171 = vector.load %arg11[%c4_169, %c0_170] : memref<177x32xf32, #tpu.memory_space<vmem>>, vector<85x32xf32>
    %c4_171 = arith.constant 4 : index
    %c0_172 = arith.constant 0 : index
    %c0_173 = arith.constant 0 : index
    %172 = vector.load %arg4[%c4_171, %c0_172, %c0_173] : memref<5x32x32xf32, #tpu.memory_space<vmem>>, vector<1x32x32xf32>
    %173 = vector.shape_cast %172 : vector<1x32x32xf32> to vector<32x32xf32>
    %cst_174 = arith.constant dense<0.000000e+00> : vector<85x32xf32>
    %174 = tpu.matmul %171, %173, %cst_174 {dimension_numbers = #tpu.dot_dimension_numbers<[1], [0], [0], [1], [0, 0, 1, 1], [], []>} : vector<85x32xf32>, vector<32x32xf32>, vector<85x32xf32> -> vector<85x32xf32>
    %175 = arith.addf %170, %174 : vector<85x32xf32>
    %176 = vector.broadcast %3 : vector<1x32xf32> to vector<85x32xf32>
    %177 = arith.addf %175, %176 : vector<85x32xf32>
    %178 = arith.addf %177, %113 : vector<85x32xf32>
    %cst_175 = arith.constant 0.000000e+00 : f32
    %179 = vector.broadcast %cst_175 : f32 to vector<85x32xf32>
    %180 = arith.maximumf %178, %179 : vector<85x32xf32>
    %181 = vector.extract_strided_slice %180 {offsets = [0, 0], sizes = [81, 32], strides = [1, 1]} : vector<85x32xf32> to vector<81x32xf32>
    %182 = vector.extract_strided_slice %180 {offsets = [1, 0], sizes = [81, 32], strides = [1, 1]} : vector<85x32xf32> to vector<81x32xf32>
    %183 = arith.maximumf %181, %182 : vector<81x32xf32>
    %184 = vector.extract_strided_slice %180 {offsets = [2, 0], sizes = [81, 32], strides = [1, 1]} : vector<85x32xf32> to vector<81x32xf32>
    %185 = arith.maximumf %183, %184 : vector<81x32xf32>
    %186 = vector.extract_strided_slice %180 {offsets = [3, 0], sizes = [81, 32], strides = [1, 1]} : vector<85x32xf32> to vector<81x32xf32>
    %187 = arith.maximumf %185, %186 : vector<81x32xf32>
    %188 = vector.extract_strided_slice %180 {offsets = [4, 0], sizes = [81, 32], strides = [1, 1]} : vector<85x32xf32> to vector<81x32xf32>
    %189 = arith.maximumf %187, %188 : vector<81x32xf32>
    %190 = tpu.iota {dimensions = array<i32: 0>} : vector<41x81xi32>
    %191 = tpu.iota {dimensions = array<i32: 1>} : vector<41x81xi32>
    %c2_i32_176 = arith.constant 2 : i32
    %192 = vector.broadcast %c2_i32_176 : i32 to vector<41x81xi32>
    %193 = arith.muli %192, %190 : vector<41x81xi32>
    %194 = arith.cmpi eq, %191, %193 : vector<41x81xi32>
    %195 = arith.extui %194 : vector<41x81xi1> to vector<41x81xi32>
    %196 = arith.sitofp %195 : vector<41x81xi32> to vector<41x81xf32>
    %cst_177 = arith.constant dense<0.000000e+00> : vector<41x32xf32>
    %197 = tpu.matmul %196, %189, %cst_177 {dimension_numbers = #tpu.dot_dimension_numbers<[1], [0], [0], [1], [0, 0, 1, 1], [], []>} : vector<41x81xf32>, vector<81x32xf32>, vector<41x32xf32> -> vector<41x32xf32>
    %cst_178 = arith.constant 0.000000e+00 : f32
    %198 = vector.broadcast %cst_178 : f32 to vector<2x32xf32>
    %c0_179 = arith.constant 0 : index
    %c0_180 = arith.constant 0 : index
    %199 = vector.load %arg11[%c0_179, %c0_180] : memref<177x32xf32, #tpu.memory_space<vmem>>, vector<2x32xf32>
    tpu.vector_store %arg11[%c0_179, %c0_180], %198 {strides = array<i32>} : memref<177x32xf32, #tpu.memory_space<vmem>>, vector<2x32xf32>,
    %c2_181 = arith.constant 2 : index
    %c0_182 = arith.constant 0 : index
    %200 = vector.load %arg11[%c2_181, %c0_182] : memref<177x32xf32, #tpu.memory_space<vmem>>, vector<41x32xf32>
    tpu.vector_store %arg11[%c2_181, %c0_182], %197 {strides = array<i32>} : memref<177x32xf32, #tpu.memory_space<vmem>>, vector<41x32xf32>,
    %cst_183 = arith.constant 0.000000e+00 : f32
    %201 = vector.broadcast %cst_183 : f32 to vector<2x32xf32>
    %c43 = arith.constant 43 : index
    %c0_184 = arith.constant 0 : index
    %202 = vector.load %arg11[%c43, %c0_184] : memref<177x32xf32, #tpu.memory_space<vmem>>, vector<2x32xf32>
    tpu.vector_store %arg11[%c43, %c0_184], %201 {strides = array<i32>} : memref<177x32xf32, #tpu.memory_space<vmem>>, vector<2x32xf32>,
    %c0_185 = arith.constant 0 : index
    %c0_186 = arith.constant 0 : index
    %203 = vector.load %arg11[%c0_185, %c0_186] : memref<177x32xf32, #tpu.memory_space<vmem>>, vector<41x32xf32>
    %c0_187 = arith.constant 0 : index
    %c0_188 = arith.constant 0 : index
    %c0_189 = arith.constant 0 : index
    %204 = vector.load %arg4[%c0_187, %c0_188, %c0_189] : memref<5x32x32xf32, #tpu.memory_space<vmem>>, vector<1x32x32xf32>
    %205 = vector.shape_cast %204 : vector<1x32x32xf32> to vector<32x32xf32>
    %cst_190 = arith.constant dense<0.000000e+00> : vector<41x32xf32>
    %206 = tpu.matmul %203, %205, %cst_190 {dimension_numbers = #tpu.dot_dimension_numbers<[1], [0], [0], [1], [0, 0, 1, 1], [], []>} : vector<41x32xf32>, vector<32x32xf32>, vector<41x32xf32> -> vector<41x32xf32>
    %c1_191 = arith.constant 1 : index
    %c0_192 = arith.constant 0 : index
    %207 = vector.load %arg11[%c1_191, %c0_192] : memref<177x32xf32, #tpu.memory_space<vmem>>, vector<41x32xf32>
    %c1_193 = arith.constant 1 : index
    %c0_194 = arith.constant 0 : index
    %c0_195 = arith.constant 0 : index
    %208 = vector.load %arg4[%c1_193, %c0_194, %c0_195] : memref<5x32x32xf32, #tpu.memory_space<vmem>>, vector<1x32x32xf32>
    %209 = vector.shape_cast %208 : vector<1x32x32xf32> to vector<32x32xf32>
    %cst_196 = arith.constant dense<0.000000e+00> : vector<41x32xf32>
    %210 = tpu.matmul %207, %209, %cst_196 {dimension_numbers = #tpu.dot_dimension_numbers<[1], [0], [0], [1], [0, 0, 1, 1], [], []>} : vector<41x32xf32>, vector<32x32xf32>, vector<41x32xf32> -> vector<41x32xf32>
    %211 = arith.addf %206, %210 : vector<41x32xf32>
    %c2_197 = arith.constant 2 : index
    %c0_198 = arith.constant 0 : index
    %212 = vector.load %arg11[%c2_197, %c0_198] : memref<177x32xf32, #tpu.memory_space<vmem>>, vector<41x32xf32>
    %c2_199 = arith.constant 2 : index
    %c0_200 = arith.constant 0 : index
    %c0_201 = arith.constant 0 : index
    %213 = vector.load %arg4[%c2_199, %c0_200, %c0_201] : memref<5x32x32xf32, #tpu.memory_space<vmem>>, vector<1x32x32xf32>
    %214 = vector.shape_cast %213 : vector<1x32x32xf32> to vector<32x32xf32>
    %cst_202 = arith.constant dense<0.000000e+00> : vector<41x32xf32>
    %215 = tpu.matmul %212, %214, %cst_202 {dimension_numbers = #tpu.dot_dimension_numbers<[1], [0], [0], [1], [0, 0, 1, 1], [], []>} : vector<41x32xf32>, vector<32x32xf32>, vector<41x32xf32> -> vector<41x32xf32>
    %216 = arith.addf %211, %215 : vector<41x32xf32>
    %c3_203 = arith.constant 3 : index
    %c0_204 = arith.constant 0 : index
    %217 = vector.load %arg11[%c3_203, %c0_204] : memref<177x32xf32, #tpu.memory_space<vmem>>, vector<41x32xf32>
    %c3_205 = arith.constant 3 : index
    %c0_206 = arith.constant 0 : index
    %c0_207 = arith.constant 0 : index
    %218 = vector.load %arg4[%c3_205, %c0_206, %c0_207] : memref<5x32x32xf32, #tpu.memory_space<vmem>>, vector<1x32x32xf32>
    %219 = vector.shape_cast %218 : vector<1x32x32xf32> to vector<32x32xf32>
    %cst_208 = arith.constant dense<0.000000e+00> : vector<41x32xf32>
    %220 = tpu.matmul %217, %219, %cst_208 {dimension_numbers = #tpu.dot_dimension_numbers<[1], [0], [0], [1], [0, 0, 1, 1], [], []>} : vector<41x32xf32>, vector<32x32xf32>, vector<41x32xf32> -> vector<41x32xf32>
    %221 = arith.addf %216, %220 : vector<41x32xf32>
    %c4_209 = arith.constant 4 : index
    %c0_210 = arith.constant 0 : index
    %222 = vector.load %arg11[%c4_209, %c0_210] : memref<177x32xf32, #tpu.memory_space<vmem>>, vector<41x32xf32>
    %c4_211 = arith.constant 4 : index
    %c0_212 = arith.constant 0 : index
    %c0_213 = arith.constant 0 : index
    %223 = vector.load %arg4[%c4_211, %c0_212, %c0_213] : memref<5x32x32xf32, #tpu.memory_space<vmem>>, vector<1x32x32xf32>
    %224 = vector.shape_cast %223 : vector<1x32x32xf32> to vector<32x32xf32>
    %cst_214 = arith.constant dense<0.000000e+00> : vector<41x32xf32>
    %225 = tpu.matmul %222, %224, %cst_214 {dimension_numbers = #tpu.dot_dimension_numbers<[1], [0], [0], [1], [0, 0, 1, 1], [], []>} : vector<41x32xf32>, vector<32x32xf32>, vector<41x32xf32> -> vector<41x32xf32>
    %226 = arith.addf %221, %225 : vector<41x32xf32>
    %227 = vector.broadcast %3 : vector<1x32xf32> to vector<41x32xf32>
    %228 = arith.addf %226, %227 : vector<41x32xf32>
    %cst_215 = arith.constant 0.000000e+00 : f32
    %229 = vector.broadcast %cst_215 : f32 to vector<41x32xf32>
    %230 = arith.maximumf %228, %229 : vector<41x32xf32>
    %cst_216 = arith.constant 0.000000e+00 : f32
    %231 = vector.broadcast %cst_216 : f32 to vector<2x32xf32>
    %c0_217 = arith.constant 0 : index
    %c0_218 = arith.constant 0 : index
    %232 = vector.load %arg11[%c0_217, %c0_218] : memref<177x32xf32, #tpu.memory_space<vmem>>, vector<2x32xf32>
    tpu.vector_store %arg11[%c0_217, %c0_218], %231 {strides = array<i32>} : memref<177x32xf32, #tpu.memory_space<vmem>>, vector<2x32xf32>,
    %c2_219 = arith.constant 2 : index
    %c0_220 = arith.constant 0 : index
    %233 = vector.load %arg11[%c2_219, %c0_220] : memref<177x32xf32, #tpu.memory_space<vmem>>, vector<41x32xf32>
    tpu.vector_store %arg11[%c2_219, %c0_220], %230 {strides = array<i32>} : memref<177x32xf32, #tpu.memory_space<vmem>>, vector<41x32xf32>,
    %cst_221 = arith.constant 0.000000e+00 : f32
    %234 = vector.broadcast %cst_221 : f32 to vector<2x32xf32>
    %c43_222 = arith.constant 43 : index
    %c0_223 = arith.constant 0 : index
    %235 = vector.load %arg11[%c43_222, %c0_223] : memref<177x32xf32, #tpu.memory_space<vmem>>, vector<2x32xf32>
    tpu.vector_store %arg11[%c43_222, %c0_223], %234 {strides = array<i32>} : memref<177x32xf32, #tpu.memory_space<vmem>>, vector<2x32xf32>,
    %c0_224 = arith.constant 0 : index
    %c0_225 = arith.constant 0 : index
    %236 = vector.load %arg11[%c0_224, %c0_225] : memref<177x32xf32, #tpu.memory_space<vmem>>, vector<41x32xf32>
    %c0_226 = arith.constant 0 : index
    %c0_227 = arith.constant 0 : index
    %c0_228 = arith.constant 0 : index
    %237 = vector.load %arg4[%c0_226, %c0_227, %c0_228] : memref<5x32x32xf32, #tpu.memory_space<vmem>>, vector<1x32x32xf32>
    %238 = vector.shape_cast %237 : vector<1x32x32xf32> to vector<32x32xf32>
    %cst_229 = arith.constant dense<0.000000e+00> : vector<41x32xf32>
    %239 = tpu.matmul %236, %238, %cst_229 {dimension_numbers = #tpu.dot_dimension_numbers<[1], [0], [0], [1], [0, 0, 1, 1], [], []>} : vector<41x32xf32>, vector<32x32xf32>, vector<41x32xf32> -> vector<41x32xf32>
    %c1_230 = arith.constant 1 : index
    %c0_231 = arith.constant 0 : index
    %240 = vector.load %arg11[%c1_230, %c0_231] : memref<177x32xf32, #tpu.memory_space<vmem>>, vector<41x32xf32>
    %c1_232 = arith.constant 1 : index
    %c0_233 = arith.constant 0 : index
    %c0_234 = arith.constant 0 : index
    %241 = vector.load %arg4[%c1_232, %c0_233, %c0_234] : memref<5x32x32xf32, #tpu.memory_space<vmem>>, vector<1x32x32xf32>
    %242 = vector.shape_cast %241 : vector<1x32x32xf32> to vector<32x32xf32>
    %cst_235 = arith.constant dense<0.000000e+00> : vector<41x32xf32>
    %243 = tpu.matmul %240, %242, %cst_235 {dimension_numbers = #tpu.dot_dimension_numbers<[1], [0], [0], [1], [0, 0, 1, 1], [], []>} : vector<41x32xf32>, vector<32x32xf32>, vector<41x32xf32> -> vector<41x32xf32>
    %244 = arith.addf %239, %243 : vector<41x32xf32>
    %c2_236 = arith.constant 2 : index
    %c0_237 = arith.constant 0 : index
    %245 = vector.load %arg11[%c2_236, %c0_237] : memref<177x32xf32, #tpu.memory_space<vmem>>, vector<41x32xf32>
    %c2_238 = arith.constant 2 : index
    %c0_239 = arith.constant 0 : index
    %c0_240 = arith.constant 0 : index
    %246 = vector.load %arg4[%c2_238, %c0_239, %c0_240] : memref<5x32x32xf32, #tpu.memory_space<vmem>>, vector<1x32x32xf32>
    %247 = vector.shape_cast %246 : vector<1x32x32xf32> to vector<32x32xf32>
    %cst_241 = arith.constant dense<0.000000e+00> : vector<41x32xf32>
    %248 = tpu.matmul %245, %247, %cst_241 {dimension_numbers = #tpu.dot_dimension_numbers<[1], [0], [0], [1], [0, 0, 1, 1], [], []>} : vector<41x32xf32>, vector<32x32xf32>, vector<41x32xf32> -> vector<41x32xf32>
    %249 = arith.addf %244, %248 : vector<41x32xf32>
    %c3_242 = arith.constant 3 : index
    %c0_243 = arith.constant 0 : index
    %250 = vector.load %arg11[%c3_242, %c0_243] : memref<177x32xf32, #tpu.memory_space<vmem>>, vector<41x32xf32>
    %c3_244 = arith.constant 3 : index
    %c0_245 = arith.constant 0 : index
    %c0_246 = arith.constant 0 : index
    %251 = vector.load %arg4[%c3_244, %c0_245, %c0_246] : memref<5x32x32xf32, #tpu.memory_space<vmem>>, vector<1x32x32xf32>
    %252 = vector.shape_cast %251 : vector<1x32x32xf32> to vector<32x32xf32>
    %cst_247 = arith.constant dense<0.000000e+00> : vector<41x32xf32>
    %253 = tpu.matmul %250, %252, %cst_247 {dimension_numbers = #tpu.dot_dimension_numbers<[1], [0], [0], [1], [0, 0, 1, 1], [], []>} : vector<41x32xf32>, vector<32x32xf32>, vector<41x32xf32> -> vector<41x32xf32>
    %254 = arith.addf %249, %253 : vector<41x32xf32>
    %c4_248 = arith.constant 4 : index
    %c0_249 = arith.constant 0 : index
    %255 = vector.load %arg11[%c4_248, %c0_249] : memref<177x32xf32, #tpu.memory_space<vmem>>, vector<41x32xf32>
    %c4_250 = arith.constant 4 : index
    %c0_251 = arith.constant 0 : index
    %c0_252 = arith.constant 0 : index
    %256 = vector.load %arg4[%c4_250, %c0_251, %c0_252] : memref<5x32x32xf32, #tpu.memory_space<vmem>>, vector<1x32x32xf32>
    %257 = vector.shape_cast %256 : vector<1x32x32xf32> to vector<32x32xf32>
    %cst_253 = arith.constant dense<0.000000e+00> : vector<41x32xf32>
    %258 = tpu.matmul %255, %257, %cst_253 {dimension_numbers = #tpu.dot_dimension_numbers<[1], [0], [0], [1], [0, 0, 1, 1], [], []>} : vector<41x32xf32>, vector<32x32xf32>, vector<41x32xf32> -> vector<41x32xf32>
    %259 = arith.addf %254, %258 : vector<41x32xf32>
    %260 = vector.broadcast %3 : vector<1x32xf32> to vector<41x32xf32>
    %261 = arith.addf %259, %260 : vector<41x32xf32>
    %262 = arith.addf %261, %197 : vector<41x32xf32>
    %cst_254 = arith.constant 0.000000e+00 : f32
    %263 = vector.broadcast %cst_254 : f32 to vector<41x32xf32>
    %264 = arith.maximumf %262, %263 : vector<41x32xf32>
    %265 = vector.extract_strided_slice %264 {offsets = [0, 0], sizes = [37, 32], strides = [1, 1]} : vector<41x32xf32> to vector<37x32xf32>
    %266 = vector.extract_strided_slice %264 {offsets = [1, 0], sizes = [37, 32], strides = [1, 1]} : vector<41x32xf32> to vector<37x32xf32>
    %267 = arith.maximumf %265, %266 : vector<37x32xf32>
    %268 = vector.extract_strided_slice %264 {offsets = [2, 0], sizes = [37, 32], strides = [1, 1]} : vector<41x32xf32> to vector<37x32xf32>
    %269 = arith.maximumf %267, %268 : vector<37x32xf32>
    %270 = vector.extract_strided_slice %264 {offsets = [3, 0], sizes = [37, 32], strides = [1, 1]} : vector<41x32xf32> to vector<37x32xf32>
    %271 = arith.maximumf %269, %270 : vector<37x32xf32>
    %272 = vector.extract_strided_slice %264 {offsets = [4, 0], sizes = [37, 32], strides = [1, 1]} : vector<41x32xf32> to vector<37x32xf32>
    %273 = arith.maximumf %271, %272 : vector<37x32xf32>
    %274 = tpu.iota {dimensions = array<i32: 0>} : vector<19x37xi32>
    %275 = tpu.iota {dimensions = array<i32: 1>} : vector<19x37xi32>
    %c2_i32_255 = arith.constant 2 : i32
    %276 = vector.broadcast %c2_i32_255 : i32 to vector<19x37xi32>
    %277 = arith.muli %276, %274 : vector<19x37xi32>
    %278 = arith.cmpi eq, %275, %277 : vector<19x37xi32>
    %279 = arith.extui %278 : vector<19x37xi1> to vector<19x37xi32>
    %280 = arith.sitofp %279 : vector<19x37xi32> to vector<19x37xf32>
    %cst_256 = arith.constant dense<0.000000e+00> : vector<19x32xf32>
    %281 = tpu.matmul %280, %273, %cst_256 {dimension_numbers = #tpu.dot_dimension_numbers<[1], [0], [0], [1], [0, 0, 1, 1], [], []>} : vector<19x37xf32>, vector<37x32xf32>, vector<19x32xf32> -> vector<19x32xf32>
    %cst_257 = arith.constant 0.000000e+00 : f32
    %282 = vector.broadcast %cst_257 : f32 to vector<2x32xf32>
    %c0_258 = arith.constant 0 : index
    %c0_259 = arith.constant 0 : index
    %283 = vector.load %arg11[%c0_258, %c0_259] : memref<177x32xf32, #tpu.memory_space<vmem>>, vector<2x32xf32>
    tpu.vector_store %arg11[%c0_258, %c0_259], %282 {strides = array<i32>} : memref<177x32xf32, #tpu.memory_space<vmem>>, vector<2x32xf32>,
    %c2_260 = arith.constant 2 : index
    %c0_261 = arith.constant 0 : index
    %284 = vector.load %arg11[%c2_260, %c0_261] : memref<177x32xf32, #tpu.memory_space<vmem>>, vector<19x32xf32>
    tpu.vector_store %arg11[%c2_260, %c0_261], %281 {strides = array<i32>} : memref<177x32xf32, #tpu.memory_space<vmem>>, vector<19x32xf32>,
    %cst_262 = arith.constant 0.000000e+00 : f32
    %285 = vector.broadcast %cst_262 : f32 to vector<2x32xf32>
    %c21 = arith.constant 21 : index
    %c0_263 = arith.constant 0 : index
    %286 = vector.load %arg11[%c21, %c0_263] : memref<177x32xf32, #tpu.memory_space<vmem>>, vector<2x32xf32>
    tpu.vector_store %arg11[%c21, %c0_263], %285 {strides = array<i32>} : memref<177x32xf32, #tpu.memory_space<vmem>>, vector<2x32xf32>,
    %c0_264 = arith.constant 0 : index
    %c0_265 = arith.constant 0 : index
    %287 = vector.load %arg11[%c0_264, %c0_265] : memref<177x32xf32, #tpu.memory_space<vmem>>, vector<19x32xf32>
    %c0_266 = arith.constant 0 : index
    %c0_267 = arith.constant 0 : index
    %c0_268 = arith.constant 0 : index
    %288 = vector.load %arg4[%c0_266, %c0_267, %c0_268] : memref<5x32x32xf32, #tpu.memory_space<vmem>>, vector<1x32x32xf32>
    %289 = vector.shape_cast %288 : vector<1x32x32xf32> to vector<32x32xf32>
    %cst_269 = arith.constant dense<0.000000e+00> : vector<19x32xf32>
    %290 = tpu.matmul %287, %289, %cst_269 {dimension_numbers = #tpu.dot_dimension_numbers<[1], [0], [0], [1], [0, 0, 1, 1], [], []>} : vector<19x32xf32>, vector<32x32xf32>, vector<19x32xf32> -> vector<19x32xf32>
    %c1_270 = arith.constant 1 : index
    %c0_271 = arith.constant 0 : index
    %291 = vector.load %arg11[%c1_270, %c0_271] : memref<177x32xf32, #tpu.memory_space<vmem>>, vector<19x32xf32>
    %c1_272 = arith.constant 1 : index
    %c0_273 = arith.constant 0 : index
    %c0_274 = arith.constant 0 : index
    %292 = vector.load %arg4[%c1_272, %c0_273, %c0_274] : memref<5x32x32xf32, #tpu.memory_space<vmem>>, vector<1x32x32xf32>
    %293 = vector.shape_cast %292 : vector<1x32x32xf32> to vector<32x32xf32>
    %cst_275 = arith.constant dense<0.000000e+00> : vector<19x32xf32>
    %294 = tpu.matmul %291, %293, %cst_275 {dimension_numbers = #tpu.dot_dimension_numbers<[1], [0], [0], [1], [0, 0, 1, 1], [], []>} : vector<19x32xf32>, vector<32x32xf32>, vector<19x32xf32> -> vector<19x32xf32>
    %295 = arith.addf %290, %294 : vector<19x32xf32>
    %c2_276 = arith.constant 2 : index
    %c0_277 = arith.constant 0 : index
    %296 = vector.load %arg11[%c2_276, %c0_277] : memref<177x32xf32, #tpu.memory_space<vmem>>, vector<19x32xf32>
    %c2_278 = arith.constant 2 : index
    %c0_279 = arith.constant 0 : index
    %c0_280 = arith.constant 0 : index
    %297 = vector.load %arg4[%c2_278, %c0_279, %c0_280] : memref<5x32x32xf32, #tpu.memory_space<vmem>>, vector<1x32x32xf32>
    %298 = vector.shape_cast %297 : vector<1x32x32xf32> to vector<32x32xf32>
    %cst_281 = arith.constant dense<0.000000e+00> : vector<19x32xf32>
    %299 = tpu.matmul %296, %298, %cst_281 {dimension_numbers = #tpu.dot_dimension_numbers<[1], [0], [0], [1], [0, 0, 1, 1], [], []>} : vector<19x32xf32>, vector<32x32xf32>, vector<19x32xf32> -> vector<19x32xf32>
    %300 = arith.addf %295, %299 : vector<19x32xf32>
    %c3_282 = arith.constant 3 : index
    %c0_283 = arith.constant 0 : index
    %301 = vector.load %arg11[%c3_282, %c0_283] : memref<177x32xf32, #tpu.memory_space<vmem>>, vector<19x32xf32>
    %c3_284 = arith.constant 3 : index
    %c0_285 = arith.constant 0 : index
    %c0_286 = arith.constant 0 : index
    %302 = vector.load %arg4[%c3_284, %c0_285, %c0_286] : memref<5x32x32xf32, #tpu.memory_space<vmem>>, vector<1x32x32xf32>
    %303 = vector.shape_cast %302 : vector<1x32x32xf32> to vector<32x32xf32>
    %cst_287 = arith.constant dense<0.000000e+00> : vector<19x32xf32>
    %304 = tpu.matmul %301, %303, %cst_287 {dimension_numbers = #tpu.dot_dimension_numbers<[1], [0], [0], [1], [0, 0, 1, 1], [], []>} : vector<19x32xf32>, vector<32x32xf32>, vector<19x32xf32> -> vector<19x32xf32>
    %305 = arith.addf %300, %304 : vector<19x32xf32>
    %c4_288 = arith.constant 4 : index
    %c0_289 = arith.constant 0 : index
    %306 = vector.load %arg11[%c4_288, %c0_289] : memref<177x32xf32, #tpu.memory_space<vmem>>, vector<19x32xf32>
    %c4_290 = arith.constant 4 : index
    %c0_291 = arith.constant 0 : index
    %c0_292 = arith.constant 0 : index
    %307 = vector.load %arg4[%c4_290, %c0_291, %c0_292] : memref<5x32x32xf32, #tpu.memory_space<vmem>>, vector<1x32x32xf32>
    %308 = vector.shape_cast %307 : vector<1x32x32xf32> to vector<32x32xf32>
    %cst_293 = arith.constant dense<0.000000e+00> : vector<19x32xf32>
    %309 = tpu.matmul %306, %308, %cst_293 {dimension_numbers = #tpu.dot_dimension_numbers<[1], [0], [0], [1], [0, 0, 1, 1], [], []>} : vector<19x32xf32>, vector<32x32xf32>, vector<19x32xf32> -> vector<19x32xf32>
    %310 = arith.addf %305, %309 : vector<19x32xf32>
    %311 = vector.broadcast %3 : vector<1x32xf32> to vector<19x32xf32>
    %312 = arith.addf %310, %311 : vector<19x32xf32>
    %cst_294 = arith.constant 0.000000e+00 : f32
    %313 = vector.broadcast %cst_294 : f32 to vector<19x32xf32>
    %314 = arith.maximumf %312, %313 : vector<19x32xf32>
    %cst_295 = arith.constant 0.000000e+00 : f32
    %315 = vector.broadcast %cst_295 : f32 to vector<2x32xf32>
    %c0_296 = arith.constant 0 : index
    %c0_297 = arith.constant 0 : index
    %316 = vector.load %arg11[%c0_296, %c0_297] : memref<177x32xf32, #tpu.memory_space<vmem>>, vector<2x32xf32>
    tpu.vector_store %arg11[%c0_296, %c0_297], %315 {strides = array<i32>} : memref<177x32xf32, #tpu.memory_space<vmem>>, vector<2x32xf32>,
    %c2_298 = arith.constant 2 : index
    %c0_299 = arith.constant 0 : index
    %317 = vector.load %arg11[%c2_298, %c0_299] : memref<177x32xf32, #tpu.memory_space<vmem>>, vector<19x32xf32>
    tpu.vector_store %arg11[%c2_298, %c0_299], %314 {strides = array<i32>} : memref<177x32xf32, #tpu.memory_space<vmem>>, vector<19x32xf32>,
    %cst_300 = arith.constant 0.000000e+00 : f32
    %318 = vector.broadcast %cst_300 : f32 to vector<2x32xf32>
    %c21_301 = arith.constant 21 : index
    %c0_302 = arith.constant 0 : index
    %319 = vector.load %arg11[%c21_301, %c0_302] : memref<177x32xf32, #tpu.memory_space<vmem>>, vector<2x32xf32>
    tpu.vector_store %arg11[%c21_301, %c0_302], %318 {strides = array<i32>} : memref<177x32xf32, #tpu.memory_space<vmem>>, vector<2x32xf32>,
    %c0_303 = arith.constant 0 : index
    %c0_304 = arith.constant 0 : index
    %320 = vector.load %arg11[%c0_303, %c0_304] : memref<177x32xf32, #tpu.memory_space<vmem>>, vector<19x32xf32>
    %c0_305 = arith.constant 0 : index
    %c0_306 = arith.constant 0 : index
    %c0_307 = arith.constant 0 : index
    %321 = vector.load %arg4[%c0_305, %c0_306, %c0_307] : memref<5x32x32xf32, #tpu.memory_space<vmem>>, vector<1x32x32xf32>
    %322 = vector.shape_cast %321 : vector<1x32x32xf32> to vector<32x32xf32>
    %cst_308 = arith.constant dense<0.000000e+00> : vector<19x32xf32>
    %323 = tpu.matmul %320, %322, %cst_308 {dimension_numbers = #tpu.dot_dimension_numbers<[1], [0], [0], [1], [0, 0, 1, 1], [], []>} : vector<19x32xf32>, vector<32x32xf32>, vector<19x32xf32> -> vector<19x32xf32>
    %c1_309 = arith.constant 1 : index
    %c0_310 = arith.constant 0 : index
    %324 = vector.load %arg11[%c1_309, %c0_310] : memref<177x32xf32, #tpu.memory_space<vmem>>, vector<19x32xf32>
    %c1_311 = arith.constant 1 : index
    %c0_312 = arith.constant 0 : index
    %c0_313 = arith.constant 0 : index
    %325 = vector.load %arg4[%c1_311, %c0_312, %c0_313] : memref<5x32x32xf32, #tpu.memory_space<vmem>>, vector<1x32x32xf32>
    %326 = vector.shape_cast %325 : vector<1x32x32xf32> to vector<32x32xf32>
    %cst_314 = arith.constant dense<0.000000e+00> : vector<19x32xf32>
    %327 = tpu.matmul %324, %326, %cst_314 {dimension_numbers = #tpu.dot_dimension_numbers<[1], [0], [0], [1], [0, 0, 1, 1], [], []>} : vector<19x32xf32>, vector<32x32xf32>, vector<19x32xf32> -> vector<19x32xf32>
    %328 = arith.addf %323, %327 : vector<19x32xf32>
    %c2_315 = arith.constant 2 : index
    %c0_316 = arith.constant 0 : index
    %329 = vector.load %arg11[%c2_315, %c0_316] : memref<177x32xf32, #tpu.memory_space<vmem>>, vector<19x32xf32>
    %c2_317 = arith.constant 2 : index
    %c0_318 = arith.constant 0 : index
    %c0_319 = arith.constant 0 : index
    %330 = vector.load %arg4[%c2_317, %c0_318, %c0_319] : memref<5x32x32xf32, #tpu.memory_space<vmem>>, vector<1x32x32xf32>
    %331 = vector.shape_cast %330 : vector<1x32x32xf32> to vector<32x32xf32>
    %cst_320 = arith.constant dense<0.000000e+00> : vector<19x32xf32>
    %332 = tpu.matmul %329, %331, %cst_320 {dimension_numbers = #tpu.dot_dimension_numbers<[1], [0], [0], [1], [0, 0, 1, 1], [], []>} : vector<19x32xf32>, vector<32x32xf32>, vector<19x32xf32> -> vector<19x32xf32>
    %333 = arith.addf %328, %332 : vector<19x32xf32>
    %c3_321 = arith.constant 3 : index
    %c0_322 = arith.constant 0 : index
    %334 = vector.load %arg11[%c3_321, %c0_322] : memref<177x32xf32, #tpu.memory_space<vmem>>, vector<19x32xf32>
    %c3_323 = arith.constant 3 : index
    %c0_324 = arith.constant 0 : index
    %c0_325 = arith.constant 0 : index
    %335 = vector.load %arg4[%c3_323, %c0_324, %c0_325] : memref<5x32x32xf32, #tpu.memory_space<vmem>>, vector<1x32x32xf32>
    %336 = vector.shape_cast %335 : vector<1x32x32xf32> to vector<32x32xf32>
    %cst_326 = arith.constant dense<0.000000e+00> : vector<19x32xf32>
    %337 = tpu.matmul %334, %336, %cst_326 {dimension_numbers = #tpu.dot_dimension_numbers<[1], [0], [0], [1], [0, 0, 1, 1], [], []>} : vector<19x32xf32>, vector<32x32xf32>, vector<19x32xf32> -> vector<19x32xf32>
    %338 = arith.addf %333, %337 : vector<19x32xf32>
    %c4_327 = arith.constant 4 : index
    %c0_328 = arith.constant 0 : index
    %339 = vector.load %arg11[%c4_327, %c0_328] : memref<177x32xf32, #tpu.memory_space<vmem>>, vector<19x32xf32>
    %c4_329 = arith.constant 4 : index
    %c0_330 = arith.constant 0 : index
    %c0_331 = arith.constant 0 : index
    %340 = vector.load %arg4[%c4_329, %c0_330, %c0_331] : memref<5x32x32xf32, #tpu.memory_space<vmem>>, vector<1x32x32xf32>
    %341 = vector.shape_cast %340 : vector<1x32x32xf32> to vector<32x32xf32>
    %cst_332 = arith.constant dense<0.000000e+00> : vector<19x32xf32>
    %342 = tpu.matmul %339, %341, %cst_332 {dimension_numbers = #tpu.dot_dimension_numbers<[1], [0], [0], [1], [0, 0, 1, 1], [], []>} : vector<19x32xf32>, vector<32x32xf32>, vector<19x32xf32> -> vector<19x32xf32>
    %343 = arith.addf %338, %342 : vector<19x32xf32>
    %344 = vector.broadcast %3 : vector<1x32xf32> to vector<19x32xf32>
    %345 = arith.addf %343, %344 : vector<19x32xf32>
    %346 = arith.addf %345, %281 : vector<19x32xf32>
    %cst_333 = arith.constant 0.000000e+00 : f32
    %347 = vector.broadcast %cst_333 : f32 to vector<19x32xf32>
    %348 = arith.maximumf %346, %347 : vector<19x32xf32>
    %349 = vector.extract_strided_slice %348 {offsets = [0, 0], sizes = [15, 32], strides = [1, 1]} : vector<19x32xf32> to vector<15x32xf32>
    %350 = vector.extract_strided_slice %348 {offsets = [1, 0], sizes = [15, 32], strides = [1, 1]} : vector<19x32xf32> to vector<15x32xf32>
    %351 = arith.maximumf %349, %350 : vector<15x32xf32>
    %352 = vector.extract_strided_slice %348 {offsets = [2, 0], sizes = [15, 32], strides = [1, 1]} : vector<19x32xf32> to vector<15x32xf32>
    %353 = arith.maximumf %351, %352 : vector<15x32xf32>
    %354 = vector.extract_strided_slice %348 {offsets = [3, 0], sizes = [15, 32], strides = [1, 1]} : vector<19x32xf32> to vector<15x32xf32>
    %355 = arith.maximumf %353, %354 : vector<15x32xf32>
    %356 = vector.extract_strided_slice %348 {offsets = [4, 0], sizes = [15, 32], strides = [1, 1]} : vector<19x32xf32> to vector<15x32xf32>
    %357 = arith.maximumf %355, %356 : vector<15x32xf32>
    %358 = tpu.iota {dimensions = array<i32: 0>} : vector<8x15xi32>
    %359 = tpu.iota {dimensions = array<i32: 1>} : vector<8x15xi32>
    %c2_i32_334 = arith.constant 2 : i32
    %360 = vector.broadcast %c2_i32_334 : i32 to vector<8x15xi32>
    %361 = arith.muli %360, %358 : vector<8x15xi32>
    %362 = arith.cmpi eq, %359, %361 : vector<8x15xi32>
    %363 = arith.extui %362 : vector<8x15xi1> to vector<8x15xi32>
    %364 = arith.sitofp %363 : vector<8x15xi32> to vector<8x15xf32>
    %cst_335 = arith.constant dense<0.000000e+00> : vector<8x32xf32>
    %365 = tpu.matmul %364, %357, %cst_335 {dimension_numbers = #tpu.dot_dimension_numbers<[1], [0], [0], [1], [0, 0, 1, 1], [], []>} : vector<8x15xf32>, vector<15x32xf32>, vector<8x32xf32> -> vector<8x32xf32>
    %366 = vector.extract_strided_slice %365 {offsets = [0, 0], sizes = [1, 32], strides = [1, 1]} : vector<8x32xf32> to vector<1x32xf32>
    %c0_336 = arith.constant 0 : index
    %c0_337 = arith.constant 0 : index
    %c0_338 = arith.constant 0 : index
    %367 = vector.load %arg6[%c0_336, %c0_337, %c0_338] : memref<8x32x32xf32, #tpu.memory_space<vmem>>, vector<1x32x32xf32>
    %368 = vector.shape_cast %367 : vector<1x32x32xf32> to vector<32x32xf32>
    %cst_339 = arith.constant dense<0.000000e+00> : vector<1x32xf32>
    %369 = tpu.matmul %366, %368, %cst_339 {dimension_numbers = #tpu.dot_dimension_numbers<[1], [0], [0], [1], [0, 0, 1, 1], [], []>} : vector<1x32xf32>, vector<32x32xf32>, vector<1x32xf32> -> vector<1x32xf32>
    %370 = vector.extract_strided_slice %365 {offsets = [1, 0], sizes = [1, 32], strides = [1, 1]} : vector<8x32xf32> to vector<1x32xf32>
    %c1_340 = arith.constant 1 : index
    %c0_341 = arith.constant 0 : index
    %c0_342 = arith.constant 0 : index
    %371 = vector.load %arg6[%c1_340, %c0_341, %c0_342] : memref<8x32x32xf32, #tpu.memory_space<vmem>>, vector<1x32x32xf32>
    %372 = vector.shape_cast %371 : vector<1x32x32xf32> to vector<32x32xf32>
    %cst_343 = arith.constant dense<0.000000e+00> : vector<1x32xf32>
    %373 = tpu.matmul %370, %372, %cst_343 {dimension_numbers = #tpu.dot_dimension_numbers<[1], [0], [0], [1], [0, 0, 1, 1], [], []>} : vector<1x32xf32>, vector<32x32xf32>, vector<1x32xf32> -> vector<1x32xf32>
    %374 = arith.addf %369, %373 : vector<1x32xf32>
    %375 = vector.extract_strided_slice %365 {offsets = [2, 0], sizes = [1, 32], strides = [1, 1]} : vector<8x32xf32> to vector<1x32xf32>
    %c2_344 = arith.constant 2 : index
    %c0_345 = arith.constant 0 : index
    %c0_346 = arith.constant 0 : index
    %376 = vector.load %arg6[%c2_344, %c0_345, %c0_346] : memref<8x32x32xf32, #tpu.memory_space<vmem>>, vector<1x32x32xf32>
    %377 = vector.shape_cast %376 : vector<1x32x32xf32> to vector<32x32xf32>
    %cst_347 = arith.constant dense<0.000000e+00> : vector<1x32xf32>
    %378 = tpu.matmul %375, %377, %cst_347 {dimension_numbers = #tpu.dot_dimension_numbers<[1], [0], [0], [1], [0, 0, 1, 1], [], []>} : vector<1x32xf32>, vector<32x32xf32>, vector<1x32xf32> -> vector<1x32xf32>
    %379 = arith.addf %374, %378 : vector<1x32xf32>
    %380 = vector.extract_strided_slice %365 {offsets = [3, 0], sizes = [1, 32], strides = [1, 1]} : vector<8x32xf32> to vector<1x32xf32>
    %c3_348 = arith.constant 3 : index
    %c0_349 = arith.constant 0 : index
    %c0_350 = arith.constant 0 : index
    %381 = vector.load %arg6[%c3_348, %c0_349, %c0_350] : memref<8x32x32xf32, #tpu.memory_space<vmem>>, vector<1x32x32xf32>
    %382 = vector.shape_cast %381 : vector<1x32x32xf32> to vector<32x32xf32>
    %cst_351 = arith.constant dense<0.000000e+00> : vector<1x32xf32>
    %383 = tpu.matmul %380, %382, %cst_351 {dimension_numbers = #tpu.dot_dimension_numbers<[1], [0], [0], [1], [0, 0, 1, 1], [], []>} : vector<1x32xf32>, vector<32x32xf32>, vector<1x32xf32> -> vector<1x32xf32>
    %384 = arith.addf %379, %383 : vector<1x32xf32>
    %385 = vector.extract_strided_slice %365 {offsets = [4, 0], sizes = [1, 32], strides = [1, 1]} : vector<8x32xf32> to vector<1x32xf32>
    %c4_352 = arith.constant 4 : index
    %c0_353 = arith.constant 0 : index
    %c0_354 = arith.constant 0 : index
    %386 = vector.load %arg6[%c4_352, %c0_353, %c0_354] : memref<8x32x32xf32, #tpu.memory_space<vmem>>, vector<1x32x32xf32>
    %387 = vector.shape_cast %386 : vector<1x32x32xf32> to vector<32x32xf32>
    %cst_355 = arith.constant dense<0.000000e+00> : vector<1x32xf32>
    %388 = tpu.matmul %385, %387, %cst_355 {dimension_numbers = #tpu.dot_dimension_numbers<[1], [0], [0], [1], [0, 0, 1, 1], [], []>} : vector<1x32xf32>, vector<32x32xf32>, vector<1x32xf32> -> vector<1x32xf32>
    %389 = arith.addf %384, %388 : vector<1x32xf32>
    %390 = vector.extract_strided_slice %365 {offsets = [5, 0], sizes = [1, 32], strides = [1, 1]} : vector<8x32xf32> to vector<1x32xf32>
    %c5 = arith.constant 5 : index
    %c0_356 = arith.constant 0 : index
    %c0_357 = arith.constant 0 : index
    %391 = vector.load %arg6[%c5, %c0_356, %c0_357] : memref<8x32x32xf32, #tpu.memory_space<vmem>>, vector<1x32x32xf32>
    %392 = vector.shape_cast %391 : vector<1x32x32xf32> to vector<32x32xf32>
    %cst_358 = arith.constant dense<0.000000e+00> : vector<1x32xf32>
    %393 = tpu.matmul %390, %392, %cst_358 {dimension_numbers = #tpu.dot_dimension_numbers<[1], [0], [0], [1], [0, 0, 1, 1], [], []>} : vector<1x32xf32>, vector<32x32xf32>, vector<1x32xf32> -> vector<1x32xf32>
    %394 = arith.addf %389, %393 : vector<1x32xf32>
    %395 = vector.extract_strided_slice %365 {offsets = [6, 0], sizes = [1, 32], strides = [1, 1]} : vector<8x32xf32> to vector<1x32xf32>
    %c6 = arith.constant 6 : index
    %c0_359 = arith.constant 0 : index
    %c0_360 = arith.constant 0 : index
    %396 = vector.load %arg6[%c6, %c0_359, %c0_360] : memref<8x32x32xf32, #tpu.memory_space<vmem>>, vector<1x32x32xf32>
    %397 = vector.shape_cast %396 : vector<1x32x32xf32> to vector<32x32xf32>
    %cst_361 = arith.constant dense<0.000000e+00> : vector<1x32xf32>
    %398 = tpu.matmul %395, %397, %cst_361 {dimension_numbers = #tpu.dot_dimension_numbers<[1], [0], [0], [1], [0, 0, 1, 1], [], []>} : vector<1x32xf32>, vector<32x32xf32>, vector<1x32xf32> -> vector<1x32xf32>
    %399 = arith.addf %394, %398 : vector<1x32xf32>
    %400 = vector.extract_strided_slice %365 {offsets = [7, 0], sizes = [1, 32], strides = [1, 1]} : vector<8x32xf32> to vector<1x32xf32>
    %c7 = arith.constant 7 : index
    %c0_362 = arith.constant 0 : index
    %c0_363 = arith.constant 0 : index
    %401 = vector.load %arg6[%c7, %c0_362, %c0_363] : memref<8x32x32xf32, #tpu.memory_space<vmem>>, vector<1x32x32xf32>
    %402 = vector.shape_cast %401 : vector<1x32x32xf32> to vector<32x32xf32>
    %cst_364 = arith.constant dense<0.000000e+00> : vector<1x32xf32>
    %403 = tpu.matmul %400, %402, %cst_364 {dimension_numbers = #tpu.dot_dimension_numbers<[1], [0], [0], [1], [0, 0, 1, 1], [], []>} : vector<1x32xf32>, vector<32x32xf32>, vector<1x32xf32> -> vector<1x32xf32>
    %404 = arith.addf %399, %403 : vector<1x32xf32>
    %c0_365 = arith.constant 0 : index
    %c0_366 = arith.constant 0 : index
    %405 = vector.load %arg7[%c0_365, %c0_366] : memref<1x32xf32, #tpu.memory_space<vmem>>, vector<1x32xf32>
    %406 = arith.addf %404, %405 : vector<1x32xf32>
    %cst_367 = arith.constant 0.000000e+00 : f32
    %407 = vector.broadcast %cst_367 : f32 to vector<1x32xf32>
    %408 = arith.maximumf %406, %407 : vector<1x32xf32>
    %c0_368 = arith.constant 0 : index
    %c0_369 = arith.constant 0 : index
    %409 = vector.load %arg8[%c0_368, %c0_369] : memref<32x32xf32, #tpu.memory_space<vmem>>, vector<32x32xf32>
    %cst_370 = arith.constant dense<0.000000e+00> : vector<1x32xf32>
    %410 = tpu.matmul %408, %409, %cst_370 {dimension_numbers = #tpu.dot_dimension_numbers<[1], [0], [0], [1], [0, 0, 1, 1], [], []>} : vector<1x32xf32>, vector<32x32xf32>, vector<1x32xf32> -> vector<1x32xf32>
    %c0_371 = arith.constant 0 : index
    %c0_372 = arith.constant 0 : index
    %411 = vector.load %arg9[%c0_371, %c0_372] : memref<1x32xf32, #tpu.memory_space<vmem>>, vector<1x32xf32>
    %412 = arith.addf %410, %411 : vector<1x32xf32>
    %c0_373 = arith.constant 0 : index
    %c0_374 = arith.constant 0 : index
    %c0_375 = arith.constant 0 : index
    %413 = vector.load %arg10[%c0_373, %c0_374, %c0_375] : memref<1x1x32xf32, #tpu.memory_space<vmem>>, vector<1x1x32xf32>
    %414 = vector.shape_cast %413 : vector<1x1x32xf32> to vector<1x32xf32>
    %415 = vector.shape_cast %412 : vector<1x32xf32> to vector<1x1x32xf32>
    tpu.vector_store %arg10[%c0_373, %c0_374, %c0_375], %415 {strides = array<i32>} : memref<1x1x32xf32, #tpu.memory_space<vmem>>, vector<1x1x32xf32>,
    return
  }
  func.func @transform_0(%arg0: i32) -> (i32, i32, i32) {
    %c0_i32 = arith.constant 0 : i32
    %c0_i32_0 = arith.constant 0 : i32
    %c0_i32_1 = arith.constant 0 : i32
    return %arg0, %c0_i32, %c0_i32_0 : i32, i32, i32
  }
  func.func @transform_1(%arg0: i32) -> (i32, i32, i32) {
    %c0_i32 = arith.constant 0 : i32
    %c0_i32_0 = arith.constant 0 : i32
    %c0_i32_1 = arith.constant 0 : i32
    %c0_i32_2 = arith.constant 0 : i32
    return %c0_i32, %c0_i32_0, %c0_i32_1 : i32, i32, i32
  }
  func.func @transform_2(%arg0: i32) -> (i32, i32) {
    %c0_i32 = arith.constant 0 : i32
    %c0_i32_0 = arith.constant 0 : i32
    %c0_i32_1 = arith.constant 0 : i32
    return %c0_i32, %c0_i32_0 : i32, i32
  }
  func.func @transform_3(%arg0: i32) -> (i32, i32, i32) {
    %c0_i32 = arith.constant 0 : i32
    %c0_i32_0 = arith.constant 0 : i32
    %c0_i32_1 = arith.constant 0 : i32
    %c0_i32_2 = arith.constant 0 : i32
    return %c0_i32, %c0_i32_0, %c0_i32_1 : i32, i32, i32
  }
  func.func @transform_4(%arg0: i32) -> (i32, i32) {
    %c0_i32 = arith.constant 0 : i32
    %c0_i32_0 = arith.constant 0 : i32
    %c0_i32_1 = arith.constant 0 : i32
    return %c0_i32, %c0_i32_0 : i32, i32
  }
  func.func @transform_5(%arg0: i32) -> (i32, i32, i32) {
    %c0_i32 = arith.constant 0 : i32
    %c0_i32_0 = arith.constant 0 : i32
    %c0_i32_1 = arith.constant 0 : i32
    %c0_i32_2 = arith.constant 0 : i32
    return %c0_i32, %c0_i32_0, %c0_i32_1 : i32, i32, i32
  }
  func.func @transform_6(%arg0: i32) -> (i32, i32) {
    %c0_i32 = arith.constant 0 : i32
    %c0_i32_0 = arith.constant 0 : i32
    %c0_i32_1 = arith.constant 0 : i32
    return %c0_i32, %c0_i32_0 : i32, i32
  }
  func.func @transform_7(%arg0: i32) -> (i32, i32) {
    %c0_i32 = arith.constant 0 : i32
    %c0_i32_0 = arith.constant 0 : i32
    %c0_i32_1 = arith.constant 0 : i32
    return %c0_i32, %c0_i32_0 : i32, i32
  }
  func.func @transform_8(%arg0: i32) -> (i32, i32) {
    %c0_i32 = arith.constant 0 : i32
    %c0_i32_0 = arith.constant 0 : i32
    %c0_i32_1 = arith.constant 0 : i32
    return %c0_i32, %c0_i32_0 : i32, i32
  }
  func.func @transform_9(%arg0: i32) -> (i32, i32, i32) {
    %c0_i32 = arith.constant 0 : i32
    %c0_i32_0 = arith.constant 0 : i32
    %c0_i32_1 = arith.constant 0 : i32
    return %arg0, %c0_i32, %c0_i32_0 : i32, i32, i32
  }
}

</mosaic_0001>

<bundles_post_ra>
// kernel: anomaly_classifier_forward.1
= control target key start
LH: loop header
LB: loop body
LE: loop exit
PB: predicated region body
PF: predicated region fallthrough
CT: control target
= control target key end

     0   :  { %14 = vsyncpa [#allocation4], 0  ;;  %s17772_s0 = inlined_call_operand.vmem [shape: f32[2,177,4], index: 0, kind: input, shape index: {}]   ;;  %s17773_s1 = inlined_call_operand.vmem [shape: f32[5,4,32], index: 1, kind: input, shape index: {}]   ;;  %s17774_s2 = inlined_call_operand.vmem [shape: f32[1,32], index: 2, kind: input, shape index: {}]   ;;  %s17775_s3 = inlined_call_operand.hbm [shape: f32[5,32,32], index: 3, kind: input, shape index: {}]   ;;  %s17776_s4 = inlined_call_operand.vmem [shape: f32[1,32], index: 4, kind: input, shape index: {}]   ;;  %s17777_s5 = inlined_call_operand.vmem [shape: f32[8,32,32], index: 5, kind: input, shape index: {}]   ;;  %s17778_s6 = inlined_call_operand.vmem [shape: f32[1,32], index: 6, kind: input, shape index: {}]   ;;  %s17779_s7 = inlined_call_operand.vmem [shape: f32[32,32], index: 7, kind: input, shape index: {}]   ;;  %s17780_s8 = inlined_call_operand.vmem [shape: f32[1,32], index: 8, kind: input, shape index: {}]   ;;  %s17781_s9 = inlined_call_operand.hbm [shape: f32[2,1,32], index: 9, kind: output, shape index: {}]  }
   0x1   :  { %15 = vsyncpa [#allocation5], 0 }
   0x2   :  { %17 = vsyncpa [#allocation5 + $0x1], 0  ;;  %s14736_s30 = smov 0   ;;  %s14738_s10 = smov 0  }
   0x3   :  { %s14740_s11 = smov 0   ;;  %s14742_s12 = smov 0  }
   0x4 LB: > { %s14757_s13 = sadd.s32 4294967295, %s14675_s12   ;;  %s10900_s14 = sadd.s32 4294967294, %s14675_s12   ;;  %s14675_s12 = sphi %s14742_s12, %s17917_s12   ;;  %s14671_s11 = sphi %s14740_s11, %s17916_s11   ;;  %s14667_s10 = sphi %s14738_s10, %s17915_s10   ;;  %s14663_s30 = sphi %s14736_s30, %s17914_s30  }
   0x5   : > { %s14761_s15 = sadd.s32 1, %s14675_s12   ;;  %s224_s16 = sadd.s32 1, %s14671_s11 }
   0x6   : > { %s221_s17 = ssub.s32 %s14675_s12, %s14761_s15  ;;  %p234_p0 = scmp.ne.s32.totalorder %s14671_s11, %s14667_s10 }
   0x7   : > { %p222_p1 = scmp.eq.s32.totalorder %s221_s17, 0  ;;  %p235_p2 = scmp.eq.s32.totalorder %s14757_s13, 1 }
   0x8   : > { %p240_p3 = scmp.ne.s32.totalorder %s14667_s10, %s14663_s30  ;;  %p241_p4 = scmp.eq.s32.totalorder %s10900_s14, 1 }
   0x9   : > { %s14772_s18 = scalar_select %p222_p1, %s14671_s11, %s224_s16  }
   0xa   : > { %p14774_p5 = por %p235_p2, %p234_p0  ;;  %p14778_p6 = por %p241_p4, %p240_p3 }
   0xb   : > { %p10901_p7 = scmp.ge.s32.totalorder %s14675_s12, 1  ;;  %p248_p8 = scmp.lt.s32.totalorder %s14675_s12, 3 }
   0xc   : > { %s17797_s19 = scalar_select %p14774_p5, 1, 0 }
   0xd   : > { %s17798_s20 = scalar_select %p14778_p6, 1, 0 }
   0xe   : > { %p17782_p9 = scmp.eq.s32.totalorder %s14757_s13, 0  ;;  %p14785_p10 = pnand %p10901_p7, %p248_p8 }
   0xf   : > { %s14677_s22 = smov [#allocation3]   ;;  %s14581_s27 = scalar_lea.hbm %s17775_s3, 2560 }
  0x10   : > { %s17799_s21 = scalar_select %p14785_p10, 1, 0 }
  0x11   : > { %s266_s23 = sshll.u32 %s14677_s22, 4  ;;  %p14526_p11 = pneg %p14785_p10  ;;  %s267_s23 = int_to_ptr.vmem [resolvable:$true] %s266_s23 }
  0x12   : > { %p14582_p13 = scmp.ne.s32.totalorder %s17775_s3, %s14581_s27  ;;  %p14588_p3 = scmp.lt.u32.totalorder %s14581_s27, %s17775_s3 }
  0x13   : > { %p14793_p12 = pnand %p17782_p9, %p14526_p11 }
  0x15   : > { %p14583_p0 = pneg %p14793_p12 }
  0x17   : > { %p14584_p1 = pnand %p14583_p0, %p14582_p13 }
  0x19   : > { %p14585_p2 = pneg %p14584_p1 }
  0x1b   : > { %p14590_p4 = pnand %p14588_p3, %p14585_p2 }
  0x1d   : > { %14593 = shalt.err (!%p14590_p4)
}
  0x1e   : > { %s14594_s17 = scalar_lea.vmem %s267_s23, 2560  ;;  %p14602_p9 = scmp.lt.s32.totalorder %s267_s23, %s267_s23 }
  0x1f   : > { %p14595_p7 = scmp.ne.s32.totalorder %s267_s23, %s14594_s17  ;;  %p14603_p6 = scmp.lt.s32.totalorder %s14594_s17, %s14594_s17 }
  0x21   : > { %p14597_p8 = pnand %p14595_p7, %p14583_p0  ;;  %p14604_p5 = por %p14603_p6, %p14602_p9 }
  0x23   : > { %p14598_p11 = pneg %p14597_p8 }
  0x25   : > { %p14605_p10 = pnand %p14604_p5, %p14598_p11 }
  0x27   : > { %14608 = shalt.err (!%p14605_p10)
}
  0x28   : > { %s14678_s22 = smov 128   ;;  %s14679_s25 = smov 8  }
  0x29   : > { %14529 = dma.hbm_to_vmem [thread:$0]  (!%p14793_p12), %s17775_s3, 2560, %s267_s23, [#allocation4], %s14678_s22, %s14678_s22, %s14679_s25  }
  0x2a   : > { %p17801_p13 = scmp.ne.s32.totalorder %s17799_s21, 0 }
  0x2c   : > { %305 = sbr.rel (%p17801_p13) target bundleno = 4517 (0x11a5), region = 56 }
  0x33   : > { %p17802_p1 = scmp.eq.s32.totalorder %s14757_s13, 0 }
  0x35   : > { %14654 = dma.done.wait (%p17802_p1), [#allocation4], 2560   ;;  %p17803_p0 = pmov %p17802_p1 }
  0x36   : > { %p340_p5 = scmp.lt.s32.totalorder %s14757_s13, 1  ;;  %vm17790_vm0 = vcmask 1043456   ;;  %v10907_v0 = vld [vmem:[%s17773_s1 + $0x4] sm:$0xf]  ;;  %vm17793_vm1 = vcmask 1046528   ;;  %vm439_vm2 = vcmask 31744  }
  0x37   : > { %14656 = vsyncadd (%p17803_p0), [#allocation4], 4294964736  ;;  %12314 = vmatprep.subr.msk.mxu0 %vm17790_vm0, %v10907_v0  ;;  %v370_v15 = vld [vmem:[%s17773_s1] sm:$0xf]  ;;  %v14886_v26 = vld [vmem:[%s17773_s1 + $0x8] sm:$0xf] }
  0x38   : > { %s341_s27 = scalar_select %p340_p5, %s14757_s13, 1  ;;  %12315 = vmatpush3.msk.msra.mxu0 %vm17790_vm0, %v10907_v0  ;;  %vm17792_vm3 = vcmask 1045504   ;;  %vm17791_vm4 = vcmask 1044480   ;;  %vm1785_vm5 = vcmask 254976   ;;  %vm1787_vm6 = vcmask 261120  }
  0x39   : > { %12349 = vmatprep.subr.msk.mxu0 %vm17790_vm0, %v370_v15  ;;  %vm1809_vm7 = vcmask 258048   ;;  %vm5220_vm8 = vcmask 334848   ;;  %vm17789_vm10 = vcmask 1040384   ;;  %vm17788_vm11 = vmmov 1   ;;  %s338_s23 = sand.u32 1, %s14667_s10   ;;  %s11543_s22 = sshll.u32 %s14757_s13, 4 }
  0x3a   : > { %s14519_s29 = smul.u32 184, %s341_s27  ;;  %vm13917_vm12 = vmpackc.low %vm17789_vm10, %vm17788_vm11  ;;  %s339_s25 = scalar_lea.vmem [#allocation6], %s338_s23 }
  0x3b   : > { %s10833_s26 = sshll.u32 %s339_s25, 4  ;;  %s10821_s24 = scalar_lea.sflag [#allocation5], %s338_s23  ;;  %s17731_s26 = int_to_ptr.vmem [resolvable:$true] %s10833_s26 }
  0x3c   : > { %s14824_s16 = scalar_lea.vmem %s17772_s0, %s14519_s29  ;;  %s17729_s29 = scalar_lea.hbm %s17781_s9, %s11543_s22 }
  0x3d   : > { %v14830_v1 = vld [vmem:[%s14824_s16] sm:$0xff]  ;;  %v14833_v2 = vld [vmem:[%s14824_s16 + $0x8] sm:$0xff]  ;;  %v14839_v5 = vld [vmem:[%s14824_s16 + $0x10] sm:$0xff]  ;;  %s14609_s14 = scalar_lea.vmem %s17731_s26, 16  ;;  %p17912_p9 = scmp.ne.s32.totalorder %s17797_s19, 0 }
  0x3e   : > { %v396_v3 = vrot.slane %v14830_v1, 1  ;;  %v397_v4 = vrot.slane %v14833_v2, 1  ;;  %v14842_v6 = vld [vmem:[%s14824_s16 + $0x18] sm:$0xff]  ;;  %v14845_v7 = vld [vmem:[%s14824_s16 + $0x20] sm:$0xff]  ;;  %v399_v8 = vrot.slane %v14839_v5, 1  ;;  %v14852_v11 = vld [vmem:[%s14824_s16 + $0x28] sm:$0xff]  ;;  %p14610_p6 = scmp.ne.s32.totalorder %s17731_s26, %s14609_s14 }
  0x3f   : > { %v401_v9 = vrot.slane %v14842_v6, 1  ;;  %v403_v10 = vrot.slane %v14845_v7, 1  ;;  %v405_v13 = vrot.slane %v14852_v11, 1  ;;  %v14857_v14 = vld [vmem:[%s14824_s16 + $0x30] sm:$0xff]  ;;  %v14867_v18 = vld [vmem:[%s14824_s16 + $0x38] sm:$0xff]  ;;  %v14870_v19 = vld [vmem:[%s14824_s16 + $0x40] sm:$0xff] }
  0x40   : > { %v398_v12 = vsel %vm17793_vm1, %v396_v3, %v397_v4  ;;  %v400_v16 = vsel %vm17793_vm1, %v397_v4, %v399_v8  ;;  %v407_v21 = vrot.slane %v14857_v14, 1  ;;  %v14878_v22 = vld [vmem:[%s14824_s16 + $0x48] sm:$0xff]  ;;  %v409_v24 = vrot.slane %v14867_v18, 1  ;;  %v14891_v28 = vld [vmem:[%s14824_s16 + $0x50] sm:$0xff]  ;;  %v14894_v29 = vld [vmem:[%s14824_s16 + $0x58] sm:$0xff]  ;;  %p14611_p10 = pnand %p14610_p6, %p17912_p9  ;;  %s14685_s13 = smov [#allocation6]  }
  0x41   : > { %12316 = vmatprep.mubr.msk.f32.mxu0 %vm439_vm2, %v398_v12  ;;  %v402_v17 = vsel %vm17793_vm1, %v399_v8, %v401_v9  ;;  %v404_v20 = vsel %vm17793_vm1, %v401_v9, %v403_v10  ;;  %v406_v23 = vsel %vm17793_vm1, %v403_v10, %v405_v13  ;;  %v411_v25 = vrot.slane %v14870_v19, 1  ;;  %v14897_v30 = vld [vmem:[%s14824_s16 + $0x60] sm:$0xff]  ;;  %v14929_v49 = vld [vmem:[%s14824_s16 + $0x68] sm:$0xff]  ;;  %v14932_v50 = vld [vmem:[%s14824_s16 + $0x70] sm:$0xff] }
  0x42   : > { %12317 = vmatmul.mubr.msk.f32.vlgmr.msra.gmra.mrb[0].mxu0 %vm439_vm2, %v400_v16  ;;  %v413_v27 = vrot.slane %v14878_v22, 1  ;;  %v888_v31 = vrot.slane %v14830_v1, 2  ;;  %v408_v32 = vsel %vm17793_vm1, %v405_v13, %v407_v21  ;;  %v410_v33 = vsel %vm17793_vm1, %v407_v21, %v409_v24  ;;  %v14941_v55 = vld [vmem:[%s14824_s16 + $0x78] sm:$0xff]  ;;  %v14969_v8 = vld [vmem:[%s14824_s16 + $0x80] sm:$0xff]  ;;  %p14612_p12 = pneg %p14611_p10 }
  0x43   : > { %12319 = vmatprep.mubr.msk.f32.mxu0 %vm439_vm2, %v402_v17  ;;  %12350 = vmatpush3.msk.msra.mxu0 %vm17790_vm0, %v370_v15  ;;  %v412_v34 = vsel %vm17793_vm1, %v409_v24, %v411_v25  ;;  %v889_v35 = vrot.slane %v14833_v2, 2  ;;  %v891_v36 = vrot.slane %v14839_v5, 2  ;;  %v415_v37 = vrot.slane %v14891_v28, 1  ;;  %v14985_v17 = vld [vmem:[%s14824_s16 + $0x88] sm:$0xff] }
  0x44   : > { %12384 = vmatprep.subr.msk.mxu0 %vm17790_vm0, %v14886_v26  ;;  %v417_v38 = vrot.slane %v14894_v29, 1  ;;  %v419_v39 = vrot.slane %v14897_v30, 1  ;;  %v893_v40 = vrot.slane %v14842_v6, 2  ;;  %v414_v41 = vsel %vm17793_vm1, %v411_v25, %v413_v27 }
  0x45   : > { %v14915_v42 = vsel %vm17792_vm3, %v888_v31, %v889_v35  ;;  %v14918_v43 = vsel %vm17792_vm3, %v889_v35, %v891_v36  ;;  %v895_v44 = vrot.slane %v14845_v7, 2  ;;  %v897_v46 = vrot.slane %v14852_v11, 2 }
  0x46   : > { %12320 = vmatmul.mubr.msk.f32.gmra.mrb[2].mxu0 %vm439_vm2, %v404_v20  ;;  %v14923_v45 = vsel %vm17792_vm3, %v891_v36, %v893_v40  ;;  %v899_v47 = vrot.slane %v14857_v14, 2  ;;  %v901_v48 = vrot.slane %v14867_v18, 2  ;;  %v903_v52 = vrot.slane %v14870_v19, 2 }
  0x47   : > { %12322 = vmatprep.mubr.msk.f32.mxu0 %vm439_vm2, %v406_v23  ;;  %v14935_v51 = vsel %vm17792_vm3, %v893_v40, %v895_v44  ;;  %v905_v53 = vrot.slane %v14878_v22, 2  ;;  %v907_v54 = vrot.slane %v14891_v28, 2  ;;  %v14944_v56 = vsel %vm17792_vm3, %v895_v44, %v897_v46 }
  0x48   : > { %v14947_v57 = vsel %vm17792_vm3, %v897_v46, %v899_v47  ;;  %v14950_v58 = vsel %vm17792_vm3, %v899_v47, %v901_v48  ;;  %v909_v59 = vrot.slane %v14894_v29, 2  ;;  %v14955_v60 = vsel %vm17792_vm3, %v901_v48, %v903_v52  ;;  %v15022_v47 = vld [vmem:[%s14824_s16 + $0x90] sm:$0xff] }
  0x49   : > { %v14958_v61 = vsel %vm17792_vm3, %v903_v52, %v905_v53  ;;  %v14961_v62 = vsel %vm17792_vm3, %v905_v53, %v907_v54  ;;  %v911_v63 = vrot.slane %v14897_v30, 2  ;;  %v416_v0 = vsel %vm17793_vm1, %v413_v27, %v415_v37 }
  0x4a   : > { %12323 = vmatmul.mubr.msk.f32.gmra.mrb[4].mxu0 %vm439_vm2, %v408_v32  ;;  %v421_v3 = vrot.slane %v14929_v49, 1  ;;  %v423_v4 = vrot.slane %v14932_v50, 1  ;;  %v14972_v9 = vsel %vm17792_vm3, %v907_v54, %v909_v59  ;;  %v418_v10 = vsel %vm17793_vm1, %v415_v37, %v417_v38 }
  0x4b   : > { %12325 = vmatprep.mubr.msk.f32.mxu0 %vm439_vm2, %v410_v33  ;;  %v425_v12 = vrot.slane %v14941_v55, 1  ;;  %v14979_v13 = vsel %vm17792_vm3, %v909_v59, %v911_v63  ;;  %v420_v15 = vsel %vm17793_vm1, %v417_v38, %v419_v39  ;;  %v427_v16 = vrot.slane %v14969_v8, 1  ;;  %v15031_v59 = vld [vmem:[%s14824_s16 + $0x98] sm:$0xff] }
  0x4c   : > { %v422_v20 = vsel %vm17793_vm1, %v419_v39, %v421_v3  ;;  %v424_v21 = vsel %vm17793_vm1, %v421_v3, %v423_v4  ;;  %v1178_v23 = vrot.slane %v14830_v1, 3  ;;  %v1179_v25 = vrot.slane %v14833_v2, 3 }
  0x4d   : > { %v426_v24 = vsel %vm17793_vm1, %v423_v4, %v425_v12  ;;  %v1181_v27 = vrot.slane %v14839_v5, 3  ;;  %v1183_v31 = vrot.slane %v14842_v6, 3  ;;  %v429_v32 = vrot.slane %v14985_v17, 1 }
  0x4e   : > { %12326 = vmatmul.mubr.msk.f32.gmra.mrb[6].mxu0 %vm439_vm2, %v412_v34  ;;  %v1185_v33 = vrot.slane %v14845_v7, 3  ;;  %v1187_v34 = vrot.slane %v14852_v11, 3  ;;  %v1189_v35 = vrot.slane %v14857_v14, 3  ;;  %v15001_v36 = vsel %vm17791_vm4, %v1178_v23, %v1179_v25 }
  0x4f   : > { %12328 = vmatprep.mubr.msk.f32.mxu0 %vm439_vm2, %v414_v41  ;;  %v15004_v37 = vsel %vm17791_vm4, %v1179_v25, %v1181_v27  ;;  %v15007_v38 = vsel %vm17791_vm4, %v1181_v27, %v1183_v31  ;;  %v1191_v39 = vrot.slane %v14867_v18, 3  ;;  %v1193_v46 = vrot.slane %v14870_v19, 3 }
  0x50   : > { %v15012_v40 = vsel %vm17791_vm4, %v1183_v31, %v1185_v33  ;;  %v15015_v41 = vsel %vm17791_vm4, %v1185_v33, %v1187_v34  ;;  %v15018_v44 = vsel %vm17791_vm4, %v1187_v34, %v1189_v35  ;;  %v1195_v52 = vrot.slane %v14878_v22, 3  ;;  %v15058_v31 = vld [vmem:[%s14824_s16 + $0xa0] sm:$0xff]  ;;  %v15061_v33 = vld [vmem:[%s14824_s16 + $0xa8] sm:$0xff] }
  0x51   : > { %v15025_v48 = vsel %vm17791_vm4, %v1189_v35, %v1191_v39  ;;  %v1197_v53 = vrot.slane %v14891_v28, 3  ;;  %v1199_v54 = vrot.slane %v14894_v29, 3  ;;  %v1201_v3 = vrot.slane %v14897_v30, 3 }
  0x52   : > { %12329 = vmatmul.mubr.msk.f32.gmra.mrb[8].mxu0 %vm439_vm2, %v416_v0  ;;  %v15034_v0 = vsel %vm17791_vm4, %v1191_v39, %v1193_v46  ;;  %v15039_v4 = vsel %vm17791_vm4, %v1193_v46, %v1195_v52  ;;  %v431_v23 = vrot.slane %v15022_v47, 1  ;;  %v433_v27 = vrot.slane %v15031_v59, 1 }
  0x53   : > { %12331 = vmatprep.mubr.msk.f32.mxu0 %vm439_vm2, %v418_v10  ;;  %v15042_v10 = vsel %vm17791_vm4, %v1195_v52, %v1197_v53  ;;  %v15053_v25 = vsel %vm17791_vm4, %v1199_v54, %v1201_v3  ;;  %v437_v35 = vrot.slane %v15061_v33, 1  ;;  %v1468_v46 = vrot.slane %v14830_v1, 4 }
  0x54   : > { %v434_v34 = vsel %vm17793_vm1, %v431_v23, %v433_v27  ;;  %v1469_v52 = vrot.slane %v14833_v2, 4 }
  0x56   : > { %12332 = vmatmul.mubr.msk.f32.gmra.mrb[10].mxu0 %vm439_vm2, %v420_v15  ;;  %v15045_v15 = vsel %vm17791_vm4, %v1197_v53, %v1199_v54  ;;  %v1471_v53 = vrot.slane %v14839_v5, 4  ;;  %v15092_v54 = vsel %vm17790_vm0, %v1468_v46, %v1469_v52  ;;  %v929_v46 = vrot.slane %v15061_v33, 2 }
  0x57   : > { %12334 = vmatprep.mubr.msk.f32.mxu0 %vm439_vm2, %v422_v20  ;;  %v428_v20 = vsel %vm17793_vm1, %v425_v12, %v427_v16  ;;  %v432_v12 = vsel %vm17793_vm1, %v429_v32, %v431_v23  ;;  %v1477_v23 = vrot.slane %v14852_v11, 4 }
  0x5a   : > { %12335 = vmatmul.mubr.msk.f32.gmra.mrb[12].mxu0 %vm439_vm2, %v424_v21  ;;  %v430_v21 = vsel %vm17793_vm1, %v427_v16, %v429_v32  ;;  %v10978_v32 = vld [vmem:[%s17773_s1 + $0xc] sm:$0xf] }
  0x5b   : > { %12337 = vmatprep.mubr.msk.f32.mxu0 %vm439_vm2, %v426_v24  ;;  %v435_v24 = vrot.slane %v15058_v31, 1 }
  0x5d   : > { %v436_v16 = vsel %vm17793_vm1, %v433_v27, %v435_v24  ;;  %v438_v39 = vsel %vm17793_vm1, %v435_v24, %v437_v35  ;;  %v1481_v27 = vrot.slane %v14867_v18, 4  ;;  %v1485_v24 = vrot.slane %v14878_v22, 4 }
  0x5e   : > { %12338 = vmatmul.mubr.msk.f32.gmra.mrb[14].mxu0 %vm439_vm2, %v428_v20  ;;  %v15095_v20 = vsel %vm17790_vm0, %v1469_v52, %v1471_v53 }
  0x5f   : > { %12340 = vmatprep.mubr.msk.f32.mxu0 %vm439_vm2, %v430_v21 }
  0x62   : > { %12341 = vmatmul.mubr.msk.f32.gmra.mrb[16].mxu0 %vm439_vm2, %v432_v12 }
  0x63   : > { %12343 = vmatprep.mubr.msk.f32.mxu0 %vm439_vm2, %v434_v34 }
  0x66   : > { %12344 = vmatmul.mubr.msk.f32.gmra.mrb[18].mxu0 %vm439_vm2, %v436_v16 }
  0x67   : > { %12346 = vmatprep.mubr.msk.f32.mxu0 %vm439_vm2, %v438_v39  ;;  %v927_v39 = vrot.slane %v15058_v31, 2 }
  0x6a   : > { %12347 = vmatmul.mubr.msk.f32.gmra.mrb[20].mxu0 %vm439_vm2, %v437_v35  ;;  %v1489_v35 = vrot.slane %v14894_v29, 4 }
  0x6b   : > { %12351 = vmatprep.mubr.msk.f32.mxu0 %vm439_vm2, %v14830_v1  ;;  %v1473_v1 = vrot.slane %v14842_v6, 4 }
  0x6e   : > { %12352 = vmatmul.mubr.msk.f32.vlgmr.msra.gmra.mrb[0].mxu0 %vm439_vm2, %v14833_v2  ;;  %v1475_v2 = vrot.slane %v14845_v7, 4 }
  0x6f   : > { %12354 = vmatprep.mubr.msk.f32.mxu0 %vm439_vm2, %v14839_v5  ;;  %12385 = vmatpush3.msk.msra.mxu0 %vm17790_vm0, %v14886_v26  ;;  %v15104_v5 = vsel %vm17790_vm0, %v1471_v53, %v1473_v1  ;;  %v930_v53 = vsel %vm17792_vm3, %v927_v39, %v929_v46 }
  0x70   : > { %12419 = vmatprep.subr.msk.mxu0 %vm17790_vm0, %v10978_v32  ;;  %v15107_v26 = vsel %vm17790_vm0, %v1473_v1, %v1475_v2  ;;  %v15116_v21 = vsel %vm17790_vm0, %v1475_v2, %v1477_v23  ;;  %v1217_v1 = vrot.slane %v15058_v31, 3 }
  0x72   : > { %12355 = vmatmul.mubr.msk.f32.gmra.mrb[2].mxu0 %vm439_vm2, %v14842_v6  ;;  %v1479_v6 = vrot.slane %v14857_v14, 4 }
  0x73   : > { %12357 = vmatprep.mubr.msk.f32.mxu0 %vm439_vm2, %v14845_v7 }
  0x74   : > { %v15119_v7 = vsel %vm17790_vm0, %v1477_v23, %v1479_v6  ;;  %v15128_v12 = vsel %vm17790_vm0, %v1479_v6, %v1481_v27  ;;  %v1219_v23 = vrot.slane %v15061_v33, 3 }
  0x76   : > { %12358 = vmatmul.mubr.msk.f32.gmra.mrb[4].mxu0 %vm439_vm2, %v14852_v11  ;;  %v1483_v11 = vrot.slane %v14870_v19, 4 }
  0x77   : > { %12360 = vmatprep.mubr.msk.f32.mxu0 %vm439_vm2, %v14857_v14 }
  0x78   : > { %v15131_v14 = vsel %vm17790_vm0, %v1481_v27, %v1483_v11  ;;  %v15140_v34 = vsel %vm17790_vm0, %v1483_v11, %v1485_v24  ;;  %v1220_v27 = vsel %vm17791_vm4, %v1217_v1, %v1219_v23 }
  0x7a   : > { %12361 = vmatmul.mubr.msk.f32.gmra.mrb[6].mxu0 %vm439_vm2, %v14867_v18  ;;  %v1487_v18 = vrot.slane %v14891_v28, 4 }
  0x7b   : > { %12363 = vmatprep.mubr.msk.f32.mxu0 %vm439_vm2, %v14870_v19 }
  0x7c   : > { %v15143_v19 = vsel %vm17790_vm0, %v1485_v24, %v1487_v18  ;;  %v15152_v16 = vsel %vm17790_vm0, %v1487_v18, %v1489_v35  ;;  %v1509_v24 = vrot.slane %v15061_v33, 4  ;;  %v367_v18 = vld [vmem:[%s14824_s16 + $0xb0] sm:$0x1]  ;;  %s14613_s16 = sshll.u32 %s14685_s13, 4  ;;  %s14614_s16 = int_to_ptr.vmem [resolvable:$false] %s14613_s16 }
  0x7d   : > { %s14615_s21 = scalar_lea.vmem %s14614_s16, 32  ;;  %p14616_p2 = scmp.lt.s32.totalorder %s17731_s26, %s14614_s16 }
  0x7e   : > { %12364 = vmatmul.mubr.msk.f32.gmra.mrb[8].mxu0 %vm439_vm2, %v14878_v22  ;;  %v1491_v22 = vrot.slane %v14897_v30, 4  ;;  %p14617_p3 = scmp.lt.s32.totalorder %s14615_s21, %s14609_s14 }
  0x7f   : > { %12366 = vmatprep.mubr.msk.f32.mxu0 %vm439_vm2, %v14891_v28 }
  0x80   : > { %v15157_v28 = vsel %vm17790_vm0, %v1489_v35, %v1491_v22  ;;  %v17785_v35 = vmov 0.0   ;;  %p14618_p4 = por %p14617_p3, %p14616_p2 }
  0x81   : > { %1786 = vst.msk [vmem:[#allocation2] sm:$0x3] %vm1785_vm5, %v17785_v35  ;;  %1811 = vst.msk [vmem:[#allocation2 + $0xaf] sm:$0x3] %vm1785_vm5, %v17785_v35 }
  0x82   : > { %12367 = vmatmul.mubr.msk.f32.gmra.mrb[10].mxu0 %vm439_vm2, %v14894_v29  ;;  %v11002_v29 = vld [vmem:[%s17773_s1 + $0x10] sm:$0xf]  ;;  %p14619_p7 = pnand %p14618_p4, %p14612_p12 }
  0x83   : > { %12369 = vmatprep.mubr.msk.f32.mxu0 %vm439_vm2, %v14897_v30 }
  0x86   : > { %12370 = vmatmul.mubr.msk.f32.gmra.mrb[12].mxu0 %vm439_vm2, %v14929_v49 }
  0x87   : > { %12372 = vmatprep.mubr.msk.f32.mxu0 %vm439_vm2, %v14932_v50 }
  0x8a   : > { %12373 = vmatmul.mubr.msk.f32.gmra.mrb[14].mxu0 %vm439_vm2, %v14941_v55 }
  0x8b   : > { %12375 = vmatprep.mubr.msk.f32.mxu0 %vm439_vm2, %v14969_v8 }
  0x8e   : > { %12376 = vmatmul.mubr.msk.f32.gmra.mrb[16].mxu0 %vm439_vm2, %v14985_v17 }
  0x8f   : > { %12378 = vmatprep.mubr.msk.f32.mxu0 %vm439_vm2, %v15022_v47 }
  0x92   : > { %12379 = vmatmul.mubr.msk.f32.gmra.mrb[18].mxu0 %vm439_vm2, %v15031_v59 }
  0x93   : > { %12381 = vmatprep.mubr.msk.f32.mxu0 %vm439_vm2, %v15058_v31 }
  0x96   : > { %12382 = vmatmul.mubr.msk.f32.gmra.mrb[20].mxu0 %vm439_vm2, %v15061_v33  ;;  %v1861_v33 = vld [vmem:[#allocation3 + $0x20] sm:$0xff] }
  0x97   : > { %12386 = vmatprep.mubr.msk.f32.mxu0 %vm439_vm2, %v14915_v42  ;;  %v913_v42 = vrot.slane %v14929_v49, 2 }
  0x9a   : > { %12387 = vmatmul.mubr.msk.f32.vlgmr.msra.gmra.mrb[0].mxu0 %vm439_vm2, %v14918_v43  ;;  %v915_v43 = vrot.slane %v14932_v50, 2 }
  0x9b   : > { %12389 = vmatprep.mubr.msk.f32.mxu0 %vm439_vm2, %v14923_v45  ;;  %12420 = vmatpush3.msk.msra.mxu0 %vm17790_vm0, %v10978_v32  ;;  %v914_v45 = vsel %vm17792_vm3, %v911_v63, %v913_v42 }
  0x9c   : > { %12454 = vmatprep.subr.msk.mxu0 %vm17790_vm0, %v11002_v29 }
  0x9e   : > { %12390 = vmatmul.mubr.msk.f32.gmra.mrb[2].mxu0 %vm439_vm2, %v14935_v51  ;;  %v917_v51 = vrot.slane %v14941_v55, 2 }
  0x9f   : > { %12392 = vmatprep.mubr.msk.f32.mxu0 %vm439_vm2, %v14944_v56  ;;  %v916_v56 = vsel %vm17792_vm3, %v913_v42, %v915_v43  ;;  %v1834_v42 = vld [vmem:[#allocation3] sm:$0xff] }
  0xa2   : > { %12393 = vmatmul.mubr.msk.f32.gmra.mrb[4].mxu0 %vm439_vm2, %v14947_v57  ;;  %v919_v57 = vrot.slane %v14969_v8, 2 }
  0xa3   : > { %12395 = vmatprep.mubr.msk.f32.mxu0 %vm439_vm2, %v14950_v58  ;;  %v918_v58 = vsel %vm17792_vm3, %v915_v43, %v917_v51  ;;  %v1835_v43 = vld [vmem:[#allocation3 + $0x8] sm:$0xff] }
  0xa6   : > { %12396 = vmatmul.mubr.msk.f32.gmra.mrb[6].mxu0 %vm439_vm2, %v14955_v60  ;;  %v921_v60 = vrot.slane %v14985_v17, 2 }
  0xa7   : > { %12398 = vmatprep.mubr.msk.f32.mxu0 %vm439_vm2, %v14958_v61  ;;  %v920_v61 = vsel %vm17792_vm3, %v917_v51, %v919_v57  ;;  %v15358_v51 = vld [vmem:[%s17774_s2] ss:$0 sm:$0xff] }
  0xa8   : > { %v922_v63 = vsel %vm17792_vm3, %v919_v57, %v921_v60 }
  0xaa   : > { %12399 = vmatmul.mubr.msk.f32.gmra.mrb[8].mxu0 %vm439_vm2, %v14961_v62  ;;  %v923_v62 = vrot.slane %v15022_v47, 2 }
  0xab   : > { %12401 = vmatprep.mubr.msk.f32.mxu0 %vm439_vm2, %v14972_v9  ;;  %v925_v9 = vrot.slane %v15031_v59, 2 }
  0xad   : > { %v926_v32 = vsel %vm17792_vm3, %v923_v62, %v925_v9  ;;  %v928_v52 = vsel %vm17792_vm3, %v925_v9, %v927_v39  ;;  %v1836_v39 = vld [vmem:[#allocation3 + $0x10] sm:$0xff] }
  0xae   : > { %12402 = vmatmul.mubr.msk.f32.gmra.mrb[10].mxu0 %vm439_vm2, %v14979_v13  ;;  %v924_v13 = vsel %vm17792_vm3, %v921_v60, %v923_v62 }
  0xaf   : > { %12404 = vmatprep.mubr.msk.f32.mxu0 %vm439_vm2, %v914_v45  ;;  %v15351_v45 = vpack.c.bf16 %v1835_v43, %v1834_v42 }
  0xb2   : > { %12405 = vmatmul.mubr.msk.f32.gmra.mrb[12].mxu0 %vm439_vm2, %v916_v56 }
  0xb3   : > { %12407 = vmatprep.mubr.msk.f32.mxu0 %vm439_vm2, %v918_v58 }
  0xb6   : > { %12408 = vmatmul.mubr.msk.f32.gmra.mrb[14].mxu0 %vm439_vm2, %v920_v61 }
  0xb7   : > { %12410 = vmatprep.mubr.msk.f32.mxu0 %vm439_vm2, %v922_v63 }
  0xba   : > { %12411 = vmatmul.mubr.msk.f32.gmra.mrb[16].mxu0 %vm439_vm2, %v924_v13 }
  0xbb   : > { %12413 = vmatprep.mubr.msk.f32.mxu0 %vm439_vm2, %v926_v32  ;;  %v1837_v32 = vld [vmem:[#allocation3 + $0x18] sm:$0xff] }
  0xbe   : > { %12414 = vmatmul.mubr.msk.f32.gmra.mrb[18].mxu0 %vm439_vm2, %v928_v52 }
  0xbf   : > { %12416 = vmatprep.mubr.msk.f32.mxu0 %vm439_vm2, %v930_v53 }
  0xc2   : > { %12417 = vmatmul.mubr.msk.f32.gmra.mrb[20].mxu0 %vm439_vm2, %v929_v46 }
  0xc3   : > { %12421 = vmatprep.mubr.msk.f32.mxu0 %vm439_vm2, %v15001_v36  ;;  %v1203_v36 = vrot.slane %v14929_v49, 3 }
  0xc6   : > { %12422 = vmatmul.mubr.msk.f32.vlgmr.msra.gmra.mrb[0].mxu0 %vm439_vm2, %v15004_v37  ;;  %v1205_v37 = vrot.slane %v14932_v50, 3 }
  0xc7   : > { %12424 = vmatprep.mubr.msk.f32.mxu0 %vm439_vm2, %v15007_v38  ;;  %12455 = vmatpush3.msk.msra.mxu0 %vm17790_vm0, %v11002_v29  ;;  %v1204_v38 = vsel %vm17791_vm4, %v1201_v3, %v1203_v36 }
  0xca   : > { %12425 = vmatmul.mubr.msk.f32.gmra.mrb[2].mxu0 %vm439_vm2, %v15012_v40  ;;  %v1207_v40 = vrot.slane %v14941_v55, 3 }
  0xcb   : > { %12427 = vmatprep.mubr.msk.f32.mxu0 %vm439_vm2, %v15015_v41  ;;  %v1206_v41 = vsel %vm17791_vm4, %v1203_v36, %v1205_v37 }
  0xce   : > { %12428 = vmatmul.mubr.msk.f32.gmra.mrb[4].mxu0 %vm439_vm2, %v15018_v44  ;;  %v1209_v44 = vrot.slane %v14969_v8, 3 }
  0xcf   : > { %12430 = vmatprep.mubr.msk.f32.mxu0 %vm439_vm2, %v15025_v48  ;;  %v1208_v48 = vsel %vm17791_vm4, %v1205_v37, %v1207_v40 }
  0xd0   : > { %v1210_v3 = vsel %vm17791_vm4, %v1207_v40, %v1209_v44 }
  0xd2   : > { %12431 = vmatmul.mubr.msk.f32.gmra.mrb[6].mxu0 %vm439_vm2, %v15034_v0  ;;  %v1211_v0 = vrot.slane %v14985_v17, 3 }
  0xd3   : > { %12433 = vmatprep.mubr.msk.f32.mxu0 %vm439_vm2, %v15039_v4  ;;  %v1213_v4 = vrot.slane %v15022_v47, 3 }
  0xd6   : > { %12434 = vmatmul.mubr.msk.f32.gmra.mrb[8].mxu0 %vm439_vm2, %v15042_v10  ;;  %v1212_v10 = vsel %vm17791_vm4, %v1209_v44, %v1211_v0 }
  0xd7   : > { %12436 = vmatprep.mubr.msk.f32.mxu0 %vm439_vm2, %v15045_v15  ;;  %v1215_v15 = vrot.slane %v15031_v59, 3 }
  0xd9   : > { %v1216_v2 = vsel %vm17791_vm4, %v1213_v4, %v1215_v15  ;;  %v1218_v6 = vsel %vm17791_vm4, %v1215_v15, %v1217_v1 }
  0xda   : > { %12437 = vmatmul.mubr.msk.f32.gmra.mrb[10].mxu0 %vm439_vm2, %v15053_v25  ;;  %v1214_v25 = vsel %vm17791_vm4, %v1211_v0, %v1213_v4  ;;  %v2370_v0 = vld [vmem:[#allocation3 + $0x40] sm:$0xff] }
  0xdb   : > { %12439 = vmatprep.mubr.msk.f32.mxu0 %vm439_vm2, %v1204_v38  ;;  %v15390_v38 = vpack.c.bf16 %v1837_v32, %v1836_v39 }
  0xde   : > { %12440 = vmatmul.mubr.msk.f32.gmra.mrb[12].mxu0 %vm439_vm2, %v1206_v41 }
  0xdf   : > { %12442 = vmatprep.mubr.msk.f32.mxu0 %vm439_vm2, %v1208_v48 }
  0xe2   : > { %12443 = vmatmul.mubr.msk.f32.gmra.mrb[14].mxu0 %vm439_vm2, %v1210_v3  ;;  %v2371_v3 = vld [vmem:[#allocation3 + $0x48] sm:$0xff] }
  0xe3   : > { %12445 = vmatprep.mubr.msk.f32.mxu0 %vm439_vm2, %v1212_v10 }
  0xe6   : > { %12446 = vmatmul.mubr.msk.f32.gmra.mrb[16].mxu0 %vm439_vm2, %v1214_v25  ;;  %v15411_v25 = vpack.c.bf16 %v2371_v3, %v2370_v0  ;;  %v2373_v0 = vld [vmem:[#allocation3 + $0x58] sm:$0xff] }
  0xe7   : > { %12448 = vmatprep.mubr.msk.f32.mxu0 %vm439_vm2, %v1216_v2 }
  0xea   : > { %12449 = vmatmul.mubr.msk.f32.gmra.mrb[18].mxu0 %vm439_vm2, %v1218_v6 }
  0xeb   : > { %12451 = vmatprep.mubr.msk.f32.mxu0 %vm439_vm2, %v1220_v27 }
  0xee   : > { %12452 = vmatmul.mubr.msk.f32.gmra.mrb[20].mxu0 %vm439_vm2, %v1219_v23 }
  0xef   : > { %12456 = vmatprep.mubr.msk.f32.mxu0 %vm439_vm2, %v15092_v54  ;;  %v1493_v54 = vrot.slane %v14929_v49, 4 }
  0xf2   : > { %12457 = vmatmul.mubr.msk.f32.vlgmr.msra.gmra.mrb[0].mxu0 %vm439_vm2, %v15095_v20  ;;  %v1495_v20 = vrot.slane %v14932_v50, 4  ;;  %v1501_v50 = vrot.slane %v14985_v17, 4  ;;  %v1507_v17 = vrot.slane %v15058_v31, 4 }
  0xf3   : > { %12459 = vmatprep.mubr.msk.f32.mxu0 %vm439_vm2, %v15104_v5  ;;  %v1494_v5 = vsel %vm17790_vm0, %v1491_v22, %v1493_v54 }
  0xf4   : > { %v1496_v49 = vsel %vm17790_vm0, %v1493_v54, %v1495_v20 }
  0xf6   : > { %12460 = vmatmul.mubr.msk.f32.gmra.mrb[2].mxu0 %vm439_vm2, %v15107_v26  ;;  %v1497_v26 = vrot.slane %v14941_v55, 4  ;;  %v1503_v55 = vrot.slane %v15022_v47, 4 }
  0xf7   : > { %12462 = vmatprep.mubr.msk.f32.mxu0 %vm439_vm2, %v15116_v21  ;;  %v1499_v21 = vrot.slane %v14969_v8, 4 }
  0xf8   : > { %v1504_v8 = vsel %vm17790_vm0, %v1501_v50, %v1503_v55 }
  0xf9   : > { %v1500_v30 = vsel %vm17790_vm0, %v1497_v26, %v1499_v21  ;;  %v1502_v11 = vsel %vm17790_vm0, %v1499_v21, %v1501_v50 }
  0xfa   : > { %12463 = vmatmul.mubr.msk.f32.gmra.mrb[4].mxu0 %vm439_vm2, %v15119_v7  ;;  %v1498_v7 = vsel %vm17790_vm0, %v1495_v20, %v1497_v26 }
  0xfb   : > { %12465 = vmatprep.mubr.msk.f32.mxu0 %vm439_vm2, %v15128_v12  ;;  %v1505_v12 = vrot.slane %v15031_v59, 4  ;;  %v1511_v59 = vrot.slane %v367_v18, 4 }
  0xfd   : > { %v1508_v47 = vsel %vm17790_vm0, %v1505_v12, %v1507_v17  ;;  %v1512_v31 = vsel %vm17790_vm0, %v1509_v24, %v1511_v59 }
  0xfe   : > { %12466 = vmatmul.mubr.msk.f32.gmra.mrb[6].mxu0 %vm439_vm2, %v15131_v14  ;;  %v1506_v14 = vsel %vm17790_vm0, %v1503_v55, %v1505_v12 }
  0xff   : > { %12468 = vmatprep.mubr.msk.f32.mxu0 %vm439_vm2, %v15140_v34  ;;  %v1510_v34 = vsel %vm17790_vm0, %v1507_v17, %v1509_v24 }
 0x102   : > { %12469 = vmatmul.mubr.msk.f32.gmra.mrb[8].mxu0 %vm439_vm2, %v15143_v19  ;;  %v1862_v19 = vld [vmem:[#allocation3 + $0x28] sm:$0xff] }
 0x103   : > { %12471 = vmatprep.mubr.msk.f32.mxu0 %vm439_vm2, %v15152_v16  ;;  %v13805_v22 = vpack.c.bf16 %v1862_v19, %v1861_v33  ;;  %v1863_v16 = vld [vmem:[#allocation3 + $0x30] sm:$0xff] }
 0x105   : > { %13806 = vmatprep.subr.bf16.mxu1 %v13805_v22  ;;  %13846 = vmatprep.subr.bf16.mxu0 %v13805_v22 }
 0x106   : > { %12472 = vmatmul.mubr.msk.f32.gmra.mrb[10].mxu0 %vm439_vm2, %v15157_v28  ;;  %13808 = vmatpush3.bf16.msra.mxu1 %v13805_v22  ;;  %v1864_v28 = vld [vmem:[#allocation3 + $0x38] sm:$0xff] }
 0x107   : > { %12474 = vmatprep.mubr.msk.f32.mxu0 %vm439_vm2, %v1494_v5  ;;  %13848 = vmatpush3.bf16.msra.mxu0 %v13805_v22  ;;  %v13809_v29 = vpack.c.bf16 %v1864_v28, %v1863_v16 }
 0x109   : > { %13810 = vmatprep.subr.bf16.mxu1 %v13809_v29  ;;  %13850 = vmatprep.subr.bf16.mxu0 %v13809_v29 }
 0x10a   : > { %12475 = vmatmul.mubr.msk.f32.gmra.mrb[12].mxu0 %vm439_vm2, %v1496_v49  ;;  %13812 = vmatpush3.bf16.msra.mxu1 %v13809_v29 }
 0x10b   : > { %12477 = vmatprep.mubr.msk.f32.mxu0 %vm439_vm2, %v1498_v7  ;;  %13852 = vmatpush3.bf16.msra.mxu0 %v13809_v29 }
 0x10c   : > { %13814 = vmatprep.subr.bf16.mxu1 %v15351_v45  ;;  %13854 = vmatprep.subr.bf16.mxu0 %v15351_v45 }
 0x10e   : > { %12478 = vmatmul.mubr.msk.f32.gmra.mrb[14].mxu0 %vm439_vm2, %v1500_v30 }
 0x10f   : > { %12480 = vmatprep.mubr.msk.f32.mxu0 %vm439_vm2, %v1502_v11 }
 0x112   : > { %12481 = vmatmul.mubr.msk.f32.gmra.mrb[16].mxu0 %vm439_vm2, %v1504_v8 }
 0x113   : > { %12483 = vmatprep.mubr.msk.f32.mxu0 %vm439_vm2, %v1506_v14 }
 0x116   : > { %12484 = vmatmul.mubr.msk.f32.gmra.mrb[18].mxu0 %vm439_vm2, %v1508_v47 }
 0x117   : > { %12486 = vmatprep.mubr.msk.f32.mxu0 %vm439_vm2, %v1510_v34 }
 0x11a   : > { %12487 = vmatmul.mubr.msk.f32.gmra.mrb[20].mxu0 %vm439_vm2, %v1512_v31 }
 0x1c5   : > { %v12458_v56 = vpop.f32.mrb[0].mxu0 }
 0x1c6   : > { %v15361_v57 = vadd.f32 %v12458_v56, %v15358_v51  ;;  %v1626_v58 = vpop.f32.mrb[1].mxu0 }
 0x1c7   : > { %v15364_v60 = vadd.f32 %v15358_v51, %v1626_v58 }
 0x1c8   : > { %1789 = vst.msk [vmem:[#allocation2 + $0xa] sm:$0xff] %vm1787_vm6, %v15361_v57 }
 0x1c9   : > { %1788 = vst.msk [vmem:[#allocation2 + $0x2] sm:$0xff] %vm1787_vm6, %v15364_v60  ;;  %v12461_v61 = vpop.f32.mrb[2].mxu0 }
 0x1ca   : > { %v15371_v62 = vadd.f32 %v12461_v61, %v15358_v51  ;;  %v1636_v63 = vpop.f32.mrb[3].mxu0 }
 0x1cb   : > { %v15374_v9 = vadd.f32 %v15358_v51, %v1636_v63 }
 0x1cc   : > { %1791 = vst.msk [vmem:[#allocation2 + $0x1a] sm:$0xff] %vm1787_vm6, %v15371_v62 }
 0x1cd   : > { %1790 = vst.msk [vmem:[#allocation2 + $0x12] sm:$0xff] %vm1787_vm6, %v15374_v9  ;;  %v12464_v13 = vpop.f32.mrb[4].mxu0 }
 0x1ce   : > { %v15381_v46 = vadd.f32 %v12464_v13, %v15358_v51  ;;  %v1646_v52 = vpop.f32.mrb[5].mxu0 }
 0x1cf   : > { %v15384_v53 = vadd.f32 %v15358_v51, %v1646_v52 }
 0x1d0   : > { %v15386_v36 = vld [vmem:[#allocation2] sm:$0xff]  ;;  %1793 = vst.msk [vmem:[#allocation2 + $0x2a] sm:$0xff] %vm1787_vm6, %v15381_v46  ;;  %v1839_v40 = vld [vmem:[#allocation2 + $0x9] sm:$0xff] }
 0x1d1   : > { %v1838_v37 = vld [vmem:[#allocation2 + $0x1] sm:$0xff]  ;;  %1792 = vst.msk [vmem:[#allocation2 + $0x22] sm:$0xff] %vm1787_vm6, %v15384_v53  ;;  %v12467_v41 = vpop.f32.mrb[6].mxu0 }
 0x1d2   : > { %3267 = vst.msk [vmem:[#allocation2] sm:$0x3] %vm1785_vm5, %v17785_v35  ;;  %12497 = vmatprep.mubr.msk.f32.mxu1 %vm1787_vm6, %v1838_v37  ;;  %v15398_v44 = vadd.f32 %v12467_v41, %v15358_v51  ;;  %v1656_v48 = vpop.f32.mrb[7].mxu0 }
 0x1d3   : > { %12498 = vmatmul.mubr.msk.f32.vlgmr.msra.gmra.mrb[0].mxu1 %vm1787_vm6, %v1839_v40  ;;  %v15402_v4 = vadd.f32 %v15358_v51, %v1656_v48  ;;  %v2372_v48 = vld [vmem:[#allocation3 + $0x50] sm:$0xff] }
 0x1d4   : > { %13816 = vmatpush3.bf16.msra.mxu1 %v15351_v45  ;;  %v1840_v10 = vld [vmem:[#allocation2 + $0x11] sm:$0xff]  ;;  %1795 = vst.msk [vmem:[#allocation2 + $0x3a] sm:$0xff] %vm1787_vm6, %v15398_v44  ;;  %v1841_v23 = vld [vmem:[#allocation2 + $0x19] sm:$0xff] }
 0x1d5   : > { %13818 = vmatprep.subr.bf16.mxu1 %v15390_v38  ;;  %1794 = vst.msk [vmem:[#allocation2 + $0x32] sm:$0xff] %vm1787_vm6, %v15402_v4  ;;  %v12470_v15 = vpop.f32.mrb[8].mxu0  ;;  %12500 = vmatprep.mubr.msk.f32.mxu1 %vm1787_vm6, %v1840_v10 }
 0x1d6   : > { %v15414_v1 = vadd.f32 %v12470_v15, %v15358_v51  ;;  %v1666_v2 = vpop.f32.mrb[9].mxu0  ;;  %v15512_v15 = vpack.c.bf16 %v2373_v0, %v2372_v48  ;;  %v2350_v48 = vld [vmem:[#allocation2 + $0x1a] sm:$0xff] }
 0x1d7   : > { %v15417_v6 = vadd.f32 %v15358_v51, %v1666_v2  ;;  %12501 = vmatmul.mubr.msk.f32.gmra.mrb[2].mxu1 %vm1787_vm6, %v1841_v23  ;;  %v1813_v2 = vld [vmem:[#allocation2 + $0x8] sm:$0xff]  ;;  %v2660_v23 = vld [vmem:[#allocation3 + $0x60] sm:$0xff] }
 0x1d8   : > { %v1843_v27 = vld [vmem:[#allocation2 + $0x29] sm:$0xff]  ;;  %1797 = vst.msk [vmem:[#allocation2 + $0x4a] sm:$0xff] %vm1787_vm6, %v15414_v1  ;;  %13820 = vmatpush3.bf16.msra.mxu1 %v15390_v38  ;;  %v1842_v20 = vld [vmem:[#allocation2 + $0x21] sm:$0xff] }
 0x1d9   : > { %1796 = vst.msk [vmem:[#allocation2 + $0x42] sm:$0xff] %vm1787_vm6, %v15417_v6  ;;  %v12473_v54 = vpop.f32.mrb[10].mxu0  ;;  %13822 = vmatprep.subr.bf16.mxu1 %v15411_v25  ;;  %12503 = vmatprep.mubr.msk.f32.mxu1 %vm1787_vm6, %v1842_v20  ;;  %v2351_v0 = vld [vmem:[#allocation2 + $0x22] sm:$0xff] }
 0x1da   : > { %v15427_v5 = vadd.f32 %v12473_v54, %v15358_v51  ;;  %v1676_v26 = vpop.f32.mrb[11].mxu0  ;;  %v1814_v54 = vld [vmem:[#allocation2 + $0x10] sm:$0xff] }
 0x1db   : > { %v15431_v49 = vadd.f32 %v15358_v51, %v1676_v26  ;;  %12504 = vmatmul.mubr.msk.f32.gmra.mrb[4].mxu1 %vm1787_vm6, %v1843_v27  ;;  %v2661_v27 = vld [vmem:[#allocation3 + $0x68] sm:$0xff] }
 0x1dc   : > { %1799 = vst.msk [vmem:[#allocation2 + $0x5a] sm:$0xff] %vm1787_vm6, %v15427_v5  ;;  %v1844_v21 = vld [vmem:[#allocation2 + $0x31] sm:$0xff]  ;;  %v1845_v7 = vld [vmem:[#allocation2 + $0x39] sm:$0xff]  ;;  %v15518_v20 = vpack.c.bf16 %v2661_v27, %v2660_v23 }
 0x1dd   : > { %1798 = vst.msk [vmem:[#allocation2 + $0x52] sm:$0xff] %vm1787_vm6, %v15431_v49  ;;  %v12476_v50 = vpop.f32.mrb[12].mxu0  ;;  %12506 = vmatprep.mubr.msk.f32.mxu1 %vm1787_vm6, %v1844_v21  ;;  %v1816_v26 = vld [vmem:[#allocation2 + $0x20] sm:$0xff]  ;;  %v1817_v21 = vld [vmem:[#allocation2 + $0x28] sm:$0xff]  ;;  %v2353_v23 = vld [vmem:[#allocation2 + $0x32] sm:$0xff] }
 0x1de   : > { %v15440_v30 = vadd.f32 %v12476_v50, %v15358_v51  ;;  %v1686_v55 = vpop.f32.mrb[13].mxu0  ;;  %v1819_v50 = vld [vmem:[#allocation2 + $0x38] sm:$0xff] }
 0x1df   : > { %v15443_v11 = vadd.f32 %v15358_v51, %v1686_v55  ;;  %12507 = vmatmul.mubr.msk.f32.gmra.mrb[6].mxu1 %vm1787_vm6, %v1845_v7  ;;  %v1818_v7 = vld [vmem:[#allocation2 + $0x30] sm:$0xff]  ;;  %v2354_v27 = vld [vmem:[#allocation2 + $0x3a] sm:$0xff] }
 0x1e0   : > { %1801 = vst.msk [vmem:[#allocation2 + $0x6a] sm:$0xff] %vm1787_vm6, %v15440_v30  ;;  %v1846_v12 = vld [vmem:[#allocation2 + $0x41] sm:$0xff]  ;;  %v1847_v8 = vld [vmem:[#allocation2 + $0x49] sm:$0xff] }
 0x1e1   : > { %1800 = vst.msk [vmem:[#allocation2 + $0x62] sm:$0xff] %vm1787_vm6, %v15443_v11  ;;  %v12479_v17 = vpop.f32.mrb[14].mxu0  ;;  %12509 = vmatprep.mubr.msk.f32.mxu1 %vm1787_vm6, %v1846_v12  ;;  %v1820_v55 = vld [vmem:[#allocation2 + $0x40] sm:$0xff]  ;;  %v1821_v12 = vld [vmem:[#allocation2 + $0x48] sm:$0xff] }
 0x1e2   : > { %v15452_v14 = vadd.f32 %v12479_v17, %v15358_v51  ;;  %v1696_v24 = vpop.f32.mrb[15].mxu0 }
 0x1e3   : > { %v15455_v18 = vadd.f32 %v15358_v51, %v1696_v24  ;;  %12510 = vmatmul.mubr.msk.f32.gmra.mrb[8].mxu1 %vm1787_vm6, %v1847_v8 }
 0x1e4   : > { %1803 = vst.msk [vmem:[#allocation2 + $0x7a] sm:$0xff] %vm1787_vm6, %v15452_v14  ;;  %v1848_v47 = vld [vmem:[#allocation2 + $0x51] sm:$0xff]  ;;  %v1849_v59 = vld [vmem:[#allocation2 + $0x59] sm:$0xff] }
 0x1e5   : > { %1802 = vst.msk [vmem:[#allocation2 + $0x72] sm:$0xff] %vm1787_vm6, %v15455_v18  ;;  %v12482_v34 = vpop.f32.mrb[16].mxu0  ;;  %12512 = vmatprep.mubr.msk.f32.mxu1 %vm1787_vm6, %v1848_v47  ;;  %v1822_v8 = vld [vmem:[#allocation2 + $0x50] sm:$0xff]  ;;  %v1823_v17 = vld [vmem:[#allocation2 + $0x58] sm:$0xff] }
 0x1e6   : > { %v15464_v31 = vadd.f32 %v12482_v34, %v15358_v51  ;;  %v1706_v33 = vpop.f32.mrb[17].mxu0 }
 0x1e7   : > { %v15467_v19 = vadd.f32 %v15358_v51, %v1706_v33  ;;  %12513 = vmatmul.mubr.msk.f32.gmra.mrb[10].mxu1 %vm1787_vm6, %v1849_v59 }
 0x1e8   : > { %1805 = vst.msk [vmem:[#allocation2 + $0x8a] sm:$0xff] %vm1787_vm6, %v15464_v31  ;;  %v1850_v22 = vld [vmem:[#allocation2 + $0x61] sm:$0xff]  ;;  %v1851_v16 = vld [vmem:[#allocation2 + $0x69] sm:$0xff] }
 0x1e9   : > { %1804 = vst.msk [vmem:[#allocation2 + $0x82] sm:$0xff] %vm1787_vm6, %v15467_v19  ;;  %v12485_v28 = vpop.f32.mrb[18].mxu0  ;;  %12515 = vmatprep.mubr.msk.f32.mxu1 %vm1787_vm6, %v1850_v22  ;;  %v1824_v24 = vld [vmem:[#allocation2 + $0x60] sm:$0xff]  ;;  %v1825_v47 = vld [vmem:[#allocation2 + $0x68] sm:$0xff] }
 0x1ea   : > { %v15476_v29 = vadd.f32 %v12485_v28, %v15358_v51  ;;  %v1716_v42 = vpop.f32.mrb[19].mxu0 }
 0x1eb   : > { %v15479_v43 = vadd.f32 %v15358_v51, %v1716_v42  ;;  %12516 = vmatmul.mubr.msk.f32.gmra.mrb[12].mxu1 %vm1787_vm6, %v1851_v16 }
 0x1ec   : > { %1807 = vst.msk [vmem:[#allocation2 + $0x9a] sm:$0xff] %vm1787_vm6, %v15476_v29  ;;  %v1852_v56 = vld [vmem:[#allocation2 + $0x71] sm:$0xff]  ;;  %v1853_v58 = vld [vmem:[#allocation2 + $0x79] sm:$0xff] }
 0x1ed   : > { %1806 = vst.msk [vmem:[#allocation2 + $0x92] sm:$0xff] %vm1787_vm6, %v15479_v43  ;;  %v12488_v61 = vpop.f32.mrb[20].mxu0  ;;  %12518 = vmatprep.mubr.msk.f32.mxu1 %vm1787_vm6, %v1852_v56  ;;  %v1826_v59 = vld [vmem:[#allocation2 + $0x70] sm:$0xff]  ;;  %v1827_v34 = vld [vmem:[#allocation2 + $0x78] sm:$0xff] }
 0x1ee   : > { %v15488_v63 = vadd.f32 %v12488_v61, %v15358_v51  ;;  %v1726_v13 = vpop.f32.mrb[21].mxu0  ;;  %v2663_v61 = vld [vmem:[#allocation3 + $0x78] sm:$0xff] }
 0x1ef   : > { %v15491_v39 = vadd.f32 %v15358_v51, %v1726_v13  ;;  %12519 = vmatmul.mubr.msk.f32.gmra.mrb[14].mxu1 %vm1787_vm6, %v1853_v58  ;;  %v2662_v58 = vld [vmem:[#allocation3 + $0x70] sm:$0xff] }
 0x1f0   : > { %1810 = vst.msk [vmem:[#allocation2 + $0xaa] sm:$0x1f] %vm1809_vm7, %v15488_v63  ;;  %v1854_v32 = vld [vmem:[#allocation2 + $0x81] sm:$0xff]  ;;  %v1855_v52 = vld [vmem:[#allocation2 + $0x89] sm:$0xff] }
 0x1f1   : > { %1808 = vst.msk [vmem:[#allocation2 + $0xa2] sm:$0xff] %vm1787_vm6, %v15491_v39  ;;  %12521 = vmatprep.mubr.msk.f32.mxu1 %vm1787_vm6, %v1854_v32  ;;  %v1828_v33 = vld [vmem:[#allocation2 + $0x80] sm:$0xff]  ;;  %v1829_v22 = vld [vmem:[#allocation2 + $0x88] sm:$0xff]  ;;  %v15542_v32 = vpack.c.bf16 %v2663_v61, %v2662_v58 }
 0x1f2   : > { %v2347_v13 = vld [vmem:[#allocation2 + $0x2] sm:$0xff] }
 0x1f3   : > { %12522 = vmatmul.mubr.msk.f32.gmra.mrb[16].mxu1 %vm1787_vm6, %v1855_v52  ;;  %v2348_v52 = vld [vmem:[#allocation2 + $0xa] sm:$0xff]  ;;  %v2640_v58 = vld [vmem:[#allocation2 + $0x1b] sm:$0xff] }
 0x1f4   : > { %v1856_v37 = vld [vmem:[#allocation2 + $0x91] sm:$0xff]  ;;  %v1857_v40 = vld [vmem:[#allocation2 + $0x99] sm:$0xff]  ;;  %v2641_v61 = vld [vmem:[#allocation2 + $0x23] sm:$0xff] }
 0x1f5   : > { %12524 = vmatprep.mubr.msk.f32.mxu1 %vm1787_vm6, %v1856_v37  ;;  %v1830_v16 = vld [vmem:[#allocation2 + $0x90] sm:$0xff]  ;;  %v1831_v28 = vld [vmem:[#allocation2 + $0x98] sm:$0xff] }
 0x1f6   : > { %v2950_v37 = vld [vmem:[#allocation3 + $0x80] sm:$0xff] }
 0x1f7   : > { %12525 = vmatmul.mubr.msk.f32.gmra.mrb[18].mxu1 %vm1787_vm6, %v1857_v40  ;;  %v15504_v3 = vld [vmem:[#allocation2 + $0xab] sm:$0x1f]  ;;  %v2951_v40 = vld [vmem:[#allocation3 + $0x88] sm:$0xff] }
 0x1f8   : > { %v1858_v51 = vld [vmem:[#allocation2 + $0xa1] sm:$0xff]  ;;  %v1859_v41 = vld [vmem:[#allocation2 + $0xa9] sm:$0x1f] }
 0x1f9   : > { %12527 = vmatprep.mubr.msk.f32.mxu1 %vm1787_vm6, %v1858_v51  ;;  %v15506_v10 = vld [vmem:[#allocation2 + $0xac] sm:$0x1f]  ;;  %v1832_v42 = vld [vmem:[#allocation2 + $0xa0] sm:$0xff]  ;;  %v2349_v51 = vld [vmem:[#allocation2 + $0x12] sm:$0xff] }
 0x1fa   : > { %3290 = vst.msk [vmem:[#allocation2 + $0xaf] sm:$0x3] %vm1785_vm5, %v17785_v35  ;;  %v1833_v56 = vld [vmem:[#allocation2 + $0xa8] sm:$0x1f] }
 0x1fb   : > { %12528 = vmatmul.mubr.msk.f32.gmra.mrb[20].mxu1 %vm1787_vm6, %v1859_v41  ;;  %v15548_v41 = vpack.c.bf16 %v2951_v40, %v2950_v37  ;;  %v2644_v37 = vld [vmem:[#allocation2 + $0x3b] sm:$0xff]  ;;  %v2645_v40 = vld [vmem:[#allocation2 + $0x43] sm:$0xff] }
 0x1fc   : > { %12538 = vmatprep.mubr.msk.f32.mxu1 %vm1787_vm6, %v15386_v36  ;;  %v1815_v36 = vld [vmem:[#allocation2 + $0x18] sm:$0xff] }
 0x1ff   : > { %12539 = vmatmul.mubr.msk.f32.vlgmr.msra.gmra.mrb[0].mxu1 %vm1787_vm6, %v1813_v2  ;;  %v2352_v2 = vld [vmem:[#allocation2 + $0x2a] sm:$0xff] }
 0x200   : > { %12541 = vmatprep.mubr.msk.f32.mxu1 %vm1787_vm6, %v1814_v54  ;;  %13824 = vmatpush3.bf16.msra.mxu1 %v15411_v25  ;;  %v2355_v54 = vld [vmem:[#allocation2 + $0x42] sm:$0xff] }
 0x201   : > { %13826 = vmatprep.subr.bf16.mxu1 %v15512_v15 }
 0x203   : > { %12542 = vmatmul.mubr.msk.f32.gmra.mrb[2].mxu1 %vm1787_vm6, %v1815_v36  ;;  %v2356_v36 = vld [vmem:[#allocation2 + $0x4a] sm:$0xff] }
 0x204   : > { %12544 = vmatprep.mubr.msk.f32.mxu1 %vm1787_vm6, %v1816_v26  ;;  %13828 = vmatpush3.bf16.msra.mxu1 %v15512_v15  ;;  %v2357_v26 = vld [vmem:[#allocation2 + $0x52] sm:$0xff] }
 0x205   : > { %13830 = vmatprep.subr.bf16.mxu1 %v15518_v20 }
 0x207   : > { %12545 = vmatmul.mubr.msk.f32.gmra.mrb[4].mxu1 %vm1787_vm6, %v1817_v21  ;;  %v2358_v21 = vld [vmem:[#allocation2 + $0x5a] sm:$0xff] }
 0x208   : > { %12547 = vmatprep.mubr.msk.f32.mxu1 %vm1787_vm6, %v1818_v7  ;;  %v2359_v7 = vld [vmem:[#allocation2 + $0x62] sm:$0xff] }
 0x20b   : > { %12548 = vmatmul.mubr.msk.f32.gmra.mrb[6].mxu1 %vm1787_vm6, %v1819_v50  ;;  %v2360_v50 = vld [vmem:[#allocation2 + $0x6a] sm:$0xff] }
 0x20c   : > { %12550 = vmatprep.mubr.msk.f32.mxu1 %vm1787_vm6, %v1820_v55  ;;  %v2361_v55 = vld [vmem:[#allocation2 + $0x72] sm:$0xff] }
 0x20f   : > { %12551 = vmatmul.mubr.msk.f32.gmra.mrb[8].mxu1 %vm1787_vm6, %v1821_v12  ;;  %v2362_v12 = vld [vmem:[#allocation2 + $0x7a] sm:$0xff] }
 0x210   : > { %12553 = vmatprep.mubr.msk.f32.mxu1 %vm1787_vm6, %v1822_v8  ;;  %v2363_v8 = vld [vmem:[#allocation2 + $0x82] sm:$0xff] }
 0x213   : > { %12554 = vmatmul.mubr.msk.f32.gmra.mrb[10].mxu1 %vm1787_vm6, %v1823_v17  ;;  %v2364_v17 = vld [vmem:[#allocation2 + $0x8a] sm:$0xff] }
 0x214   : > { %12556 = vmatprep.mubr.msk.f32.mxu1 %vm1787_vm6, %v1824_v24  ;;  %v2365_v24 = vld [vmem:[#allocation2 + $0x92] sm:$0xff] }
 0x217   : > { %12557 = vmatmul.mubr.msk.f32.gmra.mrb[12].mxu1 %vm1787_vm6, %v1825_v47  ;;  %v2366_v47 = vld [vmem:[#allocation2 + $0x9a] sm:$0xff] }
 0x218   : > { %12559 = vmatprep.mubr.msk.f32.mxu1 %vm1787_vm6, %v1826_v59  ;;  %v2367_v59 = vld [vmem:[#allocation2 + $0xa2] sm:$0xff] }
 0x21b   : > { %12560 = vmatmul.mubr.msk.f32.gmra.mrb[14].mxu1 %vm1787_vm6, %v1827_v34  ;;  %v2368_v34 = vld [vmem:[#allocation2 + $0xaa] sm:$0x1f] }
 0x21c   : > { %12562 = vmatprep.mubr.msk.f32.mxu1 %vm1787_vm6, %v1828_v33  ;;  %v2952_v33 = vld [vmem:[#allocation3 + $0x90] sm:$0xff] }
 0x21f   : > { %12563 = vmatmul.mubr.msk.f32.gmra.mrb[16].mxu1 %vm1787_vm6, %v1829_v22  ;;  %v2953_v22 = vld [vmem:[#allocation3 + $0x98] sm:$0xff] }
 0x220   : > { %12565 = vmatprep.mubr.msk.f32.mxu1 %vm1787_vm6, %v1830_v16  ;;  %v2637_v16 = vld [vmem:[#allocation2 + $0x3] sm:$0xff] }
 0x223   : > { %12566 = vmatmul.mubr.msk.f32.gmra.mrb[18].mxu1 %vm1787_vm6, %v1831_v28  ;;  %v15572_v28 = vpack.c.bf16 %v2953_v22, %v2952_v33  ;;  %v2936_v33 = vld [vmem:[#allocation2 + $0x4c] sm:$0xff]  ;;  %v2937_v22 = vld [vmem:[#allocation2 + $0x54] sm:$0xff] }
 0x224   : > { %12568 = vmatprep.mubr.msk.f32.mxu1 %vm1787_vm6, %v1832_v42  ;;  %v2638_v42 = vld [vmem:[#allocation2 + $0xb] sm:$0xff] }
 0x227   : > { %12569 = vmatmul.mubr.msk.f32.gmra.mrb[20].mxu1 %vm1787_vm6, %v1833_v56  ;;  %v2639_v56 = vld [vmem:[#allocation2 + $0x13] sm:$0xff] }
 0x228   : > { %12579 = vmatprep.mubr.msk.f32.mxu1 %vm1787_vm6, %v2347_v13  ;;  %v2642_v13 = vld [vmem:[#allocation2 + $0x2b] sm:$0xff] }
 0x22b   : > { %12580 = vmatmul.mubr.msk.f32.vlgmr.msra.gmra.mrb[0].mxu1 %vm1787_vm6, %v2348_v52  ;;  %v2643_v52 = vld [vmem:[#allocation2 + $0x33] sm:$0xff] }
 0x22c   : > { %12582 = vmatprep.mubr.msk.f32.mxu1 %vm1787_vm6, %v2349_v51  ;;  %13832 = vmatpush3.bf16.msra.mxu1 %v15518_v20  ;;  %v2646_v51 = vld [vmem:[#allocation2 + $0x4b] sm:$0xff] }
 0x22d   : > { %13834 = vmatprep.subr.bf16.mxu1 %v15542_v32 }
 0x22f   : > { %12583 = vmatmul.mubr.msk.f32.gmra.mrb[2].mxu1 %vm1787_vm6, %v2350_v48  ;;  %v2647_v48 = vld [vmem:[#allocation2 + $0x53] sm:$0xff] }
 0x230   : > { %12585 = vmatprep.mubr.msk.f32.mxu1 %vm1787_vm6, %v2351_v0  ;;  %13836 = vmatpush3.bf16.msra.mxu1 %v15542_v32  ;;  %v2648_v0 = vld [vmem:[#allocation2 + $0x5b] sm:$0xff] }
 0x231   : > { %13838 = vmatprep.subr.bf16.mxu1 %v15548_v41 }
 0x233   : > { %12586 = vmatmul.mubr.msk.f32.gmra.mrb[4].mxu1 %vm1787_vm6, %v2352_v2  ;;  %v2649_v2 = vld [vmem:[#allocation2 + $0x63] sm:$0xff] }
 0x234   : > { %12588 = vmatprep.mubr.msk.f32.mxu1 %vm1787_vm6, %v2353_v23  ;;  %v2650_v23 = vld [vmem:[#allocation2 + $0x6b] sm:$0xff] }
 0x237   : > { %12589 = vmatmul.mubr.msk.f32.gmra.mrb[6].mxu1 %vm1787_vm6, %v2354_v27  ;;  %v2651_v27 = vld [vmem:[#allocation2 + $0x73] sm:$0xff] }
 0x238   : > { %12591 = vmatprep.mubr.msk.f32.mxu1 %vm1787_vm6, %v2355_v54  ;;  %v2652_v54 = vld [vmem:[#allocation2 + $0x7b] sm:$0xff] }
 0x23b   : > { %12592 = vmatmul.mubr.msk.f32.gmra.mrb[8].mxu1 %vm1787_vm6, %v2356_v36  ;;  %v2653_v36 = vld [vmem:[#allocation2 + $0x83] sm:$0xff] }
 0x23c   : > { %12594 = vmatprep.mubr.msk.f32.mxu1 %vm1787_vm6, %v2357_v26  ;;  %v2654_v26 = vld [vmem:[#allocation2 + $0x8b] sm:$0xff] }
 0x23f   : > { %12595 = vmatmul.mubr.msk.f32.gmra.mrb[10].mxu1 %vm1787_vm6, %v2358_v21  ;;  %v2655_v21 = vld [vmem:[#allocation2 + $0x93] sm:$0xff] }
 0x240   : > { %12597 = vmatprep.mubr.msk.f32.mxu1 %vm1787_vm6, %v2359_v7  ;;  %v2656_v7 = vld [vmem:[#allocation2 + $0x9b] sm:$0xff] }
 0x243   : > { %12598 = vmatmul.mubr.msk.f32.gmra.mrb[12].mxu1 %vm1787_vm6, %v2360_v50  ;;  %v2657_v50 = vld [vmem:[#allocation2 + $0xa3] sm:$0xff] }
 0x244   : > { %12600 = vmatprep.mubr.msk.f32.mxu1 %vm1787_vm6, %v2361_v55  ;;  %v2927_v55 = vld [vmem:[#allocation2 + $0x4] sm:$0xff] }
 0x247   : > { %12601 = vmatmul.mubr.msk.f32.gmra.mrb[14].mxu1 %vm1787_vm6, %v2362_v12  ;;  %v2928_v12 = vld [vmem:[#allocation2 + $0xc] sm:$0xff] }
 0x248   : > { %12603 = vmatprep.mubr.msk.f32.mxu1 %vm1787_vm6, %v2363_v8  ;;  %v2929_v8 = vld [vmem:[#allocation2 + $0x14] sm:$0xff] }
 0x24b   : > { %12604 = vmatmul.mubr.msk.f32.gmra.mrb[16].mxu1 %vm1787_vm6, %v2364_v17  ;;  %v2930_v17 = vld [vmem:[#allocation2 + $0x1c] sm:$0xff] }
 0x24c   : > { %12606 = vmatprep.mubr.msk.f32.mxu1 %vm1787_vm6, %v2365_v24  ;;  %v2931_v24 = vld [vmem:[#allocation2 + $0x24] sm:$0xff] }
 0x24f   : > { %12607 = vmatmul.mubr.msk.f32.gmra.mrb[18].mxu1 %vm1787_vm6, %v2366_v47  ;;  %v2932_v47 = vld [vmem:[#allocation2 + $0x2c] sm:$0xff] }
 0x250   : > { %12609 = vmatprep.mubr.msk.f32.mxu1 %vm1787_vm6, %v2367_v59  ;;  %v2933_v59 = vld [vmem:[#allocation2 + $0x34] sm:$0xff] }
 0x253   : > { %12610 = vmatmul.mubr.msk.f32.gmra.mrb[20].mxu1 %vm1787_vm6, %v2368_v34  ;;  %v2935_v34 = vld [vmem:[#allocation2 + $0x44] sm:$0xff] }
 0x254   : > { %12620 = vmatprep.mubr.msk.f32.mxu1 %vm1787_vm6, %v2637_v16  ;;  %v2938_v16 = vld [vmem:[#allocation2 + $0x5c] sm:$0xff] }
 0x257   : > { %12621 = vmatmul.mubr.msk.f32.vlgmr.msra.gmra.mrb[0].mxu1 %vm1787_vm6, %v2638_v42  ;;  %v2939_v42 = vld [vmem:[#allocation2 + $0x64] sm:$0xff] }
 0x258   : > { %12623 = vmatprep.mubr.msk.f32.mxu1 %vm1787_vm6, %v2639_v56  ;;  %13840 = vmatpush3.bf16.msra.mxu1 %v15548_v41  ;;  %v2940_v56 = vld [vmem:[#allocation2 + $0x6c] sm:$0xff] }
 0x259   : > { %13842 = vmatprep.subr.bf16.mxu1 %v15572_v28 }
 0x25b   : > { %12624 = vmatmul.mubr.msk.f32.gmra.mrb[2].mxu1 %vm1787_vm6, %v2640_v58  ;;  %v2941_v58 = vld [vmem:[#allocation2 + $0x74] sm:$0xff] }
 0x25c   : > { %12626 = vmatprep.mubr.msk.f32.mxu1 %vm1787_vm6, %v2641_v61  ;;  %13844 = vmatpush3.bf16.msra.mxu1 %v15572_v28  ;;  %v2942_v61 = vld [vmem:[#allocation2 + $0x7c] sm:$0xff] }
 0x25f   : > { %12627 = vmatmul.mubr.msk.f32.gmra.mrb[4].mxu1 %vm1787_vm6, %v2642_v13  ;;  %v2943_v13 = vld [vmem:[#allocation2 + $0x84] sm:$0xff] }
 0x260   : > { %12629 = vmatprep.mubr.msk.f32.mxu1 %vm1787_vm6, %v2643_v52  ;;  %v2944_v52 = vld [vmem:[#allocation2 + $0x8c] sm:$0xff] }
 0x263   : > { %12630 = vmatmul.mubr.msk.f32.gmra.mrb[6].mxu1 %vm1787_vm6, %v2644_v37  ;;  %v2945_v37 = vld [vmem:[#allocation2 + $0x94] sm:$0xff] }
 0x264   : > { %12632 = vmatprep.mubr.msk.f32.mxu1 %vm1787_vm6, %v2645_v40  ;;  %v2946_v40 = vld [vmem:[#allocation2 + $0x9c] sm:$0xff] }
 0x267   : > { %12633 = vmatmul.mubr.msk.f32.gmra.mrb[8].mxu1 %vm1787_vm6, %v2646_v51  ;;  %v2947_v51 = vld [vmem:[#allocation2 + $0xa4] sm:$0xff] }
 0x268   : > { %12635 = vmatprep.mubr.msk.f32.mxu1 %vm1787_vm6, %v2647_v48  ;;  %v15625_v48 = vld [vmem:[%s17776_s4] ss:$0 sm:$0xff] }
 0x26b   : > { %12636 = vmatmul.mubr.msk.f32.gmra.mrb[10].mxu1 %vm1787_vm6, %v2648_v0 }
 0x26c   : > { %12638 = vmatprep.mubr.msk.f32.mxu1 %vm1787_vm6, %v2649_v2 }
 0x26f   : > { %12639 = vmatmul.mubr.msk.f32.gmra.mrb[12].mxu1 %vm1787_vm6, %v2650_v23 }
 0x270   : > { %12641 = vmatprep.mubr.msk.f32.mxu1 %vm1787_vm6, %v2651_v27 }
 0x273   : > { %12642 = vmatmul.mubr.msk.f32.gmra.mrb[14].mxu1 %vm1787_vm6, %v2652_v54 }
 0x274   : > { %12644 = vmatprep.mubr.msk.f32.mxu1 %vm1787_vm6, %v2653_v36 }
 0x277   : > { %12645 = vmatmul.mubr.msk.f32.gmra.mrb[16].mxu1 %vm1787_vm6, %v2654_v26 }
 0x278   : > { %12647 = vmatprep.mubr.msk.f32.mxu1 %vm1787_vm6, %v2655_v21 }
 0x27b   : > { %12648 = vmatmul.mubr.msk.f32.gmra.mrb[18].mxu1 %vm1787_vm6, %v2656_v7 }
 0x27c   : > { %12650 = vmatprep.mubr.msk.f32.mxu1 %vm1787_vm6, %v2657_v50 }
 0x27f   : > { %12651 = vmatmul.mubr.msk.f32.gmra.mrb[20].mxu1 %vm1787_vm6, %v15504_v3  ;;  %v2934_v3 = vld [vmem:[#allocation2 + $0x3c] sm:$0xff] }
 0x280   : > { %12661 = vmatprep.mubr.msk.f32.mxu1 %vm1787_vm6, %v2927_v55 }
 0x283   : > { %12662 = vmatmul.mubr.msk.f32.vlgmr.msra.gmra.mrb[0].mxu1 %vm1787_vm6, %v2928_v12 }
 0x284   : > { %12664 = vmatprep.mubr.msk.f32.mxu1 %vm1787_vm6, %v2929_v8 }
 0x287   : > { %12665 = vmatmul.mubr.msk.f32.gmra.mrb[2].mxu1 %vm1787_vm6, %v2930_v17 }
 0x288   : > { %12667 = vmatprep.mubr.msk.f32.mxu1 %vm1787_vm6, %v2931_v24 }
 0x28b   : > { %12668 = vmatmul.mubr.msk.f32.gmra.mrb[4].mxu1 %vm1787_vm6, %v2932_v47 }
 0x28c   : > { %12670 = vmatprep.mubr.msk.f32.mxu1 %vm1787_vm6, %v2933_v59 }
 0x28f   : > { %12671 = vmatmul.mubr.msk.f32.gmra.mrb[6].mxu1 %vm1787_vm6, %v2934_v3 }
 0x290   : > { %12673 = vmatprep.mubr.msk.f32.mxu1 %vm1787_vm6, %v2935_v34 }
 0x293   : > { %12674 = vmatmul.mubr.msk.f32.gmra.mrb[8].mxu1 %vm1787_vm6, %v2936_v33 }
 0x294   : > { %12676 = vmatprep.mubr.msk.f32.mxu1 %vm1787_vm6, %v2937_v22 }
 0x297   : > { %12677 = vmatmul.mubr.msk.f32.gmra.mrb[10].mxu1 %vm1787_vm6, %v2938_v16 }
 0x298   : > { %12679 = vmatprep.mubr.msk.f32.mxu1 %vm1787_vm6, %v2939_v42 }
 0x29b   : > { %12680 = vmatmul.mubr.msk.f32.gmra.mrb[12].mxu1 %vm1787_vm6, %v2940_v56 }
 0x29c   : > { %12682 = vmatprep.mubr.msk.f32.mxu1 %vm1787_vm6, %v2941_v58 }
 0x29f   : > { %12683 = vmatmul.mubr.msk.f32.gmra.mrb[14].mxu1 %vm1787_vm6, %v2942_v61 }
 0x2a0   : > { %12685 = vmatprep.mubr.msk.f32.mxu1 %vm1787_vm6, %v2943_v13 }
 0x2a3   : > { %12686 = vmatmul.mubr.msk.f32.gmra.mrb[16].mxu1 %vm1787_vm6, %v2944_v52 }
 0x2a4   : > { %12688 = vmatprep.mubr.msk.f32.mxu1 %vm1787_vm6, %v2945_v37 }
 0x2a7   : > { %12689 = vmatmul.mubr.msk.f32.gmra.mrb[18].mxu1 %vm1787_vm6, %v2946_v40 }
 0x2a8   : > { %12691 = vmatprep.mubr.msk.f32.mxu1 %vm1787_vm6, %v2947_v51 }
 0x2ab   : > { %12692 = vmatmul.mubr.msk.f32.gmra.mrb[20].mxu1 %vm1787_vm6, %v15506_v10 }
 0x356   : > { %v12663_v0 = vpop.f32.mrb[0].mxu1 }
 0x357   : > { %v3224_v2 = vadd.f32 %v12663_v0, %v15625_v48  ;;  %v3086_v23 = vpop.f32.mrb[1].mxu1 }
 0x358   : > { %v3223_v27 = vadd.f32 %v15625_v48, %v3086_v23 }
 0x359   : > { %v3246_v54 = vmax.f32 %v3224_v2, 0.0 }
 0x35a   : > { %v3245_v36 = vmax.f32 %v3223_v27, 0.0  ;;  %v12666_v26 = vpop.f32.mrb[2].mxu1 }
 0x35b   : > { %3269 = vst.msk [vmem:[#allocation2 + $0xa] sm:$0xff] %vm1787_vm6, %v3246_v54  ;;  %v3226_v21 = vadd.f32 %v12666_v26, %v15625_v48  ;;  %v3096_v7 = vpop.f32.mrb[3].mxu1 }
 0x35c   : > { %3268 = vst.msk [vmem:[#allocation2 + $0x2] sm:$0xff] %vm1787_vm6, %v3245_v36  ;;  %v3225_v10 = vadd.f32 %v15625_v48, %v3096_v7 }
 0x35d   : > { %v3248_v50 = vmax.f32 %v3226_v21, 0.0 }
 0x35e   : > { %v3247_v55 = vmax.f32 %v3225_v10, 0.0  ;;  %v12669_v12 = vpop.f32.mrb[4].mxu1 }
 0x35f   : > { %3271 = vst.msk [vmem:[#allocation2 + $0x1a] sm:$0xff] %vm1787_vm6, %v3248_v50  ;;  %v3228_v8 = vadd.f32 %v12669_v12, %v15625_v48  ;;  %v3106_v17 = vpop.f32.mrb[5].mxu1 }
 0x360   : > { %3270 = vst.msk [vmem:[#allocation2 + $0x12] sm:$0xff] %vm1787_vm6, %v3247_v55  ;;  %v3227_v24 = vadd.f32 %v15625_v48, %v3106_v17 }
 0x361   : > { %v3250_v47 = vmax.f32 %v3228_v8, 0.0 }
 0x362   : > { %v3249_v59 = vmax.f32 %v3227_v24, 0.0  ;;  %v12672_v3 = vpop.f32.mrb[6].mxu1 }
 0x363   : > { %3273 = vst.msk [vmem:[#allocation2 + $0x2a] sm:$0xff] %vm1787_vm6, %v3250_v47  ;;  %v3230_v34 = vadd.f32 %v12672_v3, %v15625_v48  ;;  %v3116_v33 = vpop.f32.mrb[7].mxu1  ;;  %v3317_v22 = vld [vmem:[#allocation2 + $0x1] sm:$0xff]  ;;  %v3318_v16 = vld [vmem:[#allocation2 + $0x9] sm:$0xff] }
 0x364   : > { %v15639_v42 = vld [vmem:[#allocation2] sm:$0xff]  ;;  %3272 = vst.msk [vmem:[#allocation2 + $0x22] sm:$0xff] %vm1787_vm6, %v3249_v59  ;;  %v3229_v56 = vadd.f32 %v15625_v48, %v3116_v33  ;;  %12702 = vmatprep.mubr.msk.f32.mxu0 %vm1787_vm6, %v3317_v22 }
 0x365   : > { %5378 = vst.msk [vmem:[#allocation2] sm:$0x3] %vm1785_vm5, %v17785_v35  ;;  %v3252_v58 = vmax.f32 %v3230_v34, 0.0  ;;  %12703 = vmatmul.mubr.msk.f32.vlgmr.msra.gmra.mrb[22].mxu0 %vm1787_vm6, %v3318_v16 }
 0x366   : > { %v3251_v61 = vmax.f32 %v3229_v56, 0.0  ;;  %v12675_v13 = vpop.f32.mrb[8].mxu1  ;;  %13856 = vmatpush3.bf16.msra.mxu0 %v15351_v45 }
 0x367   : > { %3275 = vst.msk [vmem:[#allocation2 + $0x3a] sm:$0xff] %vm1787_vm6, %v3252_v58  ;;  %v3232_v52 = vadd.f32 %v12675_v13, %v15625_v48  ;;  %v3126_v37 = vpop.f32.mrb[9].mxu1  ;;  %v3319_v40 = vld [vmem:[#allocation2 + $0x11] sm:$0xff]  ;;  %v3320_v51 = vld [vmem:[#allocation2 + $0x19] sm:$0xff]  ;;  %13858 = vmatprep.subr.bf16.mxu0 %v15390_v38 }
 0x368   : > { %3274 = vst.msk [vmem:[#allocation2 + $0x32] sm:$0xff] %vm1787_vm6, %v3251_v61  ;;  %v3231_v0 = vadd.f32 %v15625_v48, %v3126_v37  ;;  %12705 = vmatprep.mubr.msk.f32.mxu0 %vm1787_vm6, %v3319_v40 }
 0x369   : > { %v3254_v2 = vmax.f32 %v3232_v52, 0.0  ;;  %12706 = vmatmul.mubr.msk.f32.gmra.mrb[24].mxu0 %vm1787_vm6, %v3320_v51 }
 0x36a   : > { %v3253_v23 = vmax.f32 %v3231_v0, 0.0  ;;  %v12678_v45 = vpop.f32.mrb[10].mxu1  ;;  %13860 = vmatpush3.bf16.msra.mxu0 %v15390_v38 }
 0x36b   : > { %3277 = vst.msk [vmem:[#allocation2 + $0x4a] sm:$0xff] %vm1787_vm6, %v3254_v2  ;;  %v3234_v27 = vadd.f32 %v12678_v45, %v15625_v48  ;;  %v3136_v54 = vpop.f32.mrb[11].mxu1  ;;  %v3321_v36 = vld [vmem:[#allocation2 + $0x21] sm:$0xff]  ;;  %v3322_v26 = vld [vmem:[#allocation2 + $0x29] sm:$0xff]  ;;  %13862 = vmatprep.subr.bf16.mxu0 %v15411_v25 }
 0x36c   : > { %3276 = vst.msk [vmem:[#allocation2 + $0x42] sm:$0xff] %vm1787_vm6, %v3253_v23  ;;  %v3233_v21 = vadd.f32 %v15625_v48, %v3136_v54  ;;  %12708 = vmatprep.mubr.msk.f32.mxu0 %vm1787_vm6, %v3321_v36 }
 0x36d   : > { %v3256_v7 = vmax.f32 %v3234_v27, 0.0  ;;  %12709 = vmatmul.mubr.msk.f32.gmra.mrb[26].mxu0 %vm1787_vm6, %v3322_v26 }
 0x36e   : > { %v3255_v10 = vmax.f32 %v3233_v21, 0.0  ;;  %v12681_v38 = vpop.f32.mrb[12].mxu1 }
 0x36f   : > { %3279 = vst.msk [vmem:[#allocation2 + $0x5a] sm:$0xff] %vm1787_vm6, %v3256_v7  ;;  %v3236_v50 = vadd.f32 %v12681_v38, %v15625_v48  ;;  %v3146_v55 = vpop.f32.mrb[13].mxu1  ;;  %v3323_v12 = vld [vmem:[#allocation2 + $0x31] sm:$0xff]  ;;  %v3324_v8 = vld [vmem:[#allocation2 + $0x39] sm:$0xff] }
 0x370   : > { %3278 = vst.msk [vmem:[#allocation2 + $0x52] sm:$0xff] %vm1787_vm6, %v3255_v10  ;;  %v3235_v17 = vadd.f32 %v15625_v48, %v3146_v55  ;;  %12711 = vmatprep.mubr.msk.f32.mxu0 %vm1787_vm6, %v3323_v12 }
 0x371   : > { %v3258_v24 = vmax.f32 %v3236_v50, 0.0  ;;  %12712 = vmatmul.mubr.msk.f32.gmra.mrb[28].mxu0 %vm1787_vm6, %v3324_v8 }
 0x372   : > { %v3257_v47 = vmax.f32 %v3235_v17, 0.0  ;;  %v12684_v59 = vpop.f32.mrb[14].mxu1 }
 0x373   : > { %3281 = vst.msk [vmem:[#allocation2 + $0x6a] sm:$0xff] %vm1787_vm6, %v3258_v24  ;;  %v3238_v3 = vadd.f32 %v12684_v59, %v15625_v48  ;;  %v3156_v34 = vpop.f32.mrb[15].mxu1  ;;  %v3325_v33 = vld [vmem:[#allocation2 + $0x41] sm:$0xff]  ;;  %v3326_v22 = vld [vmem:[#allocation2 + $0x49] sm:$0xff] }
 0x374   : > { %3280 = vst.msk [vmem:[#allocation2 + $0x62] sm:$0xff] %vm1787_vm6, %v3257_v47  ;;  %v3237_v16 = vadd.f32 %v15625_v48, %v3156_v34  ;;  %12714 = vmatprep.mubr.msk.f32.mxu0 %vm1787_vm6, %v3325_v33 }
 0x375   : > { %v3260_v56 = vmax.f32 %v3238_v3, 0.0  ;;  %12715 = vmatmul.mubr.msk.f32.gmra.mrb[30].mxu0 %vm1787_vm6, %v3326_v22 }
 0x376   : > { %v3259_v58 = vmax.f32 %v3237_v16, 0.0  ;;  %v12687_v61 = vpop.f32.mrb[16].mxu1 }
 0x377   : > { %3283 = vst.msk [vmem:[#allocation2 + $0x7a] sm:$0xff] %vm1787_vm6, %v3260_v56  ;;  %v3240_v13 = vadd.f32 %v12687_v61, %v15625_v48  ;;  %v3166_v52 = vpop.f32.mrb[17].mxu1  ;;  %v3327_v37 = vld [vmem:[#allocation2 + $0x51] sm:$0xff]  ;;  %v3328_v40 = vld [vmem:[#allocation2 + $0x59] sm:$0xff] }
 0x378   : > { %3282 = vst.msk [vmem:[#allocation2 + $0x72] sm:$0xff] %vm1787_vm6, %v3259_v58  ;;  %v3239_v51 = vadd.f32 %v15625_v48, %v3166_v52  ;;  %12717 = vmatprep.mubr.msk.f32.mxu0 %vm1787_vm6, %v3327_v37  ;;  %v15680_v0 = vld [vmem:[#allocation2 + $0x50] sm:$0xff]  ;;  %v15682_v2 = vld [vmem:[#allocation2 + $0x58] sm:$0xff]  ;;  %v3292_v52 = vld [vmem:[#allocation2 + $0x8] sm:$0xff] }
 0x379   : > { %v3262_v23 = vmax.f32 %v3240_v13, 0.0  ;;  %12718 = vmatmul.mubr.msk.f32.gmra.mrb[32].mxu0 %vm1787_vm6, %v3328_v40  ;;  %v15685_v45 = vld [vmem:[#allocation2 + $0x52] sm:$0xff] }
 0x37a   : > { %v15687_v27 = vld [vmem:[#allocation2 + $0x53] sm:$0xff]  ;;  %v3261_v36 = vmax.f32 %v3239_v51, 0.0  ;;  %v12690_v26 = vpop.f32.mrb[18].mxu1  ;;  %v3295_v51 = vld [vmem:[#allocation2 + $0x20] sm:$0xff] }
 0x37b   : > { %v15689_v54 = vld [vmem:[#allocation2 + $0x54] sm:$0xff]  ;;  %3285 = vst.msk [vmem:[#allocation2 + $0x8a] sm:$0xff] %vm1787_vm6, %v3262_v23  ;;  %v3242_v21 = vadd.f32 %v12690_v26, %v15625_v48  ;;  %v3176_v7 = vpop.f32.mrb[19].mxu1  ;;  %v3329_v10 = vld [vmem:[#allocation2 + $0x61] sm:$0xff]  ;;  %v3330_v38 = vld [vmem:[#allocation2 + $0x69] sm:$0xff] }
 0x37c   : > { %5390 = vst.msk [vmem:[#allocation2 + $0x57] sm:$0x3] %vm1785_vm5, %v17785_v35  ;;  %v3241_v50 = vadd.f32 %v15625_v48, %v3176_v7  ;;  %12720 = vmatprep.mubr.msk.f32.mxu0 %vm1787_vm6, %v3329_v10  ;;  %v3293_v37 = vld [vmem:[#allocation2 + $0x10] sm:$0xff]  ;;  %v3294_v40 = vld [vmem:[#allocation2 + $0x18] sm:$0xff]  ;;  %v3300_v26 = vld [vmem:[#allocation2 + $0x48] sm:$0xff] }
 0x37d   : > { %3284 = vst.msk [vmem:[#allocation2 + $0x82] sm:$0xff] %vm1787_vm6, %v3261_v36  ;;  %v3264_v55 = vmax.f32 %v3242_v21, 0.0  ;;  %12721 = vmatmul.mubr.msk.f32.gmra.mrb[34].mxu0 %vm1787_vm6, %v3330_v38  ;;  %v3297_v23 = vld [vmem:[#allocation2 + $0x30] sm:$0xff]  ;;  %v3298_v36 = vld [vmem:[#allocation2 + $0x38] sm:$0xff]  ;;  %v3304_v21 = vld [vmem:[#allocation2 + $0x68] sm:$0xff] }
 0x37e   : > { %v3263_v12 = vmax.f32 %v3241_v50, 0.0  ;;  %v12693_v8 = vpop.f32.mrb[20].mxu1 }
 0x37f   : > { %3287 = vst.msk [vmem:[#allocation2 + $0x9a] sm:$0xff] %vm1787_vm6, %v3264_v55  ;;  %v3244_v17 = vadd.f32 %v12693_v8, %v15625_v48  ;;  %v3186_v24 = vpop.f32.mrb[21].mxu1  ;;  %v3331_v47 = vld [vmem:[#allocation2 + $0x71] sm:$0xff]  ;;  %v3332_v59 = vld [vmem:[#allocation2 + $0x79] sm:$0xff]  ;;  %v3825_v8 = vld [vmem:[#allocation2 + $0x2] sm:$0xff] }
 0x380   : > { %3286 = vst.msk [vmem:[#allocation2 + $0x92] sm:$0xff] %vm1787_vm6, %v3263_v12  ;;  %v3243_v3 = vadd.f32 %v15625_v48, %v3186_v24  ;;  %12723 = vmatprep.mubr.msk.f32.mxu0 %vm1787_vm6, %v3331_v47  ;;  %v3305_v7 = vld [vmem:[#allocation2 + $0x70] sm:$0xff]  ;;  %v3306_v10 = vld [vmem:[#allocation2 + $0x78] sm:$0xff] }
 0x381   : > { %v3266_v34 = vmax.f32 %v3244_v17, 0.0  ;;  %12724 = vmatmul.mubr.msk.f32.gmra.mrb[36].mxu0 %vm1787_vm6, %v3332_v59  ;;  %v3826_v17 = vld [vmem:[#allocation2 + $0xa] sm:$0xff]  ;;  %v3827_v24 = vld [vmem:[#allocation2 + $0x12] sm:$0xff]  ;;  %v3828_v47 = vld [vmem:[#allocation2 + $0x1a] sm:$0xff] }
 0x382   : > { %v3265_v33 = vmax.f32 %v3243_v3, 0.0  ;;  %v3829_v59 = vld [vmem:[#allocation2 + $0x22] sm:$0xff]  ;;  %v3830_v3 = vld [vmem:[#allocation2 + $0x2a] sm:$0xff] }
 0x383   : > { %3289 = vst.msk [vmem:[#allocation2 + $0xaa] sm:$0x1f] %vm1809_vm7, %v3266_v34  ;;  %v3831_v34 = vld [vmem:[#allocation2 + $0x32] sm:$0xff] }
 0x384   : > { %v3333_v22 = vld [vmem:[#allocation2 + $0x81] sm:$0xff]  ;;  %v3334_v16 = vld [vmem:[#allocation2 + $0x89] sm:$0xff]  ;;  %3288 = vst.msk [vmem:[#allocation2 + $0xa2] sm:$0xff] %vm1787_vm6, %v3265_v33 }
 0x385   : > { %12726 = vmatprep.mubr.msk.f32.mxu0 %vm1787_vm6, %v3333_v22  ;;  %v3307_v38 = vld [vmem:[#allocation2 + $0x80] sm:$0xff]  ;;  %v3308_v50 = vld [vmem:[#allocation2 + $0x88] sm:$0xff] }
 0x386   : > { %12727 = vmatmul.mubr.msk.f32.gmra.mrb[38].mxu0 %vm1787_vm6, %v3334_v16  ;;  %v3832_v33 = vld [vmem:[#allocation2 + $0x3a] sm:$0xff]  ;;  %v3834_v22 = vld [vmem:[#allocation2 + $0x4a] sm:$0xff]  ;;  %v3837_v16 = vld [vmem:[#allocation2 + $0x62] sm:$0xff] }
 0x387   : > { %v3335_v56 = vld [vmem:[#allocation2 + $0x91] sm:$0xff]  ;;  %v3336_v58 = vld [vmem:[#allocation2 + $0x99] sm:$0xff] }
 0x388   : > { %12729 = vmatprep.mubr.msk.f32.mxu0 %vm1787_vm6, %v3335_v56  ;;  %v3838_v56 = vld [vmem:[#allocation2 + $0x6a] sm:$0xff] }
 0x38a   : > { %12730 = vmatmul.mubr.msk.f32.gmra.mrb[40].mxu0 %vm1787_vm6, %v3336_v58  ;;  %v3839_v58 = vld [vmem:[#allocation2 + $0x72] sm:$0xff] }
 0x38b   : > { %v3337_v61 = vld [vmem:[#allocation2 + $0xa1] sm:$0xff]  ;;  %v3338_v13 = vld [vmem:[#allocation2 + $0xa9] sm:$0x1f] }
 0x38c   : > { %12732 = vmatprep.mubr.msk.f32.mxu0 %vm1787_vm6, %v3337_v61  ;;  %v3311_v55 = vld [vmem:[#allocation2 + $0xa0] sm:$0xff]  ;;  %v3312_v12 = vld [vmem:[#allocation2 + $0xa8] sm:$0x1f] }
 0x38d   : > { %v3840_v61 = vld [vmem:[#allocation2 + $0x7a] sm:$0xff] }
 0x38e   : > { %12733 = vmatmul.mubr.msk.f32.gmra.mrb[42].mxu0 %vm1787_vm6, %v3338_v13  ;;  %v3841_v13 = vld [vmem:[#allocation2 + $0x82] sm:$0xff] }
 0x38f   : > { %12743 = vmatprep.mubr.msk.f32.mxu0 %vm1787_vm6, %v15639_v42  ;;  %v3296_v42 = vld [vmem:[#allocation2 + $0x28] sm:$0xff] }
 0x392   : > { %12744 = vmatmul.mubr.msk.f32.vlgmr.msra.gmra.mrb[22].mxu0 %vm1787_vm6, %v3292_v52  ;;  %v3842_v52 = vld [vmem:[#allocation2 + $0x8a] sm:$0xff] }
 0x393   : > { %12746 = vmatprep.mubr.msk.f32.mxu0 %vm1787_vm6, %v3293_v37  ;;  %13864 = vmatpush3.bf16.msra.mxu0 %v15411_v25  ;;  %v3299_v25 = vld [vmem:[#allocation2 + $0x40] sm:$0xff] }
 0x394   : > { %13866 = vmatprep.subr.bf16.mxu0 %v15512_v15  ;;  %v3844_v37 = vld [vmem:[#allocation2 + $0x9a] sm:$0xff] }
 0x396   : > { %12747 = vmatmul.mubr.msk.f32.gmra.mrb[24].mxu0 %vm1787_vm6, %v3294_v40  ;;  %v3845_v40 = vld [vmem:[#allocation2 + $0xa2] sm:$0xff] }
 0x397   : > { %12749 = vmatprep.mubr.msk.f32.mxu0 %vm1787_vm6, %v3295_v51  ;;  %13868 = vmatpush3.bf16.msra.mxu0 %v15512_v15  ;;  %v3303_v15 = vld [vmem:[#allocation2 + $0x60] sm:$0xff]  ;;  %v3846_v51 = vld [vmem:[#allocation2 + $0xaa] sm:$0x1f] }
 0x398   : > { %13870 = vmatprep.subr.bf16.mxu0 %v15518_v20 }
 0x39a   : > { %12750 = vmatmul.mubr.msk.f32.gmra.mrb[26].mxu0 %vm1787_vm6, %v3296_v42  ;;  %v4114_v42 = vld [vmem:[#allocation2 + $0x3] sm:$0xff] }
 0x39b   : > { %12752 = vmatprep.mubr.msk.f32.mxu0 %vm1787_vm6, %v3297_v23  ;;  %v4115_v23 = vld [vmem:[#allocation2 + $0xb] sm:$0xff] }
 0x39e   : > { %12753 = vmatmul.mubr.msk.f32.gmra.mrb[28].mxu0 %vm1787_vm6, %v3298_v36  ;;  %v4116_v36 = vld [vmem:[#allocation2 + $0x13] sm:$0xff] }
 0x39f   : > { %12755 = vmatprep.mubr.msk.f32.mxu0 %vm1787_vm6, %v3299_v25  ;;  %v4117_v25 = vld [vmem:[#allocation2 + $0x1b] sm:$0xff] }
 0x3a2   : > { %12756 = vmatmul.mubr.msk.f32.gmra.mrb[30].mxu0 %vm1787_vm6, %v3300_v26  ;;  %v4118_v26 = vld [vmem:[#allocation2 + $0x23] sm:$0xff] }
 0x3a3   : > { %12758 = vmatprep.mubr.msk.f32.mxu0 %vm1787_vm6, %v15680_v0  ;;  %v3309_v0 = vld [vmem:[#allocation2 + $0x90] sm:$0xff] }
 0x3a6   : > { %12759 = vmatmul.mubr.msk.f32.gmra.mrb[32].mxu0 %vm1787_vm6, %v15682_v2  ;;  %v3310_v2 = vld [vmem:[#allocation2 + $0x98] sm:$0xff] }
 0x3a7   : > { %12761 = vmatprep.mubr.msk.f32.mxu0 %vm1787_vm6, %v3303_v15  ;;  %v4119_v15 = vld [vmem:[#allocation2 + $0x2b] sm:$0xff] }
 0x3aa   : > { %12762 = vmatmul.mubr.msk.f32.gmra.mrb[34].mxu0 %vm1787_vm6, %v3304_v21  ;;  %v4120_v21 = vld [vmem:[#allocation2 + $0x33] sm:$0xff] }
 0x3ab   : > { %12764 = vmatprep.mubr.msk.f32.mxu0 %vm1787_vm6, %v3305_v7  ;;  %v4121_v7 = vld [vmem:[#allocation2 + $0x3b] sm:$0xff] }
 0x3ae   : > { %12765 = vmatmul.mubr.msk.f32.gmra.mrb[36].mxu0 %vm1787_vm6, %v3306_v10  ;;  %v4123_v10 = vld [vmem:[#allocation2 + $0x4b] sm:$0xff] }
 0x3af   : > { %12767 = vmatprep.mubr.msk.f32.mxu0 %vm1787_vm6, %v3307_v38  ;;  %v4125_v38 = vld [vmem:[#allocation2 + $0x5b] sm:$0xff] }
 0x3b2   : > { %12768 = vmatmul.mubr.msk.f32.gmra.mrb[38].mxu0 %vm1787_vm6, %v3308_v50  ;;  %v4127_v50 = vld [vmem:[#allocation2 + $0x6b] sm:$0xff] }
 0x3b3   : > { %12770 = vmatprep.mubr.msk.f32.mxu0 %vm1787_vm6, %v3309_v0  ;;  %v4128_v0 = vld [vmem:[#allocation2 + $0x73] sm:$0xff] }
 0x3b6   : > { %12771 = vmatmul.mubr.msk.f32.gmra.mrb[40].mxu0 %vm1787_vm6, %v3310_v2  ;;  %v4129_v2 = vld [vmem:[#allocation2 + $0x7b] sm:$0xff] }
 0x3b7   : > { %12773 = vmatprep.mubr.msk.f32.mxu0 %vm1787_vm6, %v3311_v55  ;;  %v4130_v55 = vld [vmem:[#allocation2 + $0x83] sm:$0xff] }
 0x3ba   : > { %12774 = vmatmul.mubr.msk.f32.gmra.mrb[42].mxu0 %vm1787_vm6, %v3312_v12  ;;  %v4131_v12 = vld [vmem:[#allocation2 + $0x8b] sm:$0xff] }
 0x3bb   : > { %12784 = vmatprep.mubr.msk.f32.mxu0 %vm1787_vm6, %v3825_v8  ;;  %v4133_v8 = vld [vmem:[#allocation2 + $0x9b] sm:$0xff] }
 0x3be   : > { %12785 = vmatmul.mubr.msk.f32.vlgmr.msra.gmra.mrb[22].mxu0 %vm1787_vm6, %v3826_v17  ;;  %v4134_v17 = vld [vmem:[#allocation2 + $0xa3] sm:$0xff] }
 0x3bf   : > { %12787 = vmatprep.mubr.msk.f32.mxu0 %vm1787_vm6, %v3827_v24  ;;  %13872 = vmatpush3.bf16.msra.mxu0 %v15518_v20  ;;  %v3833_v20 = vld [vmem:[#allocation2 + $0x42] sm:$0xff]  ;;  %v4135_v24 = vld [vmem:[#allocation2 + $0xab] sm:$0x1f] }
 0x3c0   : > { %13874 = vmatprep.subr.bf16.mxu0 %v15542_v32 }
 0x3c2   : > { %12788 = vmatmul.mubr.msk.f32.gmra.mrb[24].mxu0 %vm1787_vm6, %v3828_v47  ;;  %v4403_v47 = vld [vmem:[#allocation2 + $0x4] sm:$0xff] }
 0x3c3   : > { %12790 = vmatprep.mubr.msk.f32.mxu0 %vm1787_vm6, %v3829_v59  ;;  %13876 = vmatpush3.bf16.msra.mxu0 %v15542_v32  ;;  %v3836_v32 = vld [vmem:[#allocation2 + $0x5a] sm:$0xff]  ;;  %v4404_v59 = vld [vmem:[#allocation2 + $0xc] sm:$0xff] }
 0x3c4   : > { %13878 = vmatprep.subr.bf16.mxu0 %v15548_v41 }
 0x3c6   : > { %12791 = vmatmul.mubr.msk.f32.gmra.mrb[26].mxu0 %vm1787_vm6, %v3830_v3  ;;  %v4405_v3 = vld [vmem:[#allocation2 + $0x14] sm:$0xff] }
 0x3c7   : > { %12793 = vmatprep.mubr.msk.f32.mxu0 %vm1787_vm6, %v3831_v34  ;;  %v4406_v34 = vld [vmem:[#allocation2 + $0x1c] sm:$0xff] }
 0x3ca   : > { %12794 = vmatmul.mubr.msk.f32.gmra.mrb[28].mxu0 %vm1787_vm6, %v3832_v33  ;;  %v4407_v33 = vld [vmem:[#allocation2 + $0x24] sm:$0xff] }
 0x3cb   : > { %12796 = vmatprep.mubr.msk.f32.mxu0 %vm1787_vm6, %v3833_v20  ;;  %v4408_v20 = vld [vmem:[#allocation2 + $0x2c] sm:$0xff] }
 0x3ce   : > { %12797 = vmatmul.mubr.msk.f32.gmra.mrb[30].mxu0 %vm1787_vm6, %v3834_v22  ;;  %v4409_v22 = vld [vmem:[#allocation2 + $0x34] sm:$0xff] }
 0x3cf   : > { %12799 = vmatprep.mubr.msk.f32.mxu0 %vm1787_vm6, %v15685_v45  ;;  %v3843_v45 = vld [vmem:[#allocation2 + $0x92] sm:$0xff] }
 0x3d2   : > { %12800 = vmatmul.mubr.msk.f32.gmra.mrb[32].mxu0 %vm1787_vm6, %v3836_v32  ;;  %v4410_v32 = vld [vmem:[#allocation2 + $0x3c] sm:$0xff] }
 0x3d3   : > { %12802 = vmatprep.mubr.msk.f32.mxu0 %vm1787_vm6, %v3837_v16  ;;  %v4411_v16 = vld [vmem:[#allocation2 + $0x44] sm:$0xff] }
 0x3d6   : > { %12803 = vmatmul.mubr.msk.f32.gmra.mrb[34].mxu0 %vm1787_vm6, %v3838_v56  ;;  %v4412_v56 = vld [vmem:[#allocation2 + $0x4c] sm:$0xff] }
 0x3d7   : > { %12805 = vmatprep.mubr.msk.f32.mxu0 %vm1787_vm6, %v3839_v58  ;;  %v4414_v58 = vld [vmem:[#allocation2 + $0x5c] sm:$0xff] }
 0x3da   : > { %12806 = vmatmul.mubr.msk.f32.gmra.mrb[36].mxu0 %vm1787_vm6, %v3840_v61  ;;  %v4415_v61 = vld [vmem:[#allocation2 + $0x64] sm:$0xff] }
 0x3db   : > { %12808 = vmatprep.mubr.msk.f32.mxu0 %vm1787_vm6, %v3841_v13  ;;  %v4416_v13 = vld [vmem:[#allocation2 + $0x6c] sm:$0xff] }
 0x3de   : > { %12809 = vmatmul.mubr.msk.f32.gmra.mrb[38].mxu0 %vm1787_vm6, %v3842_v52  ;;  %v4417_v52 = vld [vmem:[#allocation2 + $0x74] sm:$0xff] }
 0x3df   : > { %12811 = vmatprep.mubr.msk.f32.mxu0 %vm1787_vm6, %v3843_v45  ;;  %v4418_v45 = vld [vmem:[#allocation2 + $0x7c] sm:$0xff] }
 0x3e2   : > { %12812 = vmatmul.mubr.msk.f32.gmra.mrb[40].mxu0 %vm1787_vm6, %v3844_v37  ;;  %v4419_v37 = vld [vmem:[#allocation2 + $0x84] sm:$0xff] }
 0x3e3   : > { %12814 = vmatprep.mubr.msk.f32.mxu0 %vm1787_vm6, %v3845_v40  ;;  %v4420_v40 = vld [vmem:[#allocation2 + $0x8c] sm:$0xff] }
 0x3e6   : > { %12815 = vmatmul.mubr.msk.f32.gmra.mrb[42].mxu0 %vm1787_vm6, %v3846_v51  ;;  %v4422_v51 = vld [vmem:[#allocation2 + $0x9c] sm:$0xff] }
 0x3e7   : > { %12825 = vmatprep.mubr.msk.f32.mxu0 %vm1787_vm6, %v4114_v42  ;;  %v4423_v42 = vld [vmem:[#allocation2 + $0xa4] sm:$0xff] }
 0x3ea   : > { %12826 = vmatmul.mubr.msk.f32.vlgmr.msra.gmra.mrb[22].mxu0 %vm1787_vm6, %v4115_v23  ;;  %v4424_v23 = vld [vmem:[#allocation2 + $0xac] sm:$0x1f] }
 0x3eb   : > { %12828 = vmatprep.mubr.msk.f32.mxu0 %vm1787_vm6, %v4116_v36  ;;  %13880 = vmatpush3.bf16.msra.mxu0 %v15548_v41  ;;  %v4122_v41 = vld [vmem:[#allocation2 + $0x43] sm:$0xff]  ;;  %v17794_v36 = vmov 0.0|0.0  }
 0x3ec   : > { %13882 = vmatprep.subr.bf16.mxu0 %v15572_v28  ;;  %13885 = vmatprep.subr.bf16.mxu1 %v17794_v36 }
 0x3ee   : > { %12829 = vmatmul.mubr.msk.f32.gmra.mrb[24].mxu0 %vm1787_vm6, %v4117_v25  ;;  %v5128_v25 = vlaneseq }
 0x3ef   : > { %12831 = vmatprep.mubr.msk.f32.mxu0 %vm1787_vm6, %v4118_v26  ;;  %13884 = vmatpush3.bf16.msra.mxu0 %v15572_v28  ;;  %v4126_v28 = vld [vmem:[#allocation2 + $0x63] sm:$0xff] }
 0x3f0   : > { %13943 = vmatprep.subr.bf16.mxu0 %v17794_v36  ;;  %v15820_v26 = vshrl.u32 %v5128_v25, 7 }
 0x3f2   : > { %12832 = vmatmul.mubr.msk.f32.gmra.mrb[26].mxu0 %vm1787_vm6, %v4119_v15  ;;  %v15822_v15 = vand.u32 127, %v5128_v25 }
 0x3f3   : > { %12834 = vmatprep.mubr.msk.f32.mxu0 %vm1787_vm6, %v4120_v21 }
 0x3f4   : > { %v15825_v21 = vadd.s32 128, %v15822_v15 }
 0x3f6   : > { %12835 = vmatmul.mubr.msk.f32.gmra.mrb[28].mxu0 %vm1787_vm6, %v4121_v7  ;;  %v17787_v7 = vmul.u32 2, %v15820_v26 }
 0x3f7   : > { %12837 = vmatprep.mubr.msk.f32.mxu0 %vm1787_vm6, %v4122_v41 }
 0x3f8   : > { %vm5155_vm9 = vcmp.eq.s32.totalorder %v15825_v21, %v17787_v7 }
 0x3f9   : > { %v11249_v41 = vsel %vm5155_vm9, 1.0, %v17785_v35 }
 0x3fa   : > { %12838 = vmatmul.mubr.msk.f32.gmra.mrb[30].mxu0 %vm1787_vm6, %v4123_v10  ;;  %11271 = vmatprep.mubr.msk.f32.mxu1 %vm5220_vm8, %v11249_v41 }
 0x3fb   : > { %12840 = vmatprep.mubr.msk.f32.mxu0 %vm1787_vm6, %v15687_v27  ;;  %v4132_v27 = vld [vmem:[#allocation2 + $0x93] sm:$0xff] }
 0x3fe   : > { %12841 = vmatmul.mubr.msk.f32.gmra.mrb[32].mxu0 %vm1787_vm6, %v4125_v38 }
 0x3ff   : > { %12843 = vmatprep.mubr.msk.f32.mxu0 %vm1787_vm6, %v4126_v28 }
 0x402   : > { %12844 = vmatmul.mubr.msk.f32.gmra.mrb[34].mxu0 %vm1787_vm6, %v4127_v50 }
 0x403   : > { %12846 = vmatprep.mubr.msk.f32.mxu0 %vm1787_vm6, %v4128_v0 }
 0x406   : > { %12847 = vmatmul.mubr.msk.f32.gmra.mrb[36].mxu0 %vm1787_vm6, %v4129_v2 }
 0x407   : > { %12849 = vmatprep.mubr.msk.f32.mxu0 %vm1787_vm6, %v4130_v55 }
 0x40a   : > { %12850 = vmatmul.mubr.msk.f32.gmra.mrb[38].mxu0 %vm1787_vm6, %v4131_v12 }
 0x40b   : > { %12852 = vmatprep.mubr.msk.f32.mxu0 %vm1787_vm6, %v4132_v27 }
 0x40e   : > { %12853 = vmatmul.mubr.msk.f32.gmra.mrb[40].mxu0 %vm1787_vm6, %v4133_v8 }
 0x40f   : > { %12855 = vmatprep.mubr.msk.f32.mxu0 %vm1787_vm6, %v4134_v17 }
 0x412   : > { %12856 = vmatmul.mubr.msk.f32.gmra.mrb[42].mxu0 %vm1787_vm6, %v4135_v24 }
 0x413   : > { %12866 = vmatprep.mubr.msk.f32.mxu0 %vm1787_vm6, %v4403_v47  ;;  %v15842_v47 = vadd.s32 8, %v15820_v26 }
 0x416   : > { %12867 = vmatmul.mubr.msk.f32.vlgmr.msra.gmra.mrb[22].mxu0 %vm1787_vm6, %v4404_v59 }
 0x417   : > { %12869 = vmatprep.mubr.msk.f32.mxu0 %vm1787_vm6, %v4405_v3 }
 0x41a   : > { %12870 = vmatmul.mubr.msk.f32.gmra.mrb[24].mxu0 %vm1787_vm6, %v4406_v34 }
 0x41b   : > { %12872 = vmatprep.mubr.msk.f32.mxu0 %vm1787_vm6, %v4407_v33 }
 0x41e   : > { %12873 = vmatmul.mubr.msk.f32.gmra.mrb[26].mxu0 %vm1787_vm6, %v4408_v20 }
 0x41f   : > { %12875 = vmatprep.mubr.msk.f32.mxu0 %vm1787_vm6, %v4409_v22 }
 0x422   : > { %12876 = vmatmul.mubr.msk.f32.gmra.mrb[28].mxu0 %vm1787_vm6, %v4410_v32 }
 0x423   : > { %12878 = vmatprep.mubr.msk.f32.mxu0 %vm1787_vm6, %v4411_v16 }
 0x426   : > { %12879 = vmatmul.mubr.msk.f32.gmra.mrb[30].mxu0 %vm1787_vm6, %v4412_v56 }
 0x427   : > { %12881 = vmatprep.mubr.msk.f32.mxu0 %vm1787_vm6, %v15689_v54  ;;  %v4421_v54 = vld [vmem:[#allocation2 + $0x94] sm:$0xff] }
 0x42a   : > { %12882 = vmatmul.mubr.msk.f32.gmra.mrb[32].mxu0 %vm1787_vm6, %v4414_v58 }
 0x42b   : > { %12884 = vmatprep.mubr.msk.f32.mxu0 %vm1787_vm6, %v4415_v61 }
 0x42e   : > { %12885 = vmatmul.mubr.msk.f32.gmra.mrb[34].mxu0 %vm1787_vm6, %v4416_v13 }
 0x42f   : > { %12887 = vmatprep.mubr.msk.f32.mxu0 %vm1787_vm6, %v4417_v52 }
 0x432   : > { %12888 = vmatmul.mubr.msk.f32.gmra.mrb[36].mxu0 %vm1787_vm6, %v4418_v45 }
 0x433   : > { %12890 = vmatprep.mubr.msk.f32.mxu0 %vm1787_vm6, %v4419_v37 }
 0x436   : > { %12891 = vmatmul.mubr.msk.f32.gmra.mrb[38].mxu0 %vm1787_vm6, %v4420_v40 }
 0x437   : > { %12893 = vmatprep.mubr.msk.f32.mxu0 %vm1787_vm6, %v4421_v54 }
 0x43a   : > { %12894 = vmatmul.mubr.msk.f32.gmra.mrb[40].mxu0 %vm1787_vm6, %v4422_v51 }
 0x43b   : > { %12896 = vmatprep.mubr.msk.f32.mxu0 %vm1787_vm6, %v4423_v42 }
 0x43e   : > { %12897 = vmatmul.mubr.msk.f32.gmra.mrb[42].mxu0 %vm1787_vm6, %v4424_v23 }
 0x4e9   : > { %v12868_v10 = vpop.f32.mrb[22].mxu0 }
 0x4ea   : > { %v4693_v38 = vadd.f32 %v12868_v10, %v15625_v48  ;;  %v4561_v28 = vpop.f32.mrb[23].mxu0 }
 0x4eb   : > { %v4692_v50 = vadd.f32 %v15625_v48, %v4561_v28 }
 0x4ec   : > { %v4715_v0 = vadd.f32 %v4693_v38, %v15361_v57 }
 0x4ed   : > { %v4714_v2 = vadd.f32 %v4692_v50, %v15364_v60  ;;  %v12871_v55 = vpop.f32.mrb[24].mxu0 }
 0x4ee   : > { %v15837_v12 = vmax.f32 %v4715_v0, 0.0  ;;  %v4695_v27 = vadd.f32 %v12871_v55, %v15625_v48  ;;  %v4571_v8 = vpop.f32.mrb[25].mxu0 }
 0x4ef   : > { %v4736_v17 = vmax.f32 %v4714_v2, 0.0  ;;  %v4694_v24 = vadd.f32 %v15625_v48, %v4571_v8 }
 0x4f0   : > { %v4781_v59 = vrot.slane %v15837_v12, 1  ;;  %v4868_v3 = vrot.slane %v15837_v12, 2  ;;  %v4955_v57 = vrot.slane %v15837_v12, 3  ;;  %v4717_v60 = vadd.f32 %v4695_v27, %v15371_v62 }
 0x4f1   : > { %v4780_v34 = vrot.slane %v4736_v17, 1  ;;  %v4867_v33 = vrot.slane %v4736_v17, 2  ;;  %v4954_v20 = vrot.slane %v4736_v17, 3  ;;  %v4716_v22 = vadd.f32 %v4694_v24, %v15374_v9  ;;  %v12874_v32 = vpop.f32.mrb[26].mxu0 }
 0x4f2   : > { %v15849_v16 = vmax.f32 %v4717_v60, 0.0  ;;  %v4697_v56 = vadd.f32 %v12874_v32, %v15625_v48  ;;  %v4581_v58 = vpop.f32.mrb[27].mxu0  ;;  %v5041_v61 = vrot.slane %v4736_v17, 4  ;;  %v5042_v13 = vrot.slane %v15837_v12, 4 }
 0x4f3   : > { %v15853_v52 = vmax.f32 %v4716_v22, 0.0  ;;  %v4696_v45 = vadd.f32 %v15625_v48, %v4581_v58  ;;  %v4782_v62 = vsel %vm17793_vm1, %v4780_v34, %v4781_v59  ;;  %v4869_v37 = vsel %vm17792_vm3, %v4867_v33, %v4868_v3 }
 0x4f4   : > { %v4785_v40 = vrot.slane %v15849_v16, 1  ;;  %v4872_v9 = vrot.slane %v15849_v16, 2  ;;  %v4959_v54 = vrot.slane %v15849_v16, 3  ;;  %v4719_v51 = vadd.f32 %v4697_v56, %v15381_v46 }
 0x4f5   : > { %v4783_v42 = vrot.slane %v15853_v52, 1  ;;  %v4870_v23 = vrot.slane %v15853_v52, 2  ;;  %v4957_v25 = vrot.slane %v15853_v52, 3  ;;  %v4718_v41 = vadd.f32 %v4696_v45, %v15384_v53  ;;  %v12877_v10 = vpop.f32.mrb[28].mxu0 }
 0x4f6   : > { %v15866_v38 = vmax.f32 %v4719_v51, 0.0  ;;  %v4699_v28 = vadd.f32 %v12877_v10, %v15625_v48  ;;  %v4591_v50 = vpop.f32.mrb[29].mxu0  ;;  %v4845_v0 = vmax.f32 %v4736_v17, %v4782_v62  ;;  %v4956_v2 = vsel %vm17791_vm4, %v4954_v20, %v4955_v57 }
 0x4f7   : > { %v15870_v55 = vmax.f32 %v4718_v41, 0.0  ;;  %v4698_v46 = vadd.f32 %v15625_v48, %v4591_v50  ;;  %v4784_v27 = vsel %vm17793_vm1, %v4781_v59, %v4783_v42  ;;  %v4871_v8 = vsel %vm17792_vm3, %v4868_v3, %v4870_v23 }
 0x4f8   : > { %v4789_v53 = vrot.slane %v15866_v38, 1  ;;  %v4876_v24 = vrot.slane %v15866_v38, 2  ;;  %v4963_v60 = vrot.slane %v15866_v38, 3  ;;  %v4721_v17 = vadd.f32 %v4699_v28, %v15398_v44 }
 0x4f9   : > { %v4787_v34 = vrot.slane %v15870_v55, 1  ;;  %v4874_v33 = vrot.slane %v15870_v55, 2  ;;  %v4961_v20 = vrot.slane %v15870_v55, 3  ;;  %v4720_v59 = vadd.f32 %v4698_v46, %v15402_v4  ;;  %v12880_v22 = vpop.f32.mrb[30].mxu0 }
 0x4fa   : > { %v15885_v32 = vmax.f32 %v4721_v17, 0.0  ;;  %v4701_v3 = vadd.f32 %v12880_v22, %v15625_v48  ;;  %v4601_v56 = vpop.f32.mrb[31].mxu0  ;;  %v4846_v58 = vmax.f32 %v15837_v12, %v4784_v27  ;;  %v4932_v45 = vmax.f32 %v4845_v0, %v4869_v37 }
 0x4fb   : > { %v15889_v62 = vmax.f32 %v4720_v59, 0.0  ;;  %v4700_v44 = vadd.f32 %v15625_v48, %v4601_v56  ;;  %v4958_v51 = vsel %vm17791_vm4, %v4955_v57, %v4957_v25  ;;  %v5043_v4 = vsel %vm17790_vm0, %v5041_v61, %v5042_v13 }
 0x4fc   : > { %v4793_v41 = vrot.slane %v15885_v32, 1  ;;  %v4880_v10 = vrot.slane %v15885_v32, 2  ;;  %v4723_v37 = vadd.f32 %v4701_v3, %v15414_v1  ;;  %v4933_v22 = vmax.f32 %v4846_v58, %v4871_v8 }
 0x4fd   : > { %v4791_v50 = vrot.slane %v15889_v62, 1  ;;  %v4878_v0 = vrot.slane %v15889_v62, 2  ;;  %v4965_v46 = vrot.slane %v15889_v62, 3  ;;  %v4722_v57 = vadd.f32 %v4700_v44, %v15417_v6  ;;  %v12883_v27 = vpop.f32.mrb[32].mxu0 }
 0x4fe   : > { %v15906_v17 = vmax.f32 %v4723_v37, 0.0  ;;  %v4703_v61 = vadd.f32 %v12883_v27, %v15625_v48  ;;  %v4611_v59 = vpop.f32.mrb[33].mxu0  ;;  %v5019_v56 = vmax.f32 %v4932_v45, %v4956_v2  ;;  %v5044_v3 = vrot.slane %v15853_v52, 4 }
 0x4ff   : > { %v15909_v35 = vmax.f32 %v4722_v57, 0.0  ;;  %v4702_v1 = vadd.f32 %v15625_v48, %v4611_v59  ;;  %v4786_v7 = vsel %vm17793_vm1, %v4783_v42, %v4785_v40  ;;  %v5020_v28 = vmax.f32 %v4933_v22, %v4958_v51 }
 0x500   : > { %v4725_v27 = vadd.f32 %v4703_v61, %v15427_v5  ;;  %v5045_v5 = vsel %vm17790_vm0, %v5042_v13, %v5044_v3  ;;  %v5106_v44 = vmax.f32 %v5019_v56, %v5043_v4  ;;  %v4847_v51 = vmax.f32 %v15853_v52, %v4786_v7 }
 0x501   : > { %v4795_v2 = vrot.slane %v15909_v35, 1  ;;  %v4882_v8 = vrot.slane %v15909_v35, 2  ;;  %v4969_v58 = vrot.slane %v15909_v35, 3  ;;  %v4724_v45 = vadd.f32 %v4702_v1, %v15431_v49  ;;  %v12886_v57 = vpop.f32.mrb[34].mxu0 }
 0x502   : > { %v15924_v59 = vmax.f32 %v4725_v27, 0.0  ;;  %v4705_v42 = vadd.f32 %v12886_v57, %v15625_v48  ;;  %v4621_v6 = vpop.f32.mrb[35].mxu0  ;;  %v4788_v49 = vsel %vm17793_vm1, %v4785_v40, %v4787_v34  ;;  %v5107_v40 = vmax.f32 %v5020_v28, %v5045_v5 }
 0x503   : > { %v15932_v61 = vmax.f32 %v4724_v45, 0.0  ;;  %v4704_v37 = vadd.f32 %v15625_v48, %v4621_v6  ;;  %v4792_v52 = vsel %vm17793_vm1, %v4789_v53, %v4791_v50 }
 0x504   : > { %v4727_v12 = vadd.f32 %v4705_v42, %v15440_v30  ;;  %v4848_v42 = vmax.f32 %v15849_v16, %v4788_v49 }
 0x505   : > { %v4799_v13 = vrot.slane %v15932_v61, 1  ;;  %v4886_v27 = vrot.slane %v15932_v61, 2  ;;  %v4726_v56 = vadd.f32 %v4704_v37, %v15443_v11  ;;  %v12889_v6 = vpop.f32.mrb[36].mxu0  ;;  %v4873_v11 = vsel %vm17792_vm3, %v4870_v23, %v4872_v9 }
 0x506   : > { %v15948_v45 = vmax.f32 %v4727_v12, 0.0  ;;  %v4707_v57 = vadd.f32 %v12889_v6, %v15625_v48  ;;  %v4631_v1 = vpop.f32.mrb[37].mxu0  ;;  %v13886_v12 = vpack.c.bf16 %v5107_v40, %v5106_v44  ;;  %v4875_v23 = vsel %vm17792_vm3, %v4872_v9, %v4874_v33 }
 0x507   : > { %v15952_v22 = vmax.f32 %v4726_v56, 0.0  ;;  %v4706_v30 = vadd.f32 %v15625_v48, %v4631_v1  ;;  %v4934_v5 = vmax.f32 %v4847_v51, %v4873_v11  ;;  %v4960_v44 = vsel %vm17791_vm4, %v4957_v25, %v4959_v54 }
 0x508   : > { %v4729_v49 = vadd.f32 %v4707_v57, %v15452_v14  ;;  %13887 = vmatpush1.bf16.msra.mxu1 %v13886_v12  ;;  %v4935_v14 = vmax.f32 %v4848_v42, %v4875_v23  ;;  %v5046_v9 = vrot.slane %v15849_v16, 4 }
 0x509   : > { %v4803_v7 = vrot.slane %v15952_v22, 1  ;;  %v4890_v56 = vrot.slane %v15952_v22, 2  ;;  %v4977_v1 = vrot.slane %v15952_v22, 3  ;;  %v12892_v6 = vpop.f32.mrb[38].mxu0  ;;  %v4728_v4 = vadd.f32 %v4706_v30, %v15455_v18  ;;  %13888 = vmatprep.subr.bf16.mxu1 %v17794_v36 }
 0x50a   : > { %v4641_v40 = vpop.f32.mrb[39].mxu0  ;;  %v15979_v28 = vmax.f32 %v4729_v49, 0.0  ;;  %v4962_v18 = vsel %vm17791_vm4, %v4959_v54, %v4961_v20  ;;  %v5021_v57 = vmax.f32 %v4934_v5, %v4960_v44  ;;  %v5048_v30 = vrot.slane %v15870_v55, 4 }
 0x50b   : > { %v15988_v51 = vmax.f32 %v4728_v4, 0.0  ;;  %v4709_v25 = vadd.f32 %v12892_v6, %v15625_v48  ;;  %v5022_v49 = vmax.f32 %v4935_v14, %v4962_v18  ;;  %v5047_v4 = vsel %vm17790_vm0, %v5044_v3, %v5046_v9 }
 0x50c   : > { %v4809_v11 = vrot.slane %v15979_v28, 1  ;;  %v5049_v6 = vsel %vm17790_vm0, %v5046_v9, %v5048_v30  ;;  %v5108_v44 = vmax.f32 %v5021_v57, %v5047_v4  ;;  %v4708_v42 = vadd.f32 %v15625_v48, %v4641_v40 }
 0x50d   : > { %v12895_v23 = vpop.f32.mrb[40].mxu0  ;;  %v4807_v37 = vrot.slane %v15988_v51, 1  ;;  %v4894_v54 = vrot.slane %v15988_v51, 2  ;;  %v4981_v16 = vrot.slane %v15988_v51, 3  ;;  %v4731_v12 = vadd.f32 %v4709_v25, %v15464_v31 }
 0x50e   : > { %v4651_v5 = vpop.f32.mrb[41].mxu0  ;;  %v5109_v14 = vmax.f32 %v5022_v49, %v5049_v6  ;;  %v4790_v18 = vsel %vm17793_vm1, %v4787_v34, %v4789_v53  ;;  %v4877_v31 = vsel %vm17792_vm3, %v4874_v33, %v4876_v24  ;;  %v4730_v3 = vadd.f32 %v4708_v42, %v15467_v19 }
 0x50f   : > { %v16019_v48 = vmax.f32 %v4731_v12, 0.0  ;;  %v4849_v40 = vmax.f32 %v15870_v55, %v4790_v18  ;;  %v4850_v34 = vmax.f32 %v15866_v38, %v4792_v52  ;;  %v4879_v53 = vsel %vm17792_vm3, %v4876_v24, %v4878_v0  ;;  %v14577_v18 = vld [vmem:[%s17776_s4] ss:$0 sm:$0xff] }
 0x510   : > { %v13889_v57 = vpack.c.bf16 %v5109_v14, %v5108_v44  ;;  %v4964_v33 = vsel %vm17791_vm4, %v4961_v20, %v4963_v60  ;;  %v4966_v19 = vsel %vm17791_vm4, %v4963_v60, %v4965_v46  ;;  %v16042_v24 = vmax.f32 %v4730_v3, 0.0 }
 0x511   : > { %v12898_v9 = vpop.f32.mrb[42].mxu0  ;;  %v4813_v12 = vrot.slane %v16019_v48, 1  ;;  %v4900_v42 = vrot.slane %v16019_v48, 2  ;;  %v4987_v49 = vrot.slane %v16019_v48, 3  ;;  %v4936_v4 = vmax.f32 %v4849_v40, %v4877_v31 }
 0x512   : > { %v4661_v25 = vpop.f32.mrb[43].mxu0  ;;  %13890 = vmatpush1.bf16.msra.mxu1 %v13889_v57  ;;  %v4937_v55 = vmax.f32 %v4850_v34, %v4879_v53  ;;  %v5050_v20 = vrot.slane %v15866_v38, 4  ;;  %v5052_v6 = vrot.slane %v15889_v62, 4  ;;  %v4811_v60 = vrot.slane %v16042_v24, 1 }
 0x513   : > { %13891 = vmatprep.subr.bf16.mxu1 %v17794_v36  ;;  %v4898_v44 = vrot.slane %v16042_v24, 2  ;;  %v4985_v14 = vrot.slane %v16042_v24, 3  ;;  %v4711_v52 = vadd.f32 %v14577_v18, %v12895_v23  ;;  %v5023_v3 = vmax.f32 %v4936_v4, %v4964_v33 }
 0x514   : > { %v5024_v31 = vmax.f32 %v4937_v55, %v4966_v19  ;;  %v5051_v40 = vsel %vm17790_vm0, %v5048_v30, %v5050_v20  ;;  %v5053_v38 = vsel %vm17790_vm0, %v5050_v20, %v5052_v6  ;;  %v4710_v57 = vadd.f32 %v14577_v18, %v4651_v5 }
 0x515   : > { %v4733_v34 = vadd.f32 %v4711_v52, %v15476_v29  ;;  %v4794_v53 = vsel %vm17793_vm1, %v4791_v50, %v4793_v41  ;;  %v4796_v23 = vsel %vm17793_vm1, %v4793_v41, %v4795_v2  ;;  %v5110_v33 = vmax.f32 %v5023_v3, %v5051_v40 }
 0x516   : > { %v5111_v19 = vmax.f32 %v5024_v31, %v5053_v38  ;;  %v4851_v30 = vmax.f32 %v15889_v62, %v4794_v53  ;;  %v4852_v4 = vmax.f32 %v15885_v32, %v4796_v23  ;;  %v4732_v5 = vadd.f32 %v4710_v57, %v15479_v43 }
 0x517   : > { %v16068_v29 = vmax.f32 %v4733_v34, 0.0  ;;  %v4881_v50 = vsel %vm17792_vm3, %v4878_v0, %v4880_v10  ;;  %v4883_v41 = vsel %vm17792_vm3, %v4880_v10, %v4882_v8  ;;  %v17804_v3 = vrot.slane %v15885_v32, 3 }
 0x518   : > { %v13892_v55 = vpack.c.bf16 %v5111_v19, %v5110_v33  ;;  %v4938_v20 = vmax.f32 %v4851_v30, %v4881_v50  ;;  %v4939_v52 = vmax.f32 %v4852_v4, %v4883_v41  ;;  %v16089_v38 = vmax.f32 %v4732_v5, 0.0 }
 0x519   : > { %v4968_v43 = vsel %vm17791_vm4, %v4965_v46, %v17804_v3  ;;  %v4817_v31 = vrot.slane %v16068_v29, 1  ;;  %v4904_v40 = vrot.slane %v16068_v29, 2  ;;  %v4991_v0 = vrot.slane %v16068_v29, 3 }
 0x51a   : > { %13893 = vmatpush1.bf16.msra.mxu1 %v13892_v55  ;;  %v17805_v10 = vmov %v17804_v3  ;;  %v5025_v57 = vmax.f32 %v4938_v20, %v4968_v43  ;;  %v5054_v62 = vrot.slane %v15885_v32, 4  ;;  %v5056_v46 = vrot.slane %v15909_v35, 4 }
 0x51b   : > { %v4970_v34 = vsel %vm17791_vm4, %v17805_v10, %v4969_v58  ;;  %13894 = vmatprep.subr.bf16.mxu1 %v17794_v36  ;;  %v4815_v53 = vrot.slane %v16089_v38, 1  ;;  %v4902_v23 = vrot.slane %v16089_v38, 2  ;;  %v4989_v33 = vrot.slane %v16089_v38, 3 }
 0x51c   : > { %v5026_v19 = vmax.f32 %v4939_v52, %v4970_v34  ;;  %v5055_v30 = vsel %vm17790_vm0, %v5052_v6, %v5054_v62  ;;  %v5057_v4 = vsel %vm17790_vm0, %v5054_v62, %v5056_v46  ;;  %v4713_v5 = vadd.f32 %v14577_v18, %v12898_v9 }
 0x51d   : > { %v4712_v50 = vadd.f32 %v14577_v18, %v4661_v25  ;;  %v5112_v41 = vmax.f32 %v5025_v57, %v5055_v30  ;;  %v17806_v32 = vrot.slane %v15906_v17, 1  ;;  %v17808_v10 = vrot.slane %v15906_v17, 2 }
 0x51e   : > { %v5113_v55 = vmax.f32 %v5026_v19, %v5057_v4  ;;  %v4735_v6 = vadd.f32 %v4713_v5, %v15488_v63  ;;  %v17810_v63 = vrot.slane %v15906_v17, 3 }
 0x51f   : > { %v4798_v20 = vsel %vm17793_vm1, %v4795_v2, %v17806_v32  ;;  %v17807_v3 = vmov %v17806_v32  ;;  %v4734_v43 = vadd.f32 %v4712_v50, %v15491_v39  ;;  %v4885_v2 = vsel %vm17792_vm3, %v4882_v8, %v17808_v10 }
 0x520   : > { %v4800_v52 = vsel %vm17793_vm1, %v17807_v3, %v4799_v13  ;;  %v4853_v9 = vmax.f32 %v15909_v35, %v4798_v20  ;;  %v13895_v18 = vpack.c.bf16 %v5113_v55, %v5112_v41  ;;  %v17809_v34 = vmov %v17808_v10 }
 0x521   : > { %v4854_v25 = vmax.f32 %v15906_v17, %v4800_v52  ;;  %v4887_v57 = vsel %vm17792_vm3, %v17809_v34, %v4886_v27  ;;  %v4972_v39 = vsel %vm17791_vm4, %v4969_v58, %v17810_v63  ;;  %v16133_v62 = vmax.f32 %v4735_v6, 0.0 }
 0x522   : > { %v16135_v19 = vmax.f32 %v4734_v43, 0.0  ;;  %v4940_v30 = vmax.f32 %v4853_v9, %v4885_v2  ;;  %13896 = vmatpush1.bf16.msra.mxu1 %v13895_v18  ;;  %v17811_v8 = vrot.slane %v15932_v61, 3  ;;  %v17812_v5 = vmov %v17810_v63 }
 0x523   : > { %v4941_v4 = vmax.f32 %v4854_v25, %v4887_v57  ;;  %v5058_v41 = vrot.slane %v15906_v17, 4  ;;  %v5060_v55 = vrot.slane %v15932_v61, 4  ;;  %v17813_v35 = vrot.slane %v15924_v59, 1  ;;  %13897 = vmatprep.subr.bf16.mxu1 %v17794_v36 }
 0x524   : > { %v4974_v50 = vsel %vm17791_vm4, %v17812_v5, %v17811_v8  ;;  %v4821_v32 = vrot.slane %v16133_v62, 1  ;;  %v4908_v20 = vrot.slane %v16133_v62, 2  ;;  %v4995_v3 = vrot.slane %v16133_v62, 3 }
 0x525   : > { %v4802_v58 = vsel %vm17793_vm1, %v4799_v13, %v17813_v35  ;;  %v5082_v52 = vrot.slane %v16133_v62, 4  ;;  %v4819_v17 = vrot.slane %v16135_v19, 1  ;;  %v4906_v6 = vrot.slane %v16135_v19, 2 }
 0x526   : > { %v4993_v43 = vrot.slane %v16135_v19, 3  ;;  %v5027_v9 = vmax.f32 %v4940_v30, %v4972_v39  ;;  %v4866_v25 = vmax.f32 %v16133_v62, %v4821_v32  ;;  %v5028_v13 = vmax.f32 %v4941_v4, %v4974_v50 }
 0x527   : > { %v5059_v18 = vsel %vm17790_vm0, %v5056_v46, %v5058_v41  ;;  %v5061_v10 = vsel %vm17790_vm0, %v5058_v41, %v5060_v55  ;;  %v4822_v2 = vsel %vm17793_vm1, %v4819_v17, %v4821_v32  ;;  %v4909_v34 = vsel %vm17792_vm3, %v4906_v6, %v4908_v20 }
 0x528   : > { %v5114_v57 = vmax.f32 %v5027_v9, %v5059_v18  ;;  %v17814_v63 = vmov %v17813_v35  ;;  %v16171_v30 = vmax.f32 %v4866_v25, %v4908_v20  ;;  %v4865_v46 = vmax.f32 %v16135_v19, %v4822_v2 }
 0x529   : > { %v4804_v39 = vsel %vm17793_vm1, %v17814_v63, %v4803_v7  ;;  %v5115_v4 = vmax.f32 %v5028_v13, %v5061_v10  ;;  %v4855_v8 = vmax.f32 %v15932_v61, %v4802_v58  ;;  %v17815_v50 = vrot.slane %v15924_v59, 2 }
 0x52a   : > { %v4856_v5 = vmax.f32 %v15924_v59, %v4804_v39  ;;  %v17817_v20 = vrot.slane %v15924_v59, 3  ;;  %v17818_v9 = vrot.slane %v15932_v61, 3  ;;  %v16191_v25 = vmax.f32 %v4865_v46, %v4909_v34 }
 0x52b   : > { %v4889_v41 = vsel %vm17792_vm3, %v4886_v27, %v17815_v50  ;;  %v17816_v35 = vmov %v17815_v50  ;;  %v13898_v13 = vpack.c.bf16 %v5115_v4, %v5114_v57  ;;  %v5062_v63 = vrot.slane %v15924_v59, 4 }
 0x52c   : > { %v4891_v32 = vsel %vm17792_vm3, %v17816_v35, %v4890_v56  ;;  %v4976_v58 = vsel %vm17791_vm4, %v17818_v9, %v17817_v20  ;;  %v4942_v18 = vmax.f32 %v4855_v8, %v4889_v41  ;;  %v17819_v27 = vmov %v17817_v20 }
 0x52d   : > { %v4978_v10 = vsel %vm17791_vm4, %v17819_v27, %v4977_v1  ;;  %v4943_v2 = vmax.f32 %v4856_v5, %v4891_v32  ;;  %v5064_v39 = vrot.slane %v15952_v22, 4  ;;  %v17820_v50 = vrot.slane %v15948_v45, 1  ;;  %13899 = vmatpush1.bf16.msra.mxu1 %v13898_v13 }
 0x52e   : > { %v5029_v34 = vmax.f32 %v4942_v18, %v4976_v58  ;;  %v17822_v59 = vrot.slane %v15948_v45, 2  ;;  %13900 = vmatprep.subr.bf16.mxu1 %v17794_v36  ;;  %v17824_v13 = vrot.slane %v15948_v45, 3 }
 0x52f   : > { %v4806_v61 = vsel %vm17793_vm1, %v4803_v7, %v17820_v50  ;;  %v17821_v57 = vmov %v17820_v50  ;;  %v5030_v5 = vmax.f32 %v4943_v2, %v4978_v10  ;;  %v5063_v7 = vsel %vm17790_vm0, %v5060_v55, %v5062_v63 }
 0x530   : > { %v4808_v46 = vsel %vm17793_vm1, %v17821_v57, %v4807_v37  ;;  %v4857_v4 = vmax.f32 %v15952_v22, %v4806_v61  ;;  %v4893_v8 = vsel %vm17792_vm3, %v4890_v56, %v17822_v59  ;;  %v5065_v41 = vsel %vm17790_vm0, %v5062_v63, %v5064_v39 }
 0x531   : > { %v4858_v35 = vmax.f32 %v15948_v45, %v4808_v46  ;;  %v5116_v32 = vmax.f32 %v5029_v34, %v5063_v7  ;;  %v17823_v20 = vmov %v17822_v59  ;;  %v4980_v56 = vsel %vm17791_vm4, %v4977_v1, %v17824_v13 }
 0x532   : > { %v4895_v9 = vsel %vm17792_vm3, %v17823_v20, %v4894_v54  ;;  %v4944_v58 = vmax.f32 %v4857_v4, %v4893_v8  ;;  %v5117_v18 = vmax.f32 %v5030_v5, %v5065_v41  ;;  %v17825_v27 = vmov %v17824_v13 }
 0x533   : > { %v4945_v55 = vmax.f32 %v4858_v35, %v4895_v9  ;;  %v4982_v10 = vsel %vm17791_vm4, %v17825_v27, %v4981_v16  ;;  %v5066_v2 = vrot.slane %v15948_v45, 4  ;;  %v5068_v50 = vrot.slane %v15988_v51, 4 }
 0x534   : > { %v5031_v63 = vmax.f32 %v4944_v58, %v4980_v56  ;;  %v4810_v22 = vsel %vm17793_vm1, %v4807_v37, %v4809_v11  ;;  %v4812_v1 = vsel %vm17793_vm1, %v4809_v11, %v4811_v60  ;;  %v13901_v61 = vpack.c.bf16 %v5117_v18, %v5116_v32 }
 0x535   : > { %v5032_v34 = vmax.f32 %v4945_v55, %v4982_v10  ;;  %v5067_v57 = vsel %vm17790_vm0, %v5064_v39, %v5066_v2  ;;  %v4859_v45 = vmax.f32 %v15988_v51, %v4810_v22  ;;  %v5069_v46 = vsel %vm17790_vm0, %v5066_v2, %v5068_v50 }
 0x536   : > { %v5118_v4 = vmax.f32 %v5031_v63, %v5067_v57  ;;  %v4860_v59 = vmax.f32 %v15979_v28, %v4812_v1  ;;  %v17826_v8 = vrot.slane %v15979_v28, 2  ;;  %13902 = vmatpush1.bf16.msra.mxu1 %v13901_v61  ;;  %v17828_v41 = vrot.slane %v15979_v28, 3 }
 0x537   : > { %v5119_v5 = vmax.f32 %v5032_v34, %v5069_v46  ;;  %13903 = vmatprep.subr.bf16.mxu1 %v17794_v36  ;;  %v5070_v9 = vrot.slane %v15979_v28, 4  ;;  %v5072_v58 = vrot.slane %v16042_v24, 4  ;;  %v4814_v51 = vsel %vm17793_vm1, %v4811_v60, %v4813_v12 }
 0x538   : > { %v4897_v37 = vsel %vm17792_vm3, %v4894_v54, %v17826_v8  ;;  %v17827_v11 = vmov %v17826_v8  ;;  %v4984_v35 = vsel %vm17791_vm4, %v4981_v16, %v17828_v41  ;;  %v17829_v54 = vmov %v17828_v41 }
 0x539   : > { %v4899_v39 = vsel %vm17792_vm3, %v17827_v11, %v4898_v44  ;;  %v4946_v7 = vmax.f32 %v4859_v45, %v4897_v37  ;;  %v4986_v20 = vsel %vm17791_vm4, %v17829_v54, %v4985_v14  ;;  %v13904_v13 = vpack.c.bf16 %v5119_v5, %v5118_v4 }
 0x53a   : > { %v4947_v32 = vmax.f32 %v4860_v59, %v4899_v39  ;;  %v4816_v16 = vsel %vm17793_vm1, %v4813_v12, %v4815_v53  ;;  %v5071_v55 = vsel %vm17790_vm0, %v5068_v50, %v5070_v9  ;;  %v5073_v28 = vsel %vm17790_vm0, %v5070_v9, %v5072_v58  ;;  %v5417_v9 = vld [vmem:[#allocation3 + $0x20] sm:$0xff] }
 0x53b   : > { %v5033_v56 = vmax.f32 %v4946_v7, %v4984_v35  ;;  %v4861_v27 = vmax.f32 %v16042_v24, %v4814_v51  ;;  %13905 = vmatpush1.bf16.msra.mxu1 %v13904_v13  ;;  %v4862_v2 = vmax.f32 %v16019_v48, %v4816_v16  ;;  %v4901_v60 = vsel %vm17792_vm3, %v4898_v44, %v4900_v42 }
 0x53c   : > { %v5034_v18 = vmax.f32 %v4947_v32, %v4986_v20  ;;  %v4903_v12 = vsel %vm17792_vm3, %v4900_v42, %v4902_v23  ;;  %13906 = vmatprep.subr.bf16.mxu1 %v17794_v36  ;;  %v4988_v22 = vsel %vm17791_vm4, %v4985_v14, %v4987_v49  ;;  %v4990_v44 = vsel %vm17791_vm4, %v4987_v49, %v4989_v33 }
 0x53d   : > { %v5120_v10 = vmax.f32 %v5033_v56, %v5071_v55  ;;  %v4948_v50 = vmax.f32 %v4861_v27, %v4901_v60  ;;  %v4949_v1 = vmax.f32 %v4862_v2, %v4903_v12  ;;  %v5074_v61 = vrot.slane %v16019_v48, 4  ;;  %v5420_v55 = vld [vmem:[#allocation3 + $0x38] sm:$0xff] }
 0x53e   : > { %v5121_v63 = vmax.f32 %v5034_v18, %v5073_v28  ;;  %v5076_v42 = vrot.slane %v16089_v38, 4  ;;  %v4818_v34 = vsel %vm17793_vm1, %v4815_v53, %v4817_v31  ;;  %v4820_v14 = vsel %vm17793_vm1, %v4817_v31, %v4819_v17  ;;  %v5419_v18 = vld [vmem:[#allocation3 + $0x30] sm:$0xff] }
 0x53f   : > { %v5035_v57 = vmax.f32 %v4948_v50, %v4988_v22  ;;  %v4863_v49 = vmax.f32 %v16089_v38, %v4818_v34  ;;  %v5036_v45 = vmax.f32 %v4949_v1, %v4990_v44  ;;  %v5075_v48 = vsel %vm17790_vm0, %v5072_v58, %v5074_v61  ;;  %v5418_v58 = vld [vmem:[#allocation3 + $0x28] sm:$0xff] }
 0x540   : > { %v13907_v24 = vpack.c.bf16 %v5121_v63, %v5120_v10  ;;  %v5077_v46 = vsel %vm17790_vm0, %v5074_v61, %v5076_v42  ;;  %v4864_v4 = vmax.f32 %v16068_v29, %v4820_v14  ;;  %v4905_v53 = vsel %vm17792_vm3, %v4902_v23, %v4904_v40 }
 0x541   : > { %v5122_v59 = vmax.f32 %v5035_v57, %v5075_v48  ;;  %v4907_v31 = vsel %vm17792_vm3, %v4904_v40, %v4906_v6  ;;  %v4992_v17 = vsel %vm17791_vm4, %v4989_v33, %v4991_v0  ;;  %v5123_v8 = vmax.f32 %v5036_v45, %v5077_v46 }
 0x542   : > { %13908 = vmatpush1.bf16.msra.mxu1 %v13907_v24  ;;  %v4950_v37 = vmax.f32 %v4863_v49, %v4905_v53  ;;  %v4951_v5 = vmax.f32 %v4864_v4, %v4907_v31  ;;  %v4994_v23 = vsel %vm17791_vm4, %v4991_v0, %v4993_v43  ;;  %v5078_v11 = vrot.slane %v16068_v29, 4 }
 0x543   : > { %13909 = vmatprep.subr.bf16.mxu1 %v17794_v36  ;;  %v5080_v40 = vrot.slane %v16135_v19, 4  ;;  %v4996_v38 = vsel %vm17791_vm4, %v4993_v43, %v4995_v3  ;;  %v5040_v33 = vmax.f32 %v16171_v30, %v4995_v3  ;;  %v13910_v6 = vpack.c.bf16 %v5123_v8, %v5122_v59 }
 0x544   : > { %v5037_v39 = vmax.f32 %v4950_v37, %v4992_v17  ;;  %v5038_v7 = vmax.f32 %v4951_v5, %v4994_v23  ;;  %v5039_v41 = vmax.f32 %v16191_v25, %v4996_v38  ;;  %v5079_v0 = vsel %vm17790_vm0, %v5076_v42, %v5078_v11  ;;  %v7520_v42 = vld [vmem:[#allocation3] sm:$0xff] }
 0x545   : > { %v5081_v29 = vsel %vm17790_vm0, %v5078_v11, %v5080_v40  ;;  %v5083_v35 = vsel %vm17790_vm0, %v5080_v40, %v5082_v52  ;;  %v5127_v3 = vmax.f32 %v5040_v33, %v5082_v52  ;;  %v5144_v54 = vmul.u32 2, %v15842_v47  ;;  %v6096_v11 = vld [vmem:[#allocation3 + $0x80] sm:$0xff]  ;;  %v6097_v40 = vld [vmem:[#allocation3 + $0x88] sm:$0xff]  ;;  %v6099_v33 = vld [vmem:[#allocation3 + $0x98] sm:$0xff] }
 0x546   : > { %13911 = vmatpush1.bf16.msra.mxu1 %v13910_v6  ;;  %v5124_v19 = vmax.f32 %v5037_v39, %v5079_v0  ;;  %v5125_v43 = vmax.f32 %v5038_v7, %v5081_v29  ;;  %v5126_v32 = vmax.f32 %v5039_v41, %v5083_v35  ;;  %v5131_v20 = vadd.s32 16, %v15820_v26  ;;  %v5402_v7 = vld [vmem:[#allocation3] sm:$0xff]  ;;  %v5403_v41 = vld [vmem:[#allocation3 + $0x8] sm:$0xff] }
 0x547   : > { %13912 = vmatprep.subr.bf16.mxu1 %v17794_v36  ;;  %vm5157_vm13 = vcmp.eq.s32.totalorder %v15825_v21, %v5144_v54  ;;  %v5132_v52 = vadd.s32 24, %v15820_v26  ;;  %v17830_v13 = vmul.u32 2, %v15820_v26  ;;  %v16379_v56 = vpack.c.bf16 %v5418_v58, %v5417_v9 }
 0x548   : > { %v13913_v30 = vpack.c.bf16 %v5125_v43, %v5124_v19  ;;  %v13916_v25 = vpack.c.bf16 %v5127_v3, %v5126_v32  ;;  %v5145_v62 = vmul.u32 2, %v5131_v20  ;;  %v17833_v51 = vmov 0.0   ;;  %v5404_v19 = vld [vmem:[#allocation3 + $0x10] sm:$0xff]  ;;  %v5405_v3 = vld [vmem:[#allocation3 + $0x18] sm:$0xff] }
 0x549   : > { %vm16375_vm14 = vcmp.eq.s32.totalorder %v15822_v15, %v17830_v13  ;;  %v11251_v16 = vsel %vm5157_vm13, 1.0, %v17833_v51  ;;  %v5146_v28 = vmul.u32 2, %v5132_v52  ;;  %v5133_v27 = vadd.s32 32, %v15820_v26 }
 0x54a   : > { %13914 = vmatpush1.bf16.msra.mxu1 %v13913_v30  ;;  %vm5159_vm15 = vcmp.eq.s32.totalorder %v15825_v21, %v5145_v62  ;;  %v14683_v10 = vmov 1.0   ;;  %vm16390_vm2 = vcmp.eq.s32.totalorder %v15822_v15, %v5144_v54  ;;  %v16395_v60 = vpack.c.bf16 %v5420_v55, %v5419_v18 }
 0x54b   : > { %13915 = vmatprep.subr.bf16.mxu1 %v17794_v36  ;;  %v11253_v12 = vsel %vm5159_vm15, 1.0, %v17833_v51  ;;  %vm5161_vm9 = vcmp.eq.s32.totalorder %v15825_v21, %v5146_v28  ;;  %v5147_v63 = vmul.u32 2, %v5133_v27  ;;  %v5134_v50 = vadd.s32 40, %v15820_v26 }
 0x54c   : > { %v11255_v44 = vsel %vm5161_vm9, 1.0, %v17833_v51  ;;  %v5135_v61 = vadd.s32 48, %v15820_v26  ;;  %vm16420_vm15 = vcmp.eq.s32.totalorder %v15822_v15, %v5146_v28  ;;  %v5136_v57 = vadd.s32 56, %v15820_v26 }
 0x54d   : > { %vm5163_vm13 = vcmp.eq.s32.totalorder %v15825_v21, %v5147_v63  ;;  %v5148_v1 = vmul.u32 2, %v5134_v50  ;;  %vm16432_vm11 = vcmp.eq.s32.totalorder %v15822_v15, %v5147_v63  ;;  %v5137_v48 = vadd.s32 64, %v15820_v26 }
 0x54e   : > { %13918 = vmatpush1.bf16.msk.msra.mxu1 %vm13917_vm12, %v13916_v25  ;;  %vm16406_vm12 = vcmp.eq.s32.totalorder %v15822_v15, %v5145_v62  ;;  %v11257_v34 = vsel %vm5163_vm13, 1.0, %v17833_v51  ;;  %v5149_v24 = vmul.u32 2, %v5135_v61  ;;  %v5150_v45 = vmul.u32 2, %v5136_v57 }
 0x54f   : > { %13919 = vmatprep.subr.bf16.mxu1 %v17794_v36  ;;  %vm5165_vm9 = vcmp.eq.s32.totalorder %v15825_v21, %v5148_v1  ;;  %vm16444_vm10 = vcmp.eq.s32.totalorder %v15822_v15, %v5148_v1  ;;  %v17842_v46 = vmov 0  ;;  %v5151_v59 = vmul.u32 2, %v5137_v48 }
 0x550   : > { %v11259_v49 = vsel %vm5165_vm9, 1.0, %v17833_v51  ;;  %vm5167_vm13 = vcmp.eq.s32.totalorder %v15825_v21, %v5149_v24  ;;  %v17843_v46 = vsel %vm16444_vm10, 4294967295, %v17842_v46  ;;  %vm5169_vm9 = vcmp.eq.s32.totalorder %v15825_v21, %v5150_v45 }
 0x551   : > { %11272 = vmatmul.mubr.msk.f32.vlgmr.msra.gmra.mrb[22].mxu1 %vm16375_vm14, %v14683_v10  ;;  %17844 = vst [vmem:[#allocation9_spill] sm:$0xff] %v17843_v46  ;;  %v11261_v4 = vsel %vm5167_vm13, 1.0, %v17833_v51  ;;  %v5138_v53 = vadd.s32 72, %v15820_v26  ;;  %vm5166_vm0 = vcmp.eq.s32.totalorder %v15822_v15, %v5149_v24  ;;  %v11263_v31 = vsel %vm5169_vm9, 1.0, %v17833_v51 }
 0x552   : > { %11273 = vmatprep.mubr.msk.f32.mxu1 %vm5220_vm8, %v11251_v16  ;;  %13921 = vmatpush3.bf16.msra.mxu1 %v16379_v56  ;;  %vm5171_vm4 = vcmp.eq.s32.totalorder %v15825_v21, %v5151_v59  ;;  %v5139_v8 = vadd.s32 80, %v15820_v26  ;;  %vm5168_vm13 = vcmp.eq.s32.totalorder %v15822_v15, %v5150_v45  ;;  %vm5170_vm9 = vcmp.eq.s32.totalorder %v15822_v15, %v5151_v59 }
 0x553   : > { %13922 = vmatprep.subr.bf16.mxu1 %v17794_v36  ;;  %v5152_v17 = vmul.u32 2, %v5138_v53  ;;  %v11265_v37 = vsel %vm5171_vm4, 1.0, %v17833_v51  ;;  %v13944_v38 = vpack.c.bf16 %v6097_v40, %v6096_v11  ;;  %v13926_v35 = vpack.c.bf16 %v5403_v41, %v5402_v7  ;;  %v5738_v11 = vld [vmem:[#allocation3 + $0x40] sm:$0xff]  ;;  %v5739_v40 = vld [vmem:[#allocation3 + $0x48] sm:$0xff]  ;;  %v5740_v7 = vld [vmem:[#allocation3 + $0x50] sm:$0xff] }
 0x554   : > { %v5153_v5 = vmul.u32 2, %v5139_v8  ;;  %v13929_v54 = vpack.c.bf16 %v5405_v3, %v5404_v19  ;;  %v5741_v41 = vld [vmem:[#allocation3 + $0x58] sm:$0xff]  ;;  %v11254_v2 = vsel %vm16420_vm15, 1.0, %v17833_v51  ;;  %v11256_v22 = vsel %vm16432_vm11, 1.0, %v17833_v51 }
 0x555   : > { %11274 = vmatmul.mubr.msk.f32.gmra.mrb[24].mxu1 %vm16390_vm2, %v14683_v10  ;;  %vm5173_vm3 = vcmp.eq.s32.totalorder %v15825_v21, %v5152_v17  ;;  %13945 = vmatpush3.bf16.msra.mxu0 %v13944_v38 }
 0x556   : > { %11275 = vmatprep.mubr.msk.f32.mxu1 %vm5220_vm8, %v11253_v12  ;;  %13924 = vmatpush3.bf16.msra.mxu1 %v16395_v60  ;;  %v11267_v23 = vsel %vm5173_vm3, 1.0, %v17833_v51  ;;  %vm5175_vm1 = vcmp.eq.s32.totalorder %v15825_v21, %v5153_v5  ;;  %vm5174_vm4 = vcmp.eq.s32.totalorder %v15822_v15, %v5153_v5  ;;  %v6098_v21 = vld [vmem:[#allocation3 + $0x90] sm:$0xff]  ;;  %vm14684_vm3 = vmmov 0  }
 0x557   : > { %13925 = vmatprep.subr.bf16.mxu1 %v17794_v36  ;;  %v11269_v26 = vsel %vm5175_vm1, 1.0, %v17833_v51  ;;  %13946 = vmatprep.subr.bf16.mxu0 %v17794_v36  ;;  %v13947_v6 = vpack.c.bf16 %v6099_v33, %v6098_v21  ;;  %vm7388_vm1 = vcmask 662528  }
 0x558   : > { %13071 = vmatprep.mubr.msk.f32.mxu0 %vm14684_vm3, %v17833_v51 }
 0x559   : > { %11276 = vmatmul.mubr.msk.f32.gmra.mrb[26].mxu1 %vm16406_vm12, %v14683_v10  ;;  %13948 = vmatpush3.bf16.msra.mxu0 %v13947_v6  ;;  %v16598_v6 = vpack.c.bf16 %v5739_v40, %v5738_v11 }
 0x55a   : > { %11277 = vmatprep.mubr.msk.f32.mxu1 %vm5220_vm8, %v11255_v44  ;;  %13955 = vmatprep.subr.bf16.mxu0 %v17794_v36 }
 0x55d   : > { %11278 = vmatmul.mubr.msk.f32.gmra.mrb[28].mxu1 %vm16420_vm15, %v14683_v10 }
 0x55e   : > { %11279 = vmatprep.mubr.msk.f32.mxu1 %vm5220_vm8, %v11257_v34 }
 0x561   : > { %11280 = vmatmul.mubr.msk.f32.gmra.mrb[30].mxu1 %vm16432_vm11, %v14683_v10 }
 0x562   : > { %11281 = vmatprep.mubr.msk.f32.mxu1 %vm5220_vm8, %v11259_v49 }
 0x565   : > { %11282 = vmatmul.mubr.msk.f32.gmra.mrb[32].mxu1 %vm16444_vm10, %v14683_v10 }
 0x566   : > { %11283 = vmatprep.mubr.msk.f32.mxu1 %vm5220_vm8, %v11261_v4 }
 0x569   : > { %11284 = vmatmul.mubr.msk.f32.gmra.mrb[34].mxu1 %vm5166_vm0, %v14683_v10  ;;  %vm5172_vm0 = vcmp.eq.s32.totalorder %v15822_v15, %v5152_v17 }
 0x56a   : > { %11285 = vmatprep.mubr.msk.f32.mxu1 %vm5220_vm8, %v11263_v31 }
 0x56d   : > { %11286 = vmatmul.mubr.msk.f32.gmra.mrb[36].mxu1 %vm5168_vm13, %v14683_v10  ;;  %vm17849_vm13 = vcmask 1043456  }
 0x56e   : > { %11287 = vmatprep.mubr.msk.f32.mxu1 %vm5220_vm8, %v11265_v37 }
 0x571   : > { %11288 = vmatmul.mubr.msk.f32.gmra.mrb[38].mxu1 %vm5170_vm9, %v14683_v10 }
 0x572   : > { %11289 = vmatprep.mubr.msk.f32.mxu1 %vm5220_vm8, %v11267_v23 }
 0x575   : > { %11290 = vmatmul.mubr.msk.f32.gmra.mrb[40].mxu1 %vm5172_vm0, %v14683_v10 }
 0x576   : > { %11291 = vmatprep.mubr.msk.f32.mxu1 %vm5220_vm8, %v11269_v26  ;;  %vm17847_vm8 = vcmask 1045504  }
 0x577   : > { %vm17851_vm0 = vmmov %vm17847_vm8 }
 0x579   : > { %11292 = vmatmul.mubr.msk.f32.gmra.mrb[42].mxu1 %vm5174_vm4, %v14683_v10 }
 0x57a   : > { %12907 = vmatprep.mubr.msk.f32.mxu1 %vm14684_vm3, %v17833_v51 }
 0x624   : > { %v16483_v15 = vpop.f32.mrb[22].mxu1 }
 0x625   : > { %5379 = vst.msk [vmem:[#allocation2 + $0x2] sm:$0xff] %vm1787_vm6, %v16483_v15  ;;  %v5326_v39 = vpop.f32.mrb[23].mxu1 }
 0x628   : > { %v16487_v0 = vpop.f32.mrb[24].mxu1 }
 0x629   : > { %5380 = vst.msk [vmem:[#allocation2 + $0xa] sm:$0xff] %vm1787_vm6, %v16487_v0  ;;  %v5331_v29 = vpop.f32.mrb[25].mxu1 }
 0x62a   : > { %v16610_v29 = vpack.c.bf16 %v5741_v41, %v5740_v7 }
 0x62c   : > { %v16491_v43 = vpop.f32.mrb[26].mxu1  ;;  %v5406_v32 = vld [vmem:[#allocation2 + $0x1] sm:$0xff] }
 0x62d   : > { %v16493_v30 = vld [vmem:[#allocation2] sm:$0xff]  ;;  %5381 = vst.msk [vmem:[#allocation2 + $0x12] sm:$0xff] %vm1787_vm6, %v16491_v43  ;;  %v5336_v25 = vpop.f32.mrb[27].mxu1  ;;  %12908 = vmatmul.mubr.msk.f32.vlgmr.msra.gmra.mrb[44].mxu1 %vm1787_vm6, %v5406_v32 }
 0x62e   : > { %6286 = vst.msk [vmem:[#allocation2] sm:$0x3] %vm1785_vm5, %v17833_v51  ;;  %12910 = vmatprep.mubr.msk.f32.mxu1 %vm14684_vm3, %v17833_v51  ;;  %13927 = vmatpush3.bf16.msra.mxu1 %v13926_v35 }
 0x62f   : > { %13928 = vmatprep.subr.bf16.mxu1 %v17794_v36 }
 0x630   : > { %v16503_v20 = vpop.f32.mrb[28].mxu1  ;;  %v5407_v9 = vld [vmem:[#allocation2 + $0x9] sm:$0xff] }
 0x631   : > { %v6085_v58 = vld [vmem:[#allocation2 + $0x4] sm:$0xff]  ;;  %5382 = vst.msk [vmem:[#allocation2 + $0x1a] sm:$0xff] %vm1787_vm6, %v16503_v20  ;;  %v5341_v62 = vpop.f32.mrb[29].mxu1  ;;  %12911 = vmatmul.mubr.msk.f32.gmra.mrb[46].mxu1 %vm1787_vm6, %v5407_v9 }
 0x632   : > { %13072 = vmatmul.mubr.msk.f32.vlgmr.msra.gmra.mrb[44].mxu0 %vm1787_vm6, %v6085_v58  ;;  %12913 = vmatprep.mubr.msk.f32.mxu1 %vm14684_vm3, %v17833_v51  ;;  %v5917_v62 = vld [vmem:[#allocation3 + $0x60] sm:$0xff] }
 0x633   : > { %13074 = vmatprep.mubr.msk.f32.mxu0 %vm14684_vm3, %v17833_v51  ;;  %13930 = vmatpush3.bf16.msra.mxu1 %v13929_v54 }
 0x634   : > { %13957 = vmatpush3.bf16.msra.mxu0 %v13926_v35  ;;  %v16513_v52 = vpop.f32.mrb[30].mxu1  ;;  %v5408_v13 = vld [vmem:[#allocation2 + $0x11] sm:$0xff]  ;;  %13931 = vmatprep.subr.bf16.mxu1 %v17794_v36  ;;  %v5392_v35 = vld [vmem:[#allocation2 + $0x8] sm:$0xff] }
 0x635   : > { %v6086_v16 = vld [vmem:[#allocation2 + $0xc] sm:$0xff]  ;;  %13958 = vmatprep.subr.bf16.mxu0 %v17794_v36  ;;  %5383 = vst.msk [vmem:[#allocation2 + $0x22] sm:$0xff] %vm1787_vm6, %v16513_v52  ;;  %v5346_v18 = vpop.f32.mrb[31].mxu1  ;;  %12914 = vmatmul.mubr.msk.f32.gmra.mrb[48].mxu1 %vm1787_vm6, %v5408_v13  ;;  %v5918_v13 = vld [vmem:[#allocation3 + $0x68] sm:$0xff] }
 0x636   : > { %13075 = vmatmul.mubr.msk.f32.gmra.mrb[46].mxu0 %vm1787_vm6, %v6086_v16  ;;  %12916 = vmatprep.mubr.msk.f32.mxu1 %vm14684_vm3, %v17833_v51  ;;  %v5393_v19 = vld [vmem:[#allocation2 + $0x10] sm:$0xff]  ;;  %v16647_v18 = vpack.c.bf16 %v5918_v13, %v5917_v62 }
 0x637   : > { %13077 = vmatprep.mubr.msk.f32.mxu0 %vm14684_vm3, %v17833_v51 }
 0x638   : > { %13960 = vmatpush3.bf16.msra.mxu0 %v13929_v54  ;;  %v16525_v55 = vpop.f32.mrb[32].mxu1  ;;  %v5409_v28 = vld [vmem:[#allocation2 + $0x19] sm:$0xff] }
 0x639   : > { %v6087_v27 = vld [vmem:[#allocation2 + $0x14] sm:$0xff]  ;;  %13967 = vmatprep.subr.bf16.mxu0 %v17794_v36  ;;  %5384 = vst.msk [vmem:[#allocation2 + $0x2a] sm:$0xff] %vm1787_vm6, %v16525_v55  ;;  %v5351_v10 = vpop.f32.mrb[33].mxu1  ;;  %12917 = vmatmul.mubr.msk.f32.gmra.mrb[50].mxu1 %vm1787_vm6, %v5409_v28  ;;  %v5919_v28 = vld [vmem:[#allocation3 + $0x70] sm:$0xff] }
 0x63a   : > { %13078 = vmatmul.mubr.msk.f32.gmra.mrb[48].mxu0 %vm1787_vm6, %v6087_v27  ;;  %12919 = vmatprep.mubr.msk.f32.mxu1 %vm14684_vm3, %v17833_v51  ;;  %v5394_v32 = vld [vmem:[#allocation2 + $0x18] sm:$0xff]  ;;  %v5920_v27 = vld [vmem:[#allocation3 + $0x78] sm:$0xff]  ;;  %v5727_v10 = vld [vmem:[#allocation2 + $0x2] sm:$0xff] }
 0x63b   : > { %13080 = vmatprep.mubr.msk.f32.mxu0 %vm14684_vm3, %v17833_v51 }
 0x63c   : > { %v16536_v12 = vpop.f32.mrb[34].mxu1  ;;  %v5410_v63 = vld [vmem:[#allocation2 + $0x21] sm:$0xff] }
 0x63d   : > { %v6088_v50 = vld [vmem:[#allocation2 + $0x1c] sm:$0xff]  ;;  %5385 = vst.msk [vmem:[#allocation2 + $0x32] sm:$0xff] %vm1787_vm6, %v16536_v12  ;;  %v5356_v44 = vpop.f32.mrb[35].mxu1  ;;  %12920 = vmatmul.mubr.msk.f32.gmra.mrb[52].mxu1 %vm1787_vm6, %v5410_v63  ;;  %v16653_v63 = vpack.c.bf16 %v5920_v27, %v5919_v28 }
 0x63e   : > { %13081 = vmatmul.mubr.msk.f32.gmra.mrb[50].mxu0 %vm1787_vm6, %v6088_v50  ;;  %12922 = vmatprep.mubr.msk.f32.mxu1 %vm14684_vm3, %v17833_v51  ;;  %v5395_v3 = vld [vmem:[#allocation2 + $0x20] sm:$0xff]  ;;  %v5728_v50 = vld [vmem:[#allocation2 + $0xa] sm:$0xff]  ;;  %v5729_v44 = vld [vmem:[#allocation2 + $0x12] sm:$0xff] }
 0x63f   : > { %13083 = vmatprep.mubr.msk.f32.mxu0 %vm14684_vm3, %v17833_v51 }
 0x640   : > { %v16546_v1 = vpop.f32.mrb[36].mxu1  ;;  %v5411_v61 = vld [vmem:[#allocation2 + $0x29] sm:$0xff] }
 0x641   : > { %v6089_v34 = vld [vmem:[#allocation2 + $0x24] sm:$0xff]  ;;  %5386 = vst.msk [vmem:[#allocation2 + $0x3a] sm:$0xff] %vm1787_vm6, %v16546_v1  ;;  %v5361_v24 = vpop.f32.mrb[37].mxu1  ;;  %12923 = vmatmul.mubr.msk.f32.gmra.mrb[54].mxu1 %vm1787_vm6, %v5411_v61  ;;  %v5730_v61 = vld [vmem:[#allocation2 + $0x1a] sm:$0xff] }
 0x642   : > { %13084 = vmatmul.mubr.msk.f32.gmra.mrb[52].mxu0 %vm1787_vm6, %v6089_v34  ;;  %12925 = vmatprep.mubr.msk.f32.mxu1 %vm14684_vm3, %v17833_v51  ;;  %v5731_v34 = vld [vmem:[#allocation2 + $0x22] sm:$0xff]  ;;  %v5732_v24 = vld [vmem:[#allocation2 + $0x2a] sm:$0xff] }
 0x643   : > { %13086 = vmatprep.mubr.msk.f32.mxu0 %vm14684_vm3, %v17833_v51 }
 0x644   : > { %v16556_v57 = vpop.f32.mrb[38].mxu1  ;;  %v5412_v49 = vld [vmem:[#allocation2 + $0x31] sm:$0xff] }
 0x645   : > { %v6090_v45 = vld [vmem:[#allocation2 + $0x2c] sm:$0xff]  ;;  %5387 = vst.msk [vmem:[#allocation2 + $0x42] sm:$0xff] %vm1787_vm6, %v16556_v57  ;;  %v5366_v48 = vpop.f32.mrb[39].mxu1  ;;  %12926 = vmatmul.mubr.msk.f32.gmra.mrb[56].mxu1 %vm1787_vm6, %v5412_v49 }
 0x646   : > { %13087 = vmatmul.mubr.msk.f32.gmra.mrb[54].mxu0 %vm1787_vm6, %v6090_v45  ;;  %12928 = vmatprep.mubr.msk.f32.mxu1 %vm14684_vm3, %v17833_v51  ;;  %v5397_v25 = vld [vmem:[#allocation2 + $0x30] sm:$0xff] }
 0x647   : > { %13089 = vmatprep.mubr.msk.f32.mxu0 %vm14684_vm3, %v17833_v51  ;;  %v5733_v49 = vld [vmem:[#allocation2 + $0x32] sm:$0xff] }
 0x648   : > { %v16566_v4 = vpop.f32.mrb[40].mxu1  ;;  %v5413_v59 = vld [vmem:[#allocation2 + $0x39] sm:$0xff] }
 0x649   : > { %v6091_v53 = vld [vmem:[#allocation2 + $0x34] sm:$0xff]  ;;  %5388 = vst.msk [vmem:[#allocation2 + $0x4a] sm:$0xff] %vm1787_vm6, %v16566_v4  ;;  %v5371_v31 = vpop.f32.mrb[41].mxu1  ;;  %12929 = vmatmul.mubr.msk.f32.gmra.mrb[58].mxu1 %vm1787_vm6, %v5413_v59 }
 0x64a   : > { %13090 = vmatmul.mubr.msk.f32.gmra.mrb[56].mxu0 %vm1787_vm6, %v6091_v53  ;;  %12931 = vmatprep.mubr.msk.f32.mxu1 %vm14684_vm3, %v17833_v51  ;;  %v5398_v54 = vld [vmem:[#allocation2 + $0x38] sm:$0xff]  ;;  %v5906_v31 = vld [vmem:[#allocation2 + $0x3] sm:$0xff] }
 0x64b   : > { %13092 = vmatprep.mubr.msk.f32.mxu0 %vm14684_vm3, %v17833_v51  ;;  %v5734_v45 = vld [vmem:[#allocation2 + $0x3a] sm:$0xff] }
 0x64c   : > { %v16576_v17 = vpop.f32.mrb[42].mxu1  ;;  %v5414_v8 = vld [vmem:[#allocation2 + $0x41] sm:$0xff] }
 0x64d   : > { %v6092_v37 = vld [vmem:[#allocation2 + $0x3c] sm:$0xff]  ;;  %5389 = vst.msk [vmem:[#allocation2 + $0x52] sm:$0x1f] %vm1809_vm7, %v16576_v17  ;;  %v5376_v5 = vpop.f32.mrb[43].mxu1  ;;  %12932 = vmatmul.mubr.msk.f32.gmra.mrb[60].mxu1 %vm1787_vm6, %v5414_v8  ;;  %v5907_v8 = vld [vmem:[#allocation2 + $0xb] sm:$0xff] }
 0x64e   : > { %13093 = vmatmul.mubr.msk.f32.gmra.mrb[58].mxu0 %vm1787_vm6, %v6092_v37  ;;  %12934 = vmatprep.mubr.msk.f32.mxu1 %vm14684_vm3, %v17833_v51  ;;  %v5399_v9 = vld [vmem:[#allocation2 + $0x40] sm:$0xff]  ;;  %v5908_v37 = vld [vmem:[#allocation2 + $0x13] sm:$0xff] }
 0x64f   : > { %13095 = vmatprep.mubr.msk.f32.mxu0 %vm14684_vm3, %v17833_v51  ;;  %v5735_v48 = vld [vmem:[#allocation2 + $0x42] sm:$0xff] }
 0x650   : > { %v5415_v23 = vld [vmem:[#allocation2 + $0x49] sm:$0xff]  ;;  %v5909_v5 = vld [vmem:[#allocation2 + $0x1b] sm:$0xff] }
 0x651   : > { %v6093_v26 = vld [vmem:[#allocation2 + $0x44] sm:$0xff]  ;;  %12935 = vmatmul.mubr.msk.f32.gmra.mrb[62].mxu1 %vm1787_vm6, %v5415_v23  ;;  %v5912_v23 = vld [vmem:[#allocation2 + $0x33] sm:$0xff] }
 0x652   : > { %13096 = vmatmul.mubr.msk.f32.gmra.mrb[60].mxu0 %vm1787_vm6, %v6093_v26  ;;  %12937 = vmatprep.mubr.msk.f32.mxu1 %vm14684_vm3, %v17833_v51  ;;  %v5400_v58 = vld [vmem:[#allocation2 + $0x48] sm:$0xff]  ;;  %v5913_v26 = vld [vmem:[#allocation2 + $0x3b] sm:$0xff] }
 0x653   : > { %13098 = vmatprep.mubr.msk.f32.mxu0 %vm14684_vm3, %v17833_v51  ;;  %v5736_v59 = vld [vmem:[#allocation2 + $0x4a] sm:$0xff] }
 0x654   : > { %v5416_v38 = vld [vmem:[#allocation2 + $0x51] sm:$0x1f]  ;;  %v5914_v11 = vld [vmem:[#allocation2 + $0x43] sm:$0xff] }
 0x655   : > { %v6094_v21 = vld [vmem:[#allocation2 + $0x4c] sm:$0xff]  ;;  %12938 = vmatmul.mubr.msk.f32.gmra.mrb[64].mxu1 %vm1787_vm6, %v5416_v38  ;;  %v6095_v33 = vld [vmem:[#allocation2 + $0x54] sm:$0x1f] }
 0x656   : > { %13099 = vmatmul.mubr.msk.f32.gmra.mrb[62].mxu0 %vm1787_vm6, %v6094_v21  ;;  %12948 = vmatprep.mubr.msk.f32.mxu1 %vm14684_vm3, %v17833_v51  ;;  %v16600_v39 = vld [vmem:[#allocation2 + $0x53] sm:$0x1f]  ;;  %v5915_v40 = vld [vmem:[#allocation2 + $0x4b] sm:$0xff] }
 0x657   : > { %13101 = vmatprep.mubr.msk.f32.mxu0 %vm14684_vm3, %v17833_v51  ;;  %6298 = vst.msk [vmem:[#allocation2 + $0x57] sm:$0x3] %vm1785_vm5, %v17833_v51  ;;  %v5401_v16 = vld [vmem:[#allocation2 + $0x50] sm:$0x1f] }
 0x658   : > { %v5737_v53 = vld [vmem:[#allocation2 + $0x52] sm:$0x1f] }
 0x659   : > { %12949 = vmatmul.mubr.msk.f32.vlgmr.msra.gmra.mrb[66].mxu1 %vm1787_vm6, %v16493_v30  ;;  %v5396_v30 = vld [vmem:[#allocation2 + $0x28] sm:$0xff] }
 0x65a   : > { %13102 = vmatmul.mubr.msk.f32.gmra.mrb[64].mxu0 %vm1787_vm6, %v6095_v33  ;;  %12951 = vmatprep.mubr.msk.f32.mxu1 %vm14684_vm3, %v17833_v51 }
 0x65b   : > { %13933 = vmatpush3.bf16.msra.mxu1 %v16598_v6  ;;  %13153 = vmatprep.mubr.msk.f32.mxu0 %vm14684_vm3, %v17833_v51 }
 0x65c   : > { %13934 = vmatprep.subr.bf16.mxu1 %v17794_v36 }
 0x65d   : > { %12952 = vmatmul.mubr.msk.f32.gmra.mrb[68].mxu1 %vm1787_vm6, %v5392_v35 }
 0x65e   : > { %12954 = vmatprep.mubr.msk.f32.mxu1 %vm14684_vm3, %v17833_v51 }
 0x65f   : > { %13936 = vmatpush3.bf16.msra.mxu1 %v16610_v29 }
 0x660   : > { %13937 = vmatprep.subr.bf16.mxu1 %v17794_v36 }
 0x661   : > { %12955 = vmatmul.mubr.msk.f32.gmra.mrb[70].mxu1 %vm1787_vm6, %v5393_v19 }
 0x662   : > { %12957 = vmatprep.mubr.msk.f32.mxu1 %vm14684_vm3, %v17833_v51 }
 0x665   : > { %12958 = vmatmul.mubr.msk.f32.gmra.mrb[72].mxu1 %vm1787_vm6, %v5394_v32 }
 0x666   : > { %12960 = vmatprep.mubr.msk.f32.mxu1 %vm14684_vm3, %v17833_v51 }
 0x669   : > { %12961 = vmatmul.mubr.msk.f32.gmra.mrb[74].mxu1 %vm1787_vm6, %v5395_v3 }
 0x66a   : > { %12963 = vmatprep.mubr.msk.f32.mxu1 %vm14684_vm3, %v17833_v51 }
 0x66d   : > { %12964 = vmatmul.mubr.msk.f32.gmra.mrb[76].mxu1 %vm1787_vm6, %v5396_v30 }
 0x66e   : > { %12966 = vmatprep.mubr.msk.f32.mxu1 %vm14684_vm3, %v17833_v51 }
 0x671   : > { %12967 = vmatmul.mubr.msk.f32.gmra.mrb[78].mxu1 %vm1787_vm6, %v5397_v25 }
 0x672   : > { %12969 = vmatprep.mubr.msk.f32.mxu1 %vm14684_vm3, %v17833_v51 }
 0x675   : > { %12970 = vmatmul.mubr.msk.f32.gmra.mrb[80].mxu1 %vm1787_vm6, %v5398_v54 }
 0x676   : > { %12972 = vmatprep.mubr.msk.f32.mxu1 %vm14684_vm3, %v17833_v51 }
 0x679   : > { %12973 = vmatmul.mubr.msk.f32.gmra.mrb[82].mxu1 %vm1787_vm6, %v5399_v9 }
 0x67a   : > { %12975 = vmatprep.mubr.msk.f32.mxu1 %vm14684_vm3, %v17833_v51 }
 0x67d   : > { %12976 = vmatmul.mubr.msk.f32.gmra.mrb[84].mxu1 %vm1787_vm6, %v5400_v58 }
 0x67e   : > { %12978 = vmatprep.mubr.msk.f32.mxu1 %vm14684_vm3, %v17833_v51 }
 0x681   : > { %12979 = vmatmul.mubr.msk.f32.gmra.mrb[86].mxu1 %vm1787_vm6, %v5401_v16 }
 0x682   : > { %12989 = vmatprep.mubr.msk.f32.mxu1 %vm14684_vm3, %v17833_v51 }
 0x685   : > { %12990 = vmatmul.mubr.msk.f32.vlgmr.msra.gmra.mrb[88].mxu1 %vm1787_vm6, %v5727_v10 }
 0x686   : > { %12992 = vmatprep.mubr.msk.f32.mxu1 %vm14684_vm3, %v17833_v51  ;;  %13939 = vmatpush3.bf16.msra.mxu1 %v16647_v18 }
 0x687   : > { %13940 = vmatprep.subr.bf16.mxu1 %v17794_v36 }
 0x689   : > { %12993 = vmatmul.mubr.msk.f32.gmra.mrb[90].mxu1 %vm1787_vm6, %v5728_v50 }
 0x68a   : > { %12995 = vmatprep.mubr.msk.f32.mxu1 %vm14684_vm3, %v17833_v51  ;;  %13942 = vmatpush3.bf16.msra.mxu1 %v16653_v63 }
 0x68b   : > { %13949 = vmatprep.subr.bf16.mxu1 %v17794_v36 }
 0x68d   : > { %12996 = vmatmul.mubr.msk.f32.gmra.mrb[92].mxu1 %vm1787_vm6, %v5729_v44 }
 0x68e   : > { %12998 = vmatprep.mubr.msk.f32.mxu1 %vm14684_vm3, %v17833_v51 }
 0x691   : > { %12999 = vmatmul.mubr.msk.f32.gmra.mrb[94].mxu1 %vm1787_vm6, %v5730_v61 }
 0x692   : > { %13001 = vmatprep.mubr.msk.f32.mxu1 %vm14684_vm3, %v17833_v51 }
 0x695   : > { %13002 = vmatmul.mubr.msk.f32.gmra.mrb[96].mxu1 %vm1787_vm6, %v5731_v34 }
 0x696   : > { %13004 = vmatprep.mubr.msk.f32.mxu1 %vm14684_vm3, %v17833_v51 }
 0x699   : > { %13005 = vmatmul.mubr.msk.f32.gmra.mrb[98].mxu1 %vm1787_vm6, %v5732_v24 }
 0x69a   : > { %13007 = vmatprep.mubr.msk.f32.mxu1 %vm14684_vm3, %v17833_v51 }
 0x69d   : > { %13008 = vmatmul.mubr.msk.f32.gmra.mrb[100].mxu1 %vm1787_vm6, %v5733_v49 }
 0x69e   : > { %13010 = vmatprep.mubr.msk.f32.mxu1 %vm14684_vm3, %v17833_v51 }
 0x6a1   : > { %13011 = vmatmul.mubr.msk.f32.gmra.mrb[102].mxu1 %vm1787_vm6, %v5734_v45 }
 0x6a2   : > { %13013 = vmatprep.mubr.msk.f32.mxu1 %vm14684_vm3, %v17833_v51 }
 0x6a5   : > { %13014 = vmatmul.mubr.msk.f32.gmra.mrb[104].mxu1 %vm1787_vm6, %v5735_v48 }
 0x6a6   : > { %13016 = vmatprep.mubr.msk.f32.mxu1 %vm14684_vm3, %v17833_v51 }
 0x6a9   : > { %13017 = vmatmul.mubr.msk.f32.gmra.mrb[106].mxu1 %vm1787_vm6, %v5736_v59 }
 0x6aa   : > { %13019 = vmatprep.mubr.msk.f32.mxu1 %vm14684_vm3, %v17833_v51 }
 0x6ad   : > { %13020 = vmatmul.mubr.msk.f32.gmra.mrb[108].mxu1 %vm1787_vm6, %v5737_v53 }
 0x6ae   : > { %13030 = vmatprep.mubr.msk.f32.mxu1 %vm14684_vm3, %v17833_v51 }
 0x6b1   : > { %13031 = vmatmul.mubr.msk.f32.vlgmr.msra.gmra.mrb[110].mxu1 %vm1787_vm6, %v5906_v31 }
 0x6b2   : > { %13033 = vmatprep.mubr.msk.f32.mxu1 %vm14684_vm3, %v17833_v51  ;;  %13951 = vmatpush3.bf16.msra.mxu1 %v16379_v56  ;;  %v5910_v56 = vld [vmem:[#allocation2 + $0x23] sm:$0xff] }
 0x6b3   : > { %13952 = vmatprep.subr.bf16.mxu1 %v17794_v36 }
 0x6b5   : > { %13034 = vmatmul.mubr.msk.f32.gmra.mrb[112].mxu1 %vm1787_vm6, %v5907_v8 }
 0x6b6   : > { %13036 = vmatprep.mubr.msk.f32.mxu1 %vm14684_vm3, %v17833_v51  ;;  %13954 = vmatpush3.bf16.msra.mxu1 %v16395_v60  ;;  %v5911_v60 = vld [vmem:[#allocation2 + $0x2b] sm:$0xff] }
 0x6b7   : > { %13961 = vmatprep.subr.bf16.mxu1 %v17794_v36 }
 0x6b9   : > { %13037 = vmatmul.mubr.msk.f32.gmra.mrb[114].mxu1 %vm1787_vm6, %v5908_v37 }
 0x6ba   : > { %13039 = vmatprep.mubr.msk.f32.mxu1 %vm14684_vm3, %v17833_v51 }
 0x6bd   : > { %13040 = vmatmul.mubr.msk.f32.gmra.mrb[116].mxu1 %vm1787_vm6, %v5909_v5 }
 0x6be   : > { %13042 = vmatprep.mubr.msk.f32.mxu1 %vm14684_vm3, %v17833_v51 }
 0x6c1   : > { %13043 = vmatmul.mubr.msk.f32.gmra.mrb[118].mxu1 %vm1787_vm6, %v5910_v56 }
 0x6c2   : > { %13045 = vmatprep.mubr.msk.f32.mxu1 %vm14684_vm3, %v17833_v51 }
 0x6c5   : > { %13046 = vmatmul.mubr.msk.f32.gmra.mrb[120].mxu1 %vm1787_vm6, %v5911_v60 }
 0x6c6   : > { %13048 = vmatprep.mubr.msk.f32.mxu1 %vm14684_vm3, %v17833_v51 }
 0x6c9   : > { %13049 = vmatmul.mubr.msk.f32.gmra.mrb[122].mxu1 %vm1787_vm6, %v5912_v23 }
 0x6ca   : > { %13051 = vmatprep.mubr.msk.f32.mxu1 %vm14684_vm3, %v17833_v51 }
 0x6cd   : > { %13052 = vmatmul.mubr.msk.f32.gmra.mrb[124].mxu1 %vm1787_vm6, %v5913_v26 }
 0x6ce   : > { %13054 = vmatprep.mubr.msk.f32.mxu1 %vm14684_vm3, %v17833_v51 }
 0x6d1   : > { %13055 = vmatmul.mubr.msk.f32.gmra.mrb[126].mxu1 %vm1787_vm6, %v5914_v11 }
 0x6d2   : > { %13057 = vmatprep.mubr.msk.f32.mxu1 %vm14684_vm3, %v17833_v51 }
 0x6d5   : > { %13058 = vmatmul.mubr.msk.f32.gmra.mrb[128].mxu1 %vm1787_vm6, %v5915_v40 }
 0x6d6   : > { %13060 = vmatprep.mubr.msk.f32.mxu1 %vm14684_vm3, %v17833_v51 }
 0x6d9   : > { %13061 = vmatmul.mubr.msk.f32.gmra.mrb[130].mxu1 %vm1787_vm6, %v16600_v39 }
 0x6da   : > { %13112 = vmatprep.mubr.msk.f32.mxu1 %vm14684_vm3, %v17833_v51 }
 0x700   : > { %v5520_v38 = vpop.f32.mrb[44].mxu1 }
 0x701   : > { %v12909_v21 = vpop.f32.mrb[45].mxu1 }
 0x704   : > { %v5525_v33 = vpop.f32.mrb[46].mxu1 }
 0x705   : > { %v16726_v7 = vpop.f32.mrb[44].mxu0  ;;  %v12912_v41 = vpop.f32.mrb[47].mxu1 }
 0x706   : > { %v13073_v35 = vpop.f32.mrb[45].mxu0 }
 0x708   : > { %v5530_v19 = vpop.f32.mrb[48].mxu1 }
 0x709   : > { %v16728_v32 = vpop.f32.mrb[46].mxu0  ;;  %v12915_v3 = vpop.f32.mrb[49].mxu1 }
 0x70a   : > { %v13076_v30 = vpop.f32.mrb[47].mxu0 }
 0x70c   : > { %v5535_v25 = vpop.f32.mrb[50].mxu1 }
 0x70d   : > { %v16730_v54 = vpop.f32.mrb[48].mxu0  ;;  %v12918_v9 = vpop.f32.mrb[51].mxu1 }
 0x70e   : > { %v13079_v39 = vpop.f32.mrb[49].mxu0 }
 0x710   : > { %v5540_v58 = vpop.f32.mrb[52].mxu1 }
 0x711   : > { %v16732_v62 = vpop.f32.mrb[50].mxu0  ;;  %v12921_v13 = vpop.f32.mrb[53].mxu1 }
 0x712   : > { %v13082_v16 = vpop.f32.mrb[51].mxu0 }
 0x714   : > { %v5545_v28 = vpop.f32.mrb[54].mxu1 }
 0x715   : > { %v16734_v27 = vpop.f32.mrb[52].mxu0  ;;  %v12924_v10 = vpop.f32.mrb[55].mxu1 }
 0x716   : > { %v13085_v50 = vpop.f32.mrb[53].mxu0 }
 0x718   : > { %v5550_v44 = vpop.f32.mrb[56].mxu1 }
 0x719   : > { %v16736_v61 = vpop.f32.mrb[54].mxu0  ;;  %v12927_v34 = vpop.f32.mrb[57].mxu1 }
 0x71a   : > { %v13088_v24 = vpop.f32.mrb[55].mxu0 }
 0x71c   : > { %v5555_v49 = vpop.f32.mrb[58].mxu1 }
 0x71d   : > { %v16738_v45 = vpop.f32.mrb[56].mxu0  ;;  %v12930_v48 = vpop.f32.mrb[59].mxu1 }
 0x71e   : > { %v13091_v59 = vpop.f32.mrb[57].mxu0 }
 0x720   : > { %v5560_v53 = vpop.f32.mrb[60].mxu1 }
 0x721   : > { %v16740_v31 = vpop.f32.mrb[58].mxu0  ;;  %v12933_v8 = vpop.f32.mrb[61].mxu1 }
 0x722   : > { %v13094_v37 = vpop.f32.mrb[59].mxu0 }
 0x724   : > { %v5565_v5 = vpop.f32.mrb[62].mxu1 }
 0x725   : > { %v16742_v56 = vpop.f32.mrb[60].mxu0  ;;  %v12936_v60 = vpop.f32.mrb[63].mxu1 }
 0x726   : > { %v13097_v23 = vpop.f32.mrb[61].mxu0 }
 0x728   : > { %v5570_v26 = vpop.f32.mrb[64].mxu1 }
 0x729   : > { %v16744_v11 = vpop.f32.mrb[62].mxu0  ;;  %v12939_v40 = vpop.f32.mrb[65].mxu1 }
 0x72a   : > { %v13100_v21 = vpop.f32.mrb[63].mxu0 }
 0x72c   : > { %v5673_v41 = vpop.f32.mrb[66].mxu1 }
 0x72d   : > { %v16746_v35 = vpop.f32.mrb[64].mxu0  ;;  %v5674_v3 = vadd.f32 %v5673_v41, %v5520_v38  ;;  %v12950_v30 = vpop.f32.mrb[67].mxu1 }
 0x72e   : > { %v13103_v9 = vpop.f32.mrb[65].mxu0 }
 0x730   : > { %v5678_v39 = vpop.f32.mrb[68].mxu1 }
 0x731   : > { %v5679_v13 = vadd.f32 %v5678_v39, %v5525_v33  ;;  %v12953_v16 = vpop.f32.mrb[69].mxu1 }
 0x734   : > { %v5683_v10 = vpop.f32.mrb[70].mxu1 }
 0x735   : > { %v5684_v50 = vadd.f32 %v5683_v10, %v5530_v19  ;;  %v12956_v34 = vpop.f32.mrb[71].mxu1 }
 0x738   : > { %v5688_v24 = vpop.f32.mrb[72].mxu1 }
 0x739   : > { %v5689_v48 = vadd.f32 %v5688_v24, %v5535_v25  ;;  %v12959_v59 = vpop.f32.mrb[73].mxu1 }
 0x73c   : > { %v5693_v8 = vpop.f32.mrb[74].mxu1 }
 0x73d   : > { %v5694_v37 = vadd.f32 %v5693_v8, %v5540_v58  ;;  %v12962_v60 = vpop.f32.mrb[75].mxu1 }
 0x740   : > { %v5698_v23 = vpop.f32.mrb[76].mxu1 }
 0x741   : > { %v5699_v40 = vadd.f32 %v5698_v23, %v5545_v28  ;;  %v12965_v21 = vpop.f32.mrb[77].mxu1 }
 0x744   : > { %v5703_v36 = vpop.f32.mrb[78].mxu1 }
 0x745   : > { %v5704_v46 = vadd.f32 %v5703_v36, %v5550_v44  ;;  %v12968_v38 = vpop.f32.mrb[79].mxu1 }
 0x748   : > { %v5708_v41 = vpop.f32.mrb[80].mxu1 }
 0x749   : > { %v5709_v30 = vadd.f32 %v5708_v41, %v5555_v49  ;;  %v12971_v9 = vpop.f32.mrb[81].mxu1 }
 0x74c   : > { %v5713_v33 = vpop.f32.mrb[82].mxu1 }
 0x74d   : > { %v5714_v39 = vadd.f32 %v5713_v33, %v5560_v53  ;;  %v12974_v16 = vpop.f32.mrb[83].mxu1 }
 0x750   : > { %v5718_v19 = vpop.f32.mrb[84].mxu1 }
 0x751   : > { %v5719_v10 = vadd.f32 %v5718_v19, %v5565_v5  ;;  %v12977_v34 = vpop.f32.mrb[85].mxu1 }
 0x754   : > { %v5723_v25 = vpop.f32.mrb[86].mxu1 }
 0x755   : > { %v5724_v24 = vadd.f32 %v5723_v25, %v5570_v26  ;;  %v12980_v59 = vpop.f32.mrb[87].mxu1 }
 0x758   : > { %v5841_v58 = vpop.f32.mrb[88].mxu1 }
 0x759   : > { %v5895_v8 = vadd.f32 %v5841_v58, %v5674_v3  ;;  %v12991_v60 = vpop.f32.mrb[89].mxu1 }
 0x75c   : > { %v5846_v28 = vpop.f32.mrb[90].mxu1 }
 0x75d   : > { %v5896_v23 = vadd.f32 %v5846_v28, %v5679_v13  ;;  %v12994_v21 = vpop.f32.mrb[91].mxu1 }
 0x760   : > { %v5851_v36 = vpop.f32.mrb[92].mxu1 }
 0x761   : > { %v5897_v44 = vadd.f32 %v5851_v36, %v5684_v50  ;;  %v12997_v38 = vpop.f32.mrb[93].mxu1 }
 0x764   : > { %v5856_v49 = vpop.f32.mrb[94].mxu1 }
 0x765   : > { %v5898_v41 = vadd.f32 %v5856_v49, %v5689_v48  ;;  %v13000_v9 = vpop.f32.mrb[95].mxu1 }
 0x768   : > { %v5861_v53 = vpop.f32.mrb[96].mxu1 }
 0x769   : > { %v5899_v33 = vadd.f32 %v5861_v53, %v5694_v37  ;;  %v13003_v16 = vpop.f32.mrb[97].mxu1 }
 0x76c   : > { %v5866_v5 = vpop.f32.mrb[98].mxu1 }
 0x76d   : > { %v16748_v19 = vadd.f32 %v5866_v5, %v5699_v40  ;;  %v13006_v26 = vpop.f32.mrb[99].mxu1 }
 0x770   : > { %v5871_v34 = vpop.f32.mrb[100].mxu1 }
 0x771   : > { %v16750_v25 = vadd.f32 %v5871_v34, %v5704_v46  ;;  %v13009_v3 = vpop.f32.mrb[101].mxu1 }
 0x774   : > { %v5876_v59 = vpop.f32.mrb[102].mxu1 }
 0x775   : > { %v16752_v13 = vadd.f32 %v5876_v59, %v5709_v30  ;;  %v13012_v58 = vpop.f32.mrb[103].mxu1 }
 0x778   : > { %v5881_v50 = vpop.f32.mrb[104].mxu1 }
 0x779   : > { %v16754_v60 = vadd.f32 %v5881_v50, %v5714_v39  ;;  %v13015_v48 = vpop.f32.mrb[105].mxu1  ;;  %v16764_v39 = vld [vmem:[%s17776_s4] ss:$0 sm:$0xff] }
 0x77c   : > { %v5886_v28 = vpop.f32.mrb[106].mxu1 }
 0x77d   : > { %v16756_v21 = vadd.f32 %v5886_v28, %v5719_v10  ;;  %v13018_v37 = vpop.f32.mrb[107].mxu1 }
 0x780   : > { %v5891_v36 = vpop.f32.mrb[108].mxu1 }
 0x781   : > { %v16758_v40 = vadd.f32 %v5891_v36, %v5724_v24  ;;  %v13021_v38 = vpop.f32.mrb[109].mxu1 }
 0x784   : > { %v6020_v49 = vpop.f32.mrb[110].mxu1 }
 0x785   : > { %v6074_v46 = vadd.f32 %v6020_v49, %v5895_v8  ;;  %v13032_v9 = vpop.f32.mrb[111].mxu1 }
 0x787   : > { %v6253_v53 = vadd.f32 %v16726_v7, %v6074_v46 }
 0x788   : > { %v6025_v30 = vpop.f32.mrb[112].mxu1 }
 0x789   : > { %v6264_v16 = vadd.f32 %v16764_v39, %v6253_v53  ;;  %v6075_v10 = vadd.f32 %v6025_v30, %v5896_v23  ;;  %v13035_v5 = vpop.f32.mrb[113].mxu1  ;;  %v17845_v30 = vmov 0.0|0.0  }
 0x78b   : > { %v6275_v26 = vmax.f32 %v6264_v16, 0.0  ;;  %v6254_v24 = vadd.f32 %v16728_v32, %v6075_v10 }
 0x78c   : > { %v6030_v34 = vpop.f32.mrb[114].mxu1 }
 0x78d   : > { %6287 = vst.msk [vmem:[#allocation2 + $0x2] sm:$0xff] %vm1787_vm6, %v6275_v26  ;;  %v6265_v8 = vadd.f32 %v16764_v39, %v6254_v24  ;;  %v6076_v3 = vadd.f32 %v6030_v34, %v5897_v44  ;;  %v13038_v7 = vpop.f32.mrb[115].mxu1 }
 0x78f   : > { %v6276_v59 = vmax.f32 %v6265_v8, 0.0  ;;  %v6255_v58 = vadd.f32 %v16730_v54, %v6076_v3 }
 0x790   : > { %v6035_v50 = vpop.f32.mrb[116].mxu1 }
 0x791   : > { %6288 = vst.msk [vmem:[#allocation2 + $0xa] sm:$0xff] %vm1787_vm6, %v6276_v59  ;;  %v6266_v48 = vadd.f32 %v16764_v39, %v6255_v58  ;;  %v6077_v23 = vadd.f32 %v6035_v50, %v5898_v41  ;;  %v13041_v28 = vpop.f32.mrb[117].mxu1 }
 0x793   : > { %v6277_v37 = vmax.f32 %v6266_v48, 0.0  ;;  %v6256_v32 = vadd.f32 %v16732_v62, %v6077_v23 }
 0x794   : > { %v6040_v36 = vpop.f32.mrb[118].mxu1  ;;  %v6314_v38 = vld [vmem:[#allocation2 + $0x1] sm:$0xff] }
 0x795   : > { %v6299_v49 = vld [vmem:[#allocation2] sm:$0xff]  ;;  %6289 = vst.msk [vmem:[#allocation2 + $0x12] sm:$0xff] %vm1787_vm6, %v6277_v37  ;;  %v6267_v44 = vadd.f32 %v16764_v39, %v6256_v32  ;;  %v6078_v46 = vadd.f32 %v6040_v36, %v5899_v33  ;;  %v13044_v9 = vpop.f32.mrb[119].mxu1  ;;  %13113 = vmatmul.mubr.msk.f32.vlgmr.msra.gmra.mrb[132].mxu1 %vm1787_vm6, %v6314_v38 }
 0x796   : > { %13154 = vmatmul.mubr.msk.f32.vlgmr.msra.gmra.mrb[66].mxu0 %vm1787_vm6, %v6299_v49  ;;  %7505 = vst.msk [vmem:[#allocation2] sm:$0x3] %vm1785_vm5, %v17833_v51  ;;  %13115 = vmatprep.mubr.msk.f32.mxu1 %vm14684_vm3, %v17833_v51 }
 0x797   : > { %13156 = vmatprep.mubr.msk.f32.mxu0 %vm14684_vm3, %v17833_v51  ;;  %v6278_v54 = vmax.f32 %v6267_v44, 0.0  ;;  %v6257_v62 = vadd.f32 %v16734_v27, %v6078_v46  ;;  %13963 = vmatpush3.bf16.msra.mxu1 %v16598_v6 }
 0x798   : > { %13969 = vmatpush3.bf16.msra.mxu0 %v16647_v18  ;;  %v6045_v41 = vpop.f32.mrb[120].mxu1  ;;  %v6315_v33 = vld [vmem:[#allocation2 + $0x9] sm:$0xff]  ;;  %13964 = vmatprep.subr.bf16.mxu1 %v17845_v30 }
 0x799   : > { %v6300_v53 = vld [vmem:[#allocation2 + $0x8] sm:$0xff]  ;;  %13970 = vmatprep.subr.bf16.mxu0 %v17845_v30  ;;  %6290 = vst.msk [vmem:[#allocation2 + $0x1a] sm:$0xff] %vm1787_vm6, %v6278_v54  ;;  %v6268_v16 = vadd.f32 %v16764_v39, %v6257_v62  ;;  %v6079_v10 = vadd.f32 %v6045_v41, %v16748_v19  ;;  %v13047_v5 = vpop.f32.mrb[121].mxu1  ;;  %13116 = vmatmul.mubr.msk.f32.gmra.mrb[134].mxu1 %vm1787_vm6, %v6315_v33 }
 0x79a   : > { %13157 = vmatmul.mubr.msk.f32.gmra.mrb[68].mxu0 %vm1787_vm6, %v6300_v53  ;;  %13118 = vmatprep.mubr.msk.f32.mxu1 %vm14684_vm3, %v17833_v51 }
 0x79b   : > { %13159 = vmatprep.mubr.msk.f32.mxu0 %vm14684_vm3, %v17833_v51  ;;  %v6279_v6 = vmax.f32 %v6268_v16, 0.0  ;;  %v6258_v18 = vadd.f32 %v16736_v61, %v6079_v10  ;;  %13966 = vmatpush3.bf16.msra.mxu1 %v16610_v29 }
 0x79c   : > { %13972 = vmatpush3.bf16.msra.mxu0 %v16653_v63  ;;  %v6050_v27 = vpop.f32.mrb[122].mxu1  ;;  %v6316_v19 = vld [vmem:[#allocation2 + $0x11] sm:$0xff]  ;;  %13973 = vmatprep.subr.bf16.mxu1 %v17845_v30 }
 0x79d   : > { %v6301_v26 = vld [vmem:[#allocation2 + $0x10] sm:$0xff]  ;;  %6291 = vst.msk [vmem:[#allocation2 + $0x22] sm:$0xff] %vm1787_vm6, %v6279_v6  ;;  %v6269_v24 = vadd.f32 %v16764_v39, %v6258_v18  ;;  %v6080_v34 = vadd.f32 %v6050_v27, %v16750_v25  ;;  %v13050_v8 = vpop.f32.mrb[123].mxu1  ;;  %13119 = vmatmul.mubr.msk.f32.gmra.mrb[136].mxu1 %vm1787_vm6, %v6316_v19 }
 0x79e   : > { %13160 = vmatmul.mubr.msk.f32.gmra.mrb[70].mxu0 %vm1787_vm6, %v6301_v26  ;;  %13121 = vmatprep.mubr.msk.f32.mxu1 %vm14684_vm3, %v17833_v51 }
 0x79f   : > { %13162 = vmatprep.mubr.msk.f32.mxu0 %vm14684_vm3, %v17833_v51  ;;  %v6280_v29 = vmax.f32 %v6269_v24, 0.0  ;;  %v6259_v63 = vadd.f32 %v16738_v45, %v6080_v34 }
 0x7a0   : > { %v6055_v61 = vpop.f32.mrb[124].mxu1  ;;  %v6317_v3 = vld [vmem:[#allocation2 + $0x19] sm:$0xff] }
 0x7a1   : > { %v6302_v7 = vld [vmem:[#allocation2 + $0x18] sm:$0xff]  ;;  %6292 = vst.msk [vmem:[#allocation2 + $0x2a] sm:$0xff] %vm1787_vm6, %v6280_v29  ;;  %v6270_v25 = vadd.f32 %v16764_v39, %v6259_v63  ;;  %v6081_v59 = vadd.f32 %v6055_v61, %v16752_v13  ;;  %v13053_v58 = vpop.f32.mrb[125].mxu1  ;;  %13122 = vmatmul.mubr.msk.f32.gmra.mrb[138].mxu1 %vm1787_vm6, %v6317_v3 }
 0x7a2   : > { %13163 = vmatmul.mubr.msk.f32.gmra.mrb[72].mxu0 %vm1787_vm6, %v6302_v7  ;;  %13124 = vmatprep.mubr.msk.f32.mxu1 %vm14684_vm3, %v17833_v51  ;;  %v7004_v63 = vld [vmem:[#allocation3 + $0x80] sm:$0xff]  ;;  %v7005_v7 = vld [vmem:[#allocation3 + $0x88] sm:$0xff] }
 0x7a3   : > { %13165 = vmatprep.mubr.msk.f32.mxu0 %vm14684_vm3, %v17833_v51  ;;  %v6281_v45 = vmax.f32 %v6270_v25, 0.0  ;;  %v6260_v50 = vadd.f32 %v16740_v31, %v6081_v59  ;;  %v13974_v25 = vpack.c.bf16 %v7005_v7, %v7004_v63  ;;  %v7006_v59 = vld [vmem:[#allocation3 + $0x90] sm:$0xff] }
 0x7a4   : > { %v6060_v48 = vpop.f32.mrb[126].mxu1  ;;  %v6318_v23 = vld [vmem:[#allocation2 + $0x21] sm:$0xff] }
 0x7a5   : > { %v6303_v28 = vld [vmem:[#allocation2 + $0x20] sm:$0xff]  ;;  %6293 = vst.msk [vmem:[#allocation2 + $0x32] sm:$0xff] %vm1787_vm6, %v6281_v45  ;;  %v6271_v13 = vadd.f32 %v16764_v39, %v6260_v50  ;;  %v6082_v37 = vadd.f32 %v6060_v48, %v16754_v60  ;;  %v13056_v32 = vpop.f32.mrb[127].mxu1  ;;  %13125 = vmatmul.mubr.msk.f32.gmra.mrb[140].mxu1 %vm1787_vm6, %v6318_v23  ;;  %v7007_v50 = vld [vmem:[#allocation3 + $0x98] sm:$0xff] }
 0x7a6   : > { %13166 = vmatmul.mubr.msk.f32.gmra.mrb[74].mxu0 %vm1787_vm6, %v6303_v28  ;;  %13127 = vmatprep.mubr.msk.f32.mxu1 %vm14684_vm3, %v17833_v51  ;;  %v6635_v58 = vld [vmem:[#allocation2 + $0x2] sm:$0xff]  ;;  %v16895_v48 = vpack.c.bf16 %v7007_v50, %v7006_v59  ;;  %v6636_v23 = vld [vmem:[#allocation2 + $0xa] sm:$0xff]  ;;  %v6638_v32 = vld [vmem:[#allocation2 + $0x1a] sm:$0xff] }
 0x7a7   : > { %13168 = vmatprep.mubr.msk.f32.mxu0 %vm14684_vm3, %v17833_v51  ;;  %v6282_v31 = vmax.f32 %v6271_v13, 0.0  ;;  %v6261_v36 = vadd.f32 %v16742_v56, %v6082_v37  ;;  %v6814_v45 = vld [vmem:[#allocation2 + $0x3] sm:$0xff]  ;;  %v6815_v28 = vld [vmem:[#allocation2 + $0xb] sm:$0xff]  ;;  %v6816_v37 = vld [vmem:[#allocation2 + $0x13] sm:$0xff] }
 0x7a8   : > { %v6065_v38 = vpop.f32.mrb[128].mxu1  ;;  %v6319_v49 = vld [vmem:[#allocation2 + $0x29] sm:$0xff]  ;;  %v6637_v13 = vld [vmem:[#allocation2 + $0x12] sm:$0xff] }
 0x7a9   : > { %v6304_v44 = vld [vmem:[#allocation2 + $0x28] sm:$0xff]  ;;  %6294 = vst.msk [vmem:[#allocation2 + $0x3a] sm:$0xff] %vm1787_vm6, %v6282_v31  ;;  %v6272_v60 = vadd.f32 %v16764_v39, %v6261_v36  ;;  %v6083_v46 = vadd.f32 %v6065_v38, %v16756_v21  ;;  %v13059_v9 = vpop.f32.mrb[129].mxu1  ;;  %13128 = vmatmul.mubr.msk.f32.gmra.mrb[142].mxu1 %vm1787_vm6, %v6319_v49  ;;  %v6817_v31 = vld [vmem:[#allocation2 + $0x1b] sm:$0xff] }
 0x7aa   : > { %13169 = vmatmul.mubr.msk.f32.gmra.mrb[76].mxu0 %vm1787_vm6, %v6304_v44  ;;  %13130 = vmatprep.mubr.msk.f32.mxu1 %vm14684_vm3, %v17833_v51  ;;  %v16842_v53 = vld [vmem:[#allocation2 + $0x2a] sm:$0xff]  ;;  %v6639_v36 = vld [vmem:[#allocation2 + $0x22] sm:$0xff] }
 0x7ab   : > { %13171 = vmatprep.mubr.msk.f32.mxu0 %vm14684_vm3, %v17833_v51  ;;  %v6283_v56 = vmax.f32 %v6272_v60, 0.0  ;;  %v6262_v54 = vadd.f32 %v16744_v11, %v6083_v46  ;;  %v16851_v6 = vld [vmem:[#allocation2 + $0x24] sm:$0xff] }
 0x7ac   : > { %v6070_v62 = vpop.f32.mrb[130].mxu1  ;;  %v6320_v41 = vld [vmem:[#allocation2 + $0x31] sm:$0xff]  ;;  %v6818_v38 = vld [vmem:[#allocation2 + $0x23] sm:$0xff] }
 0x7ad   : > { %v6305_v33 = vld [vmem:[#allocation2 + $0x30] sm:$0xff]  ;;  %6295 = vst.msk [vmem:[#allocation2 + $0x42] sm:$0xff] %vm1787_vm6, %v6283_v56  ;;  %v6273_v21 = vadd.f32 %v16764_v39, %v6262_v54  ;;  %v6084_v16 = vadd.f32 %v6070_v62, %v16758_v40  ;;  %v13062_v10 = vpop.f32.mrb[131].mxu1  ;;  %13131 = vmatmul.mubr.msk.f32.gmra.mrb[144].mxu1 %vm1787_vm6, %v6320_v41 }
 0x7ae   : > { %13172 = vmatmul.mubr.msk.f32.gmra.mrb[78].mxu0 %vm1787_vm6, %v6305_v33  ;;  %v16849_v5 = vld [vmem:[#allocation2 + $0x2b] sm:$0xff]  ;;  %13133 = vmatprep.mubr.msk.f32.mxu1 %vm14684_vm3, %v17833_v51  ;;  %v6996_v10 = vld [vmem:[#allocation2 + $0x1c] sm:$0xff] }
 0x7af   : > { %v16853_v11 = vld [vmem:[#allocation2 + $0x2c] sm:$0xff]  ;;  %13174 = vmatprep.mubr.msk.f32.mxu0 %vm14684_vm3, %v17833_v51  ;;  %v6284_v40 = vmax.f32 %v6273_v21, 0.0  ;;  %v6263_v18 = vadd.f32 %v16746_v35, %v6084_v16  ;;  %v6995_v16 = vld [vmem:[#allocation2 + $0x14] sm:$0xff] }
 0x7b0   : > { %7513 = vst.msk [vmem:[#allocation2 + $0x2b] sm:$0x3] %vm1785_vm5, %v17833_v51  ;;  %v6321_v27 = vld [vmem:[#allocation2 + $0x39] sm:$0xff]  ;;  %v6994_v21 = vld [vmem:[#allocation2 + $0xc] sm:$0xff] }
 0x7b1   : > { %v6306_v19 = vld [vmem:[#allocation2 + $0x38] sm:$0xff]  ;;  %6296 = vst.msk [vmem:[#allocation2 + $0x4a] sm:$0xff] %vm1787_vm6, %v6284_v40  ;;  %v6274_v26 = vadd.f32 %v16764_v39, %v6263_v18  ;;  %13134 = vmatmul.mubr.msk.f32.gmra.mrb[146].mxu1 %vm1787_vm6, %v6321_v27 }
 0x7b2   : > { %13175 = vmatmul.mubr.msk.f32.gmra.mrb[80].mxu0 %vm1787_vm6, %v6306_v19  ;;  %13136 = vmatprep.mubr.msk.f32.mxu1 %vm14684_vm3, %v17833_v51  ;;  %v6641_v49 = vld [vmem:[#allocation2 + $0x32] sm:$0xff]  ;;  %v6642_v60 = vld [vmem:[#allocation2 + $0x3a] sm:$0xff] }
 0x7b3   : > { %13177 = vmatprep.mubr.msk.f32.mxu0 %vm14684_vm3, %v17833_v51  ;;  %v6285_v24 = vmax.f32 %v6274_v26, 0.0  ;;  %v6820_v44 = vld [vmem:[#allocation2 + $0x33] sm:$0xff] }
 0x7b4   : > { %v6322_v34 = vld [vmem:[#allocation2 + $0x41] sm:$0xff] }
 0x7b5   : > { %v6307_v8 = vld [vmem:[#allocation2 + $0x40] sm:$0xff]  ;;  %6297 = vst.msk [vmem:[#allocation2 + $0x52] sm:$0x1f] %vm1809_vm7, %v6285_v24  ;;  %13137 = vmatmul.mubr.msk.f32.gmra.mrb[148].mxu1 %vm1787_vm6, %v6322_v34  ;;  %vm17846_vm7 = vcmask 1046528  }
 0x7b6   : > { %13178 = vmatmul.mubr.msk.f32.gmra.mrb[82].mxu0 %vm1787_vm6, %v6307_v8  ;;  %13139 = vmatprep.mubr.msk.f32.mxu1 %vm14684_vm3, %v17833_v51  ;;  %v6821_v46 = vld [vmem:[#allocation2 + $0x3b] sm:$0xff]  ;;  %vm17850_vm9 = vmmov %vm17846_vm7 }
 0x7b7   : > { %13180 = vmatprep.mubr.msk.f32.mxu0 %vm14684_vm3, %v17833_v51  ;;  %v6643_v9 = vld [vmem:[#allocation2 + $0x42] sm:$0xff] }
 0x7b8   : > { %v6323_v35 = vld [vmem:[#allocation2 + $0x49] sm:$0xff]  ;;  %v7000_v40 = vld [vmem:[#allocation2 + $0x3c] sm:$0xff] }
 0x7b9   : > { %v6308_v29 = vld [vmem:[#allocation2 + $0x48] sm:$0xff]  ;;  %13140 = vmatmul.mubr.msk.f32.gmra.mrb[150].mxu1 %vm1787_vm6, %v6323_v35 }
 0x7ba   : > { %13181 = vmatmul.mubr.msk.f32.gmra.mrb[84].mxu0 %vm1787_vm6, %v6308_v29  ;;  %13142 = vmatprep.mubr.msk.f32.mxu1 %vm14684_vm3, %v17833_v51  ;;  %v6822_v56 = vld [vmem:[#allocation2 + $0x43] sm:$0xff] }
 0x7bb   : > { %13183 = vmatprep.mubr.msk.f32.mxu0 %vm14684_vm3, %v17833_v51  ;;  %v6644_v54 = vld [vmem:[#allocation2 + $0x4a] sm:$0xff] }
 0x7bc   : > { %v6324_v61 = vld [vmem:[#allocation2 + $0x51] sm:$0x1f] }
 0x7bd   : > { %v6309_v3 = vld [vmem:[#allocation2 + $0x50] sm:$0x1f]  ;;  %13143 = vmatmul.mubr.msk.f32.gmra.mrb[152].mxu1 %vm1787_vm6, %v6324_v61 }
 0x7be   : > { %13184 = vmatmul.mubr.msk.f32.gmra.mrb[86].mxu0 %vm1787_vm6, %v6309_v3  ;;  %13194 = vmatprep.mubr.msk.f32.mxu1 %vm14684_vm3, %v17833_v51  ;;  %v6823_v62 = vld [vmem:[#allocation2 + $0x4b] sm:$0xff]  ;;  %v6824_v33 = vld [vmem:[#allocation2 + $0x53] sm:$0x1f] }
 0x7bf   : > { %13235 = vmatprep.mubr.msk.f32.mxu0 %vm14684_vm3, %v17833_v51  ;;  %v6645_v41 = vld [vmem:[#allocation2 + $0x52] sm:$0x1f] }
 0x7c0   : > { %v7003_v18 = vld [vmem:[#allocation2 + $0x54] sm:$0x1f] }
 0x7c1   : > { %13195 = vmatmul.mubr.msk.f32.vlgmr.msra.gmra.mrb[154].mxu1 %vm1787_vm6, %v6635_v58 }
 0x7c2   : > { %13236 = vmatmul.mubr.msk.f32.vlgmr.msra.gmra.mrb[88].mxu0 %vm1787_vm6, %v6814_v45  ;;  %13197 = vmatprep.mubr.msk.f32.mxu1 %vm14684_vm3, %v17833_v51 }
 0x7c3   : > { %13238 = vmatprep.mubr.msk.f32.mxu0 %vm14684_vm3, %v17833_v51  ;;  %13975 = vmatpush3.bf16.msra.mxu1 %v13974_v25 }
 0x7c4   : > { %13976 = vmatprep.subr.bf16.mxu1 %v17845_v30 }
 0x7c5   : > { %13198 = vmatmul.mubr.msk.f32.gmra.mrb[156].mxu1 %vm1787_vm6, %v6636_v23 }
 0x7c6   : > { %13239 = vmatmul.mubr.msk.f32.gmra.mrb[90].mxu0 %vm1787_vm6, %v6815_v28  ;;  %13200 = vmatprep.mubr.msk.f32.mxu1 %vm14684_vm3, %v17833_v51 }
 0x7c7   : > { %13241 = vmatprep.mubr.msk.f32.mxu0 %vm14684_vm3, %v17833_v51  ;;  %13978 = vmatpush3.bf16.msra.mxu1 %v16895_v48 }
 0x7c9   : > { %13201 = vmatmul.mubr.msk.f32.gmra.mrb[158].mxu1 %vm1787_vm6, %v6637_v13 }
 0x7ca   : > { %13242 = vmatmul.mubr.msk.f32.gmra.mrb[92].mxu0 %vm1787_vm6, %v6816_v37  ;;  %13203 = vmatprep.mubr.msk.f32.mxu1 %vm14684_vm3, %v17833_v51 }
 0x7cb   : > { %13244 = vmatprep.mubr.msk.f32.mxu0 %vm14684_vm3, %v17833_v51 }
 0x7cd   : > { %13204 = vmatmul.mubr.msk.f32.gmra.mrb[160].mxu1 %vm1787_vm6, %v6638_v32 }
 0x7ce   : > { %13245 = vmatmul.mubr.msk.f32.gmra.mrb[94].mxu0 %vm1787_vm6, %v6817_v31  ;;  %13206 = vmatprep.mubr.msk.f32.mxu1 %vm14684_vm3, %v17833_v51 }
 0x7cf   : > { %13247 = vmatprep.mubr.msk.f32.mxu0 %vm14684_vm3, %v17833_v51 }
 0x7d1   : > { %13207 = vmatmul.mubr.msk.f32.gmra.mrb[162].mxu1 %vm1787_vm6, %v6639_v36 }
 0x7d2   : > { %13248 = vmatmul.mubr.msk.f32.gmra.mrb[96].mxu0 %vm1787_vm6, %v6818_v38  ;;  %13209 = vmatprep.mubr.msk.f32.mxu1 %vm14684_vm3, %v17833_v51 }
 0x7d3   : > { %13250 = vmatprep.mubr.msk.f32.mxu0 %vm14684_vm3, %v17833_v51 }
 0x7d5   : > { %13210 = vmatmul.mubr.msk.f32.gmra.mrb[164].mxu1 %vm1787_vm6, %v16842_v53  ;;  %v6993_v53 = vld [vmem:[#allocation2 + $0x4] sm:$0xff] }
 0x7d6   : > { %13251 = vmatmul.mubr.msk.f32.gmra.mrb[98].mxu0 %vm1787_vm6, %v16849_v5  ;;  %13212 = vmatprep.mubr.msk.f32.mxu1 %vm14684_vm3, %v17833_v51  ;;  %v6999_v5 = vld [vmem:[#allocation2 + $0x34] sm:$0xff] }
 0x7d7   : > { %13253 = vmatprep.mubr.msk.f32.mxu0 %vm14684_vm3, %v17833_v51 }
 0x7d9   : > { %13213 = vmatmul.mubr.msk.f32.gmra.mrb[166].mxu1 %vm1787_vm6, %v6641_v49 }
 0x7da   : > { %13254 = vmatmul.mubr.msk.f32.gmra.mrb[100].mxu0 %vm1787_vm6, %v6820_v44  ;;  %13215 = vmatprep.mubr.msk.f32.mxu1 %vm14684_vm3, %v17833_v51 }
 0x7db   : > { %13256 = vmatprep.mubr.msk.f32.mxu0 %vm14684_vm3, %v17833_v51 }
 0x7dd   : > { %13216 = vmatmul.mubr.msk.f32.gmra.mrb[168].mxu1 %vm1787_vm6, %v6642_v60 }
 0x7de   : > { %13257 = vmatmul.mubr.msk.f32.gmra.mrb[102].mxu0 %vm1787_vm6, %v6821_v46  ;;  %13218 = vmatprep.mubr.msk.f32.mxu1 %vm14684_vm3, %v17833_v51 }
 0x7df   : > { %13259 = vmatprep.mubr.msk.f32.mxu0 %vm14684_vm3, %v17833_v51 }
 0x7e1   : > { %13219 = vmatmul.mubr.msk.f32.gmra.mrb[170].mxu1 %vm1787_vm6, %v6643_v9 }
 0x7e2   : > { %13260 = vmatmul.mubr.msk.f32.gmra.mrb[104].mxu0 %vm1787_vm6, %v6822_v56  ;;  %13221 = vmatprep.mubr.msk.f32.mxu1 %vm14684_vm3, %v17833_v51 }
 0x7e3   : > { %13262 = vmatprep.mubr.msk.f32.mxu0 %vm14684_vm3, %v17833_v51 }
 0x7e5   : > { %13222 = vmatmul.mubr.msk.f32.gmra.mrb[172].mxu1 %vm1787_vm6, %v6644_v54 }
 0x7e6   : > { %13263 = vmatmul.mubr.msk.f32.gmra.mrb[106].mxu0 %vm1787_vm6, %v6823_v62  ;;  %13224 = vmatprep.mubr.msk.f32.mxu1 %vm14684_vm3, %v17833_v51 }
 0x7e7   : > { %13265 = vmatprep.mubr.msk.f32.mxu0 %vm14684_vm3, %v17833_v51 }
 0x7e9   : > { %13225 = vmatmul.mubr.msk.f32.gmra.mrb[174].mxu1 %vm1787_vm6, %v6645_v41 }
 0x7ea   : > { %13266 = vmatmul.mubr.msk.f32.gmra.mrb[108].mxu0 %vm1787_vm6, %v6824_v33  ;;  %13276 = vmatprep.mubr.msk.f32.mxu1 %vm14684_vm3, %v17833_v51 }
 0x7ed   : > { %13277 = vmatmul.mubr.msk.f32.vlgmr.msra.gmra.mrb[176].mxu1 %vm1787_vm6, %v6993_v53  ;;  %v17009_v53 = vsel %vm16375_vm14, 1.0, %v17833_v51  ;;  %vm17848_vm14 = vcmask 1044480  }
 0x7ee   : > { %13279 = vmatprep.mubr.msk.f32.mxu1 %vm14684_vm3, %v17833_v51  ;;  %13331 = vmatprep.mubr.msk.f32.mxu0 %vm7388_vm1, %v17009_v53  ;;  %vm17852_vm4 = vmmov %vm17848_vm14 }
 0x7f1   : > { %13280 = vmatmul.mubr.msk.f32.gmra.mrb[178].mxu1 %vm1787_vm6, %v6994_v21 }
 0x7f2   : > { %13282 = vmatprep.mubr.msk.f32.mxu1 %vm14684_vm3, %v17833_v51 }
 0x7f5   : > { %13283 = vmatmul.mubr.msk.f32.gmra.mrb[180].mxu1 %vm1787_vm6, %v6995_v16 }
 0x7f6   : > { %13285 = vmatprep.mubr.msk.f32.mxu1 %vm14684_vm3, %v17833_v51 }
 0x7f9   : > { %13286 = vmatmul.mubr.msk.f32.gmra.mrb[182].mxu1 %vm1787_vm6, %v6996_v10 }
 0x7fa   : > { %13288 = vmatprep.mubr.msk.f32.mxu1 %vm14684_vm3, %v17833_v51 }
 0x7fd   : > { %13289 = vmatmul.mubr.msk.f32.gmra.mrb[184].mxu1 %vm1787_vm6, %v16851_v6  ;;  %v7001_v6 = vld [vmem:[#allocation2 + $0x44] sm:$0xff] }
 0x7fe   : > { %13291 = vmatprep.mubr.msk.f32.mxu1 %vm14684_vm3, %v17833_v51 }
 0x801   : > { %13292 = vmatmul.mubr.msk.f32.gmra.mrb[186].mxu1 %vm1787_vm6, %v16853_v11  ;;  %v7002_v11 = vld [vmem:[#allocation2 + $0x4c] sm:$0xff] }
 0x802   : > { %13294 = vmatprep.mubr.msk.f32.mxu1 %vm14684_vm3, %v17833_v51 }
 0x805   : > { %13295 = vmatmul.mubr.msk.f32.gmra.mrb[188].mxu1 %vm1787_vm6, %v6999_v5 }
 0x806   : > { %13297 = vmatprep.mubr.msk.f32.mxu1 %vm14684_vm3, %v17833_v51 }
 0x809   : > { %13298 = vmatmul.mubr.msk.f32.gmra.mrb[190].mxu1 %vm1787_vm6, %v7000_v40 }
 0x80a   : > { %13300 = vmatprep.mubr.msk.f32.mxu1 %vm14684_vm3, %v17833_v51 }
 0x80d   : > { %13301 = vmatmul.mubr.msk.f32.gmra.mrb[192].mxu1 %vm1787_vm6, %v7001_v6 }
 0x80e   : > { %13303 = vmatprep.mubr.msk.f32.mxu1 %vm14684_vm3, %v17833_v51 }
 0x811   : > { %13304 = vmatmul.mubr.msk.f32.gmra.mrb[194].mxu1 %vm1787_vm6, %v7002_v11 }
 0x812   : > { %13306 = vmatprep.mubr.msk.f32.mxu1 %vm14684_vm3, %v17833_v51 }
 0x815   : > { %13307 = vmatmul.mubr.msk.f32.gmra.mrb[196].mxu1 %vm1787_vm6, %v7003_v18 }
 0x868   : > { %v6428_v27 = vpop.f32.mrb[132].mxu1 }
 0x869   : > { %v6581_v19 = vpop.f32.mrb[66].mxu0  ;;  %v13114_v24 = vpop.f32.mrb[133].mxu1 }
 0x86a   : > { %v16992_v26 = vadd.f32 %v6581_v19, %v6428_v27  ;;  %v13155_v34 = vpop.f32.mrb[67].mxu0 }
 0x86b   : > { %v7530_v34 = vld [vmem:[#allocation3 + $0x20] sm:$0xff] }
 0x86c   : > { %v6433_v8 = vpop.f32.mrb[134].mxu1 }
 0x86d   : > { %v6586_v35 = vpop.f32.mrb[68].mxu0  ;;  %v13117_v63 = vpop.f32.mrb[135].mxu1 }
 0x86e   : > { %v16994_v29 = vadd.f32 %v6586_v35, %v6433_v8  ;;  %v13158_v61 = vpop.f32.mrb[69].mxu0  ;;  %v7531_v8 = vld [vmem:[#allocation3 + $0x28] sm:$0xff]  ;;  %v7532_v35 = vld [vmem:[#allocation3 + $0x30] sm:$0xff] }
 0x870   : > { %v6438_v3 = vpop.f32.mrb[136].mxu1 }
 0x871   : > { %v6591_v7 = vpop.f32.mrb[70].mxu0  ;;  %v13120_v59 = vpop.f32.mrb[137].mxu1 }
 0x872   : > { %v16996_v25 = vadd.f32 %v6591_v7, %v6438_v3  ;;  %v13161_v58 = vpop.f32.mrb[71].mxu0  ;;  %v17019_v7 = vpack.c.bf16 %v7531_v8, %v7530_v34  ;;  %v7533_v59 = vld [vmem:[#allocation3 + $0x38] sm:$0xff] }
 0x873   : > { %v17021_v58 = vpack.c.bf16 %v7533_v59, %v7532_v35 }
 0x874   : > { %v6443_v45 = vpop.f32.mrb[138].mxu1  ;;  %14000 = vmatprep.subr.bf16.mxu1 %v17019_v7 }
 0x875   : > { %v6596_v50 = vpop.f32.mrb[72].mxu0  ;;  %v13123_v28 = vpop.f32.mrb[139].mxu1  ;;  %14002 = vmatpush3.bf16.msra.mxu1 %v17019_v7 }
 0x876   : > { %v16998_v23 = vadd.f32 %v6596_v50, %v6443_v45  ;;  %v13164_v13 = vpop.f32.mrb[73].mxu0  ;;  %14004 = vmatprep.subr.bf16.mxu1 %v17021_v58 }
 0x878   : > { %v6448_v37 = vpop.f32.mrb[140].mxu1 }
 0x879   : > { %v6601_v32 = vpop.f32.mrb[74].mxu0  ;;  %v13126_v36 = vpop.f32.mrb[141].mxu1  ;;  %14006 = vmatpush3.bf16.msra.mxu1 %v17021_v58 }
 0x87a   : > { %v17000_v31 = vadd.f32 %v6601_v32, %v6448_v37  ;;  %v13167_v38 = vpop.f32.mrb[75].mxu0 }
 0x87c   : > { %v6453_v49 = vpop.f32.mrb[142].mxu1 }
 0x87d   : > { %v6606_v44 = vpop.f32.mrb[76].mxu0  ;;  %v13129_v46 = vpop.f32.mrb[143].mxu1 }
 0x87e   : > { %v17002_v60 = vadd.f32 %v6606_v44, %v6453_v49  ;;  %v13170_v9 = vpop.f32.mrb[77].mxu0 }
 0x880   : > { %v6458_v56 = vpop.f32.mrb[144].mxu1 }
 0x881   : > { %v6611_v54 = vpop.f32.mrb[78].mxu0  ;;  %v13132_v41 = vpop.f32.mrb[145].mxu1 }
 0x882   : > { %v17004_v62 = vadd.f32 %v6611_v54, %v6458_v56  ;;  %v13173_v33 = vpop.f32.mrb[79].mxu0 }
 0x884   : > { %v6463_v21 = vpop.f32.mrb[146].mxu1 }
 0x885   : > { %v6616_v16 = vpop.f32.mrb[80].mxu0  ;;  %v13135_v5 = vpop.f32.mrb[147].mxu1 }
 0x886   : > { %v17013_v10 = vadd.f32 %v6616_v16, %v6463_v21  ;;  %v13176_v40 = vpop.f32.mrb[81].mxu0 }
 0x888   : > { %v6468_v6 = vpop.f32.mrb[148].mxu1 }
 0x889   : > { %v6621_v11 = vpop.f32.mrb[82].mxu0  ;;  %v13138_v27 = vpop.f32.mrb[149].mxu1 }
 0x88a   : > { %v17015_v18 = vadd.f32 %v6621_v11, %v6468_v6  ;;  %v13179_v19 = vpop.f32.mrb[83].mxu0 }
 0x88c   : > { %v6473_v24 = vpop.f32.mrb[150].mxu1 }
 0x88d   : > { %v6626_v47 = vpop.f32.mrb[84].mxu0  ;;  %v13141_v61 = vpop.f32.mrb[151].mxu1 }
 0x88e   : > { %v17017_v63 = vadd.f32 %v6626_v47, %v6473_v24  ;;  %v13182_v3 = vpop.f32.mrb[85].mxu0 }
 0x890   : > { %v6478_v45 = vpop.f32.mrb[152].mxu1 }
 0x891   : > { %v6631_v50 = vpop.f32.mrb[86].mxu0  ;;  %v13144_v13 = vpop.f32.mrb[153].mxu1 }
 0x892   : > { %v17025_v28 = vadd.f32 %v6631_v50, %v6478_v45  ;;  %v13185_v37 = vpop.f32.mrb[87].mxu0 }
 0x894   : > { %v6749_v32 = vpop.f32.mrb[154].mxu1 }
 0x895   : > { %v6928_v36 = vpop.f32.mrb[88].mxu0  ;;  %v6803_v38 = vadd.f32 %v6749_v32, %v16992_v26  ;;  %v13196_v49 = vpop.f32.mrb[155].mxu1 }
 0x896   : > { %v13237_v44 = vpop.f32.mrb[89].mxu0 }
 0x897   : > { %v6982_v46 = vadd.f32 %v6928_v36, %v6803_v38 }
 0x898   : > { %v6754_v9 = vpop.f32.mrb[156].mxu1 }
 0x899   : > { %v6933_v56 = vpop.f32.mrb[90].mxu0  ;;  %v6804_v54 = vadd.f32 %v6754_v9, %v16994_v29  ;;  %v13199_v41 = vpop.f32.mrb[157].mxu1 }
 0x89a   : > { %v13240_v33 = vpop.f32.mrb[91].mxu0 }
 0x89b   : > { %v6983_v21 = vadd.f32 %v6933_v56, %v6804_v54 }
 0x89c   : > { %v6759_v16 = vpop.f32.mrb[158].mxu1 }
 0x89d   : > { %v6938_v5 = vpop.f32.mrb[92].mxu0  ;;  %v6805_v40 = vadd.f32 %v6759_v16, %v16996_v25  ;;  %v13202_v6 = vpop.f32.mrb[159].mxu1 }
 0x89e   : > { %v13243_v11 = vpop.f32.mrb[93].mxu0 }
 0x89f   : > { %v6984_v27 = vadd.f32 %v6938_v5, %v6805_v40 }
 0x8a0   : > { %v6764_v19 = vpop.f32.mrb[160].mxu1 }
 0x8a1   : > { %v6943_v24 = vpop.f32.mrb[94].mxu0  ;;  %v6806_v26 = vadd.f32 %v6764_v19, %v16998_v23  ;;  %v13205_v47 = vpop.f32.mrb[161].mxu1 }
 0x8a2   : > { %v13246_v34 = vpop.f32.mrb[95].mxu0 }
 0x8a3   : > { %v17033_v8 = vadd.f32 %v6943_v24, %v6806_v26 }
 0x8a4   : > { %v6769_v35 = vpop.f32.mrb[162].mxu1 }
 0x8a5   : > { %v6948_v29 = vpop.f32.mrb[96].mxu0  ;;  %v6807_v61 = vadd.f32 %v6769_v35, %v17000_v31  ;;  %v13208_v3 = vpop.f32.mrb[163].mxu1 }
 0x8a6   : > { %v13249_v59 = vpop.f32.mrb[97].mxu0 }
 0x8a7   : > { %v17036_v45 = vadd.f32 %v6948_v29, %v6807_v61 }
 0x8a8   : > { %v6774_v25 = vpop.f32.mrb[164].mxu1 }
 0x8a9   : > { %v6953_v50 = vpop.f32.mrb[98].mxu0  ;;  %v6808_v13 = vadd.f32 %v6774_v25, %v17002_v60  ;;  %v13211_v37 = vpop.f32.mrb[165].mxu1 }
 0x8aa   : > { %v13252_v32 = vpop.f32.mrb[99].mxu0 }
 0x8ab   : > { %v17039_v36 = vadd.f32 %v6953_v50, %v6808_v13 }
 0x8ac   : > { %v6779_v23 = vpop.f32.mrb[166].mxu1 }
 0x8ad   : > { %v6958_v38 = vpop.f32.mrb[100].mxu0  ;;  %v6809_v49 = vadd.f32 %v6779_v23, %v17004_v62  ;;  %v13214_v44 = vpop.f32.mrb[167].mxu1 }
 0x8ae   : > { %v13255_v9 = vpop.f32.mrb[101].mxu0 }
 0x8af   : > { %v17042_v56 = vadd.f32 %v6958_v38, %v6809_v49 }
 0x8b0   : > { %v6784_v31 = vpop.f32.mrb[168].mxu1 }
 0x8b1   : > { %v6963_v54 = vpop.f32.mrb[102].mxu0  ;;  %v6810_v41 = vadd.f32 %v6784_v31, %v17013_v10  ;;  %v13217_v33 = vpop.f32.mrb[169].mxu1 }
 0x8b2   : > { %v13258_v16 = vpop.f32.mrb[103].mxu0 }
 0x8b3   : > { %v17045_v5 = vadd.f32 %v6963_v54, %v6810_v41 }
 0x8b4   : > { %v6789_v60 = vpop.f32.mrb[170].mxu1 }
 0x8b5   : > { %v6968_v40 = vpop.f32.mrb[104].mxu0  ;;  %v6811_v6 = vadd.f32 %v6789_v60, %v17015_v18  ;;  %v13220_v11 = vpop.f32.mrb[171].mxu1 }
 0x8b6   : > { %v13261_v19 = vpop.f32.mrb[105].mxu0 }
 0x8b7   : > { %v17048_v24 = vadd.f32 %v6968_v40, %v6811_v6 }
 0x8b8   : > { %v6794_v62 = vpop.f32.mrb[172].mxu1 }
 0x8b9   : > { %v6973_v26 = vpop.f32.mrb[106].mxu0  ;;  %v6812_v47 = vadd.f32 %v6794_v62, %v17017_v63  ;;  %v13223_v34 = vpop.f32.mrb[173].mxu1 }
 0x8ba   : > { %v13264_v35 = vpop.f32.mrb[107].mxu0 }
 0x8bb   : > { %v17051_v29 = vadd.f32 %v6973_v26, %v6812_v47 }
 0x8bc   : > { %v6799_v10 = vpop.f32.mrb[174].mxu1 }
 0x8bd   : > { %v6978_v61 = vpop.f32.mrb[108].mxu0  ;;  %v6813_v3 = vadd.f32 %v6799_v10, %v17025_v28  ;;  %v13226_v59 = vpop.f32.mrb[175].mxu1 }
 0x8be   : > { %v13267_v25 = vpop.f32.mrb[109].mxu0 }
 0x8bf   : > { %v17054_v50 = vadd.f32 %v6978_v61, %v6813_v3 }
 0x8c0   : > { %v7107_v18 = vpop.f32.mrb[176].mxu1 }
 0x8c1   : > { %v7161_v13 = vadd.f32 %v7107_v18, %v6982_v46  ;;  %v13278_v37 = vpop.f32.mrb[177].mxu1 }
 0x8c3   : > { %v7172_v32 = vadd.f32 %v16764_v39, %v7161_v13 }
 0x8c4   : > { %v7112_v23 = vpop.f32.mrb[178].mxu1 }
 0x8c5   : > { %v7183_v63 = vadd.f32 %v7172_v32, %v16483_v15  ;;  %v7162_v38 = vadd.f32 %v7112_v23, %v6983_v21  ;;  %v13281_v49 = vpop.f32.mrb[179].mxu1 }
 0x8c7   : > { %v7173_v44 = vadd.f32 %v16764_v39, %v7162_v38  ;;  %v7194_v9 = vmax.f32 %v7183_v63, 0.0 }
 0x8c8   : > { %v7117_v31 = vpop.f32.mrb[180].mxu1 }
 0x8c9   : > { %v7184_v28 = vadd.f32 %v7173_v44, %v16487_v0  ;;  %v7163_v54 = vadd.f32 %v7117_v31, %v6984_v27  ;;  %v13284_v41 = vpop.f32.mrb[181].mxu1  ;;  %v7216_v60 = vrot.slane %v7194_v9, 1  ;;  %v7259_v40 = vrot.slane %v7194_v9, 2 }
 0x8ca   : > { %v7302_v62 = vrot.slane %v7194_v9, 3  ;;  %v7345_v47 = vrot.slane %v7194_v9, 4 }
 0x8cb   : > { %v7195_v33 = vmax.f32 %v7184_v28, 0.0  ;;  %v7174_v16 = vadd.f32 %v16764_v39, %v7163_v54 }
 0x8cc   : > { %v7122_v46 = vpop.f32.mrb[182].mxu1 }
 0x8cd   : > { %v7185_v6 = vadd.f32 %v7174_v16, %v16491_v43  ;;  %v7164_v15 = vadd.f32 %v7122_v46, %v17033_v8  ;;  %v13287_v21 = vpop.f32.mrb[183].mxu1  ;;  %v7217_v11 = vrot.slane %v7195_v33, 1  ;;  %v7260_v19 = vrot.slane %v7195_v33, 2 }
 0x8ce   : > { %v7303_v26 = vrot.slane %v7195_v33, 3  ;;  %v7346_v34 = vrot.slane %v7195_v33, 4 }
 0x8cf   : > { %v7196_v0 = vmax.f32 %v7185_v6, 0.0  ;;  %v7175_v27 = vadd.f32 %v16764_v39, %v7164_v15  ;;  %v7218_v35 = vsel %vm17846_vm7, %v7216_v60, %v7217_v11  ;;  %v7261_v10 = vsel %vm17847_vm8, %v7259_v40, %v7260_v19  ;;  %vm17853_vm7 = vmmov %vm17849_vm13 }
 0x8d0   : > { %v7127_v61 = vpop.f32.mrb[184].mxu1  ;;  %v7248_v3 = vmax.f32 %v7194_v9, %v7218_v35  ;;  %v7304_v43 = vsel %vm17848_vm14, %v7302_v62, %v7303_v26  ;;  %v7347_v8 = vsel %vm17849_vm13, %v7345_v47, %v7346_v34  ;;  %vm17854_vm8 = vmmov %vm17850_vm9 }
 0x8d1   : > { %v7186_v59 = vadd.f32 %v7175_v27, %v16503_v20  ;;  %v7165_v25 = vadd.f32 %v7127_v61, %v17036_v45  ;;  %v13290_v18 = vpop.f32.mrb[185].mxu1  ;;  %v7219_v13 = vrot.slane %v7196_v0, 1  ;;  %v7262_v37 = vrot.slane %v7196_v0, 2  ;;  %vm17855_vm14 = vmmov %vm17851_vm0 }
 0x8d2   : > { %v7291_v32 = vmax.f32 %v7248_v3, %v7261_v10  ;;  %v7305_v23 = vrot.slane %v7196_v0, 3  ;;  %v7348_v63 = vrot.slane %v7196_v0, 4  ;;  %vm17856_vm13 = vmmov %vm17852_vm4 }
 0x8d3   : > { %v7197_v38 = vmax.f32 %v7186_v59, 0.0  ;;  %v7176_v49 = vadd.f32 %v16764_v39, %v7165_v25  ;;  %v7220_v44 = vsel %vm17850_vm9, %v7217_v11, %v7219_v13  ;;  %v7263_v9 = vsel %vm17851_vm0, %v7260_v19, %v7262_v37  ;;  %vm17857_vm9 = vmmov %vm17853_vm7 }
 0x8d4   : > { %v7132_v31 = vpop.f32.mrb[186].mxu1  ;;  %v7249_v28 = vmax.f32 %v7195_v33, %v7220_v44  ;;  %v7306_v54 = vsel %vm17852_vm4, %v7303_v26, %v7305_v23  ;;  %v7334_v20 = vmax.f32 %v7291_v32, %v7304_v43  ;;  %v7349_v45 = vsel %vm17853_vm7, %v7346_v34, %v7348_v63  ;;  %vm17858_vm0 = vmmov %vm17854_vm8 }
 0x8d5   : > { %v7187_v41 = vadd.f32 %v7176_v49, %v16513_v52  ;;  %v7166_v16 = vadd.f32 %v7132_v31, %v17039_v36  ;;  %v13293_v46 = vpop.f32.mrb[187].mxu1  ;;  %v7221_v60 = vrot.slane %v7197_v38, 1  ;;  %v7264_v40 = vrot.slane %v7197_v38, 2  ;;  %vm17859_vm4 = vmmov %vm17855_vm14 }
 0x8d6   : > { %v7292_v6 = vmax.f32 %v7249_v28, %v7263_v9  ;;  %v7377_v15 = vmax.f32 %v7334_v20, %v7347_v8  ;;  %v7307_v21 = vrot.slane %v7197_v38, 3  ;;  %v7350_v11 = vrot.slane %v7197_v38, 4  ;;  %vm17860_vm7 = vmmov %vm17856_vm13 }
 0x8d7   : > { %v7198_v62 = vmax.f32 %v7187_v41, 0.0  ;;  %v7177_v19 = vadd.f32 %v16764_v39, %v7166_v16  ;;  %v7222_v33 = vsel %vm17854_vm8, %v7219_v13, %v7221_v60  ;;  %v7265_v26 = vsel %vm17855_vm14, %v7262_v37, %v7264_v40  ;;  %vm17861_vm8 = vmmov %vm17857_vm9 }
 0x8d8   : > { %v7137_v47 = vpop.f32.mrb[188].mxu1  ;;  %v7335_v34 = vmax.f32 %v7292_v6, %v7306_v54  ;;  %v7250_v27 = vmax.f32 %v7196_v0, %v7222_v33  ;;  %v7308_v52 = vsel %vm17856_vm13, %v7305_v23, %v7307_v21  ;;  %v7351_v36 = vsel %vm17857_vm9, %v7348_v63, %v7350_v11  ;;  %vm17862_vm14 = vmmov %vm17858_vm0 }
 0x8d9   : > { %v7188_v35 = vadd.f32 %v7177_v19, %v16525_v55  ;;  %v7167_v10 = vadd.f32 %v7137_v47, %v17042_v56  ;;  %v13296_v61 = vpop.f32.mrb[189].mxu1  ;;  %v7223_v3 = vrot.slane %v7198_v62, 1  ;;  %v7266_v43 = vrot.slane %v7198_v62, 2  ;;  %vm17863_vm13 = vmmov %vm17859_vm4 }
 0x8da   : > { %v7378_v8 = vmax.f32 %v7335_v34, %v7349_v45  ;;  %v7293_v59 = vmax.f32 %v7250_v27, %v7265_v26  ;;  %v7309_v25 = vrot.slane %v7198_v62, 3  ;;  %v7352_v18 = vrot.slane %v7198_v62, 4  ;;  %vm17864_vm9 = vmmov %vm17860_vm7 }
 0x8db   : > { %v17084_v13 = vmax.f32 %v7188_v35, 0.0  ;;  %v7178_v37 = vadd.f32 %v16764_v39, %v7167_v10  ;;  %v7224_v0 = vsel %vm17858_vm0, %v7221_v60, %v7223_v3  ;;  %v7267_v32 = vsel %vm17859_vm4, %v7264_v40, %v7266_v43  ;;  %vm17865_vm0 = vmmov %vm17861_vm8 }
 0x8dc   : > { %v7142_v23 = vpop.f32.mrb[190].mxu1  ;;  %v13979_v63 = vpack.c.bf16 %v7378_v8, %v7377_v15  ;;  %v7251_v55 = vmax.f32 %v7197_v38, %v7224_v0  ;;  %v7310_v56 = vsel %vm17860_vm7, %v7307_v21, %v7309_v25  ;;  %v7336_v49 = vmax.f32 %v7293_v59, %v7308_v52  ;;  %vm17866_vm4 = vmmov %vm17862_vm14 }
 0x8dd   : > { %v7189_v44 = vadd.f32 %v7178_v37, %v16536_v12  ;;  %v7168_v9 = vadd.f32 %v7142_v23, %v17045_v5  ;;  %v13299_v31 = vpop.f32.mrb[191].mxu1  ;;  %v7353_v28 = vsel %vm17861_vm8, %v7350_v11, %v7352_v18  ;;  %v7225_v54 = vrot.slane %v17084_v13, 1  ;;  %vm17867_vm7 = vmmov %vm17863_vm13 }
 0x8de   : > { %13980 = vmatprep.subr.bf16.mxu0 %v13979_v63  ;;  %v7294_v20 = vmax.f32 %v7251_v55, %v7267_v32  ;;  %v7379_v45 = vmax.f32 %v7336_v49, %v7351_v36  ;;  %v7268_v41 = vrot.slane %v17084_v13, 2  ;;  %v7311_v16 = vrot.slane %v17084_v13, 3  ;;  %vm17868_vm8 = vmmov %vm17864_vm9 }
 0x8df   : > { %v17096_v38 = vmax.f32 %v7189_v44, 0.0  ;;  %v7179_v46 = vadd.f32 %v16764_v39, %v7168_v9  ;;  %13982 = vmatpush3.bf16.msra.mxu0 %v13979_v63  ;;  %v7226_v12 = vsel %vm17862_vm14, %v7223_v3, %v7225_v54  ;;  %v7354_v5 = vrot.slane %v17084_v13, 4  ;;  %vm17869_vm14 = vmmov %vm17865_vm0 }
 0x8e0   : > { %v7147_v60 = vpop.f32.mrb[192].mxu1  ;;  %v7337_v40 = vmax.f32 %v7294_v20, %v7310_v56  ;;  %v7252_v6 = vmax.f32 %v7198_v62, %v7226_v12  ;;  %v7269_v15 = vsel %vm17863_vm13, %v7266_v43, %v7268_v41  ;;  %v7312_v21 = vsel %vm17864_vm9, %v7309_v25, %v7311_v16  ;;  %vm17870_vm13 = vmmov %vm17866_vm4 }
 0x8e1   : > { %v7190_v11 = vadd.f32 %v7179_v46, %v16546_v1  ;;  %v7169_v19 = vadd.f32 %v7147_v60, %v17048_v24  ;;  %v13302_v33 = vpop.f32.mrb[193].mxu1  ;;  %v7227_v26 = vrot.slane %v17096_v38, 1  ;;  %v7270_v47 = vrot.slane %v17096_v38, 2  ;;  %vm17871_vm9 = vmmov %vm17867_vm7 }
 0x8e2   : > { %v7380_v34 = vmax.f32 %v7337_v40, %v7353_v28  ;;  %v7295_v27 = vmax.f32 %v7252_v6, %v7269_v15  ;;  %v7313_v52 = vrot.slane %v17096_v38, 3  ;;  %v7355_v36 = vsel %vm17865_vm0, %v7352_v18, %v7354_v5  ;;  %vm17872_vm0 = vmmov %vm17868_vm8 }
 0x8e3   : > { %v7201_v62 = vmax.f32 %v7190_v11, 0.0  ;;  %v7180_v35 = vadd.f32 %v16764_v39, %v7169_v19  ;;  %v7228_v10 = vsel %vm17866_vm4, %v7225_v54, %v7227_v26  ;;  %v7271_v1 = vsel %vm17867_vm7, %v7268_v41, %v7270_v47 }
 0x8e4   : > { %v7152_v61 = vpop.f32.mrb[194].mxu1  ;;  %v13983_v24 = vpack.c.bf16 %v7380_v34, %v7379_v45  ;;  %v7253_v3 = vmax.f32 %v17084_v13, %v7228_v10  ;;  %v7314_v43 = vsel %vm17868_vm8, %v7311_v16, %v7313_v52  ;;  %v7338_v8 = vmax.f32 %v7295_v27, %v7312_v21  ;;  %v17120_v13 = vld [vmem:[%s17776_s4] ss:$0 sm:$0xff]  ;;  %vm17873_vm8 = vmmov %vm17872_vm0 }
 0x8e5   : > { %v7191_v59 = vadd.f32 %v7180_v35, %v16556_v57  ;;  %v7170_v25 = vadd.f32 %v7152_v61, %v17051_v29  ;;  %v13305_v37 = vpop.f32.mrb[195].mxu1  ;;  %v7356_v18 = vrot.slane %v17096_v38, 4  ;;  %v7229_v0 = vrot.slane %v7201_v62, 1 }
 0x8e6   : > { %13984 = vmatprep.subr.bf16.mxu0 %v13983_v24  ;;  %v7296_v39 = vmax.f32 %v7253_v3, %v7271_v1  ;;  %v7381_v32 = vmax.f32 %v7338_v8, %v7355_v36  ;;  %v7272_v23 = vrot.slane %v7201_v62, 2  ;;  %v7315_v63 = vrot.slane %v7201_v62, 3 }
 0x8e7   : > { %v7202_v55 = vmax.f32 %v7191_v59, 0.0  ;;  %v7181_v56 = vadd.f32 %v17120_v13, %v7170_v25  ;;  %13986 = vmatpush3.bf16.msra.mxu0 %v13983_v24  ;;  %v7357_v57 = vsel %vm17869_vm14, %v7354_v5, %v7356_v18  ;;  %v7230_v29 = vsel %vm17870_vm13, %v7227_v26, %v7229_v0  ;;  %vm17874_vm13 = vmmov %vm17869_vm14 }
 0x8e8   : > { %v7157_v49 = vpop.f32.mrb[196].mxu1  ;;  %v7339_v44 = vmax.f32 %v7296_v39, %v7314_v43  ;;  %v7254_v9 = vmax.f32 %v17096_v38, %v7230_v29  ;;  %v7273_v31 = vsel %vm17871_vm9, %v7270_v47, %v7272_v23  ;;  %v7316_v28 = vsel %vm17872_vm0, %v7313_v52, %v7315_v63  ;;  %vm17875_vm9 = vmmov %vm17866_vm4 }
 0x8e9   : > { %v7192_v54 = vadd.f32 %v7181_v56, %v16566_v4  ;;  %v7171_v20 = vadd.f32 %v7157_v49, %v17054_v50  ;;  %v13308_v45 = vpop.f32.mrb[197].mxu1  ;;  %v7231_v41 = vrot.slane %v7202_v55, 1  ;;  %v7274_v16 = vrot.slane %v7202_v55, 2  ;;  %vm17876_vm0 = vmmov %vm17867_vm7 }
 0x8ea   : > { %v7382_v46 = vmax.f32 %v7339_v44, %v7357_v57  ;;  %v7297_v12 = vmax.f32 %v7254_v9, %v7273_v31  ;;  %v7317_v5 = vrot.slane %v7202_v55, 3  ;;  %v7358_v60 = vrot.slane %v7201_v62, 4 }
 0x8eb   : > { %v7203_v40 = vmax.f32 %v7192_v54, 0.0  ;;  %v7182_v6 = vadd.f32 %v17120_v13, %v7171_v20  ;;  %v7232_v38 = vsel %vm17866_vm4, %v7229_v0, %v7231_v41  ;;  %v7275_v15 = vsel %vm17867_vm7, %v7272_v23, %v7274_v16  ;;  %vm17877_vm4 = vmmov %vm17873_vm8 }
 0x8ec   : > { %v13987_v21 = vpack.c.bf16 %v7382_v46, %v7381_v32  ;;  %v7255_v11 = vmax.f32 %v7201_v62, %v7232_v38  ;;  %v7318_v4 = vsel %vm17873_vm8, %v7315_v63, %v7317_v5  ;;  %v7340_v19 = vmax.f32 %v7297_v12, %v7316_v28  ;;  %vm17878_vm7 = vmmov %vm17874_vm13 }
 0x8ed   : > { %v7193_v50 = vadd.f32 %v7182_v6, %v16576_v17  ;;  %v7359_v33 = vsel %vm17869_vm14, %v7356_v18, %v7358_v60  ;;  %v7360_v26 = vrot.slane %v7202_v55, 4  ;;  %v7233_v47 = vrot.slane %v7203_v40, 1  ;;  %vm17879_vm8 = vmmov %vm17875_vm9 }
 0x8ee   : > { %13988 = vmatprep.subr.bf16.mxu0 %v13987_v21  ;;  %v7298_v34 = vmax.f32 %v7255_v11, %v7275_v15  ;;  %v7383_v27 = vmax.f32 %v7340_v19, %v7359_v33  ;;  %v7276_v52 = vrot.slane %v7203_v40, 2  ;;  %v7319_v36 = vrot.slane %v7203_v40, 3  ;;  %vm17880_vm14 = vmmov %vm17876_vm0  ;;  %v7522_v15 = vld [vmem:[#allocation3 + $0x10] sm:$0xff] }
 0x8ef   : > { %v7204_v35 = vmax.f32 %v7193_v50, 0.0  ;;  %13990 = vmatpush3.bf16.msra.mxu0 %v13987_v21  ;;  %v7361_v10 = vsel %vm17874_vm13, %v7358_v60, %v7360_v26  ;;  %v7234_v62 = vsel %vm17875_vm9, %v7231_v41, %v7233_v47  ;;  %v7362_v1 = vrot.slane %v7203_v40, 4  ;;  %vm17881_vm13 = vmmov %vm17877_vm4  ;;  %v7523_v21 = vld [vmem:[#allocation3 + $0x18] sm:$0xff] }
 0x8f0   : > { %v7341_v61 = vmax.f32 %v7298_v34, %v7318_v4  ;;  %v7256_v24 = vmax.f32 %v7202_v55, %v7234_v62  ;;  %v7277_v17 = vsel %vm17876_vm0, %v7274_v16, %v7276_v52  ;;  %v7320_v3 = vsel %vm17877_vm4, %v7317_v5, %v7319_v36  ;;  %vm17882_vm9 = vmmov %vm17878_vm7  ;;  %v7521_v5 = vld [vmem:[#allocation3 + $0x8] sm:$0xff]  ;;  %v7768_v62 = vld [vmem:[#allocation3 + $0x50] sm:$0xff] }
 0x8f1   : > { %v7235_v43 = vrot.slane %v7204_v35, 1  ;;  %v7278_v8 = vrot.slane %v7204_v35, 2  ;;  %v7321_v59 = vrot.slane %v7204_v35, 3  ;;  %v7363_v25 = vsel %vm17878_vm7, %v7360_v26, %v7362_v1  ;;  %v7767_v34 = vld [vmem:[#allocation3 + $0x48] sm:$0xff]  ;;  %vm17886_vm11 = vmmov %vm17879_vm8 }
 0x8f2   : > { %v7384_v37 = vmax.f32 %v7341_v61, %v7361_v10  ;;  %v7299_v18 = vmax.f32 %v7256_v24, %v7277_v17  ;;  %v7364_v0 = vrot.slane %v7204_v35, 4  ;;  %vm17883_vm0 = vcmask 1040384   ;;  %v7894_v61 = vld [vmem:[#allocation2 + $0x2b] sm:$0x1]  ;;  %v17223_v17 = vld [vmem:[#allocation2 + $0x2c] sm:$0x1]  ;;  %vm17889_vm15 = vmmov %vm17878_vm7 }
 0x8f3   : > { %v7236_v39 = vsel %vm17879_vm8, %v7233_v47, %v7235_v43  ;;  %v7279_v32 = vsel %vm17880_vm14, %v7276_v52, %v7278_v8  ;;  %v7322_v23 = vsel %vm17881_vm13, %v7319_v36, %v7321_v59  ;;  %v7258_v63 = vmax.f32 %v7204_v35, %v7235_v43  ;;  %vm17884_vm4 = vmmov %vm17883_vm0  ;;  %v7766_v47 = vld [vmem:[#allocation3 + $0x40] sm:$0xff] }
 0x8f4   : > { %v13991_v55 = vpack.c.bf16 %v7384_v37, %v7383_v27  ;;  %v7257_v56 = vmax.f32 %v7203_v40, %v7236_v39  ;;  %v7342_v57 = vmax.f32 %v7299_v18, %v7320_v3  ;;  %v7365_v29 = vsel %vm17882_vm9, %v7362_v1, %v7364_v0  ;;  %v7769_v1 = vld [vmem:[#allocation3 + $0x58] sm:$0xff] }
 0x8f5   : > { %v7301_v9 = vmax.f32 %v7258_v63, %v7278_v8  ;;  %v17149_v41 = vsel %vm16390_vm2, 1.0, %v17833_v51  ;;  %v17154_v16 = vsel %vm16406_vm12, 1.0, %v17833_v51  ;;  %v11258_v12 = vsel %vm16444_vm10, 1.0, %v17833_v51  ;;  %v7895_v8 = vld [vmem:[#allocation3 + $0x60] sm:$0xff]  ;;  %vm17887_vm2 = vmmov %vm17880_vm14 }
 0x8f6   : > { %13992 = vmatprep.subr.bf16.mxu0 %v13991_v55  ;;  %v7300_v49 = vmax.f32 %v7257_v56, %v7279_v32  ;;  %v7385_v44 = vmax.f32 %v7342_v57, %v7363_v25  ;;  %v17177_v60 = vpack.c.bf16 %v7521_v5, %v7520_v42  ;;  %vm7511_vm10 = vcmask 253952   ;;  %v7897_v32 = vld [vmem:[#allocation3 + $0x70] sm:$0xff]  ;;  %v8024_v57 = vld [vmem:[#allocation3 + $0x80] sm:$0xff]  ;;  %vm17888_vm12 = vmmov %vm17881_vm13 }
 0x8f7   : > { %13994 = vmatpush3.bf16.msra.mxu0 %v13991_v55  ;;  %v7344_v54 = vmax.f32 %v7301_v9, %v7321_v59  ;;  %v17201_v33 = vpack.c.bf16 %v7523_v21, %v7522_v15  ;;  %v17213_v36 = vpack.c.bf16 %v7767_v34, %v7766_v47  ;;  %v17228_v3 = vpack.c.bf16 %v7769_v1, %v7768_v62  ;;  %v7896_v59 = vld [vmem:[#allocation3 + $0x68] sm:$0xff]  ;;  %vm17891_vm7 = vmmov %vm17887_vm2 }
 0x8f8   : > { %v7343_v31 = vmax.f32 %v7300_v49, %v7322_v23  ;;  %14008 = vmatprep.subr.bf16.mxu1 %v17177_v60  ;;  %v17234_v37 = vpack.c.bf16 %v7896_v59, %v7895_v8  ;;  %v7898_v23 = vld [vmem:[#allocation3 + $0x78] sm:$0xff]  ;;  %vm17894_vm13 = vmmov %vm17882_vm9 }
 0x8f9   : > { %v7387_v45 = vmax.f32 %v7344_v54, %v7364_v0  ;;  %v17242_v55 = vpack.c.bf16 %v7898_v23, %v7897_v32 }
 0x8fa   : > { %v7386_v28 = vmax.f32 %v7343_v31, %v7365_v29  ;;  %v8025_v29 = vld [vmem:[#allocation3 + $0x88] sm:$0xff] }
 0x8fc   : > { %v13995_v20 = vpack.c.bf16 %v7386_v28, %v7385_v44  ;;  %v17248_v44 = vpack.c.bf16 %v8025_v29, %v8024_v57 }
 0x8fe   : > { %13996 = vmatprep.subr.bf16.mxu0 %v13995_v20 }
 0x8ff   : > { %13998 = vmatpush3.bf16.msra.mxu0 %v13995_v20 }
 0x900   : > { %13329 = vmatprep.subr.msk.mxu0 %vm17883_vm0, %v7387_v45  ;;  %vm17896_vm0 = vmmov %vm17887_vm2 }
 0x903   : > { %13330 = vmatpush3.msk.msra.mxu0 %vm17884_vm4, %v7387_v45  ;;  %vm17897_vm4 = vmmov %vm17896_vm0 }
 0x904   : > { %13332 = vmatmul.mubr.msk.f32.vlgmr.msra.gmra.mrb[110].mxu0 %vm7388_vm1, %v17149_v41  ;;  %14040 = vmatprep.subr.bf16.mxu0 %v17019_v7 }
 0x905   : > { %13334 = vmatprep.mubr.msk.f32.mxu0 %vm7388_vm1, %v17154_v16  ;;  %14042 = vmatpush3.bf16.msra.mxu0 %v17019_v7 }
 0x906   : > { %14044 = vmatprep.subr.bf16.mxu0 %v17021_v58 }
 0x908   : > { %13335 = vmatmul.mubr.msk.f32.gmra.mrb[112].mxu0 %vm7388_vm1, %v11254_v2 }
 0x909   : > { %13337 = vmatprep.mubr.msk.f32.mxu0 %vm7388_vm1, %v11256_v22  ;;  %14046 = vmatpush3.bf16.msra.mxu0 %v17021_v58 }
 0x90a   : > { %14048 = vmatprep.subr.bf16.mxu0 %v17177_v60 }
 0x90c   : > { %13338 = vmatmul.mubr.msk.f32.gmra.mrb[114].mxu0 %vm7388_vm1, %v11258_v12  ;;  %vm17890_vm1 = vmmov %vm17879_vm8 }
 0x90d   : > { %vm17892_vm8 = vmmov %vm17888_vm12 }
 0x90e   : > { %vm17893_vm14 = vmmov %vm17890_vm1 }
 0x90f   : > { %vm17895_vm9 = vmmov %vm17890_vm1 }
 0x9d7   : > { %v17181_v14 = vpop.f32.mrb[110].mxu0 }
 0x9d8   : > { %7507 = vst.msk [vmem:[#allocation2 + $0xa] sm:$0xff] %vm1787_vm6, %v17181_v14  ;;  %v17185_v40 = vpop.f32.mrb[111].mxu0 }
 0x9d9   : > { %7506 = vst.msk [vmem:[#allocation2 + $0x2] sm:$0xff] %vm1787_vm6, %v17185_v40 }
 0x9db   : > { %v17189_v6 = vpop.f32.mrb[112].mxu0 }
 0x9dc   : > { %7509 = vst.msk [vmem:[#allocation2 + $0x1a] sm:$0xff] %vm1787_vm6, %v17189_v6  ;;  %v17193_v38 = vpop.f32.mrb[113].mxu0 }
 0x9dd   : > { %7508 = vst.msk [vmem:[#allocation2 + $0x12] sm:$0xff] %vm1787_vm6, %v17193_v38 }
 0x9df   : > { %v17197_v11 = vpop.f32.mrb[114].mxu0  ;;  %v7761_v56 = vld [vmem:[#allocation2 + $0xa] sm:$0xff] }
 0x9e0   : > { %v17199_v4 = vpop.f32.mrb[115].mxu0  ;;  %v7524_v19 = vld [vmem:[#allocation2 + $0x1] sm:$0xff]  ;;  %v7525_v50 = vld [vmem:[#allocation2 + $0x9] sm:$0xff]  ;;  %7512 = vst.msk [vmem:[#allocation2 + $0x2a] sm:$0x1] %vm7511_vm10, %v17197_v11 }
 0x9e1   : > { %v7514_v26 = vld [vmem:[#allocation2] sm:$0xff]  ;;  %7510 = vst.msk [vmem:[#allocation2 + $0x22] sm:$0xff] %vm1787_vm6, %v17199_v4  ;;  %13348 = vmatprep.mubr.msk.f32.mxu1 %vm1787_vm6, %v7524_v19  ;;  %v7515_v43 = vld [vmem:[#allocation2 + $0x8] sm:$0xff] }
 0x9e2   : > { %8159 = vst.msk [vmem:[#allocation2] sm:$0x3] %vm1785_vm5, %v17833_v51  ;;  %13349 = vmatmul.mubr.msk.f32.vlgmr.msra.gmra.mrb[198].mxu1 %vm1787_vm6, %v7525_v50  ;;  %v7760_v63 = vld [vmem:[#allocation2 + $0x2] sm:$0xff] }
 0x9e3   : > { %14010 = vmatpush3.bf16.msra.mxu1 %v17177_v60  ;;  %v7763_v9 = vld [vmem:[#allocation2 + $0x1a] sm:$0xff]  ;;  %v7889_v54 = vld [vmem:[#allocation2 + $0x3] sm:$0xff] }
 0x9e4   : > { %v7526_v27 = vld [vmem:[#allocation2 + $0x11] sm:$0xff]  ;;  %v7527_v52 = vld [vmem:[#allocation2 + $0x19] sm:$0xff]  ;;  %14012 = vmatprep.subr.bf16.mxu1 %v17201_v33  ;;  %v8018_v46 = vld [vmem:[#allocation2 + $0x4] sm:$0xff] }
 0x9e5   : > { %13351 = vmatprep.mubr.msk.f32.mxu1 %vm1787_vm6, %v7526_v27  ;;  %v7516_v25 = vld [vmem:[#allocation2 + $0x10] sm:$0xff]  ;;  %v7517_v18 = vld [vmem:[#allocation2 + $0x18] sm:$0xff] }
 0x9e6   : > { %13352 = vmatmul.mubr.msk.f32.gmra.mrb[200].mxu1 %vm1787_vm6, %v7527_v52  ;;  %v7762_v49 = vld [vmem:[#allocation2 + $0x12] sm:$0xff] }
 0x9e7   : > { %14014 = vmatpush3.bf16.msra.mxu1 %v17201_v33  ;;  %v7765_v28 = vld [vmem:[#allocation2 + $0x2a] sm:$0x1]  ;;  %v7890_v20 = vld [vmem:[#allocation2 + $0xb] sm:$0xff]  ;;  %v7891_v45 = vld [vmem:[#allocation2 + $0x13] sm:$0xff] }
 0x9e8   : > { %v7528_v35 = vld [vmem:[#allocation2 + $0x21] sm:$0xff]  ;;  %v7529_v10 = vld [vmem:[#allocation2 + $0x29] sm:$0x1]  ;;  %14016 = vmatprep.subr.bf16.mxu1 %v17213_v36  ;;  %v8019_v12 = vld [vmem:[#allocation2 + $0xc] sm:$0xff] }
 0x9e9   : > { %13354 = vmatprep.mubr.msk.f32.mxu1 %vm1787_vm6, %v7528_v35  ;;  %v17221_v24 = vld [vmem:[#allocation2 + $0x24] sm:$0xff]  ;;  %v7892_v2 = vld [vmem:[#allocation2 + $0x1b] sm:$0xff] }
 0x9ea   : > { %13355 = vmatmul.mubr.msk.f32.gmra.mrb[202].mxu1 %vm1787_vm6, %v7529_v10  ;;  %8166 = vst.msk [vmem:[#allocation2 + $0x2b] sm:$0x3] %vm1785_vm5, %v17833_v51  ;;  %v7518_v0 = vld [vmem:[#allocation2 + $0x20] sm:$0xff]  ;;  %v7519_v39 = vld [vmem:[#allocation2 + $0x28] sm:$0x1]  ;;  %v8020_v42 = vld [vmem:[#allocation2 + $0x14] sm:$0xff] }
 0x9eb   : > { %13365 = vmatprep.mubr.msk.f32.mxu1 %vm1787_vm6, %v7514_v26  ;;  %v7764_v31 = vld [vmem:[#allocation2 + $0x22] sm:$0xff] }
 0x9ec   : > { %v7893_v22 = vld [vmem:[#allocation2 + $0x23] sm:$0xff] }
 0x9ed   : > { %v8021_v5 = vld [vmem:[#allocation2 + $0x1c] sm:$0xff] }
 0x9ee   : > { %13366 = vmatmul.mubr.msk.f32.vlgmr.msra.gmra.mrb[198].mxu1 %vm1787_vm6, %v7515_v43 }
 0x9ef   : > { %13368 = vmatprep.mubr.msk.f32.mxu1 %vm1787_vm6, %v7516_v25  ;;  %14018 = vmatpush3.bf16.msra.mxu1 %v17213_v36 }
 0x9f0   : > { %14020 = vmatprep.subr.bf16.mxu1 %v17228_v3 }
 0x9f2   : > { %13369 = vmatmul.mubr.msk.f32.gmra.mrb[200].mxu1 %vm1787_vm6, %v7517_v18 }
 0x9f3   : > { %13371 = vmatprep.mubr.msk.f32.mxu1 %vm1787_vm6, %v7518_v0  ;;  %14022 = vmatpush3.bf16.msra.mxu1 %v17228_v3 }
 0x9f4   : > { %14024 = vmatprep.subr.bf16.mxu1 %v17234_v37 }
 0x9f6   : > { %13372 = vmatmul.mubr.msk.f32.gmra.mrb[202].mxu1 %vm1787_vm6, %v7519_v39 }
 0x9f7   : > { %13382 = vmatprep.mubr.msk.f32.mxu1 %vm1787_vm6, %v7760_v63 }
 0x9fa   : > { %13383 = vmatmul.mubr.msk.f32.vlgmr.msra.gmra.mrb[198].mxu1 %vm1787_vm6, %v7761_v56 }
 0x9fb   : > { %13385 = vmatprep.mubr.msk.f32.mxu1 %vm1787_vm6, %v7762_v49  ;;  %14026 = vmatpush3.bf16.msra.mxu1 %v17234_v37 }
 0x9fc   : > { %14028 = vmatprep.subr.bf16.mxu1 %v17242_v55 }
 0x9fe   : > { %13386 = vmatmul.mubr.msk.f32.gmra.mrb[200].mxu1 %vm1787_vm6, %v7763_v9 }
 0x9ff   : > { %13388 = vmatprep.mubr.msk.f32.mxu1 %vm1787_vm6, %v7764_v31  ;;  %14030 = vmatpush3.bf16.msra.mxu1 %v17242_v55 }
 0xa00   : > { %14032 = vmatprep.subr.bf16.mxu1 %v17248_v44 }
 0xa02   : > { %13389 = vmatmul.mubr.msk.f32.gmra.mrb[202].mxu1 %vm1787_vm6, %v7765_v28 }
 0xa03   : > { %13399 = vmatprep.mubr.msk.f32.mxu1 %vm1787_vm6, %v7889_v54 }
 0xa06   : > { %13400 = vmatmul.mubr.msk.f32.vlgmr.msra.gmra.mrb[198].mxu1 %vm1787_vm6, %v7890_v20 }
 0xa07   : > { %13402 = vmatprep.mubr.msk.f32.mxu1 %vm1787_vm6, %v7891_v45  ;;  %14034 = vmatpush3.bf16.msra.mxu1 %v17248_v44 }
 0xa08   : > { %14036 = vmatprep.subr.bf16.mxu1 %v16895_v48 }
 0xa0a   : > { %13403 = vmatmul.mubr.msk.f32.gmra.mrb[200].mxu1 %vm1787_vm6, %v7892_v2 }
 0xa0b   : > { %13405 = vmatprep.mubr.msk.f32.mxu1 %vm1787_vm6, %v7893_v22  ;;  %14038 = vmatpush3.bf16.msra.mxu1 %v16895_v48  ;;  %v8679_v22 = vld [vmem:[#allocation3 + $0x90] sm:$0xff] }
 0xa0c   : > { %14079 = vmatprep.subr.bf16.mxu1 %v17845_v30 }
 0xa0e   : > { %13406 = vmatmul.mubr.msk.f32.gmra.mrb[202].mxu1 %vm1787_vm6, %v7894_v61 }
 0xa0f   : > { %13416 = vmatprep.mubr.msk.f32.mxu1 %vm1787_vm6, %v8018_v46  ;;  %v8680_v46 = vld [vmem:[#allocation3 + $0x98] sm:$0xff] }
 0xa12   : > { %13417 = vmatmul.mubr.msk.f32.vlgmr.msra.gmra.mrb[198].mxu1 %vm1787_vm6, %v8019_v12 }
 0xa13   : > { %13419 = vmatprep.mubr.msk.f32.mxu1 %vm1787_vm6, %v8020_v42  ;;  %v17322_v42 = vpack.c.bf16 %v8680_v46, %v8679_v22 }
 0xa16   : > { %13420 = vmatmul.mubr.msk.f32.gmra.mrb[200].mxu1 %vm1787_vm6, %v8021_v5 }
 0xa17   : > { %13422 = vmatprep.mubr.msk.f32.mxu1 %vm1787_vm6, %v17221_v24 }
 0xa1a   : > { %13423 = vmatmul.mubr.msk.f32.gmra.mrb[202].mxu1 %vm1787_vm6, %v17223_v17 }
 0xa1b   : > { %13520 = vmatprep.mubr.msk.f32.mxu1 %vm14684_vm3, %v17833_v51 }
 0xae5   : > { %v13418_v48 = vpop.f32.mrb[198].mxu1 }
 0xae6   : > { %v8148_v15 = vadd.f32 %v17120_v13, %v13418_v48  ;;  %v8112_v21 = vpop.f32.mrb[199].mxu1 }
 0xae7   : > { %v8147_v19 = vadd.f32 %v17120_v13, %v8112_v21  ;;  %v8547_v21 = vld [vmem:[#allocation2 + $0x2b] sm:$0x1] }
 0xae8   : > { %v8154_v50 = vmax.f32 %v8148_v15, 0.0 }
 0xae9   : > { %v8153_v26 = vmax.f32 %v8147_v19, 0.0  ;;  %v13421_v47 = vpop.f32.mrb[200].mxu1 }
 0xaea   : > { %8161 = vst.msk [vmem:[#allocation2 + $0xa] sm:$0xff] %vm1787_vm6, %v8154_v50  ;;  %v8150_v34 = vadd.f32 %v17120_v13, %v13421_v47  ;;  %v8122_v27 = vpop.f32.mrb[201].mxu1 }
 0xaeb   : > { %8160 = vst.msk [vmem:[#allocation2 + $0x2] sm:$0xff] %vm1787_vm6, %v8153_v26  ;;  %v8149_v52 = vadd.f32 %v17120_v13, %v8122_v27 }
 0xaec   : > { %v8156_v35 = vmax.f32 %v8150_v34, 0.0  ;;  %v8676_v34 = vld [vmem:[#allocation2 + $0x2c] sm:$0x1] }
 0xaed   : > { %v8155_v10 = vmax.f32 %v8149_v52, 0.0  ;;  %v13424_v62 = vpop.f32.mrb[202].mxu1 }
 0xaee   : > { %8163 = vst.msk [vmem:[#allocation2 + $0x1a] sm:$0xff] %vm1787_vm6, %v8156_v35  ;;  %v8152_v1 = vadd.f32 %v17120_v13, %v13424_v62  ;;  %v8132_v61 = vpop.f32.mrb[203].mxu1 }
 0xaef   : > { %8162 = vst.msk [vmem:[#allocation2 + $0x12] sm:$0xff] %vm1787_vm6, %v8155_v10  ;;  %v8151_v24 = vadd.f32 %v17120_v13, %v8132_v61 }
 0xaf0   : > { %v8158_v17 = vmax.f32 %v8152_v1, 0.0 }
 0xaf1   : > { %v8157_v43 = vmax.f32 %v8151_v24, 0.0  ;;  %v8414_v54 = vld [vmem:[#allocation2 + $0xa] sm:$0xff] }
 0xaf2   : > { %8165 = vst.msk [vmem:[#allocation2 + $0x2a] sm:$0x1] %vm7511_vm10, %v8158_v17  ;;  %v8177_v8 = vld [vmem:[#allocation2 + $0x1] sm:$0xff]  ;;  %v8178_v59 = vld [vmem:[#allocation2 + $0x9] sm:$0xff] }
 0xaf3   : > { %v8167_v25 = vld [vmem:[#allocation2] sm:$0xff]  ;;  %8164 = vst.msk [vmem:[#allocation2 + $0x22] sm:$0xff] %vm1787_vm6, %v8157_v43  ;;  %13433 = vmatprep.mubr.msk.f32.mxu0 %vm1787_vm6, %v8177_v8  ;;  %v8168_v29 = vld [vmem:[#allocation2 + $0x8] sm:$0xff] }
 0xaf4   : > { %8992 = vst.msk [vmem:[#allocation2] sm:$0x3] %vm1785_vm5, %v17833_v51  ;;  %13434 = vmatmul.mubr.msk.f32.vlgmr.msra.gmra.mrb[116].mxu0 %vm1787_vm6, %v8178_v59  ;;  %v8413_v28 = vld [vmem:[#allocation2 + $0x2] sm:$0xff] }
 0xaf5   : > { %14050 = vmatpush3.bf16.msra.mxu0 %v17177_v60  ;;  %v8416_v20 = vld [vmem:[#allocation2 + $0x1a] sm:$0xff]  ;;  %v8542_v12 = vld [vmem:[#allocation2 + $0x3] sm:$0xff] }
 0xaf6   : > { %v8179_v18 = vld [vmem:[#allocation2 + $0x11] sm:$0xff]  ;;  %v8180_v0 = vld [vmem:[#allocation2 + $0x19] sm:$0xff]  ;;  %14052 = vmatprep.subr.bf16.mxu0 %v17201_v33  ;;  %v8671_v19 = vld [vmem:[#allocation2 + $0x4] sm:$0xff] }
 0xaf7   : > { %13436 = vmatprep.mubr.msk.f32.mxu0 %vm1787_vm6, %v8179_v18  ;;  %v8169_v39 = vld [vmem:[#allocation2 + $0x10] sm:$0xff]  ;;  %v8170_v49 = vld [vmem:[#allocation2 + $0x18] sm:$0xff] }
 0xaf8   : > { %13437 = vmatmul.mubr.msk.f32.gmra.mrb[118].mxu0 %vm1787_vm6, %v8180_v0  ;;  %v8415_v32 = vld [vmem:[#allocation2 + $0x12] sm:$0xff] }
 0xaf9   : > { %v8544_v23 = vld [vmem:[#allocation2 + $0x13] sm:$0xff]  ;;  %14054 = vmatpush3.bf16.msra.mxu0 %v17201_v33  ;;  %v8418_v2 = vld [vmem:[#allocation2 + $0x2a] sm:$0x1]  ;;  %v8543_v5 = vld [vmem:[#allocation2 + $0xb] sm:$0xff] }
 0xafa   : > { %v8673_v63 = vld [vmem:[#allocation2 + $0x14] sm:$0xff]  ;;  %v8181_v56 = vld [vmem:[#allocation2 + $0x21] sm:$0xff]  ;;  %v8182_v57 = vld [vmem:[#allocation2 + $0x29] sm:$0x1]  ;;  %14056 = vmatprep.subr.bf16.mxu0 %v17213_v36 }
 0xafb   : > { %8997 = vst.msk [vmem:[#allocation2 + $0x15] sm:$0x3] %vm1785_vm5, %v17833_v51  ;;  %13439 = vmatprep.mubr.msk.f32.mxu0 %vm1787_vm6, %v8181_v56  ;;  %v8171_v9 = vld [vmem:[#allocation2 + $0x20] sm:$0xff]  ;;  %v8172_v31 = vld [vmem:[#allocation2 + $0x28] sm:$0x1]  ;;  %v8672_v50 = vld [vmem:[#allocation2 + $0xc] sm:$0xff] }
 0xafc   : > { %13440 = vmatmul.mubr.msk.f32.gmra.mrb[120].mxu0 %vm1787_vm6, %v8182_v57  ;;  %v8417_v45 = vld [vmem:[#allocation2 + $0x22] sm:$0xff] }
 0xafd   : > { %13450 = vmatprep.mubr.msk.f32.mxu0 %vm1787_vm6, %v8167_v25  ;;  %v8545_v48 = vld [vmem:[#allocation2 + $0x1b] sm:$0xff]  ;;  %v8546_v15 = vld [vmem:[#allocation2 + $0x23] sm:$0xff] }
 0xafe   : > { %v8674_v26 = vld [vmem:[#allocation2 + $0x1c] sm:$0xff]  ;;  %v8675_v47 = vld [vmem:[#allocation2 + $0x24] sm:$0xff] }
 0xb00   : > { %13451 = vmatmul.mubr.msk.f32.vlgmr.msra.gmra.mrb[116].mxu0 %vm1787_vm6, %v8168_v29 }
 0xb01   : > { %13453 = vmatprep.mubr.msk.f32.mxu0 %vm1787_vm6, %v8169_v39  ;;  %14058 = vmatpush3.bf16.msra.mxu0 %v17213_v36 }
 0xb02   : > { %14060 = vmatprep.subr.bf16.mxu0 %v17228_v3 }
 0xb04   : > { %13454 = vmatmul.mubr.msk.f32.gmra.mrb[118].mxu0 %vm1787_vm6, %v8170_v49 }
 0xb05   : > { %13456 = vmatprep.mubr.msk.f32.mxu0 %vm1787_vm6, %v8171_v9  ;;  %14062 = vmatpush3.bf16.msra.mxu0 %v17228_v3 }
 0xb06   : > { %14064 = vmatprep.subr.bf16.mxu0 %v17234_v37 }
 0xb08   : > { %13457 = vmatmul.mubr.msk.f32.gmra.mrb[120].mxu0 %vm1787_vm6, %v8172_v31 }
 0xb09   : > { %13467 = vmatprep.mubr.msk.f32.mxu0 %vm1787_vm6, %v8413_v28 }
 0xb0c   : > { %13468 = vmatmul.mubr.msk.f32.vlgmr.msra.gmra.mrb[116].mxu0 %vm1787_vm6, %v8414_v54 }
 0xb0d   : > { %13470 = vmatprep.mubr.msk.f32.mxu0 %vm1787_vm6, %v8415_v32  ;;  %14066 = vmatpush3.bf16.msra.mxu0 %v17234_v37 }
 0xb0e   : > { %14068 = vmatprep.subr.bf16.mxu0 %v17242_v55 }
 0xb10   : > { %13471 = vmatmul.mubr.msk.f32.gmra.mrb[118].mxu0 %vm1787_vm6, %v8416_v20 }
 0xb11   : > { %13473 = vmatprep.mubr.msk.f32.mxu0 %vm1787_vm6, %v8417_v45  ;;  %14070 = vmatpush3.bf16.msra.mxu0 %v17242_v55 }
 0xb12   : > { %14072 = vmatprep.subr.bf16.mxu0 %v17248_v44 }
 0xb14   : > { %13474 = vmatmul.mubr.msk.f32.gmra.mrb[120].mxu0 %vm1787_vm6, %v8418_v2 }
 0xb15   : > { %13484 = vmatprep.mubr.msk.f32.mxu0 %vm1787_vm6, %v8542_v12 }
 0xb18   : > { %13485 = vmatmul.mubr.msk.f32.vlgmr.msra.gmra.mrb[116].mxu0 %vm1787_vm6, %v8543_v5 }
 0xb19   : > { %13487 = vmatprep.mubr.msk.f32.mxu0 %vm1787_vm6, %v8544_v23  ;;  %14074 = vmatpush3.bf16.msra.mxu0 %v17248_v44 }
 0xb1a   : > { %14076 = vmatprep.subr.bf16.mxu0 %v17322_v42 }
 0xb1c   : > { %13488 = vmatmul.mubr.msk.f32.gmra.mrb[118].mxu0 %vm1787_vm6, %v8545_v48 }
 0xb1d   : > { %13490 = vmatprep.mubr.msk.f32.mxu0 %vm1787_vm6, %v8546_v15  ;;  %14078 = vmatpush3.bf16.msra.mxu0 %v17322_v42 }
 0xb1e   : > { %14085 = vmatprep.subr.bf16.mxu0 %v17845_v30 }
 0xb20   : > { %13491 = vmatmul.mubr.msk.f32.gmra.mrb[120].mxu0 %vm1787_vm6, %v8547_v21 }
 0xb21   : > { %13501 = vmatprep.mubr.msk.f32.mxu0 %vm1787_vm6, %v8671_v19 }
 0xb24   : > { %13502 = vmatmul.mubr.msk.f32.vlgmr.msra.gmra.mrb[116].mxu0 %vm1787_vm6, %v8672_v50 }
 0xb25   : > { %13504 = vmatprep.mubr.msk.f32.mxu0 %vm1787_vm6, %v8673_v63  ;;  %14087 = vmatpush3.bf16.msra.mxu0 %v17019_v7 }
 0xb26   : > { %14088 = vmatprep.subr.bf16.mxu0 %v17845_v30 }
 0xb28   : > { %13505 = vmatmul.mubr.msk.f32.gmra.mrb[118].mxu0 %vm1787_vm6, %v8674_v26 }
 0xb29   : > { %13507 = vmatprep.mubr.msk.f32.mxu0 %vm1787_vm6, %v8675_v47  ;;  %14090 = vmatpush3.bf16.msra.mxu0 %v17021_v58 }
 0xb2a   : > { %14097 = vmatprep.subr.bf16.mxu0 %v17845_v30 }
 0xb2c   : > { %13508 = vmatmul.mubr.msk.f32.gmra.mrb[120].mxu0 %vm1787_vm6, %v8676_v34 }
 0xb2d   : > { %13537 = vmatprep.mubr.msk.f32.mxu0 %vm14684_vm3, %v17833_v51 }
 0xbf7   : > { %v13503_v27 = vpop.f32.mrb[116].mxu0 }
 0xbf8   : > { %v8801_v7 = vadd.f32 %v17120_v13, %v13503_v27  ;;  %v8765_v52 = vpop.f32.mrb[117].mxu0 }
 0xbf9   : > { %v8800_v35 = vadd.f32 %v17120_v13, %v8765_v52 }
 0xbfa   : > { %v8807_v10 = vadd.f32 %v17181_v14, %v8801_v7 }
 0xbfb   : > { %v8806_v62 = vadd.f32 %v8800_v35, %v17185_v40  ;;  %v13506_v1 = vpop.f32.mrb[118].mxu0 }
 0xbfc   : > { %v8813_v61 = vmax.f32 %v8807_v10, 0.0  ;;  %v8803_v58 = vadd.f32 %v17120_v13, %v13506_v1  ;;  %v8775_v24 = vpop.f32.mrb[119].mxu0 }
 0xbfd   : > { %v8812_v17 = vmax.f32 %v8806_v62, 0.0  ;;  %v8802_v43 = vadd.f32 %v17120_v13, %v8775_v24 }
 0xbfe   : > { %v8824_v8 = vrot.slane %v8813_v61, 1  ;;  %v8843_v59 = vrot.slane %v8813_v61, 2  ;;  %v8862_v25 = vrot.slane %v8813_v61, 3  ;;  %v8809_v18 = vadd.f32 %v17189_v6, %v8803_v58 }
 0xbff   : > { %v8823_v0 = vrot.slane %v8812_v17, 1  ;;  %v8842_v39 = vrot.slane %v8812_v17, 2  ;;  %v8861_v32 = vrot.slane %v8812_v17, 3  ;;  %v8808_v14 = vadd.f32 %v8802_v43, %v17193_v38  ;;  %v13509_v23 = vpop.f32.mrb[120].mxu0 }
 0xc00   : > { %v8815_v40 = vmax.f32 %v8809_v18, 0.0  ;;  %v8805_v63 = vadd.f32 %v17120_v13, %v13509_v23  ;;  %v8785_v56 = vpop.f32.mrb[121].mxu0  ;;  %v8881_v57 = vrot.slane %v8812_v17, 4  ;;  %v8882_v29 = vrot.slane %v8813_v61, 4 }
 0xc01   : > { %v8814_v49 = vmax.f32 %v8808_v14, 0.0  ;;  %v8804_v9 = vadd.f32 %v17120_v13, %v8785_v56  ;;  %v8825_v31 = vsel %vm17886_vm11, %v8823_v0, %v8824_v8  ;;  %v8844_v28 = vsel %vm17887_vm2, %v8842_v39, %v8843_v59  ;;  %vm17898_vm11 = vmmov %vm17892_vm8 }
 0xc02   : > { %v8828_v6 = vrot.slane %v8815_v40, 1  ;;  %v8847_v54 = vrot.slane %v8815_v40, 2  ;;  %v8866_v20 = vrot.slane %v8815_v40, 3  ;;  %v8811_v45 = vadd.f32 %v17197_v11, %v8805_v63  ;;  %vm17899_vm2 = vmmov %vm17892_vm8 }
 0xc03   : > { %v8826_v38 = vrot.slane %v8814_v49, 1  ;;  %v8845_v2 = vrot.slane %v8814_v49, 2  ;;  %v8864_v22 = vrot.slane %v8814_v49, 3  ;;  %v8810_v46 = vadd.f32 %v8804_v9, %v17199_v4 }
 0xc04   : > { %v8817_v12 = vmax.f32 %v8811_v45, 0.0  ;;  %v8837_v5 = vmax.f32 %v8812_v17, %v8825_v31  ;;  %v8863_v48 = vsel %vm17888_vm12, %v8861_v32, %v8862_v25  ;;  %v8883_v13 = vsel %vm17889_vm15, %v8881_v57, %v8882_v29  ;;  %vm17900_vm12 = vmmov %vm17894_vm13 }
 0xc05   : > { %v8816_v15 = vmax.f32 %v8810_v46, 0.0  ;;  %v8827_v21 = vsel %vm17890_vm1, %v8824_v8, %v8826_v38  ;;  %v8846_v19 = vsel %vm17891_vm7, %v8843_v59, %v8845_v2  ;;  %v8865_v50 = vsel %vm17892_vm8, %v8862_v25, %v8864_v22  ;;  %vm17901_vm15 = vmmov %vm17900_vm12 }
 0xc06   : > { %v8890_v26 = vrot.slane %v8817_v12, 4  ;;  %v8838_v11 = vmax.f32 %v8813_v61, %v8827_v21  ;;  %v8856_v47 = vmax.f32 %v8837_v5, %v8844_v28  ;;  %v8884_v34 = vrot.slane %v8814_v49, 4  ;;  %vm17902_vm1 = vmmov %vm17900_vm12 }
 0xc07   : > { %v8830_v27 = vrot.slane %v8816_v15, 1  ;;  %v8849_v7 = vrot.slane %v8816_v15, 2  ;;  %v8868_v4 = vrot.slane %v8816_v15, 3  ;;  %v8829_v52 = vsel %vm17893_vm14, %v8826_v38, %v8828_v6  ;;  %vm17903_vm8 = vmmov %vm17899_vm2 }
 0xc08   : > { %v8857_v35 = vmax.f32 %v8838_v11, %v8846_v19  ;;  %v8875_v10 = vmax.f32 %v8856_v47, %v8863_v48  ;;  %v8885_v62 = vsel %vm17894_vm13, %v8882_v29, %v8884_v34  ;;  %v8839_v1 = vmax.f32 %v8814_v49, %v8829_v52  ;;  %v9509_v52 = vld [vmem:[#allocation3 + $0x28] sm:$0xff]  ;;  %vm17905_vm13 = vmmov %vm17896_vm0 }
 0xc09   : > { %v8841_v58 = vmax.f32 %v8816_v15, %v8830_v27  ;;  %v8831_v24 = vsel %vm17895_vm9, %v8828_v6, %v8830_v27  ;;  %v8848_v17 = vsel %vm17896_vm0, %v8845_v2, %v8847_v54  ;;  %v8850_v43 = vsel %vm17897_vm4, %v8847_v54, %v8849_v7  ;;  %vm17907_vm0 = vmmov %vm17902_vm1 }
 0xc0a   : > { %v8876_v61 = vmax.f32 %v8857_v35, %v8865_v50  ;;  %v8897_v8 = vmax.f32 %v8875_v10, %v8883_v13  ;;  %v8840_v59 = vmax.f32 %v8815_v40, %v8831_v24  ;;  %v8858_v25 = vmax.f32 %v8839_v1, %v8848_v17  ;;  %v9511_v10 = vld [vmem:[#allocation3 + $0x38] sm:$0xff] }
 0xc0b   : > { %v8867_v18 = vsel %vm17898_vm11, %v8864_v22, %v8866_v20  ;;  %v8869_v0 = vsel %vm17899_vm2, %v8866_v20, %v8868_v4  ;;  %v8886_v39 = vrot.slane %v8815_v40, 4  ;;  %v8888_v32 = vrot.slane %v8816_v15, 4  ;;  %vm17908_vm11 = vmmov %vm17899_vm2 }
 0xc0c   : > { %v8898_v14 = vmax.f32 %v8876_v61, %v8885_v62  ;;  %v8859_v23 = vmax.f32 %v8840_v59, %v8850_v43  ;;  %v8877_v63 = vmax.f32 %v8858_v25, %v8867_v18  ;;  %v8860_v56 = vmax.f32 %v8841_v58, %v8849_v7 }
 0xc0d   : > { %v8887_v57 = vsel %vm17900_vm12, %v8884_v34, %v8886_v39  ;;  %v8889_v29 = vsel %vm17901_vm15, %v8886_v39, %v8888_v32  ;;  %v8891_v49 = vsel %vm17902_vm1, %v8888_v32, %v8890_v26  ;;  %vm8902_vm7 = vcmask 302080  }
 0xc0e   : > { %v14080_v9 = vpack.c.bf16 %v8898_v14, %v8897_v8  ;;  %v8878_v31 = vmax.f32 %v8859_v23, %v8869_v0  ;;  %v8899_v28 = vmax.f32 %v8877_v63, %v8887_v57  ;;  %v8879_v6 = vmax.f32 %v8860_v56, %v8868_v4  ;;  %v9508_v4 = vld [vmem:[#allocation3 + $0x20] sm:$0xff] }
 0xc0f   : > { %vm8995_vm14 = vcmask 256000   ;;  %v14116_v35 = vpack.c.bf16 %v9509_v52, %v9508_v4  ;;  %vm17910_vm12 = vmmov 1  }
 0xc10   : > { %14081 = vmatpush3.bf16.msra.mxu1 %v14080_v9  ;;  %v8900_v54 = vmax.f32 %v8878_v31, %v8889_v29  ;;  %v8901_v45 = vmax.f32 %v8879_v6, %v8891_v49 }
 0xc11   : > { %14082 = vmatprep.subr.bf16.mxu1 %v17845_v30 }
 0xc12   : > { %v14083_v40 = vpack.c.bf16 %v8900_v54, %v8899_v28 }
 0xc14   : > { %14084 = vmatpush3.bf16.msra.mxu1 %v14083_v40 }
 0xc15   : > { %13518 = vmatprep.subr.mxu1 %v17833_v51 }
 0xc18   : > { %13519 = vmatpush3.msk.msra.mxu1 %vm17903_vm8, %v8901_v45 }
 0xc19   : > { %13521 = vmatmul.mubr.msk.f32.vlgmr.msra.gmra.mrb[204].mxu1 %vm8902_vm7, %v17009_v53  ;;  %14091 = vmatprep.subr.bf16.mxu1 %v17845_v30 }
 0xc1a   : > { %13523 = vmatprep.mubr.msk.f32.mxu1 %vm14684_vm3, %v17833_v51  ;;  %14093 = vmatpush3.bf16.msra.mxu1 %v17177_v60 }
 0xc1b   : > { %14094 = vmatprep.subr.bf16.mxu1 %v17845_v30 }
 0xc1d   : > { %13524 = vmatmul.mubr.msk.f32.gmra.mrb[206].mxu1 %vm8902_vm7, %v17149_v41 }
 0xc1e   : > { %13526 = vmatprep.mubr.msk.f32.mxu1 %vm14684_vm3, %v17833_v51  ;;  %14096 = vmatpush3.bf16.msra.mxu1 %v17201_v33 }
 0xc1f   : > { %14103 = vmatprep.subr.bf16.mxu1 %v17845_v30 }
 0xc21   : > { %13527 = vmatmul.mubr.msk.f32.gmra.mrb[208].mxu1 %vm8902_vm7, %v17154_v16  ;;  %vm10033_vm7 = vcmask 121856  }
 0xc22   : > { %13554 = vmatprep.mubr.msk.f32.mxu1 %vm14684_vm3, %v17833_v51 }
 0xcec   : > { %v17391_v20 = vpop.f32.mrb[204].mxu1 }
 0xced   : > { %8993 = vst.msk [vmem:[#allocation2 + $0x2] sm:$0xff] %vm1787_vm6, %v17391_v20  ;;  %v13522_v38 = vpop.f32.mrb[205].mxu1 }
 0xcf0   : > { %v17395_v2 = vpop.f32.mrb[206].mxu1 }
 0xcf1   : > { %8994 = vst.msk [vmem:[#allocation2 + $0xa] sm:$0xff] %vm1787_vm6, %v17395_v2  ;;  %v13525_v41 = vpop.f32.mrb[207].mxu1 }
 0xcf4   : > { %v17399_v22 = vpop.f32.mrb[208].mxu1  ;;  %v9005_v46 = vld [vmem:[#allocation2 + $0x1] sm:$0xff] }
 0xcf5   : > { %v8998_v16 = vld [vmem:[#allocation2] sm:$0xff]  ;;  %13538 = vmatmul.mubr.msk.f32.vlgmr.msra.gmra.mrb[122].mxu0 %vm1787_vm6, %v9005_v46  ;;  %v13528_v12 = vpop.f32.mrb[209].mxu1  ;;  %8996 = vst.msk [vmem:[#allocation2 + $0x12] sm:$0x7] %vm8995_vm14, %v17399_v22 }
 0xcf6   : > { %13555 = vmatmul.mubr.msk.f32.vlgmr.msra.gmra.mrb[210].mxu1 %vm1787_vm6, %v8998_v16  ;;  %9493 = vst.msk [vmem:[#allocation2] sm:$0x3] %vm1785_vm5, %v17833_v51  ;;  %13540 = vmatprep.mubr.msk.f32.mxu0 %vm14684_vm3, %v17833_v51  ;;  %v9190_v50 = vld [vmem:[#allocation2 + $0x2] sm:$0xff] }
 0xcf7   : > { %13557 = vmatprep.mubr.msk.f32.mxu1 %vm14684_vm3, %v17833_v51  ;;  %14099 = vmatpush3.bf16.msra.mxu0 %v17213_v36 }
 0xcf8   : > { %14105 = vmatpush3.bf16.msra.mxu1 %v17234_v37  ;;  %v9006_v5 = vld [vmem:[#allocation2 + $0x9] sm:$0xff]  ;;  %14100 = vmatprep.subr.bf16.mxu0 %v17845_v30 }
 0xcf9   : > { %v8999_v48 = vld [vmem:[#allocation2 + $0x8] sm:$0xff]  ;;  %14106 = vmatprep.subr.bf16.mxu1 %v17845_v30  ;;  %13541 = vmatmul.mubr.msk.f32.gmra.mrb[124].mxu0 %vm1787_vm6, %v9006_v5 }
 0xcfa   : > { %13558 = vmatmul.mubr.msk.f32.gmra.mrb[212].mxu1 %vm1787_vm6, %v8999_v48  ;;  %13543 = vmatprep.mubr.msk.f32.mxu0 %vm14684_vm3, %v17833_v51  ;;  %v9289_v26 = vld [vmem:[#allocation2 + $0x3] sm:$0xff] }
 0xcfb   : > { %13560 = vmatprep.mubr.msk.f32.mxu1 %vm14684_vm3, %v17833_v51  ;;  %14102 = vmatpush3.bf16.msra.mxu0 %v17228_v3  ;;  %v9191_v11 = vld [vmem:[#allocation2 + $0xa] sm:$0xff] }
 0xcfc   : > { %14108 = vmatpush3.bf16.msra.mxu1 %v17242_v55  ;;  %v9007_v13 = vld [vmem:[#allocation2 + $0x11] sm:$0x7]  ;;  %14109 = vmatprep.subr.bf16.mxu0 %v17845_v30  ;;  %v9390_v19 = vld [vmem:[#allocation2 + $0x14] sm:$0x7]  ;;  %v9388_v27 = vld [vmem:[#allocation2 + $0x4] sm:$0xff] }
 0xcfd   : > { %v9000_v15 = vld [vmem:[#allocation2 + $0x10] sm:$0x7]  ;;  %14115 = vmatprep.subr.bf16.mxu1 %v17845_v30  ;;  %13544 = vmatmul.mubr.msk.f32.gmra.mrb[126].mxu0 %vm1787_vm6, %v9007_v13  ;;  %v9291_v21 = vld [vmem:[#allocation2 + $0x13] sm:$0x7] }
 0xcfe   : > { %13561 = vmatmul.mubr.msk.f32.gmra.mrb[214].mxu1 %vm1787_vm6, %v9000_v15  ;;  %13571 = vmatprep.mubr.msk.f32.mxu0 %vm14684_vm3, %v17833_v51  ;;  %9497 = vst.msk [vmem:[#allocation2 + $0x15] sm:$0x3] %vm1785_vm5, %v17833_v51  ;;  %v9290_v47 = vld [vmem:[#allocation2 + $0xb] sm:$0xff]  ;;  %v17473_v15 = vld [vmem:[%s17776_s4] ss:$0 sm:$0xff]  ;;  %vm17904_vm5 = vmmov %vm17895_vm9 }
 0xcff   : > { %13588 = vmatprep.mubr.msk.f32.mxu1 %vm14684_vm3, %v17833_v51  ;;  %v9192_v34 = vld [vmem:[#allocation2 + $0x12] sm:$0x7]  ;;  %vm17906_vm9 = vmmov %vm17899_vm2 }
 0xd00   : > { %v9389_v7 = vld [vmem:[#allocation2 + $0xc] sm:$0xff]  ;;  %vm17909_vm2 = vmmov %vm17907_vm0 }
 0xd01   : > { %13572 = vmatmul.mubr.msk.f32.vlgmr.msra.gmra.mrb[128].mxu0 %vm1787_vm6, %v9190_v50  ;;  %vm17911_vm15 = vmmov %vm17904_vm5 }
 0xd02   : > { %13589 = vmatmul.mubr.msk.f32.vlgmr.msra.gmra.mrb[216].mxu1 %vm1787_vm6, %v9289_v26  ;;  %13574 = vmatprep.mubr.msk.f32.mxu0 %vm14684_vm3, %v17833_v51  ;;  %vm14147_vm1 = vmpackc.low %vm17911_vm15, %vm17910_vm12 }
 0xd03   : > { %13591 = vmatprep.mubr.msk.f32.mxu1 %vm14684_vm3, %v17833_v51  ;;  %14111 = vmatpush3.bf16.msra.mxu0 %v17248_v44 }
 0xd04   : > { %14112 = vmatprep.subr.bf16.mxu0 %v17845_v30  ;;  %14117 = vmatpush3.bf16.msra.mxu1 %v14116_v35 }
 0xd05   : > { %13575 = vmatmul.mubr.msk.f32.gmra.mrb[130].mxu0 %vm1787_vm6, %v9191_v11  ;;  %14118 = vmatprep.subr.bf16.mxu1 %v17845_v30 }
 0xd06   : > { %13592 = vmatmul.mubr.msk.f32.gmra.mrb[218].mxu1 %vm1787_vm6, %v9290_v47  ;;  %13577 = vmatprep.mubr.msk.f32.mxu0 %vm14684_vm3, %v17833_v51 }
 0xd07   : > { %13594 = vmatprep.mubr.msk.f32.mxu1 %vm14684_vm3, %v17833_v51  ;;  %14114 = vmatpush3.bf16.msra.mxu0 %v17322_v42 }
 0xd08   : > { %14121 = vmatprep.subr.bf16.mxu0 %v17845_v30 }
 0xd09   : > { %13578 = vmatmul.mubr.msk.f32.gmra.mrb[132].mxu0 %vm1787_vm6, %v9192_v34 }
 0xd0a   : > { %13595 = vmatmul.mubr.msk.f32.gmra.mrb[220].mxu1 %vm1787_vm6, %v9291_v21  ;;  %13605 = vmatprep.mubr.msk.f32.mxu0 %vm14684_vm3, %v17833_v51 }
 0xd0b   : > { %13622 = vmatprep.mubr.msk.f32.mxu1 %vm14684_vm3, %v17833_v51 }
 0xd0d   : > { %13606 = vmatmul.mubr.msk.f32.vlgmr.msra.gmra.mrb[134].mxu0 %vm1787_vm6, %v9388_v27 }
 0xd0e   : > { %13608 = vmatprep.mubr.msk.f32.mxu0 %vm14684_vm3, %v17833_v51  ;;  %14123 = vmatpush3.bf16.msra.mxu0 %v17177_v60  ;;  %v9510_v60 = vld [vmem:[#allocation3 + $0x30] sm:$0xff] }
 0xd0f   : > { %14124 = vmatprep.subr.bf16.mxu0 %v17845_v30  ;;  %v14119_v62 = vpack.c.bf16 %v9511_v10, %v9510_v60 }
 0xd11   : > { %13609 = vmatmul.mubr.msk.f32.gmra.mrb[136].mxu0 %vm1787_vm6, %v9389_v7  ;;  %14120 = vmatpush3.bf16.msra.mxu1 %v14119_v62 }
 0xd12   : > { %13611 = vmatprep.mubr.msk.f32.mxu0 %vm14684_vm3, %v17833_v51  ;;  %14126 = vmatpush3.bf16.msra.mxu0 %v17201_v33 }
 0xd13   : > { %14133 = vmatprep.subr.bf16.mxu0 %v17845_v30  ;;  %14127 = vmatprep.subr.bf16.mxu1 %v17845_v30 }
 0xd15   : > { %13612 = vmatmul.mubr.msk.f32.gmra.mrb[138].mxu0 %vm1787_vm6, %v9390_v19 }
 0xd16   : > { %13639 = vmatprep.mubr.msk.f32.mxu0 %vm14684_vm3, %v17833_v51 }
 0xdc8   : > { %v9087_v33 = vpop.f32.mrb[122].mxu0 }
 0xdc9   : > { %v9176_v1 = vpop.f32.mrb[210].mxu1  ;;  %v13539_v24 = vpop.f32.mrb[123].mxu0 }
 0xdca   : > { %v9177_v58 = vadd.f32 %v9176_v1, %v9087_v33  ;;  %v13556_v17 = vpop.f32.mrb[211].mxu1 }
 0xdcc   : > { %v9092_v43 = vpop.f32.mrb[124].mxu0 }
 0xdcd   : > { %v9181_v61 = vpop.f32.mrb[212].mxu1  ;;  %v13542_v59 = vpop.f32.mrb[125].mxu0 }
 0xdce   : > { %v9182_v8 = vadd.f32 %v9181_v61, %v9092_v43  ;;  %v13559_v25 = vpop.f32.mrb[213].mxu1  ;;  %v11506_v61 = vld [vmem:[%s17777_s5 + $0x20] sm:$0xff] }
 0xdcf   : > { %v11508_v25 = vld [vmem:[%s17777_s5 + $0x30] sm:$0xff] }
 0xdd0   : > { %v9097_v18 = vpop.f32.mrb[126].mxu0 }
 0xdd1   : > { %v9186_v0 = vpop.f32.mrb[214].mxu1  ;;  %v13545_v32 = vpop.f32.mrb[127].mxu0 }
 0xdd2   : > { %v9187_v39 = vadd.f32 %v9186_v0, %v9097_v18  ;;  %v13562_v14 = vpop.f32.mrb[215].mxu1  ;;  %v11509_v18 = vld [vmem:[%s17777_s5 + $0x38] sm:$0xff] }
 0xdd3   : > { %v14153_v0 = vpack.c.bf16 %v11509_v18, %v11508_v25 }
 0xdd4   : > { %v9272_v23 = vpop.f32.mrb[128].mxu0 }
 0xdd5   : > { %v9371_v63 = vpop.f32.mrb[216].mxu1  ;;  %v9286_v56 = vadd.f32 %v9272_v23, %v9177_v58  ;;  %v13573_v57 = vpop.f32.mrb[129].mxu0 }
 0xdd6   : > { %v13590_v29 = vpop.f32.mrb[217].mxu1 }
 0xdd7   : > { %v9385_v49 = vadd.f32 %v9371_v63, %v9286_v56 }
 0xdd8   : > { %v9277_v9 = vpop.f32.mrb[130].mxu0 }
 0xdd9   : > { %v9376_v31 = vpop.f32.mrb[218].mxu1  ;;  %v9287_v28 = vadd.f32 %v9277_v9, %v9182_v8  ;;  %v13576_v6 = vpop.f32.mrb[131].mxu0  ;;  %v11507_v8 = vld [vmem:[%s17777_s5 + $0x28] sm:$0xff] }
 0xdda   : > { %v13593_v54 = vpop.f32.mrb[219].mxu1  ;;  %v14150_v59 = vpack.c.bf16 %v11507_v8, %v11506_v61 }
 0xddb   : > { %v9386_v45 = vadd.f32 %v9376_v31, %v9287_v28 }
 0xddc   : > { %v9282_v40 = vpop.f32.mrb[132].mxu0 }
 0xddd   : > { %v9381_v38 = vpop.f32.mrb[220].mxu1  ;;  %v9288_v41 = vadd.f32 %v9282_v40, %v9187_v39  ;;  %v13579_v46 = vpop.f32.mrb[133].mxu0 }
 0xdde   : > { %v13596_v16 = vpop.f32.mrb[221].mxu1 }
 0xddf   : > { %v9387_v12 = vadd.f32 %v9381_v38, %v9288_v41 }
 0xde0   : > { %v9470_v5 = vpop.f32.mrb[134].mxu0 }
 0xde1   : > { %v9484_v48 = vadd.f32 %v9470_v5, %v9385_v49  ;;  %v13607_v13 = vpop.f32.mrb[135].mxu0 }
 0xde3   : > { %v9487_v21 = vadd.f32 %v17473_v15, %v9484_v48 }
 0xde4   : > { %v9475_v19 = vpop.f32.mrb[136].mxu0 }
 0xde5   : > { %v9490_v50 = vmax.f32 %v9487_v21, 0.0  ;;  %v9485_v26 = vadd.f32 %v9475_v19, %v9386_v45  ;;  %v13610_v11 = vpop.f32.mrb[137].mxu0 }
 0xde7   : > { %9494 = vst.msk [vmem:[#allocation2 + $0x2] sm:$0xff] %vm1787_vm6, %v9490_v50  ;;  %v9488_v47 = vadd.f32 %v17473_v15, %v9485_v26 }
 0xde8   : > { %v9480_v34 = vpop.f32.mrb[138].mxu0 }
 0xde9   : > { %v9491_v27 = vmax.f32 %v9488_v47, 0.0  ;;  %v9486_v7 = vadd.f32 %v9480_v34, %v9387_v12  ;;  %v13613_v4 = vpop.f32.mrb[139].mxu0 }
 0xdeb   : > { %9495 = vst.msk [vmem:[#allocation2 + $0xa] sm:$0xff] %vm1787_vm6, %v9491_v27  ;;  %v9489_v52 = vadd.f32 %v17473_v15, %v9486_v7 }
 0xded   : > { %v9492_v60 = vmax.f32 %v9489_v52, 0.0 }
 0xdee   : > { %v9505_v35 = vld [vmem:[#allocation2 + $0x1] sm:$0xff] }
 0xdef   : > { %v9498_v10 = vld [vmem:[#allocation2] sm:$0xff]  ;;  %9496 = vst.msk [vmem:[#allocation2 + $0x12] sm:$0x7] %vm8995_vm14, %v9492_v60  ;;  %13623 = vmatmul.mubr.msk.f32.vlgmr.msra.gmra.mrb[222].mxu1 %vm1787_vm6, %v9505_v35 }
 0xdf0   : > { %13640 = vmatmul.mubr.msk.f32.vlgmr.msra.gmra.mrb[140].mxu0 %vm1787_vm6, %v9498_v10  ;;  %13625 = vmatprep.mubr.msk.f32.mxu1 %vm14684_vm3, %v17833_v51  ;;  %v9690_v1 = vld [vmem:[#allocation2 + $0x2] sm:$0xff] }
 0xdf1   : > { %13642 = vmatprep.mubr.msk.f32.mxu0 %vm14684_vm3, %v17833_v51  ;;  %14129 = vmatpush3.bf16.msra.mxu1 %v17213_v36 }
 0xdf2   : > { %14135 = vmatpush3.bf16.msra.mxu0 %v17234_v37  ;;  %v9506_v62 = vld [vmem:[#allocation2 + $0x9] sm:$0xff]  ;;  %14130 = vmatprep.subr.bf16.mxu1 %v17845_v30 }
 0xdf3   : > { %v9499_v33 = vld [vmem:[#allocation2 + $0x8] sm:$0xff]  ;;  %14136 = vmatprep.subr.bf16.mxu0 %v17845_v30  ;;  %13626 = vmatmul.mubr.msk.f32.gmra.mrb[224].mxu1 %vm1787_vm6, %v9506_v62 }
 0xdf4   : > { %13643 = vmatmul.mubr.msk.f32.gmra.mrb[142].mxu0 %vm1787_vm6, %v9499_v33  ;;  %13628 = vmatprep.mubr.msk.f32.mxu1 %vm14684_vm3, %v17833_v51  ;;  %v9888_v17 = vld [vmem:[#allocation2 + $0x4] sm:$0xff] }
 0xdf5   : > { %13645 = vmatprep.mubr.msk.f32.mxu0 %vm14684_vm3, %v17833_v51  ;;  %14132 = vmatpush3.bf16.msra.mxu1 %v17228_v3  ;;  %v9789_v3 = vld [vmem:[#allocation2 + $0x3] sm:$0xff] }
 0xdf6   : > { %14138 = vmatpush3.bf16.msra.mxu0 %v17242_v55  ;;  %v9507_v36 = vld [vmem:[#allocation2 + $0x11] sm:$0x7]  ;;  %14203 = vmatprep.subr.bf16.mxu1 %v17845_v30 }
 0xdf7   : > { %v9500_v37 = vld [vmem:[#allocation2 + $0x10] sm:$0x7]  ;;  %14139 = vmatprep.subr.bf16.mxu0 %v17845_v30  ;;  %13629 = vmatmul.mubr.msk.f32.gmra.mrb[226].mxu1 %vm1787_vm6, %v9507_v36  ;;  %v9791_v24 = vld [vmem:[#allocation2 + $0x13] sm:$0x7] }
 0xdf8   : > { %13646 = vmatmul.mubr.msk.f32.gmra.mrb[144].mxu0 %vm1787_vm6, %v9500_v37  ;;  %13656 = vmatprep.mubr.msk.f32.mxu1 %vm14684_vm3, %v17833_v51  ;;  %v9691_v55 = vld [vmem:[#allocation2 + $0xa] sm:$0xff] }
 0xdf9   : > { %13673 = vmatprep.mubr.msk.f32.mxu0 %vm14684_vm3, %v17833_v51  ;;  %v9790_v58 = vld [vmem:[#allocation2 + $0xb] sm:$0xff] }
 0xdfa   : > { %v9889_v43 = vld [vmem:[#allocation2 + $0xc] sm:$0xff] }
 0xdfb   : > { %13657 = vmatmul.mubr.msk.f32.vlgmr.msra.gmra.mrb[228].mxu1 %vm1787_vm6, %v9690_v1 }
 0xdfc   : > { %13674 = vmatmul.mubr.msk.f32.vlgmr.msra.gmra.mrb[146].mxu0 %vm1787_vm6, %v9789_v3  ;;  %13659 = vmatprep.mubr.msk.f32.mxu1 %vm14684_vm3, %v17833_v51 }
 0xdfd   : > { %13676 = vmatprep.mubr.msk.f32.mxu0 %vm14684_vm3, %v17833_v51  ;;  %14141 = vmatpush3.bf16.msra.mxu0 %v17248_v44 }
 0xdfe   : > { %14205 = vmatpush3.bf16.msra.mxu1 %v17248_v44  ;;  %14142 = vmatprep.subr.bf16.mxu0 %v17845_v30  ;;  %v9692_v44 = vld [vmem:[#allocation2 + $0x12] sm:$0x7] }
 0xdff   : > { %14204 = vmatprep.subr.bf16.mxu1 %v17845_v30  ;;  %13660 = vmatmul.mubr.msk.f32.gmra.mrb[230].mxu1 %vm1787_vm6, %v9691_v55 }
 0xe00   : > { %13677 = vmatmul.mubr.msk.f32.gmra.mrb[148].mxu0 %vm1787_vm6, %v9790_v58  ;;  %13662 = vmatprep.mubr.msk.f32.mxu1 %vm14684_vm3, %v17833_v51 }
 0xe01   : > { %13679 = vmatprep.mubr.msk.f32.mxu0 %vm14684_vm3, %v17833_v51  ;;  %14144 = vmatpush3.bf16.msra.mxu0 %v17322_v42 }
 0xe02   : > { %14206 = vmatpush3.bf16.msra.mxu1 %v17322_v42  ;;  %14145 = vmatprep.subr.bf16.mxu0 %v17845_v30  ;;  %v9890_v42 = vld [vmem:[#allocation2 + $0x14] sm:$0x7] }
 0xe03   : > { %14149 = vmatprep.subr.bf16.mxu1 %v17845_v30  ;;  %13663 = vmatmul.mubr.msk.f32.gmra.mrb[232].mxu1 %vm1787_vm6, %v9692_v44 }
 0xe04   : > { %13680 = vmatmul.mubr.msk.f32.gmra.mrb[150].mxu0 %vm1787_vm6, %v9791_v24  ;;  %13693 = vmatprep.mubr.msk.f32.mxu1 %vm14684_vm3, %v17833_v51 }
 0xe05   : > { %13690 = vmatprep.mubr.msk.f32.mxu0 %vm14684_vm3, %v17833_v51 }
 0xe07   : > { %13694 = vmatmul.mubr.msk.f32.vlgmr.msra.gmra.mrb[234].mxu1 %vm1787_vm6, %v9889_v43 }
 0xe08   : > { %13691 = vmatmul.mubr.msk.f32.vlgmr.msra.gmra.mrb[152].mxu0 %vm1787_vm6, %v9888_v17  ;;  %13696 = vmatprep.mubr.msk.f32.mxu1 %vm14684_vm3, %v17833_v51 }
 0xe09   : > { %13703 = vmatprep.mubr.msk.f32.mxu0 %vm14684_vm3, %v17833_v51  ;;  %14151 = vmatpush3.bf16.msra.mxu1 %v14150_v59 }
 0xe0a   : > { %14152 = vmatprep.subr.bf16.mxu1 %v17845_v30 }
 0xe0b   : > { %13697 = vmatmul.mubr.msk.f32.gmra.mrb[236].mxu1 %vm1787_vm6, %v9890_v42 }
 0xe0c   : > { %13714 = vmatprep.mubr.msk.f32.mxu1 %vm14684_vm3, %v17833_v51 }
 0xe0d   : > { %14154 = vmatpush3.bf16.msra.mxu1 %v14153_v0 }
 0xe0e   : > { %14161 = vmatprep.subr.bf16.mxu1 %v17845_v30 }
 0xec2   : > { %v9587_v39 = vpop.f32.mrb[222].mxu1 }
 0xec3   : > { %v9676_v32 = vpop.f32.mrb[140].mxu0  ;;  %v13624_v23 = vpop.f32.mrb[223].mxu1 }
 0xec4   : > { %v9677_v14 = vadd.f32 %v9676_v32, %v9587_v39  ;;  %v13641_v63 = vpop.f32.mrb[141].mxu0 }
 0xec6   : > { %v9592_v56 = vpop.f32.mrb[224].mxu1 }
 0xec7   : > { %v9681_v57 = vpop.f32.mrb[142].mxu0  ;;  %v13627_v49 = vpop.f32.mrb[225].mxu1 }
 0xec8   : > { %v9682_v29 = vadd.f32 %v9681_v57, %v9592_v56  ;;  %v13644_v9 = vpop.f32.mrb[143].mxu0 }
 0xeca   : > { %v9597_v31 = vpop.f32.mrb[226].mxu1 }
 0xecb   : > { %v9686_v28 = vpop.f32.mrb[144].mxu0  ;;  %v13630_v54 = vpop.f32.mrb[227].mxu1 }
 0xecc   : > { %v9687_v6 = vadd.f32 %v9686_v28, %v9597_v31  ;;  %v13647_v45 = vpop.f32.mrb[145].mxu0 }
 0xece   : > { %v9772_v40 = vpop.f32.mrb[228].mxu1 }
 0xecf   : > { %v9871_v38 = vpop.f32.mrb[146].mxu0  ;;  %v9786_v41 = vadd.f32 %v9772_v40, %v9677_v14  ;;  %v13658_v46 = vpop.f32.mrb[229].mxu1 }
 0xed0   : > { %v13675_v16 = vpop.f32.mrb[147].mxu0 }
 0xed1   : > { %v9885_v12 = vadd.f32 %v9871_v38, %v9786_v41  ;;  %v10109_v38 = vld [vmem:[%s17777_s5] sm:$0xff]  ;;  %v10110_v41 = vld [vmem:[%s17777_s5 + $0x8] sm:$0xff] }
 0xed2   : > { %v9777_v5 = vpop.f32.mrb[230].mxu1  ;;  %v14156_v16 = vpack.c.bf16 %v10110_v41, %v10109_v38 }
 0xed3   : > { %v9876_v48 = vpop.f32.mrb[148].mxu0  ;;  %v9787_v13 = vadd.f32 %v9777_v5, %v9682_v29  ;;  %v13661_v21 = vpop.f32.mrb[231].mxu1  ;;  %v10112_v5 = vld [vmem:[%s17777_s5 + $0x18] sm:$0xff] }
 0xed4   : > { %v13678_v19 = vpop.f32.mrb[149].mxu0  ;;  %v11518_v21 = vld [vmem:[%s17777_s5 + $0x68] sm:$0xff] }
 0xed5   : > { %v9886_v50 = vadd.f32 %v9876_v48, %v9787_v13  ;;  %v11517_v13 = vld [vmem:[%s17777_s5 + $0x60] sm:$0xff]  ;;  %v11513_v19 = vld [vmem:[%s17777_s5 + $0x48] sm:$0xff] }
 0xed6   : > { %v9782_v26 = vpop.f32.mrb[232].mxu1 }
 0xed7   : > { %v9881_v11 = vpop.f32.mrb[150].mxu0  ;;  %v9788_v47 = vadd.f32 %v9782_v26, %v9687_v6  ;;  %v13664_v34 = vpop.f32.mrb[233].mxu1  ;;  %v11519_v26 = vld [vmem:[%s17777_s5 + $0x70] sm:$0xff] }
 0xed8   : > { %v13681_v27 = vpop.f32.mrb[151].mxu0 }
 0xed9   : > { %v9887_v7 = vadd.f32 %v9881_v11, %v9788_v47  ;;  %v11520_v11 = vld [vmem:[%s17777_s5 + $0x78] sm:$0xff] }
 0xeda   : > { %v9975_v52 = vpop.f32.mrb[234].mxu1 }
 0xedb   : > { %v9970_v4 = vpop.f32.mrb[152].mxu0  ;;  %v9985_v35 = vadd.f32 %v9975_v52, %v9886_v50  ;;  %v13695_v62 = vpop.f32.mrb[235].mxu1  ;;  %v14168_v50 = vpack.c.bf16 %v11518_v21, %v11517_v13 }
 0xedc   : > { %v9984_v60 = vadd.f32 %v9970_v4, %v9885_v12  ;;  %v13692_v10 = vpop.f32.mrb[153].mxu0  ;;  %v10111_v12 = vld [vmem:[%s17777_s5 + $0x10] sm:$0xff]  ;;  %v11515_v4 = vld [vmem:[%s17777_s5 + $0x58] sm:$0xff] }
 0xedd   : > { %v9988_v36 = vadd.f32 %v17473_v15, %v9985_v35  ;;  %v14159_v48 = vpack.c.bf16 %v10112_v5, %v10111_v12  ;;  %v11527_v35 = vld [vmem:[%s17777_s5 + $0xa0] sm:$0xff]  ;;  %v11528_v10 = vld [vmem:[%s17777_s5 + $0xa8] sm:$0xff] }
 0xede   : > { %v9987_v33 = vadd.f32 %v17473_v15, %v9984_v60  ;;  %v9980_v37 = vpop.f32.mrb[236].mxu1  ;;  %v14171_v60 = vpack.c.bf16 %v11520_v11, %v11519_v26 }
 0xedf   : > { %v9991_v3 = vadd.f32 %v9988_v36, %v17395_v2  ;;  %v9986_v55 = vadd.f32 %v9980_v37, %v9887_v7  ;;  %v13698_v58 = vpop.f32.mrb[237].mxu1  ;;  %v11514_v7 = vld [vmem:[%s17777_s5 + $0x50] sm:$0xff]  ;;  %v11523_v36 = vld [vmem:[%s17777_s5 + $0x88] sm:$0xff]  ;;  %v14180_v37 = vpack.c.bf16 %v11528_v10, %v11527_v35 }
 0xee0   : > { %v9990_v1 = vadd.f32 %v9987_v33, %v17391_v20  ;;  %v14165_v62 = vpack.c.bf16 %v11515_v4, %v11514_v7  ;;  %v11522_v33 = vld [vmem:[%s17777_s5 + $0x80] sm:$0xff] }
 0xee1   : > { %v9994_v24 = vmax.f32 %v9991_v3, 0.0  ;;  %v9989_v17 = vadd.f32 %v17473_v15, %v9986_v55  ;;  %v11529_v3 = vld [vmem:[%s17777_s5 + $0xb0] sm:$0xff]  ;;  %v11530_v55 = vld [vmem:[%s17777_s5 + $0xb8] sm:$0xff]  ;;  %v14174_v58 = vpack.c.bf16 %v11523_v36, %v11522_v33 }
 0xee2   : > { %v9993_v44 = vmax.f32 %v9990_v1, 0.0 }
 0xee3   : > { %v9999_v59 = vrot.slane %v9994_v24, 1  ;;  %v10007_v25 = vrot.slane %v9994_v24, 2  ;;  %v10016_v18 = vrot.slane %v9994_v24, 3  ;;  %v10025_v0 = vrot.slane %v9994_v24, 4 }
 0xee4   : > { %v9998_v43 = vrot.slane %v9993_v44, 1  ;;  %v10006_v42 = vrot.slane %v9993_v44, 2  ;;  %v10015_v61 = vrot.slane %v9993_v44, 3  ;;  %v10024_v8 = vrot.slane %v9993_v44, 4 }
 0xee5   : > { %v9992_v39 = vadd.f32 %v9989_v17, %v17399_v22  ;;  %v10004_v49 = vmax.f32 %v9994_v24, %v9999_v59  ;;  %v11524_v24 = vld [vmem:[%s17777_s5 + $0x90] sm:$0xff]  ;;  %v11525_v17 = vld [vmem:[%s17777_s5 + $0x98] sm:$0xff] }
 0xee6   : > { %v10000_v20 = vsel %vm17904_vm5, %v9998_v43, %v9999_v59  ;;  %v10008_v2 = vsel %vm17905_vm13, %v10006_v42, %v10007_v25  ;;  %v10017_v32 = vsel %vm17906_vm9, %v10015_v61, %v10016_v18  ;;  %v10026_v15 = vsel %vm17907_vm0, %v10024_v8, %v10025_v0  ;;  %v11537_v42 = vld [vmem:[%s17777_s5 + $0xe0] sm:$0xff]  ;;  %v11538_v61 = vld [vmem:[%s17777_s5 + $0xe8] sm:$0xff] }
 0xee7   : > { %v9995_v14 = vmax.f32 %v9992_v39, 0.0  ;;  %v10003_v23 = vmax.f32 %v9993_v44, %v10000_v20  ;;  %v14183_v43 = vpack.c.bf16 %v11530_v55, %v11529_v3  ;;  %v14177_v8 = vpack.c.bf16 %v11525_v17, %v11524_v24  ;;  %v11532_v59 = vld [vmem:[%s17777_s5 + $0xc0] sm:$0xff]  ;;  %v11539_v39 = vld [vmem:[%s17777_s5 + $0xf0] sm:$0xff]  ;;  %v11540_v20 = vld [vmem:[%s17777_s5 + $0xf8] sm:$0xff] }
 0xee9   : > { %v10009_v63 = vrot.slane %v9995_v14, 2  ;;  %v10018_v56 = vrot.slane %v9995_v14, 3  ;;  %v10027_v57 = vrot.slane %v9995_v14, 4  ;;  %v10013_v29 = vmax.f32 %v10003_v23, %v10008_v2  ;;  %v11534_v14 = vld [vmem:[%s17777_s5 + $0xd0] sm:$0xff]  ;;  %v11535_v23 = vld [vmem:[%s17777_s5 + $0xd8] sm:$0xff] }
 0xeeb   : > { %v10010_v9 = vsel %vm17897_vm4, %v10007_v25, %v10009_v63  ;;  %v10019_v31 = vsel %vm17908_vm11, %v10016_v18, %v10018_v56  ;;  %v10028_v22 = vsel %vm17909_vm2, %v10025_v0, %v10027_v57  ;;  %v10022_v28 = vmax.f32 %v10013_v29, %v10017_v32  ;;  %v11533_v25 = vld [vmem:[%s17777_s5 + $0xc8] sm:$0xff]  ;;  %v10741_v29 = vld [vmem:[%s17779_s7] sm:$0xff] }
 0xeec   : > { %v10014_v6 = vmax.f32 %v10004_v49, %v10010_v9  ;;  %v14192_v18 = vpack.c.bf16 %v11538_v61, %v11537_v42  ;;  %v14186_v2 = vpack.c.bf16 %v11533_v25, %v11532_v59  ;;  %v14189_v63 = vpack.c.bf16 %v11535_v23, %v11534_v14  ;;  %v10742_v49 = vld [vmem:[%s17779_s7 + $0x8] sm:$0xff]  ;;  %v10743_v9 = vld [vmem:[%s17779_s7 + $0x10] sm:$0xff] }
 0xeed   : > { %v10031_v54 = vmax.f32 %v10022_v28, %v10026_v15  ;;  %v14195_v15 = vpack.c.bf16 %v11540_v20, %v11539_v39 }
 0xeee   : > { %v10023_v45 = vmax.f32 %v10014_v6, %v10019_v31  ;;  %v14198_v31 = vpack.c.bf16 %v10742_v49, %v10741_v29 }
 0xef0   : > { %v10032_v40 = vmax.f32 %v10023_v45, %v10028_v22  ;;  %v10744_v22 = vld [vmem:[%s17779_s7 + $0x18] sm:$0xff] }
 0xef1   : > { %v14201_v28 = vpack.c.bf16 %v10744_v22, %v10743_v9 }
 0xef2   : > { %v14146_v46 = vpack.c.bf16 %v10032_v40, %v10031_v54 }
 0xef4   : > { %14148 = vmatpush3.bf16.msk.msra.mxu0 %vm14147_vm1, %v14146_v46 }
 0xef5   : > { %14155 = vmatprep.subr.bf16.mxu0 %v17845_v30 }
 0xef7   : > { %13704 = vmatmul.mubr.msk.f32.vlgmr.msra.gmra.mrb[154].mxu0 %vm10033_vm7, %v17009_v53  ;;  %v11512_v53 = vld [vmem:[%s17777_s5 + $0x40] sm:$0xff] }
 0xef8   : > { %14157 = vmatpush3.bf16.msra.mxu0 %v14156_v16  ;;  %13725 = vmatprep.mubr.msk.f32.mxu0 %vm14684_vm3, %v17833_v51  ;;  %v14162_v34 = vpack.c.bf16 %v11513_v19, %v11512_v53 }
 0xef9   : > { %14158 = vmatprep.subr.bf16.mxu0 %v17845_v30 }
 0xefc   : > { %14160 = vmatpush3.bf16.msra.mxu0 %v14159_v48 }
 0xefd   : > { %14167 = vmatprep.subr.bf16.mxu0 %v17845_v30 }
 0xfca   : > { %v17607_v47 = vpop.f32.mrb[154].mxu0 }
 0xfcb   : > { %13726 = vmatmul.mubr.msk.f32.vlgmr.msra.gmra.mrb[156].mxu0 %vm1787_vm6, %v17607_v47  ;;  %v10119_v27 = vrot.slane %v17607_v47, 1  ;;  %v13705_v52 = vpop.f32.mrb[155].mxu0  ;;  %v10348_v1 = vrot.slane %v17607_v47, 3  ;;  %v10269_v44 = vrot.slane %v17607_v47, 2  ;;  %v10506_v0 = vrot.slane %v17607_v47, 5 }
 0xfcc   : > { %14169 = vmatpush3.bf16.msra.mxu0 %v14168_v50  ;;  %13747 = vmatprep.mubr.msk.f32.mxu0 %vm14684_vm3, %v17833_v51  ;;  %v10427_v32 = vrot.slane %v17607_v47, 4  ;;  %v10664_v56 = vrot.slane %v17607_v47, 7  ;;  %v10585_v57 = vrot.slane %v17607_v47, 6 }
 0xfcd   : > { %13715 = vmatmul.mubr.msk.f32.vlgmr.msra.gmra.mrb[238].mxu1 %vm1787_vm6, %v10119_v27  ;;  %14170 = vmatprep.subr.bf16.mxu0 %v17845_v30  ;;  %v10738_v27 = vld [vmem:[%s17778_s6] sm:$0x1] }
 0xfce   : > { %14163 = vmatpush3.bf16.msra.mxu1 %v14162_v34  ;;  %13736 = vmatprep.mubr.msk.f32.mxu1 %vm14684_vm3, %v17833_v51 }
 0xfcf   : > { %14164 = vmatprep.subr.bf16.mxu1 %v17845_v30 }
 0xfd0   : > { %14172 = vmatpush3.bf16.msra.mxu0 %v14171_v60  ;;  %v10745_v60 = vld [vmem:[%s17780_s8] sm:$0x1] }
 0xfd1   : > { %14179 = vmatprep.subr.bf16.mxu0 %v17845_v30 }
 0xfd2   : > { %14166 = vmatpush3.bf16.msra.mxu1 %v14165_v62 }
 0xfd3   : > { %13748 = vmatmul.mubr.msk.f32.vlgmr.msra.gmra.mrb[158].mxu0 %vm1787_vm6, %v10348_v1  ;;  %14173 = vmatprep.subr.bf16.mxu1 %v17845_v30 }
 0xfd4   : > { %14181 = vmatpush3.bf16.msra.mxu0 %v14180_v37  ;;  %13769 = vmatprep.mubr.msk.f32.mxu0 %vm14684_vm3, %v17833_v51 }
 0xfd5   : > { %13737 = vmatmul.mubr.msk.f32.vlgmr.msra.gmra.mrb[240].mxu1 %vm1787_vm6, %v10269_v44  ;;  %14182 = vmatprep.subr.bf16.mxu0 %v17845_v30 }
 0xfd6   : > { %14175 = vmatpush3.bf16.msra.mxu1 %v14174_v58  ;;  %13758 = vmatprep.mubr.msk.f32.mxu1 %vm14684_vm3, %v17833_v51 }
 0xfd7   : > { %14176 = vmatprep.subr.bf16.mxu1 %v17845_v30 }
 0xfd8   : > { %14184 = vmatpush3.bf16.msra.mxu0 %v14183_v43 }
 0xfd9   : > { %14191 = vmatprep.subr.bf16.mxu0 %v17845_v30 }
 0xfda   : > { %14178 = vmatpush3.bf16.msra.mxu1 %v14177_v8 }
 0xfdb   : > { %13770 = vmatmul.mubr.msk.f32.vlgmr.msra.gmra.mrb[160].mxu0 %vm1787_vm6, %v10506_v0  ;;  %14185 = vmatprep.subr.bf16.mxu1 %v17845_v30 }
 0xfdc   : > { %14193 = vmatpush3.bf16.msra.mxu0 %v14192_v18  ;;  %13791 = vmatprep.mubr.msk.f32.mxu0 %vm14684_vm3, %v17833_v51 }
 0xfdd   : > { %13759 = vmatmul.mubr.msk.f32.vlgmr.msra.gmra.mrb[242].mxu1 %vm1787_vm6, %v10427_v32  ;;  %14194 = vmatprep.subr.bf16.mxu0 %v17845_v30 }
 0xfde   : > { %14187 = vmatpush3.bf16.msra.mxu1 %v14186_v2  ;;  %13780 = vmatprep.mubr.msk.f32.mxu1 %vm14684_vm3, %v17833_v51 }
 0xfdf   : > { %14188 = vmatprep.subr.bf16.mxu1 %v17845_v30 }
 0xfe0   : > { %14196 = vmatpush3.bf16.msra.mxu0 %v14195_v15 }
 0xfe2   : > { %14190 = vmatpush3.bf16.msra.mxu1 %v14189_v63 }
 0xfe3   : > { %13792 = vmatmul.mubr.msk.f32.vlgmr.msra.gmra.mrb[162].mxu0 %vm1787_vm6, %v10664_v56  ;;  %14197 = vmatprep.subr.bf16.mxu1 %v17845_v30 }
 0xfe5   : > { %13781 = vmatmul.mubr.msk.f32.vlgmr.msra.gmra.mrb[244].mxu1 %vm1787_vm6, %v10585_v57 }
 0xfe6   : > { %13802 = vmatprep.mubr.msk.f32.mxu1 %vm14684_vm3, %v17833_v51  ;;  %14199 = vmatpush3.bf16.msra.mxu1 %v14198_v31 }
 0xfe7   : > { %14200 = vmatprep.subr.bf16.mxu1 %v17845_v30 }
 0xfea   : > { %14202 = vmatpush3.bf16.msra.mxu1 %v14201_v28 }
0x109e   : > { %v10260_v51 = vpop.f32.mrb[156].mxu0 }
0x109f   : > { %v13727_v6 = vpop.f32.mrb[157].mxu0 }
0x10a0   : > { %v10188_v54 = vpop.f32.mrb[238].mxu1 }
0x10a1   : > { %v10261_v45 = vadd.f32 %v10260_v51, %v10188_v54  ;;  %v13716_v40 = vpop.f32.mrb[239].mxu1 }
0x10a6   : > { %v10417_v38 = vpop.f32.mrb[158].mxu0 }
0x10a7   : > { %v13749_v41 = vpop.f32.mrb[159].mxu0 }
0x10a8   : > { %v10338_v46 = vpop.f32.mrb[240].mxu1 }
0x10a9   : > { %v10342_v16 = vadd.f32 %v10338_v46, %v10261_v45  ;;  %v13738_v12 = vpop.f32.mrb[241].mxu1 }
0x10ab   : > { %v10421_v5 = vadd.f32 %v10417_v38, %v10342_v16 }
0x10ae   : > { %v10575_v48 = vpop.f32.mrb[160].mxu0 }
0x10af   : > { %v13771_v13 = vpop.f32.mrb[161].mxu0 }
0x10b0   : > { %v10496_v21 = vpop.f32.mrb[242].mxu1 }
0x10b1   : > { %v10500_v53 = vadd.f32 %v10496_v21, %v10421_v5  ;;  %v13760_v19 = vpop.f32.mrb[243].mxu1 }
0x10b3   : > { %v10579_v30 = vadd.f32 %v10575_v48, %v10500_v53 }
0x10b6   : > { %v10733_v50 = vpop.f32.mrb[162].mxu0 }
0x10b7   : > { %v13793_v26 = vpop.f32.mrb[163].mxu0 }
0x10b8   : > { %v10654_v11 = vpop.f32.mrb[244].mxu1 }
0x10b9   : > { %v10658_v47 = vadd.f32 %v10654_v11, %v10579_v30  ;;  %v13782_v34 = vpop.f32.mrb[245].mxu1 }
0x10bb   : > { %v10737_v7 = vadd.f32 %v10733_v50, %v10658_v47 }
0x10bd   : > { %v10739_v4 = vadd.f32 %v10738_v27, %v10737_v7 }
0x10bf   : > { %v10740_v52 = vmax.f32 %v10739_v4, 0.0 }
0x10c1   : > { %13803 = vmatmul.mubr.msk.f32.vlgmr.msra.gmra.mrb[246].mxu1 %vm1787_vm6, %v10740_v52 }
0x1194   : > { %v10815_v35 = vpop.f32.mrb[246].mxu1 }
0x1195   : > { %v10816_v10 = vadd.f32 %v10815_v35, %v10745_v60  ;;  %v13804_v62 = vpop.f32.mrb[247].mxu1 }
0x1197   : > { %10819 = vst.msk [vmem:[%s339_s25] sm:$0x1] %vm7511_vm10, %v10816_v10 }
0x1198   : > { %14622 = shalt.err (!%p14619_p7)
}
0x1199   : > { %s14623_s23 = scalar_lea.hbm %s17729_s29, 16  ;;  %s14627_s25 = scalar_lea.hbm %s17781_s9, 32 }
0x119a   : > { %p14624_p8 = scmp.ne.s32.totalorder %s17729_s29, %s14623_s23  ;;  %p14628_p1 = scmp.lt.u32.totalorder %s17729_s29, %s17781_s9 }
0x119b   : > { %p14629_p0 = scmp.lt.u32.totalorder %s14627_s25, %s14623_s23  ;;  %p14631_p6 = scmp.lt.u32.totalorder %s14623_s23, %s17729_s29 }
0x119c   : > { %p14625_p11 = pnand %p14624_p8, %p17912_p9 }
0x119d   : > { %p14630_p5 = por %p14629_p0, %p14628_p1 }
0x119e   : > { %p14626_p13 = pneg %p14625_p11 }
0x119f   : > { %p14632_p10 = por %p14631_p6, %p14630_p5 }
0x11a1   : > { %p14633_p12 = pnand %p14632_p10, %p14626_p13 }
0x11a3   : > { %14636 = shalt.err (!%p14633_p12)
}
0x11a4   : > { %14524 = dma.vmem_to_hbm [thread:$0]  (%p17912_p9), %s17731_s26, 16, %s17729_s29, %s10821_s24  }
0x11a5 PF: > { %p14536_p2 = scmp.ge.s32.totalorder %s14675_s12, 2  ;;  %s10845_s14 = sand.u32 1, %s14663_s30  }
0x11a6   : > { %p17913_p3 = scmp.ne.s32.totalorder %s17798_s20, 0  ;;  %s10846_s13 = scalar_lea.sflag [#allocation5], %s10845_s14 }
0x11a8   : > { %p14531_p4 = pnand %p14536_p2, %p17913_p3 }
0x11aa   : > { %14658 = dma.done.wait (!%p14531_p4), %s10846_s13, 16  }
0x11ab   : > { %14660 = vsyncadd (!%p14531_p4), %s10846_s13, 4294967280  ;;  %p20_p7 = scmp.ge.s32.totalorder %s14761_s15, 4   ;;  %s17914_s30 = smov %s14667_s10 }
0x11ac   : > { %s17915_s10 = smov %s14671_s11  ;;  %s17916_s11 = smov %s14772_s18 }
0x11ad   : > { %s17917_s12 = smov %s14761_s15  ;;  %22 = sbr.rel (!%p20_p7) target bundleno = 4 (0x4), region = 111 }
0x11b4   :  { %10850 = vsyncpa [#allocation4], 1 }
0x11b5   :  { %10852 = vsyncpa [#allocation4 + $0x1], 1 }
0x11b6   :  { %10853 = vsyncpa [#allocation5], 1 }
0x11b7   :  { %10855 = vsyncpa [#allocation5 + $0x1], 1 }

</bundles_post_ra>
